<compile_context>
chip_gen: v5e
topology: v5e:2x2
jax: 0.10.0
libtpu: 0.0.40
codegen_flags: <defaults>
</compile_context>

<pallas_src>
import functools

import jax
import jax.numpy as jnp
from jax.experimental import pallas as pl
from jax.experimental.pallas import tpu as pltpu


def _round_up(x, m):
    return (x + m - 1) // m * m


# ---------------------------------------------------------------------------
# Fused kernel: conv1+pool1, conv2+pool2, conv3/4/5, classifier  (per sample)
# ---------------------------------------------------------------------------

def _alexnet_kernel(patches_ref,
                    c1w_ref, c1b_ref, c2w_ref, c2b_ref, c3w_ref, c3b_ref,
                    c4w_ref, c4b_ref, c5w_ref, c5b_ref,
                    f1w_ref, f1b_ref, f2w_ref, f2b_ref, f3w_ref, f3b_ref,
                    out_ref,
                    f1s_ref, x2s_ref, x2b_ref, c2s_ref,
                    x3s_ref, x3b_ref, x4s_ref, x4b_ref, x5s_ref, x5b_ref,
                    *, oh1, w1p, ph1, pw1, wp2, ph2, pw2, wp3, oh3, ow3):
    f32, bf16 = jnp.float32, jnp.bfloat16

    # ----- conv1: one lane-dense K=256 MXU dot on the prebuilt im2col --------
    a1 = jnp.dot(patches_ref[0], c1w_ref[...], preferred_element_type=f32)
    a1 = jnp.maximum(a1 + c1b_ref[...], 0.0)                # (oh1*w1p, 128)
    # single bulk store into the spatial scratch (tile-aligned reshape)
    f1s_ref[...] = a1.reshape(oh1, w1p, a1.shape[-1])

    # ----- maxpool1: 3x3 / stride 2 via strided VMEM window reads ------------
    pooled1 = None
    for di in range(3):
        for dj in range(3):
            win = f1s_ref[pl.ds(di, ph1, stride=2), pl.ds(dj, pw1, stride=2), :]
            pooled1 = win if pooled1 is None else jnp.maximum(pooled1, win)
    # pooled1: (ph1, pw1, 128) f32

    # ----- conv2 zero-ring padded flat input; cast to bf16 once --------------
    x2s_ref[...] = jnp.zeros(x2s_ref.shape, x2s_ref.dtype)
    for a in range(ph1):
        x2s_ref[pl.ds((a + 2) * wp2 + 2, pw1), :] = pooled1[a]
    x2b_ref[...] = x2s_ref[...].astype(bf16)

    # ----- conv2: 5x5 shifted-slice conv, taps paired to K=256 ---------------
    k2 = 5
    oh2 = ph1
    r2 = oh2 * wp2
    acc2 = jnp.zeros((r2, c2w_ref.shape[2]), f32)
    for pr in range(c2w_ref.shape[0]):
        t0 = 2 * pr
        t1 = min(2 * pr + 1, k2 * k2 - 1)   # last pair: zero-weight dummy tap
        o0 = (t0 // k2) * wp2 + (t0 % k2)
        o1 = (t1 // k2) * wp2 + (t1 % k2)
        lhs = jnp.concatenate(
            [x2b_ref[pl.ds(o0, r2), :], x2b_ref[pl.ds(o1, r2), :]], axis=1)
        acc2 = acc2 + jnp.dot(lhs, c2w_ref[pr], preferred_element_type=f32)
    acc2 = jnp.maximum(acc2 + c2b_ref[...], 0.0)
    c2s_ref[...] = acc2.reshape(oh2, wp2, acc2.shape[-1])   # single bulk store

    # ----- maxpool2 -----------------------------------------------------------
    pooled2 = None
    for di in range(3):
        for dj in range(3):
            win = c2s_ref[pl.ds(di, ph2, stride=2), pl.ds(dj, pw2, stride=2), :]
            pooled2 = win if pooled2 is None else jnp.maximum(pooled2, win)
    # pooled2: (ph2, pw2, 128) f32

    # ----- conv3 zero-ring padded flat input ----------------------------------
    x3s_ref[...] = jnp.zeros(x3s_ref.shape, x3s_ref.dtype)
    for a in range(ph2):
        x3s_ref[pl.ds((a + 1) * wp3 + 1, pw2), :] = pooled2[a]
    x3b_ref[...] = x3s_ref[...].astype(bf16)

    # ----- conv3 / conv4 / conv5: 3x3 shifted-slice convs ---------------------
    r3 = oh3 * wp3
    ncopy = (oh3 - 1) * wp3 + ow3           # rows that hold valid outputs
    col = jax.lax.broadcasted_iota(jnp.int32, (r3, 256), 0) % wp3
    keep = col < ow3                        # mask away garbage columns

    def conv3x3(src_ref, w_ref, b_ref):
        acc = jnp.zeros((r3, w_ref.shape[2]), f32)
        for ki in range(3):
            for kj in range(3):
                acc = acc + jnp.dot(src_ref[pl.ds(ki * wp3 + kj, r3), :],
                                    w_ref[ki * 3 + kj],
                                    preferred_element_type=f32)
        return jnp.maximum(acc + b_ref[...], 0.0)

    def repad(dst32_ref, dst16_ref, act):
        # Zero-ring re-pad for the next 3x3 conv: one masked bulk copy
        # (garbage columns zeroed land on ring/unused positions), then one
        # full-buffer bf16 cast.
        dst32_ref[...] = jnp.zeros(dst32_ref.shape, dst32_ref.dtype)
        dst32_ref[pl.ds(wp3 + 1, ncopy), :] = jnp.where(keep, act, 0.0)[:ncopy]
        dst16_ref[...] = dst32_ref[...].astype(bf16)

    a3 = conv3x3(x3b_ref, c3w_ref, c3b_ref)                 # (r3, 256)
    repad(x4s_ref, x4b_ref, a3)
    a4 = conv3x3(x4b_ref, c4w_ref, c4b_ref)                 # (r3, 256)
    repad(x5s_ref, x5b_ref, a4)
    a5 = conv3x3(x5b_ref, c5w_ref, c5b_ref).astype(bf16)    # (r3, 128)

    # ----- classifier (per sample) --------------------------------------------
    # TODO(synk): nn.Dropout layers are identity here (eval-mode semantics).
    h = jnp.zeros((1, f1w_ref.shape[2]), f32)
    for a in range(oh3):
        for b in range(ow3):
            r = a * wp3 + b
            h = h + jnp.dot(a5[r:r + 1, :], f1w_ref[a * ow3 + b],
                            preferred_element_type=f32)
    h = jnp.maximum(h + f1b_ref[...], 0.0)
    h = jnp.dot(h.astype(bf16), f2w_ref[...], preferred_element_type=f32)
    h = jnp.maximum(h + f2b_ref[...], 0.0)
    h = jnp.dot(h.astype(bf16), f3w_ref[...], preferred_element_type=f32)
    h = h + f3b_ref[...]
    out_ref[0, :, :] = jnp.broadcast_to(h, out_ref.shape[1:])


# ---------------------------------------------------------------------------
# pallas_call wrapper
# ---------------------------------------------------------------------------

def _alexnet_pallas(patches, p, *, n, oh1, w1p, ph1, pw1, wp2, alloc2,
                    ph2, pw2, wp3, alloc3):
    oh2 = ph1
    oh3, ow3 = ph2, pw2
    kernel = functools.partial(
        _alexnet_kernel, oh1=oh1, w1p=w1p, ph1=ph1, pw1=pw1, wp2=wp2,
        ph2=ph2, pw2=pw2, wp3=wp3, oh3=oh3, ow3=ow3)

    weight_order = ("c1_w", "c1_b", "c2_w", "c2_b", "c3_w", "c3_b",
                    "c4_w", "c4_b", "c5_w", "c5_b",
                    "f1_w", "f1_b", "f2_w", "f2_b", "f3_w", "f3_b")
    weights = [p[k] for k in weight_order]

    def const_spec(a):
        return pl.BlockSpec(a.shape, lambda i, _z=(0,) * a.ndim: _z)

    in_specs = ([pl.BlockSpec((1,) + patches.shape[1:], lambda i: (i, 0, 0))]
                + [const_spec(a) for a in weights])

    return pl.pallas_call(
        kernel,
        out_shape=jax.ShapeDtypeStruct((n, 8, 128), jnp.float32),
        grid=(n,),
        in_specs=in_specs,
        out_specs=pl.BlockSpec((1, 8, 128), lambda i: (i, 0, 0)),
        scratch_shapes=[
            pltpu.VMEM((oh1, w1p, 128), jnp.float32),    # conv1 spatial out
            pltpu.VMEM((alloc2, 128), jnp.float32),      # conv2 padded in (f32)
            pltpu.VMEM((alloc2, 128), jnp.bfloat16),     # conv2 padded in (bf16)
            pltpu.VMEM((oh2, wp2, 128), jnp.float32),    # conv2 spatial out
            pltpu.VMEM((alloc3, 128), jnp.float32),      # conv3 padded in (f32)
            pltpu.VMEM((alloc3, 128), jnp.bfloat16),     # conv3 padded in (bf16)
            pltpu.VMEM((alloc3, 256), jnp.float32),      # conv4 padded in (f32)
            pltpu.VMEM((alloc3, 256), jnp.bfloat16),     # conv4 padded in (bf16)
            pltpu.VMEM((alloc3, 256), jnp.float32),      # conv5 padded in (f32)
            pltpu.VMEM((alloc3, 256), jnp.bfloat16),     # conv5 padded in (bf16)
        ],
        compiler_params=pltpu.CompilerParams(
            dimension_semantics=("parallel",)),
    )(patches, *weights)


# ---------------------------------------------------------------------------
# Parameters (PyTorch layouts) and kernel-layout preparation
# ---------------------------------------------------------------------------

def init_params(key, num_classes):
    def w_init(k, shape, scale=0.05):
        return scale * jax.random.normal(k, shape, dtype=jnp.float32)

    ks = jax.random.split(key, 16)
    return {
        "c1_w": w_init(ks[0], (64, 3, 7, 7)),    "c1_b": w_init(ks[1], (64,)),
        "c2_w": w_init(ks[2], (128, 64, 5, 5)),  "c2_b": w_init(ks[3], (128,)),
        "c3_w": w_init(ks[4], (256, 128, 3, 3)), "c3_b": w_init(ks[5], (256,)),
        "c4_w": w_init(ks[6], (256, 256, 3, 3)), "c4_b": w_init(ks[7], (256,)),
        "c5_w": w_init(ks[8], (128, 256, 3, 3)), "c5_b": w_init(ks[9], (128,)),
        "f1_w": w_init(ks[10], (32, 3 * 3 * 128)), "f1_b": w_init(ks[11], (32,)),
        "f2_w": w_init(ks[12], (32, 32)),          "f2_b": w_init(ks[13], (32,)),
        "f3_w": w_init(ks[14], (num_classes, 32)),
        "f3_b": w_init(ks[15], (num_classes,)),
    }


def prepare_params(params, num_classes, ncp=128):
    """One-time conversion of PyTorch-layout params to kernel layouts."""
    assert num_classes <= ncp

    def conv_w(w, icp=None, ocp=None):
        oc, ic, kh, kw = w.shape
        icp = ic if icp is None else icp
        ocp = oc if ocp is None else ocp
        wt = jnp.transpose(w, (2, 3, 1, 0))                 # (kh, kw, ic, oc)
        wt = jnp.pad(wt, ((0, 0), (0, 0), (0, icp - ic), (0, ocp - oc)))
        return wt.reshape(kh * kw, icp, ocp).astype(jnp.bfloat16)

    def vec(b, cp=None):
        cp = b.shape[0] if cp is None else cp
        return jnp.pad(b, (0, cp - b.shape[0])).reshape(1, cp).astype(jnp.float32)

    # conv1: a single flat (K, OC) operand; K padded 147 -> 256, OC 64 -> 128.
    w1 = jnp.transpose(params["c1_w"], (2, 3, 1, 0)).reshape(7 * 7 * 3, 64)
    w1 = jnp.pad(w1, ((0, 256 - 147), (0, 128 - 64))).astype(jnp.bfloat16)

    # conv2: IC 64 -> 128 (conv1's padded channels are zero activations);
    # adjacent taps paired along the contraction so each dot is K=256.
    w2 = conv_w(params["c2_w"], icp=128)                    # (25, 128, 128)
    w2 = jnp.concatenate([w2, jnp.zeros((1, 128, 128), w2.dtype)], axis=0)
    w2 = w2.reshape(13, 256, 128)

    # f1: PyTorch flatten order is (C, H, W); ours is (H, W, C) -> reorder and
    # express the Linear as 9 per-position (C_in x C_out) tap matrices.
    f1 = params["f1_w"].reshape(32, 128, 3, 3)              # (out, c, h, w)
    f1 = jnp.transpose(f1, (2, 3, 1, 0)).reshape(9, 128, 32)
    f1 = jnp.pad(f1, ((0, 0), (0, 0), (0, 128 - 32))).astype(jnp.bfloat16)
    f2 = jnp.pad(params["f2_w"].T, ((0, 128 - 32), (0, 128 - 32))
                 ).astype(jnp.bfloat16)
    f3 = jnp.pad(params["f3_w"].T, ((0, 128 - 32), (0, ncp - num_classes))
                 ).astype(jnp.bfloat16)

    return {
        "c1_w": w1, "c1_b": vec(params["c1_b"], 128),
        "c2_w": w2, "c2_b": vec(params["c2_b"]),
        "c3_w": conv_w(params["c3_w"]), "c3_b": vec(params["c3_b"]),
        "c4_w": conv_w(params["c4_w"]), "c4_b": vec(params["c4_b"]),
        "c5_w": conv_w(params["c5_w"]), "c5_b": vec(params["c5_b"]),
        "f1_w": f1, "f1_b": vec(params["f1_b"], 128),
        "f2_w": f2, "f2_b": vec(params["f2_b"], 128),
        "f3_w": f3, "f3_b": vec(params["f3_b"], ncp),
    }


# ---------------------------------------------------------------------------
# Forward pass
# ---------------------------------------------------------------------------

def _conv1_patches(x, *, oh1, ow1, w1p, kdim):
    """im2col for conv1 (7x7, stride 2, pad 2), fused by XLA with pad + cast.

    Returns (n, oh1*w1p, kdim) bf16; patch-column order is (ki, kj, c) to
    match the prepared conv1 weight.  The output-column axis is padded
    ow1 -> w1p and the patch axis 147 -> kdim so all kernel operands and the
    in-kernel spatial reshape are lane/sublane dense.
    """
    n = x.shape[0]
    xp = jnp.pad(x, ((0, 0), (0, 0), (2, 2), (2, 2)))       # NCHW, padded
    cols = [xp[:, :, ki:ki + 2 * oh1 - 1:2, kj:kj + 2 * ow1 - 1:2]
            for ki in range(7) for kj in range(7)]          # each (n,3,oh1,ow1)
    pt = jnp.stack(cols, axis=1)                            # (n,49,3,oh1,ow1)
    pt = jnp.transpose(pt, (0, 3, 4, 1, 2)).reshape(n, oh1, ow1, 7 * 7 * 3)
    pt = jnp.pad(pt, ((0, 0), (0, 0), (0, w1p - ow1), (0, kdim - 7 * 7 * 3)))
    return pt.astype(jnp.bfloat16).reshape(n, oh1 * w1p, kdim)


def alexnet_forward(p, x, *, num_classes):
    n, cin, h, w = x.shape
    assert cin == 3
    # conv1: 7x7 / stride 2 / pad 2 ; pools: 3x3 / stride 2
    oh1 = (h + 4 - 7) // 2 + 1
    ow1 = (w + 4 - 7) // 2 + 1
    ph1 = (oh1 - 3) // 2 + 1
    pw1 = (ow1 - 3) // 2 + 1
    ph2 = (ph1 - 3) // 2 + 1
    pw2 = (pw1 - 3) // 2 + 1
    # The classifier hard-codes a 3x3x128 feature map (Linear(3*3*128, 32)).
    assert (ph2, pw2) == (3, 3), (ph2, pw2)

    w1p = _round_up(ow1, 8)                      # conv1 spatial width, padded
    wp2 = _round_up(pw1 + 4, 8)                  # conv2 padded-input width
    alloc2 = _round_up(ph1 * wp2 + 4 * wp2 + 4, 8)
    wp3 = _round_up(pw2 + 2, 8)                  # conv3/4/5 padded-input width
    alloc3 = _round_up(ph2 * wp3 + 2 * wp3 + 2, 8)

    patches = _conv1_patches(x, oh1=oh1, ow1=ow1, w1p=w1p,
                             kdim=p["c1_w"].shape[0])

    out = _alexnet_pallas(patches, p, n=n, oh1=oh1, w1p=w1p, ph1=ph1, pw1=pw1,
                          wp2=wp2, alloc2=alloc2, ph2=ph2, pw2=pw2,
                          wp3=wp3, alloc3=alloc3)
    return out[:, 0, :num_classes]


if __name__ == "__main__":
    num_classes = 10
    key = jax.random.PRNGKey(0)
    pkey, xkey = jax.random.split(key)

    params = init_params(pkey, num_classes)
    prepared = prepare_params(params, num_classes)

    # 32x32 input so the feature map reaches 3x3x128 = 1152 (classifier input).
    x = jax.random.normal(xkey, (2, 3, 32, 32), dtype=jnp.float32)

    fwd = jax.jit(functools.partial(alexnet_forward, num_classes=num_classes))
    out = jax.block_until_ready(fwd(prepared, x))

    assert out.shape == (2, num_classes), out.shape
    assert bool(jnp.all(jnp.isfinite(out)))
    print("KERNEL_OK")
</pallas_src>

<mosaic_0001>
module attributes {stable_mosaic.version = 11 : i64} {
  func.func @_alexnet_kernel(%arg0: i32, %arg1: memref<1x240x256xbf16, #tpu.memory_space<vmem>>, %arg2: memref<256x128xbf16, #tpu.memory_space<vmem>>, %arg3: memref<1x128xf32, #tpu.memory_space<vmem>>, %arg4: memref<13x256x128xbf16, #tpu.memory_space<vmem>>, %arg5: memref<1x128xf32, #tpu.memory_space<vmem>>, %arg6: memref<9x128x256xbf16, #tpu.memory_space<vmem>>, %arg7: memref<1x256xf32, #tpu.memory_space<vmem>>, %arg8: memref<9x256x256xbf16, #tpu.memory_space<vmem>>, %arg9: memref<1x256xf32, #tpu.memory_space<vmem>>, %arg10: memref<9x256x128xbf16, #tpu.memory_space<vmem>>, %arg11: memref<1x128xf32, #tpu.memory_space<vmem>>, %arg12: memref<9x128x128xbf16, #tpu.memory_space<vmem>>, %arg13: memref<1x128xf32, #tpu.memory_space<vmem>>, %arg14: memref<128x128xbf16, #tpu.memory_space<vmem>>, %arg15: memref<1x128xf32, #tpu.memory_space<vmem>>, %arg16: memref<128x128xbf16, #tpu.memory_space<vmem>>, %arg17: memref<1x128xf32, #tpu.memory_space<vmem>>, %arg18: memref<1x8x128xf32, #tpu.memory_space<vmem>>, %arg19: memref<15x16x128xf32, #tpu.memory_space<vmem>>, %arg20: memref<184x128xf32, #tpu.memory_space<vmem>>, %arg21: memref<184x128xbf16, #tpu.memory_space<vmem>>, %arg22: memref<7x16x128xf32, #tpu.memory_space<vmem>>, %arg23: memref<48x128xf32, #tpu.memory_space<vmem>>, %arg24: memref<48x128xbf16, #tpu.memory_space<vmem>>, %arg25: memref<48x256xf32, #tpu.memory_space<vmem>>, %arg26: memref<48x256xbf16, #tpu.memory_space<vmem>>, %arg27: memref<48x256xf32, #tpu.memory_space<vmem>>, %arg28: memref<48x256xbf16, #tpu.memory_space<vmem>>) attributes {dimension_semantics = [#tpu.dimension_semantics<parallel>], iteration_bounds = array<i64: 2>, scalar_prefetch = 0 : i64, scratch_operands = 10 : i64, tpu.core_type = #tpu.core_type<tc>, window_params = [{transform_indices = @transform_0, window_bounds = array<i64: 1, 240, 256>}, {pipeline_mode = #tpu.pipeline_mode<synchronous>, transform_indices = @transform_1, window_bounds = array<i64: 256, 128>}, {pipeline_mode = #tpu.pipeline_mode<synchronous>, transform_indices = @transform_2, window_bounds = array<i64: 1, 128>}, {pipeline_mode = #tpu.pipeline_mode<synchronous>, transform_indices = @transform_3, window_bounds = array<i64: 13, 256, 128>}, {pipeline_mode = #tpu.pipeline_mode<synchronous>, transform_indices = @transform_4, window_bounds = array<i64: 1, 128>}, {pipeline_mode = #tpu.pipeline_mode<synchronous>, transform_indices = @transform_5, window_bounds = array<i64: 9, 128, 256>}, {pipeline_mode = #tpu.pipeline_mode<synchronous>, transform_indices = @transform_6, window_bounds = array<i64: 1, 256>}, {pipeline_mode = #tpu.pipeline_mode<synchronous>, transform_indices = @transform_7, window_bounds = array<i64: 9, 256, 256>}, {pipeline_mode = #tpu.pipeline_mode<synchronous>, transform_indices = @transform_8, window_bounds = array<i64: 1, 256>}, {pipeline_mode = #tpu.pipeline_mode<synchronous>, transform_indices = @transform_9, window_bounds = array<i64: 9, 256, 128>}, {pipeline_mode = #tpu.pipeline_mode<synchronous>, transform_indices = @transform_10, window_bounds = array<i64: 1, 128>}, {pipeline_mode = #tpu.pipeline_mode<synchronous>, transform_indices = @transform_11, window_bounds = array<i64: 9, 128, 128>}, {pipeline_mode = #tpu.pipeline_mode<synchronous>, transform_indices = @transform_12, window_bounds = array<i64: 1, 128>}, {pipeline_mode = #tpu.pipeline_mode<synchronous>, transform_indices = @transform_13, window_bounds = array<i64: 128, 128>}, {pipeline_mode = #tpu.pipeline_mode<synchronous>, transform_indices = @transform_14, window_bounds = array<i64: 1, 128>}, {pipeline_mode = #tpu.pipeline_mode<synchronous>, transform_indices = @transform_15, window_bounds = array<i64: 128, 128>}, {pipeline_mode = #tpu.pipeline_mode<synchronous>, transform_indices = @transform_16, window_bounds = array<i64: 1, 128>}, {transform_indices = @transform_17, window_bounds = array<i64: 1, 8, 128>}]} {
    %c0 = arith.constant 0 : index
    %c0_0 = arith.constant 0 : index
    %c0_1 = arith.constant 0 : index
    %0 = vector.load %arg1[%c0, %c0_0, %c0_1] : memref<1x240x256xbf16, #tpu.memory_space<vmem>>, vector<1x240x256xbf16>
    %1 = vector.shape_cast %0 : vector<1x240x256xbf16> to vector<240x256xbf16>
    %c0_2 = arith.constant 0 : index
    %c0_3 = arith.constant 0 : index
    %2 = vector.load %arg2[%c0_2, %c0_3] : memref<256x128xbf16, #tpu.memory_space<vmem>>, vector<256x128xbf16>
    %cst = arith.constant dense<0.000000e+00> : vector<240x128xf32>
    %3 = tpu.matmul %1, %2, %cst {dimension_numbers = #tpu.dot_dimension_numbers<[1], [0], [0], [1], [0, 0, 1, 1], [], []>} : vector<240x256xbf16>, vector<256x128xbf16>, vector<240x128xf32> -> vector<240x128xf32>
    %c0_4 = arith.constant 0 : index
    %c0_5 = arith.constant 0 : index
    %4 = vector.load %arg3[%c0_4, %c0_5] : memref<1x128xf32, #tpu.memory_space<vmem>>, vector<1x128xf32>
    %5 = vector.broadcast %4 : vector<1x128xf32> to vector<240x128xf32>
    %6 = arith.addf %3, %5 : vector<240x128xf32>
    %cst_6 = arith.constant 0.000000e+00 : f32
    %7 = vector.broadcast %cst_6 : f32 to vector<240x128xf32>
    %8 = arith.maximumf %6, %7 : vector<240x128xf32>
    %9 = vector.shape_cast %8 : vector<240x128xf32> to vector<15x16x128xf32>
    %c0_7 = arith.constant 0 : index
    %c0_8 = arith.constant 0 : index
    %c0_9 = arith.constant 0 : index
    %10 = vector.load %arg19[%c0_7, %c0_8, %c0_9] : memref<15x16x128xf32, #tpu.memory_space<vmem>>, vector<15x16x128xf32>
    tpu.vector_store %arg19[%c0_7, %c0_8, %c0_9], %9 {strides = array<i32>} : memref<15x16x128xf32, #tpu.memory_space<vmem>>, vector<15x16x128xf32>,
    %c0_10 = arith.constant 0 : index
    %c0_11 = arith.constant 0 : index
    %c0_12 = arith.constant 0 : index
    %11 = tpu.strided_load %arg19[%c0_10, %c0_11, %c0_12] {strides = array<i32: 2, 2, 1>} : memref<15x16x128xf32, #tpu.memory_space<vmem>>, vector<7x7x128xf32>
    %c0_13 = arith.constant 0 : index
    %c1 = arith.constant 1 : index
    %c0_14 = arith.constant 0 : index
    %12 = tpu.strided_load %arg19[%c0_13, %c1, %c0_14] {strides = array<i32: 2, 2, 1>} : memref<15x16x128xf32, #tpu.memory_space<vmem>>, vector<7x7x128xf32>
    %13 = arith.maximumf %11, %12 : vector<7x7x128xf32>
    %c0_15 = arith.constant 0 : index
    %c2 = arith.constant 2 : index
    %c0_16 = arith.constant 0 : index
    %14 = tpu.strided_load %arg19[%c0_15, %c2, %c0_16] {strides = array<i32: 2, 2, 1>} : memref<15x16x128xf32, #tpu.memory_space<vmem>>, vector<7x7x128xf32>
    %15 = arith.maximumf %13, %14 : vector<7x7x128xf32>
    %c1_17 = arith.constant 1 : index
    %c0_18 = arith.constant 0 : index
    %c0_19 = arith.constant 0 : index
    %16 = tpu.strided_load %arg19[%c1_17, %c0_18, %c0_19] {strides = array<i32: 2, 2, 1>} : memref<15x16x128xf32, #tpu.memory_space<vmem>>, vector<7x7x128xf32>
    %17 = arith.maximumf %15, %16 : vector<7x7x128xf32>
    %c1_20 = arith.constant 1 : index
    %c1_21 = arith.constant 1 : index
    %c0_22 = arith.constant 0 : index
    %18 = tpu.strided_load %arg19[%c1_20, %c1_21, %c0_22] {strides = array<i32: 2, 2, 1>} : memref<15x16x128xf32, #tpu.memory_space<vmem>>, vector<7x7x128xf32>
    %19 = arith.maximumf %17, %18 : vector<7x7x128xf32>
    %c1_23 = arith.constant 1 : index
    %c2_24 = arith.constant 2 : index
    %c0_25 = arith.constant 0 : index
    %20 = tpu.strided_load %arg19[%c1_23, %c2_24, %c0_25] {strides = array<i32: 2, 2, 1>} : memref<15x16x128xf32, #tpu.memory_space<vmem>>, vector<7x7x128xf32>
    %21 = arith.maximumf %19, %20 : vector<7x7x128xf32>
    %c2_26 = arith.constant 2 : index
    %c0_27 = arith.constant 0 : index
    %c0_28 = arith.constant 0 : index
    %22 = tpu.strided_load %arg19[%c2_26, %c0_27, %c0_28] {strides = array<i32: 2, 2, 1>} : memref<15x16x128xf32, #tpu.memory_space<vmem>>, vector<7x7x128xf32>
    %23 = arith.maximumf %21, %22 : vector<7x7x128xf32>
    %c2_29 = arith.constant 2 : index
    %c1_30 = arith.constant 1 : index
    %c0_31 = arith.constant 0 : index
    %24 = tpu.strided_load %arg19[%c2_29, %c1_30, %c0_31] {strides = array<i32: 2, 2, 1>} : memref<15x16x128xf32, #tpu.memory_space<vmem>>, vector<7x7x128xf32>
    %25 = arith.maximumf %23, %24 : vector<7x7x128xf32>
    %c2_32 = arith.constant 2 : index
    %c2_33 = arith.constant 2 : index
    %c0_34 = arith.constant 0 : index
    %26 = tpu.strided_load %arg19[%c2_32, %c2_33, %c0_34] {strides = array<i32: 2, 2, 1>} : memref<15x16x128xf32, #tpu.memory_space<vmem>>, vector<7x7x128xf32>
    %27 = arith.maximumf %25, %26 : vector<7x7x128xf32>
    %cst_35 = arith.constant 0.000000e+00 : f32
    %28 = vector.broadcast %cst_35 : f32 to vector<184x128xf32>
    %c0_36 = arith.constant 0 : index
    %c0_37 = arith.constant 0 : index
    %29 = vector.load %arg20[%c0_36, %c0_37] : memref<184x128xf32, #tpu.memory_space<vmem>>, vector<184x128xf32>
    tpu.vector_store %arg20[%c0_36, %c0_37], %28 {strides = array<i32>} : memref<184x128xf32, #tpu.memory_space<vmem>>, vector<184x128xf32>,
    %30 = vector.extract_strided_slice %27 {offsets = [0, 0, 0], sizes = [1, 7, 128], strides = [1, 1, 1]} : vector<7x7x128xf32> to vector<1x7x128xf32>
    %31 = vector.shape_cast %30 : vector<1x7x128xf32> to vector<7x128xf32>
    %c34 = arith.constant 34 : index
    %c0_38 = arith.constant 0 : index
    %32 = vector.load %arg20[%c34, %c0_38] : memref<184x128xf32, #tpu.memory_space<vmem>>, vector<7x128xf32>
    tpu.vector_store %arg20[%c34, %c0_38], %31 {strides = array<i32>} : memref<184x128xf32, #tpu.memory_space<vmem>>, vector<7x128xf32>,
    %33 = vector.extract_strided_slice %27 {offsets = [1, 0, 0], sizes = [1, 7, 128], strides = [1, 1, 1]} : vector<7x7x128xf32> to vector<1x7x128xf32>
    %34 = vector.shape_cast %33 : vector<1x7x128xf32> to vector<7x128xf32>
    %c50 = arith.constant 50 : index
    %c0_39 = arith.constant 0 : index
    %35 = vector.load %arg20[%c50, %c0_39] : memref<184x128xf32, #tpu.memory_space<vmem>>, vector<7x128xf32>
    tpu.vector_store %arg20[%c50, %c0_39], %34 {strides = array<i32>} : memref<184x128xf32, #tpu.memory_space<vmem>>, vector<7x128xf32>,
    %36 = vector.extract_strided_slice %27 {offsets = [2, 0, 0], sizes = [1, 7, 128], strides = [1, 1, 1]} : vector<7x7x128xf32> to vector<1x7x128xf32>
    %37 = vector.shape_cast %36 : vector<1x7x128xf32> to vector<7x128xf32>
    %c66 = arith.constant 66 : index
    %c0_40 = arith.constant 0 : index
    %38 = vector.load %arg20[%c66, %c0_40] : memref<184x128xf32, #tpu.memory_space<vmem>>, vector<7x128xf32>
    tpu.vector_store %arg20[%c66, %c0_40], %37 {strides = array<i32>} : memref<184x128xf32, #tpu.memory_space<vmem>>, vector<7x128xf32>,
    %39 = vector.extract_strided_slice %27 {offsets = [3, 0, 0], sizes = [1, 7, 128], strides = [1, 1, 1]} : vector<7x7x128xf32> to vector<1x7x128xf32>
    %40 = vector.shape_cast %39 : vector<1x7x128xf32> to vector<7x128xf32>
    %c82 = arith.constant 82 : index
    %c0_41 = arith.constant 0 : index
    %41 = vector.load %arg20[%c82, %c0_41] : memref<184x128xf32, #tpu.memory_space<vmem>>, vector<7x128xf32>
    tpu.vector_store %arg20[%c82, %c0_41], %40 {strides = array<i32>} : memref<184x128xf32, #tpu.memory_space<vmem>>, vector<7x128xf32>,
    %42 = vector.extract_strided_slice %27 {offsets = [4, 0, 0], sizes = [1, 7, 128], strides = [1, 1, 1]} : vector<7x7x128xf32> to vector<1x7x128xf32>
    %43 = vector.shape_cast %42 : vector<1x7x128xf32> to vector<7x128xf32>
    %c98 = arith.constant 98 : index
    %c0_42 = arith.constant 0 : index
    %44 = vector.load %arg20[%c98, %c0_42] : memref<184x128xf32, #tpu.memory_space<vmem>>, vector<7x128xf32>
    tpu.vector_store %arg20[%c98, %c0_42], %43 {strides = array<i32>} : memref<184x128xf32, #tpu.memory_space<vmem>>, vector<7x128xf32>,
    %45 = vector.extract_strided_slice %27 {offsets = [5, 0, 0], sizes = [1, 7, 128], strides = [1, 1, 1]} : vector<7x7x128xf32> to vector<1x7x128xf32>
    %46 = vector.shape_cast %45 : vector<1x7x128xf32> to vector<7x128xf32>
    %c114 = arith.constant 114 : index
    %c0_43 = arith.constant 0 : index
    %47 = vector.load %arg20[%c114, %c0_43] : memref<184x128xf32, #tpu.memory_space<vmem>>, vector<7x128xf32>
    tpu.vector_store %arg20[%c114, %c0_43], %46 {strides = array<i32>} : memref<184x128xf32, #tpu.memory_space<vmem>>, vector<7x128xf32>,
    %48 = vector.extract_strided_slice %27 {offsets = [6, 0, 0], sizes = [1, 7, 128], strides = [1, 1, 1]} : vector<7x7x128xf32> to vector<1x7x128xf32>
    %49 = vector.shape_cast %48 : vector<1x7x128xf32> to vector<7x128xf32>
    %c130 = arith.constant 130 : index
    %c0_44 = arith.constant 0 : index
    %50 = vector.load %arg20[%c130, %c0_44] : memref<184x128xf32, #tpu.memory_space<vmem>>, vector<7x128xf32>
    tpu.vector_store %arg20[%c130, %c0_44], %49 {strides = array<i32>} : memref<184x128xf32, #tpu.memory_space<vmem>>, vector<7x128xf32>,
    %c0_45 = arith.constant 0 : index
    %c0_46 = arith.constant 0 : index
    %51 = vector.load %arg20[%c0_45, %c0_46] : memref<184x128xf32, #tpu.memory_space<vmem>>, vector<184x128xf32>
    %52 = arith.truncf %51 : vector<184x128xf32> to vector<184x128xbf16>
    %c0_47 = arith.constant 0 : index
    %c0_48 = arith.constant 0 : index
    %53 = vector.load %arg21[%c0_47, %c0_48] : memref<184x128xbf16, #tpu.memory_space<vmem>>, vector<184x128xbf16>
    tpu.vector_store %arg21[%c0_47, %c0_48], %52 {strides = array<i32>} : memref<184x128xbf16, #tpu.memory_space<vmem>>, vector<184x128xbf16>,
    %cst_49 = arith.constant 0.000000e+00 : f32
    %54 = vector.broadcast %cst_49 : f32 to vector<112x128xf32>
    %c0_50 = arith.constant 0 : index
    %c0_51 = arith.constant 0 : index
    %55 = vector.load %arg21[%c0_50, %c0_51] : memref<184x128xbf16, #tpu.memory_space<vmem>>, vector<112x128xbf16>
    %c1_52 = arith.constant 1 : index
    %c0_53 = arith.constant 0 : index
    %56 = vector.load %arg21[%c1_52, %c0_53] : memref<184x128xbf16, #tpu.memory_space<vmem>>, vector<112x128xbf16>
    %57 = tpu.concatenate %55, %56 in 1 : vector<112x128xbf16>, vector<112x128xbf16> -> vector<112x256xbf16>
    %c0_54 = arith.constant 0 : index
    %c0_55 = arith.constant 0 : index
    %c0_56 = arith.constant 0 : index
    %58 = vector.load %arg4[%c0_54, %c0_55, %c0_56] : memref<13x256x128xbf16, #tpu.memory_space<vmem>>, vector<1x256x128xbf16>
    %59 = vector.shape_cast %58 : vector<1x256x128xbf16> to vector<256x128xbf16>
    %cst_57 = arith.constant dense<0.000000e+00> : vector<112x128xf32>
    %60 = tpu.matmul %57, %59, %cst_57 {dimension_numbers = #tpu.dot_dimension_numbers<[1], [0], [0], [1], [0, 0, 1, 1], [], []>} : vector<112x256xbf16>, vector<256x128xbf16>, vector<112x128xf32> -> vector<112x128xf32>
    %61 = arith.addf %54, %60 : vector<112x128xf32>
    %c2_58 = arith.constant 2 : index
    %c0_59 = arith.constant 0 : index
    %62 = vector.load %arg21[%c2_58, %c0_59] : memref<184x128xbf16, #tpu.memory_space<vmem>>, vector<112x128xbf16>
    %c3 = arith.constant 3 : index
    %c0_60 = arith.constant 0 : index
    %63 = vector.load %arg21[%c3, %c0_60] : memref<184x128xbf16, #tpu.memory_space<vmem>>, vector<112x128xbf16>
    %64 = tpu.concatenate %62, %63 in 1 : vector<112x128xbf16>, vector<112x128xbf16> -> vector<112x256xbf16>
    %c1_61 = arith.constant 1 : index
    %c0_62 = arith.constant 0 : index
    %c0_63 = arith.constant 0 : index
    %65 = vector.load %arg4[%c1_61, %c0_62, %c0_63] : memref<13x256x128xbf16, #tpu.memory_space<vmem>>, vector<1x256x128xbf16>
    %66 = vector.shape_cast %65 : vector<1x256x128xbf16> to vector<256x128xbf16>
    %cst_64 = arith.constant dense<0.000000e+00> : vector<112x128xf32>
    %67 = tpu.matmul %64, %66, %cst_64 {dimension_numbers = #tpu.dot_dimension_numbers<[1], [0], [0], [1], [0, 0, 1, 1], [], []>} : vector<112x256xbf16>, vector<256x128xbf16>, vector<112x128xf32> -> vector<112x128xf32>
    %68 = arith.addf %61, %67 : vector<112x128xf32>
    %c4 = arith.constant 4 : index
    %c0_65 = arith.constant 0 : index
    %69 = vector.load %arg21[%c4, %c0_65] : memref<184x128xbf16, #tpu.memory_space<vmem>>, vector<112x128xbf16>
    %c16 = arith.constant 16 : index
    %c0_66 = arith.constant 0 : index
    %70 = vector.load %arg21[%c16, %c0_66] : memref<184x128xbf16, #tpu.memory_space<vmem>>, vector<112x128xbf16>
    %71 = tpu.concatenate %69, %70 in 1 : vector<112x128xbf16>, vector<112x128xbf16> -> vector<112x256xbf16>
    %c2_67 = arith.constant 2 : index
    %c0_68 = arith.constant 0 : index
    %c0_69 = arith.constant 0 : index
    %72 = vector.load %arg4[%c2_67, %c0_68, %c0_69] : memref<13x256x128xbf16, #tpu.memory_space<vmem>>, vector<1x256x128xbf16>
    %73 = vector.shape_cast %72 : vector<1x256x128xbf16> to vector<256x128xbf16>
    %cst_70 = arith.constant dense<0.000000e+00> : vector<112x128xf32>
    %74 = tpu.matmul %71, %73, %cst_70 {dimension_numbers = #tpu.dot_dimension_numbers<[1], [0], [0], [1], [0, 0, 1, 1], [], []>} : vector<112x256xbf16>, vector<256x128xbf16>, vector<112x128xf32> -> vector<112x128xf32>
    %75 = arith.addf %68, %74 : vector<112x128xf32>
    %c17 = arith.constant 17 : index
    %c0_71 = arith.constant 0 : index
    %76 = vector.load %arg21[%c17, %c0_71] : memref<184x128xbf16, #tpu.memory_space<vmem>>, vector<112x128xbf16>
    %c18 = arith.constant 18 : index
    %c0_72 = arith.constant 0 : index
    %77 = vector.load %arg21[%c18, %c0_72] : memref<184x128xbf16, #tpu.memory_space<vmem>>, vector<112x128xbf16>
    %78 = tpu.concatenate %76, %77 in 1 : vector<112x128xbf16>, vector<112x128xbf16> -> vector<112x256xbf16>
    %c3_73 = arith.constant 3 : index
    %c0_74 = arith.constant 0 : index
    %c0_75 = arith.constant 0 : index
    %79 = vector.load %arg4[%c3_73, %c0_74, %c0_75] : memref<13x256x128xbf16, #tpu.memory_space<vmem>>, vector<1x256x128xbf16>
    %80 = vector.shape_cast %79 : vector<1x256x128xbf16> to vector<256x128xbf16>
    %cst_76 = arith.constant dense<0.000000e+00> : vector<112x128xf32>
    %81 = tpu.matmul %78, %80, %cst_76 {dimension_numbers = #tpu.dot_dimension_numbers<[1], [0], [0], [1], [0, 0, 1, 1], [], []>} : vector<112x256xbf16>, vector<256x128xbf16>, vector<112x128xf32> -> vector<112x128xf32>
    %82 = arith.addf %75, %81 : vector<112x128xf32>
    %c19 = arith.constant 19 : index
    %c0_77 = arith.constant 0 : index
    %83 = vector.load %arg21[%c19, %c0_77] : memref<184x128xbf16, #tpu.memory_space<vmem>>, vector<112x128xbf16>
    %c20 = arith.constant 20 : index
    %c0_78 = arith.constant 0 : index
    %84 = vector.load %arg21[%c20, %c0_78] : memref<184x128xbf16, #tpu.memory_space<vmem>>, vector<112x128xbf16>
    %85 = tpu.concatenate %83, %84 in 1 : vector<112x128xbf16>, vector<112x128xbf16> -> vector<112x256xbf16>
    %c4_79 = arith.constant 4 : index
    %c0_80 = arith.constant 0 : index
    %c0_81 = arith.constant 0 : index
    %86 = vector.load %arg4[%c4_79, %c0_80, %c0_81] : memref<13x256x128xbf16, #tpu.memory_space<vmem>>, vector<1x256x128xbf16>
    %87 = vector.shape_cast %86 : vector<1x256x128xbf16> to vector<256x128xbf16>
    %cst_82 = arith.constant dense<0.000000e+00> : vector<112x128xf32>
    %88 = tpu.matmul %85, %87, %cst_82 {dimension_numbers = #tpu.dot_dimension_numbers<[1], [0], [0], [1], [0, 0, 1, 1], [], []>} : vector<112x256xbf16>, vector<256x128xbf16>, vector<112x128xf32> -> vector<112x128xf32>
    %89 = arith.addf %82, %88 : vector<112x128xf32>
    %c32 = arith.constant 32 : index
    %c0_83 = arith.constant 0 : index
    %90 = vector.load %arg21[%c32, %c0_83] : memref<184x128xbf16, #tpu.memory_space<vmem>>, vector<112x128xbf16>
    %c33 = arith.constant 33 : index
    %c0_84 = arith.constant 0 : index
    %91 = vector.load %arg21[%c33, %c0_84] : memref<184x128xbf16, #tpu.memory_space<vmem>>, vector<112x128xbf16>
    %92 = tpu.concatenate %90, %91 in 1 : vector<112x128xbf16>, vector<112x128xbf16> -> vector<112x256xbf16>
    %c5 = arith.constant 5 : index
    %c0_85 = arith.constant 0 : index
    %c0_86 = arith.constant 0 : index
    %93 = vector.load %arg4[%c5, %c0_85, %c0_86] : memref<13x256x128xbf16, #tpu.memory_space<vmem>>, vector<1x256x128xbf16>
    %94 = vector.shape_cast %93 : vector<1x256x128xbf16> to vector<256x128xbf16>
    %cst_87 = arith.constant dense<0.000000e+00> : vector<112x128xf32>
    %95 = tpu.matmul %92, %94, %cst_87 {dimension_numbers = #tpu.dot_dimension_numbers<[1], [0], [0], [1], [0, 0, 1, 1], [], []>} : vector<112x256xbf16>, vector<256x128xbf16>, vector<112x128xf32> -> vector<112x128xf32>
    %96 = arith.addf %89, %95 : vector<112x128xf32>
    %c34_88 = arith.constant 34 : index
    %c0_89 = arith.constant 0 : index
    %97 = vector.load %arg21[%c34_88, %c0_89] : memref<184x128xbf16, #tpu.memory_space<vmem>>, vector<112x128xbf16>
    %c35 = arith.constant 35 : index
    %c0_90 = arith.constant 0 : index
    %98 = vector.load %arg21[%c35, %c0_90] : memref<184x128xbf16, #tpu.memory_space<vmem>>, vector<112x128xbf16>
    %99 = tpu.concatenate %97, %98 in 1 : vector<112x128xbf16>, vector<112x128xbf16> -> vector<112x256xbf16>
    %c6 = arith.constant 6 : index
    %c0_91 = arith.constant 0 : index
    %c0_92 = arith.constant 0 : index
    %100 = vector.load %arg4[%c6, %c0_91, %c0_92] : memref<13x256x128xbf16, #tpu.memory_space<vmem>>, vector<1x256x128xbf16>
    %101 = vector.shape_cast %100 : vector<1x256x128xbf16> to vector<256x128xbf16>
    %cst_93 = arith.constant dense<0.000000e+00> : vector<112x128xf32>
    %102 = tpu.matmul %99, %101, %cst_93 {dimension_numbers = #tpu.dot_dimension_numbers<[1], [0], [0], [1], [0, 0, 1, 1], [], []>} : vector<112x256xbf16>, vector<256x128xbf16>, vector<112x128xf32> -> vector<112x128xf32>
    %103 = arith.addf %96, %102 : vector<112x128xf32>
    %c36 = arith.constant 36 : index
    %c0_94 = arith.constant 0 : index
    %104 = vector.load %arg21[%c36, %c0_94] : memref<184x128xbf16, #tpu.memory_space<vmem>>, vector<112x128xbf16>
    %c48 = arith.constant 48 : index
    %c0_95 = arith.constant 0 : index
    %105 = vector.load %arg21[%c48, %c0_95] : memref<184x128xbf16, #tpu.memory_space<vmem>>, vector<112x128xbf16>
    %106 = tpu.concatenate %104, %105 in 1 : vector<112x128xbf16>, vector<112x128xbf16> -> vector<112x256xbf16>
    %c7 = arith.constant 7 : index
    %c0_96 = arith.constant 0 : index
    %c0_97 = arith.constant 0 : index
    %107 = vector.load %arg4[%c7, %c0_96, %c0_97] : memref<13x256x128xbf16, #tpu.memory_space<vmem>>, vector<1x256x128xbf16>
    %108 = vector.shape_cast %107 : vector<1x256x128xbf16> to vector<256x128xbf16>
    %cst_98 = arith.constant dense<0.000000e+00> : vector<112x128xf32>
    %109 = tpu.matmul %106, %108, %cst_98 {dimension_numbers = #tpu.dot_dimension_numbers<[1], [0], [0], [1], [0, 0, 1, 1], [], []>} : vector<112x256xbf16>, vector<256x128xbf16>, vector<112x128xf32> -> vector<112x128xf32>
    %110 = arith.addf %103, %109 : vector<112x128xf32>
    %c49 = arith.constant 49 : index
    %c0_99 = arith.constant 0 : index
    %111 = vector.load %arg21[%c49, %c0_99] : memref<184x128xbf16, #tpu.memory_space<vmem>>, vector<112x128xbf16>
    %c50_100 = arith.constant 50 : index
    %c0_101 = arith.constant 0 : index
    %112 = vector.load %arg21[%c50_100, %c0_101] : memref<184x128xbf16, #tpu.memory_space<vmem>>, vector<112x128xbf16>
    %113 = tpu.concatenate %111, %112 in 1 : vector<112x128xbf16>, vector<112x128xbf16> -> vector<112x256xbf16>
    %c8 = arith.constant 8 : index
    %c0_102 = arith.constant 0 : index
    %c0_103 = arith.constant 0 : index
    %114 = vector.load %arg4[%c8, %c0_102, %c0_103] : memref<13x256x128xbf16, #tpu.memory_space<vmem>>, vector<1x256x128xbf16>
    %115 = vector.shape_cast %114 : vector<1x256x128xbf16> to vector<256x128xbf16>
    %cst_104 = arith.constant dense<0.000000e+00> : vector<112x128xf32>
    %116 = tpu.matmul %113, %115, %cst_104 {dimension_numbers = #tpu.dot_dimension_numbers<[1], [0], [0], [1], [0, 0, 1, 1], [], []>} : vector<112x256xbf16>, vector<256x128xbf16>, vector<112x128xf32> -> vector<112x128xf32>
    %117 = arith.addf %110, %116 : vector<112x128xf32>
    %c51 = arith.constant 51 : index
    %c0_105 = arith.constant 0 : index
    %118 = vector.load %arg21[%c51, %c0_105] : memref<184x128xbf16, #tpu.memory_space<vmem>>, vector<112x128xbf16>
    %c52 = arith.constant 52 : index
    %c0_106 = arith.constant 0 : index
    %119 = vector.load %arg21[%c52, %c0_106] : memref<184x128xbf16, #tpu.memory_space<vmem>>, vector<112x128xbf16>
    %120 = tpu.concatenate %118, %119 in 1 : vector<112x128xbf16>, vector<112x128xbf16> -> vector<112x256xbf16>
    %c9 = arith.constant 9 : index
    %c0_107 = arith.constant 0 : index
    %c0_108 = arith.constant 0 : index
    %121 = vector.load %arg4[%c9, %c0_107, %c0_108] : memref<13x256x128xbf16, #tpu.memory_space<vmem>>, vector<1x256x128xbf16>
    %122 = vector.shape_cast %121 : vector<1x256x128xbf16> to vector<256x128xbf16>
    %cst_109 = arith.constant dense<0.000000e+00> : vector<112x128xf32>
    %123 = tpu.matmul %120, %122, %cst_109 {dimension_numbers = #tpu.dot_dimension_numbers<[1], [0], [0], [1], [0, 0, 1, 1], [], []>} : vector<112x256xbf16>, vector<256x128xbf16>, vector<112x128xf32> -> vector<112x128xf32>
    %124 = arith.addf %117, %123 : vector<112x128xf32>
    %c64 = arith.constant 64 : index
    %c0_110 = arith.constant 0 : index
    %125 = vector.load %arg21[%c64, %c0_110] : memref<184x128xbf16, #tpu.memory_space<vmem>>, vector<112x128xbf16>
    %c65 = arith.constant 65 : index
    %c0_111 = arith.constant 0 : index
    %126 = vector.load %arg21[%c65, %c0_111] : memref<184x128xbf16, #tpu.memory_space<vmem>>, vector<112x128xbf16>
    %127 = tpu.concatenate %125, %126 in 1 : vector<112x128xbf16>, vector<112x128xbf16> -> vector<112x256xbf16>
    %c10 = arith.constant 10 : index
    %c0_112 = arith.constant 0 : index
    %c0_113 = arith.constant 0 : index
    %128 = vector.load %arg4[%c10, %c0_112, %c0_113] : memref<13x256x128xbf16, #tpu.memory_space<vmem>>, vector<1x256x128xbf16>
    %129 = vector.shape_cast %128 : vector<1x256x128xbf16> to vector<256x128xbf16>
    %cst_114 = arith.constant dense<0.000000e+00> : vector<112x128xf32>
    %130 = tpu.matmul %127, %129, %cst_114 {dimension_numbers = #tpu.dot_dimension_numbers<[1], [0], [0], [1], [0, 0, 1, 1], [], []>} : vector<112x256xbf16>, vector<256x128xbf16>, vector<112x128xf32> -> vector<112x128xf32>
    %131 = arith.addf %124, %130 : vector<112x128xf32>
    %c66_115 = arith.constant 66 : index
    %c0_116 = arith.constant 0 : index
    %132 = vector.load %arg21[%c66_115, %c0_116] : memref<184x128xbf16, #tpu.memory_space<vmem>>, vector<112x128xbf16>
    %c67 = arith.constant 67 : index
    %c0_117 = arith.constant 0 : index
    %133 = vector.load %arg21[%c67, %c0_117] : memref<184x128xbf16, #tpu.memory_space<vmem>>, vector<112x128xbf16>
    %134 = tpu.concatenate %132, %133 in 1 : vector<112x128xbf16>, vector<112x128xbf16> -> vector<112x256xbf16>
    %c11 = arith.constant 11 : index
    %c0_118 = arith.constant 0 : index
    %c0_119 = arith.constant 0 : index
    %135 = vector.load %arg4[%c11, %c0_118, %c0_119] : memref<13x256x128xbf16, #tpu.memory_space<vmem>>, vector<1x256x128xbf16>
    %136 = vector.shape_cast %135 : vector<1x256x128xbf16> to vector<256x128xbf16>
    %cst_120 = arith.constant dense<0.000000e+00> : vector<112x128xf32>
    %137 = tpu.matmul %134, %136, %cst_120 {dimension_numbers = #tpu.dot_dimension_numbers<[1], [0], [0], [1], [0, 0, 1, 1], [], []>} : vector<112x256xbf16>, vector<256x128xbf16>, vector<112x128xf32> -> vector<112x128xf32>
    %138 = arith.addf %131, %137 : vector<112x128xf32>
    %c68 = arith.constant 68 : index
    %c0_121 = arith.constant 0 : index
    %139 = vector.load %arg21[%c68, %c0_121] : memref<184x128xbf16, #tpu.memory_space<vmem>>, vector<112x128xbf16>
    %c68_122 = arith.constant 68 : index
    %c0_123 = arith.constant 0 : index
    %140 = vector.load %arg21[%c68_122, %c0_123] : memref<184x128xbf16, #tpu.memory_space<vmem>>, vector<112x128xbf16>
    %141 = tpu.concatenate %139, %140 in 1 : vector<112x128xbf16>, vector<112x128xbf16> -> vector<112x256xbf16>
    %c12 = arith.constant 12 : index
    %c0_124 = arith.constant 0 : index
    %c0_125 = arith.constant 0 : index
    %142 = vector.load %arg4[%c12, %c0_124, %c0_125] : memref<13x256x128xbf16, #tpu.memory_space<vmem>>, vector<1x256x128xbf16>
    %143 = vector.shape_cast %142 : vector<1x256x128xbf16> to vector<256x128xbf16>
    %cst_126 = arith.constant dense<0.000000e+00> : vector<112x128xf32>
    %144 = tpu.matmul %141, %143, %cst_126 {dimension_numbers = #tpu.dot_dimension_numbers<[1], [0], [0], [1], [0, 0, 1, 1], [], []>} : vector<112x256xbf16>, vector<256x128xbf16>, vector<112x128xf32> -> vector<112x128xf32>
    %145 = arith.addf %138, %144 : vector<112x128xf32>
    %c0_127 = arith.constant 0 : index
    %c0_128 = arith.constant 0 : index
    %146 = vector.load %arg5[%c0_127, %c0_128] : memref<1x128xf32, #tpu.memory_space<vmem>>, vector<1x128xf32>
    %147 = vector.broadcast %146 : vector<1x128xf32> to vector<112x128xf32>
    %148 = arith.addf %145, %147 : vector<112x128xf32>
    %cst_129 = arith.constant 0.000000e+00 : f32
    %149 = vector.broadcast %cst_129 : f32 to vector<112x128xf32>
    %150 = arith.maximumf %148, %149 : vector<112x128xf32>
    %151 = vector.shape_cast %150 : vector<112x128xf32> to vector<7x16x128xf32>
    %c0_130 = arith.constant 0 : index
    %c0_131 = arith.constant 0 : index
    %c0_132 = arith.constant 0 : index
    %152 = vector.load %arg22[%c0_130, %c0_131, %c0_132] : memref<7x16x128xf32, #tpu.memory_space<vmem>>, vector<7x16x128xf32>
    tpu.vector_store %arg22[%c0_130, %c0_131, %c0_132], %151 {strides = array<i32>} : memref<7x16x128xf32, #tpu.memory_space<vmem>>, vector<7x16x128xf32>,
    %c0_133 = arith.constant 0 : index
    %c0_134 = arith.constant 0 : index
    %c0_135 = arith.constant 0 : index
    %153 = tpu.strided_load %arg22[%c0_133, %c0_134, %c0_135] {strides = array<i32: 2, 2, 1>} : memref<7x16x128xf32, #tpu.memory_space<vmem>>, vector<3x3x128xf32>
    %c0_136 = arith.constant 0 : index
    %c1_137 = arith.constant 1 : index
    %c0_138 = arith.constant 0 : index
    %154 = tpu.strided_load %arg22[%c0_136, %c1_137, %c0_138] {strides = array<i32: 2, 2, 1>} : memref<7x16x128xf32, #tpu.memory_space<vmem>>, vector<3x3x128xf32>
    %155 = arith.maximumf %153, %154 : vector<3x3x128xf32>
    %c0_139 = arith.constant 0 : index
    %c2_140 = arith.constant 2 : index
    %c0_141 = arith.constant 0 : index
    %156 = tpu.strided_load %arg22[%c0_139, %c2_140, %c0_141] {strides = array<i32: 2, 2, 1>} : memref<7x16x128xf32, #tpu.memory_space<vmem>>, vector<3x3x128xf32>
    %157 = arith.maximumf %155, %156 : vector<3x3x128xf32>
    %c1_142 = arith.constant 1 : index
    %c0_143 = arith.constant 0 : index
    %c0_144 = arith.constant 0 : index
    %158 = tpu.strided_load %arg22[%c1_142, %c0_143, %c0_144] {strides = array<i32: 2, 2, 1>} : memref<7x16x128xf32, #tpu.memory_space<vmem>>, vector<3x3x128xf32>
    %159 = arith.maximumf %157, %158 : vector<3x3x128xf32>
    %c1_145 = arith.constant 1 : index
    %c1_146 = arith.constant 1 : index
    %c0_147 = arith.constant 0 : index
    %160 = tpu.strided_load %arg22[%c1_145, %c1_146, %c0_147] {strides = array<i32: 2, 2, 1>} : memref<7x16x128xf32, #tpu.memory_space<vmem>>, vector<3x3x128xf32>
    %161 = arith.maximumf %159, %160 : vector<3x3x128xf32>
    %c1_148 = arith.constant 1 : index
    %c2_149 = arith.constant 2 : index
    %c0_150 = arith.constant 0 : index
    %162 = tpu.strided_load %arg22[%c1_148, %c2_149, %c0_150] {strides = array<i32: 2, 2, 1>} : memref<7x16x128xf32, #tpu.memory_space<vmem>>, vector<3x3x128xf32>
    %163 = arith.maximumf %161, %162 : vector<3x3x128xf32>
    %c2_151 = arith.constant 2 : index
    %c0_152 = arith.constant 0 : index
    %c0_153 = arith.constant 0 : index
    %164 = tpu.strided_load %arg22[%c2_151, %c0_152, %c0_153] {strides = array<i32: 2, 2, 1>} : memref<7x16x128xf32, #tpu.memory_space<vmem>>, vector<3x3x128xf32>
    %165 = arith.maximumf %163, %164 : vector<3x3x128xf32>
    %c2_154 = arith.constant 2 : index
    %c1_155 = arith.constant 1 : index
    %c0_156 = arith.constant 0 : index
    %166 = tpu.strided_load %arg22[%c2_154, %c1_155, %c0_156] {strides = array<i32: 2, 2, 1>} : memref<7x16x128xf32, #tpu.memory_space<vmem>>, vector<3x3x128xf32>
    %167 = arith.maximumf %165, %166 : vector<3x3x128xf32>
    %c2_157 = arith.constant 2 : index
    %c2_158 = arith.constant 2 : index
    %c0_159 = arith.constant 0 : index
    %168 = tpu.strided_load %arg22[%c2_157, %c2_158, %c0_159] {strides = array<i32: 2, 2, 1>} : memref<7x16x128xf32, #tpu.memory_space<vmem>>, vector<3x3x128xf32>
    %169 = arith.maximumf %167, %168 : vector<3x3x128xf32>
    %cst_160 = arith.constant 0.000000e+00 : f32
    %170 = vector.broadcast %cst_160 : f32 to vector<48x128xf32>
    %c0_161 = arith.constant 0 : index
    %c0_162 = arith.constant 0 : index
    %171 = vector.load %arg23[%c0_161, %c0_162] : memref<48x128xf32, #tpu.memory_space<vmem>>, vector<48x128xf32>
    tpu.vector_store %arg23[%c0_161, %c0_162], %170 {strides = array<i32>} : memref<48x128xf32, #tpu.memory_space<vmem>>, vector<48x128xf32>,
    %172 = vector.extract_strided_slice %169 {offsets = [0, 0, 0], sizes = [1, 3, 128], strides = [1, 1, 1]} : vector<3x3x128xf32> to vector<1x3x128xf32>
    %173 = vector.shape_cast %172 : vector<1x3x128xf32> to vector<3x128xf32>
    %c9_163 = arith.constant 9 : index
    %c0_164 = arith.constant 0 : index
    %174 = vector.load %arg23[%c9_163, %c0_164] : memref<48x128xf32, #tpu.memory_space<vmem>>, vector<3x128xf32>
    tpu.vector_store %arg23[%c9_163, %c0_164], %173 {strides = array<i32>} : memref<48x128xf32, #tpu.memory_space<vmem>>, vector<3x128xf32>,
    %175 = vector.extract_strided_slice %169 {offsets = [1, 0, 0], sizes = [1, 3, 128], strides = [1, 1, 1]} : vector<3x3x128xf32> to vector<1x3x128xf32>
    %176 = vector.shape_cast %175 : vector<1x3x128xf32> to vector<3x128xf32>
    %c17_165 = arith.constant 17 : index
    %c0_166 = arith.constant 0 : index
    %177 = vector.load %arg23[%c17_165, %c0_166] : memref<48x128xf32, #tpu.memory_space<vmem>>, vector<3x128xf32>
    tpu.vector_store %arg23[%c17_165, %c0_166], %176 {strides = array<i32>} : memref<48x128xf32, #tpu.memory_space<vmem>>, vector<3x128xf32>,
    %178 = vector.extract_strided_slice %169 {offsets = [2, 0, 0], sizes = [1, 3, 128], strides = [1, 1, 1]} : vector<3x3x128xf32> to vector<1x3x128xf32>
    %179 = vector.shape_cast %178 : vector<1x3x128xf32> to vector<3x128xf32>
    %c25 = arith.constant 25 : index
    %c0_167 = arith.constant 0 : index
    %180 = vector.load %arg23[%c25, %c0_167] : memref<48x128xf32, #tpu.memory_space<vmem>>, vector<3x128xf32>
    tpu.vector_store %arg23[%c25, %c0_167], %179 {strides = array<i32>} : memref<48x128xf32, #tpu.memory_space<vmem>>, vector<3x128xf32>,
    %c0_168 = arith.constant 0 : index
    %c0_169 = arith.constant 0 : index
    %181 = vector.load %arg23[%c0_168, %c0_169] : memref<48x128xf32, #tpu.memory_space<vmem>>, vector<48x128xf32>
    %182 = arith.truncf %181 : vector<48x128xf32> to vector<48x128xbf16>
    %c0_170 = arith.constant 0 : index
    %c0_171 = arith.constant 0 : index
    %183 = vector.load %arg24[%c0_170, %c0_171] : memref<48x128xbf16, #tpu.memory_space<vmem>>, vector<48x128xbf16>
    tpu.vector_store %arg24[%c0_170, %c0_171], %182 {strides = array<i32>} : memref<48x128xbf16, #tpu.memory_space<vmem>>, vector<48x128xbf16>,
    %184 = tpu.iota {dimensions = array<i32: 0>} : vector<24x256xi32>
    %c8_i32 = arith.constant 8 : i32
    %c0_i32 = arith.constant 0 : i32
    %185 = arith.cmpi eq, %c8_i32, %c0_i32 : i32
    %c1_i32 = arith.constant 1 : i32
    %186 = arith.select %185, %c1_i32, %c8_i32 : i32
    %187 = vector.broadcast %186 : i32 to vector<24x256xi32>
    %188 = arith.remsi %184, %187 : vector<24x256xi32>
    %c0_i32_172 = arith.constant 0 : i32
    %189 = vector.broadcast %c0_i32_172 : i32 to vector<24x256xi32>
    %190 = arith.cmpi ne, %188, %189 : vector<24x256xi32>
    %c0_i32_173 = arith.constant 0 : i32
    %191 = vector.broadcast %c0_i32_173 : i32 to vector<24x256xi32>
    %192 = arith.cmpi slt, %188, %191 : vector<24x256xi32>
    %c0_i32_174 = arith.constant 0 : i32
    %193 = arith.cmpi slt, %186, %c0_i32_174 : i32
    %194 = vector.broadcast %193 : i1 to vector<24x256xi1>
    %195 = vector.broadcast %194 : vector<24x256xi1> to vector<24x256xi1>
    %196 = arith.xori %192, %195 : vector<24x256xi1>
    %197 = arith.andi %196, %190 : vector<24x256xi1>
    %198 = vector.broadcast %186 : i32 to vector<24x256xi32>
    %199 = arith.addi %188, %198 : vector<24x256xi32>
    %200 = arith.select %197, %199, %188 : vector<24x256xi1>, vector<24x256xi32>
    %c3_i32 = arith.constant 3 : i32
    %201 = vector.broadcast %c3_i32 : i32 to vector<24x256xi32>
    %202 = arith.cmpi slt, %200, %201 : vector<24x256xi32>
    %cst_175 = arith.constant 0.000000e+00 : f32
    %203 = vector.broadcast %cst_175 : f32 to vector<24x256xf32>
    %c0_176 = arith.constant 0 : index
    %c0_177 = arith.constant 0 : index
    %204 = vector.load %arg24[%c0_176, %c0_177] : memref<48x128xbf16, #tpu.memory_space<vmem>>, vector<24x128xbf16>
    %c0_178 = arith.constant 0 : index
    %c0_179 = arith.constant 0 : index
    %c0_180 = arith.constant 0 : index
    %205 = vector.load %arg6[%c0_178, %c0_179, %c0_180] : memref<9x128x256xbf16, #tpu.memory_space<vmem>>, vector<1x128x256xbf16>
    %206 = vector.shape_cast %205 : vector<1x128x256xbf16> to vector<128x256xbf16>
    %cst_181 = arith.constant dense<0.000000e+00> : vector<24x256xf32>
    %207 = tpu.matmul %204, %206, %cst_181 {dimension_numbers = #tpu.dot_dimension_numbers<[1], [0], [0], [1], [0, 0, 1, 1], [], []>} : vector<24x128xbf16>, vector<128x256xbf16>, vector<24x256xf32> -> vector<24x256xf32>
    %208 = arith.addf %203, %207 : vector<24x256xf32>
    %c1_182 = arith.constant 1 : index
    %c0_183 = arith.constant 0 : index
    %209 = vector.load %arg24[%c1_182, %c0_183] : memref<48x128xbf16, #tpu.memory_space<vmem>>, vector<24x128xbf16>
    %c1_184 = arith.constant 1 : index
    %c0_185 = arith.constant 0 : index
    %c0_186 = arith.constant 0 : index
    %210 = vector.load %arg6[%c1_184, %c0_185, %c0_186] : memref<9x128x256xbf16, #tpu.memory_space<vmem>>, vector<1x128x256xbf16>
    %211 = vector.shape_cast %210 : vector<1x128x256xbf16> to vector<128x256xbf16>
    %cst_187 = arith.constant dense<0.000000e+00> : vector<24x256xf32>
    %212 = tpu.matmul %209, %211, %cst_187 {dimension_numbers = #tpu.dot_dimension_numbers<[1], [0], [0], [1], [0, 0, 1, 1], [], []>} : vector<24x128xbf16>, vector<128x256xbf16>, vector<24x256xf32> -> vector<24x256xf32>
    %213 = arith.addf %208, %212 : vector<24x256xf32>
    %c2_188 = arith.constant 2 : index
    %c0_189 = arith.constant 0 : index
    %214 = vector.load %arg24[%c2_188, %c0_189] : memref<48x128xbf16, #tpu.memory_space<vmem>>, vector<24x128xbf16>
    %c2_190 = arith.constant 2 : index
    %c0_191 = arith.constant 0 : index
    %c0_192 = arith.constant 0 : index
    %215 = vector.load %arg6[%c2_190, %c0_191, %c0_192] : memref<9x128x256xbf16, #tpu.memory_space<vmem>>, vector<1x128x256xbf16>
    %216 = vector.shape_cast %215 : vector<1x128x256xbf16> to vector<128x256xbf16>
    %cst_193 = arith.constant dense<0.000000e+00> : vector<24x256xf32>
    %217 = tpu.matmul %214, %216, %cst_193 {dimension_numbers = #tpu.dot_dimension_numbers<[1], [0], [0], [1], [0, 0, 1, 1], [], []>} : vector<24x128xbf16>, vector<128x256xbf16>, vector<24x256xf32> -> vector<24x256xf32>
    %218 = arith.addf %213, %217 : vector<24x256xf32>
    %c8_194 = arith.constant 8 : index
    %c0_195 = arith.constant 0 : index
    %219 = vector.load %arg24[%c8_194, %c0_195] : memref<48x128xbf16, #tpu.memory_space<vmem>>, vector<24x128xbf16>
    %c3_196 = arith.constant 3 : index
    %c0_197 = arith.constant 0 : index
    %c0_198 = arith.constant 0 : index
    %220 = vector.load %arg6[%c3_196, %c0_197, %c0_198] : memref<9x128x256xbf16, #tpu.memory_space<vmem>>, vector<1x128x256xbf16>
    %221 = vector.shape_cast %220 : vector<1x128x256xbf16> to vector<128x256xbf16>
    %cst_199 = arith.constant dense<0.000000e+00> : vector<24x256xf32>
    %222 = tpu.matmul %219, %221, %cst_199 {dimension_numbers = #tpu.dot_dimension_numbers<[1], [0], [0], [1], [0, 0, 1, 1], [], []>} : vector<24x128xbf16>, vector<128x256xbf16>, vector<24x256xf32> -> vector<24x256xf32>
    %223 = arith.addf %218, %222 : vector<24x256xf32>
    %c9_200 = arith.constant 9 : index
    %c0_201 = arith.constant 0 : index
    %224 = vector.load %arg24[%c9_200, %c0_201] : memref<48x128xbf16, #tpu.memory_space<vmem>>, vector<24x128xbf16>
    %c4_202 = arith.constant 4 : index
    %c0_203 = arith.constant 0 : index
    %c0_204 = arith.constant 0 : index
    %225 = vector.load %arg6[%c4_202, %c0_203, %c0_204] : memref<9x128x256xbf16, #tpu.memory_space<vmem>>, vector<1x128x256xbf16>
    %226 = vector.shape_cast %225 : vector<1x128x256xbf16> to vector<128x256xbf16>
    %cst_205 = arith.constant dense<0.000000e+00> : vector<24x256xf32>
    %227 = tpu.matmul %224, %226, %cst_205 {dimension_numbers = #tpu.dot_dimension_numbers<[1], [0], [0], [1], [0, 0, 1, 1], [], []>} : vector<24x128xbf16>, vector<128x256xbf16>, vector<24x256xf32> -> vector<24x256xf32>
    %228 = arith.addf %223, %227 : vector<24x256xf32>
    %c10_206 = arith.constant 10 : index
    %c0_207 = arith.constant 0 : index
    %229 = vector.load %arg24[%c10_206, %c0_207] : memref<48x128xbf16, #tpu.memory_space<vmem>>, vector<24x128xbf16>
    %c5_208 = arith.constant 5 : index
    %c0_209 = arith.constant 0 : index
    %c0_210 = arith.constant 0 : index
    %230 = vector.load %arg6[%c5_208, %c0_209, %c0_210] : memref<9x128x256xbf16, #tpu.memory_space<vmem>>, vector<1x128x256xbf16>
    %231 = vector.shape_cast %230 : vector<1x128x256xbf16> to vector<128x256xbf16>
    %cst_211 = arith.constant dense<0.000000e+00> : vector<24x256xf32>
    %232 = tpu.matmul %229, %231, %cst_211 {dimension_numbers = #tpu.dot_dimension_numbers<[1], [0], [0], [1], [0, 0, 1, 1], [], []>} : vector<24x128xbf16>, vector<128x256xbf16>, vector<24x256xf32> -> vector<24x256xf32>
    %233 = arith.addf %228, %232 : vector<24x256xf32>
    %c16_212 = arith.constant 16 : index
    %c0_213 = arith.constant 0 : index
    %234 = vector.load %arg24[%c16_212, %c0_213] : memref<48x128xbf16, #tpu.memory_space<vmem>>, vector<24x128xbf16>
    %c6_214 = arith.constant 6 : index
    %c0_215 = arith.constant 0 : index
    %c0_216 = arith.constant 0 : index
    %235 = vector.load %arg6[%c6_214, %c0_215, %c0_216] : memref<9x128x256xbf16, #tpu.memory_space<vmem>>, vector<1x128x256xbf16>
    %236 = vector.shape_cast %235 : vector<1x128x256xbf16> to vector<128x256xbf16>
    %cst_217 = arith.constant dense<0.000000e+00> : vector<24x256xf32>
    %237 = tpu.matmul %234, %236, %cst_217 {dimension_numbers = #tpu.dot_dimension_numbers<[1], [0], [0], [1], [0, 0, 1, 1], [], []>} : vector<24x128xbf16>, vector<128x256xbf16>, vector<24x256xf32> -> vector<24x256xf32>
    %238 = arith.addf %233, %237 : vector<24x256xf32>
    %c17_218 = arith.constant 17 : index
    %c0_219 = arith.constant 0 : index
    %239 = vector.load %arg24[%c17_218, %c0_219] : memref<48x128xbf16, #tpu.memory_space<vmem>>, vector<24x128xbf16>
    %c7_220 = arith.constant 7 : index
    %c0_221 = arith.constant 0 : index
    %c0_222 = arith.constant 0 : index
    %240 = vector.load %arg6[%c7_220, %c0_221, %c0_222] : memref<9x128x256xbf16, #tpu.memory_space<vmem>>, vector<1x128x256xbf16>
    %241 = vector.shape_cast %240 : vector<1x128x256xbf16> to vector<128x256xbf16>
    %cst_223 = arith.constant dense<0.000000e+00> : vector<24x256xf32>
    %242 = tpu.matmul %239, %241, %cst_223 {dimension_numbers = #tpu.dot_dimension_numbers<[1], [0], [0], [1], [0, 0, 1, 1], [], []>} : vector<24x128xbf16>, vector<128x256xbf16>, vector<24x256xf32> -> vector<24x256xf32>
    %243 = arith.addf %238, %242 : vector<24x256xf32>
    %c18_224 = arith.constant 18 : index
    %c0_225 = arith.constant 0 : index
    %244 = vector.load %arg24[%c18_224, %c0_225] : memref<48x128xbf16, #tpu.memory_space<vmem>>, vector<24x128xbf16>
    %c8_226 = arith.constant 8 : index
    %c0_227 = arith.constant 0 : index
    %c0_228 = arith.constant 0 : index
    %245 = vector.load %arg6[%c8_226, %c0_227, %c0_228] : memref<9x128x256xbf16, #tpu.memory_space<vmem>>, vector<1x128x256xbf16>
    %246 = vector.shape_cast %245 : vector<1x128x256xbf16> to vector<128x256xbf16>
    %cst_229 = arith.constant dense<0.000000e+00> : vector<24x256xf32>
    %247 = tpu.matmul %244, %246, %cst_229 {dimension_numbers = #tpu.dot_dimension_numbers<[1], [0], [0], [1], [0, 0, 1, 1], [], []>} : vector<24x128xbf16>, vector<128x256xbf16>, vector<24x256xf32> -> vector<24x256xf32>
    %248 = arith.addf %243, %247 : vector<24x256xf32>
    %c0_230 = arith.constant 0 : index
    %c0_231 = arith.constant 0 : index
    %249 = vector.load %arg7[%c0_230, %c0_231] : memref<1x256xf32, #tpu.memory_space<vmem>>, vector<1x256xf32>
    %250 = vector.broadcast %249 : vector<1x256xf32> to vector<24x256xf32>
    %251 = arith.addf %248, %250 : vector<24x256xf32>
    %cst_232 = arith.constant 0.000000e+00 : f32
    %252 = vector.broadcast %cst_232 : f32 to vector<24x256xf32>
    %253 = arith.maximumf %251, %252 : vector<24x256xf32>
    %cst_233 = arith.constant 0.000000e+00 : f32
    %254 = vector.broadcast %cst_233 : f32 to vector<48x256xf32>
    %c0_234 = arith.constant 0 : index
    %c0_235 = arith.constant 0 : index
    %255 = vector.load %arg25[%c0_234, %c0_235] : memref<48x256xf32, #tpu.memory_space<vmem>>, vector<48x256xf32>
    tpu.vector_store %arg25[%c0_234, %c0_235], %254 {strides = array<i32>} : memref<48x256xf32, #tpu.memory_space<vmem>>, vector<48x256xf32>,
    %cst_236 = arith.constant 0.000000e+00 : f32
    %256 = vector.broadcast %cst_236 : f32 to vector<24x256xf32>
    %257 = arith.select %202, %253, %256 : vector<24x256xi1>, vector<24x256xf32>
    %258 = vector.extract_strided_slice %257 {offsets = [0, 0], sizes = [19, 256], strides = [1, 1]} : vector<24x256xf32> to vector<19x256xf32>
    %c9_237 = arith.constant 9 : index
    %c0_238 = arith.constant 0 : index
    %259 = vector.load %arg25[%c9_237, %c0_238] : memref<48x256xf32, #tpu.memory_space<vmem>>, vector<19x256xf32>
    tpu.vector_store %arg25[%c9_237, %c0_238], %258 {strides = array<i32>} : memref<48x256xf32, #tpu.memory_space<vmem>>, vector<19x256xf32>,
    %c0_239 = arith.constant 0 : index
    %c0_240 = arith.constant 0 : index
    %260 = vector.load %arg25[%c0_239, %c0_240] : memref<48x256xf32, #tpu.memory_space<vmem>>, vector<48x256xf32>
    %261 = arith.truncf %260 : vector<48x256xf32> to vector<48x256xbf16>
    %c0_241 = arith.constant 0 : index
    %c0_242 = arith.constant 0 : index
    %262 = vector.load %arg26[%c0_241, %c0_242] : memref<48x256xbf16, #tpu.memory_space<vmem>>, vector<48x256xbf16>
    tpu.vector_store %arg26[%c0_241, %c0_242], %261 {strides = array<i32>} : memref<48x256xbf16, #tpu.memory_space<vmem>>, vector<48x256xbf16>,
    %cst_243 = arith.constant 0.000000e+00 : f32
    %263 = vector.broadcast %cst_243 : f32 to vector<24x256xf32>
    %c0_244 = arith.constant 0 : index
    %c0_245 = arith.constant 0 : index
    %264 = vector.load %arg26[%c0_244, %c0_245] : memref<48x256xbf16, #tpu.memory_space<vmem>>, vector<24x256xbf16>
    %c0_246 = arith.constant 0 : index
    %c0_247 = arith.constant 0 : index
    %c0_248 = arith.constant 0 : index
    %265 = vector.load %arg8[%c0_246, %c0_247, %c0_248] : memref<9x256x256xbf16, #tpu.memory_space<vmem>>, vector<1x256x256xbf16>
    %266 = vector.shape_cast %265 : vector<1x256x256xbf16> to vector<256x256xbf16>
    %cst_249 = arith.constant dense<0.000000e+00> : vector<24x256xf32>
    %267 = tpu.matmul %264, %266, %cst_249 {dimension_numbers = #tpu.dot_dimension_numbers<[1], [0], [0], [1], [0, 0, 1, 1], [], []>} : vector<24x256xbf16>, vector<256x256xbf16>, vector<24x256xf32> -> vector<24x256xf32>
    %268 = arith.addf %263, %267 : vector<24x256xf32>
    %c1_250 = arith.constant 1 : index
    %c0_251 = arith.constant 0 : index
    %269 = vector.load %arg26[%c1_250, %c0_251] : memref<48x256xbf16, #tpu.memory_space<vmem>>, vector<24x256xbf16>
    %c1_252 = arith.constant 1 : index
    %c0_253 = arith.constant 0 : index
    %c0_254 = arith.constant 0 : index
    %270 = vector.load %arg8[%c1_252, %c0_253, %c0_254] : memref<9x256x256xbf16, #tpu.memory_space<vmem>>, vector<1x256x256xbf16>
    %271 = vector.shape_cast %270 : vector<1x256x256xbf16> to vector<256x256xbf16>
    %cst_255 = arith.constant dense<0.000000e+00> : vector<24x256xf32>
    %272 = tpu.matmul %269, %271, %cst_255 {dimension_numbers = #tpu.dot_dimension_numbers<[1], [0], [0], [1], [0, 0, 1, 1], [], []>} : vector<24x256xbf16>, vector<256x256xbf16>, vector<24x256xf32> -> vector<24x256xf32>
    %273 = arith.addf %268, %272 : vector<24x256xf32>
    %c2_256 = arith.constant 2 : index
    %c0_257 = arith.constant 0 : index
    %274 = vector.load %arg26[%c2_256, %c0_257] : memref<48x256xbf16, #tpu.memory_space<vmem>>, vector<24x256xbf16>
    %c2_258 = arith.constant 2 : index
    %c0_259 = arith.constant 0 : index
    %c0_260 = arith.constant 0 : index
    %275 = vector.load %arg8[%c2_258, %c0_259, %c0_260] : memref<9x256x256xbf16, #tpu.memory_space<vmem>>, vector<1x256x256xbf16>
    %276 = vector.shape_cast %275 : vector<1x256x256xbf16> to vector<256x256xbf16>
    %cst_261 = arith.constant dense<0.000000e+00> : vector<24x256xf32>
    %277 = tpu.matmul %274, %276, %cst_261 {dimension_numbers = #tpu.dot_dimension_numbers<[1], [0], [0], [1], [0, 0, 1, 1], [], []>} : vector<24x256xbf16>, vector<256x256xbf16>, vector<24x256xf32> -> vector<24x256xf32>
    %278 = arith.addf %273, %277 : vector<24x256xf32>
    %c8_262 = arith.constant 8 : index
    %c0_263 = arith.constant 0 : index
    %279 = vector.load %arg26[%c8_262, %c0_263] : memref<48x256xbf16, #tpu.memory_space<vmem>>, vector<24x256xbf16>
    %c3_264 = arith.constant 3 : index
    %c0_265 = arith.constant 0 : index
    %c0_266 = arith.constant 0 : index
    %280 = vector.load %arg8[%c3_264, %c0_265, %c0_266] : memref<9x256x256xbf16, #tpu.memory_space<vmem>>, vector<1x256x256xbf16>
    %281 = vector.shape_cast %280 : vector<1x256x256xbf16> to vector<256x256xbf16>
    %cst_267 = arith.constant dense<0.000000e+00> : vector<24x256xf32>
    %282 = tpu.matmul %279, %281, %cst_267 {dimension_numbers = #tpu.dot_dimension_numbers<[1], [0], [0], [1], [0, 0, 1, 1], [], []>} : vector<24x256xbf16>, vector<256x256xbf16>, vector<24x256xf32> -> vector<24x256xf32>
    %283 = arith.addf %278, %282 : vector<24x256xf32>
    %c9_268 = arith.constant 9 : index
    %c0_269 = arith.constant 0 : index
    %284 = vector.load %arg26[%c9_268, %c0_269] : memref<48x256xbf16, #tpu.memory_space<vmem>>, vector<24x256xbf16>
    %c4_270 = arith.constant 4 : index
    %c0_271 = arith.constant 0 : index
    %c0_272 = arith.constant 0 : index
    %285 = vector.load %arg8[%c4_270, %c0_271, %c0_272] : memref<9x256x256xbf16, #tpu.memory_space<vmem>>, vector<1x256x256xbf16>
    %286 = vector.shape_cast %285 : vector<1x256x256xbf16> to vector<256x256xbf16>
    %cst_273 = arith.constant dense<0.000000e+00> : vector<24x256xf32>
    %287 = tpu.matmul %284, %286, %cst_273 {dimension_numbers = #tpu.dot_dimension_numbers<[1], [0], [0], [1], [0, 0, 1, 1], [], []>} : vector<24x256xbf16>, vector<256x256xbf16>, vector<24x256xf32> -> vector<24x256xf32>
    %288 = arith.addf %283, %287 : vector<24x256xf32>
    %c10_274 = arith.constant 10 : index
    %c0_275 = arith.constant 0 : index
    %289 = vector.load %arg26[%c10_274, %c0_275] : memref<48x256xbf16, #tpu.memory_space<vmem>>, vector<24x256xbf16>
    %c5_276 = arith.constant 5 : index
    %c0_277 = arith.constant 0 : index
    %c0_278 = arith.constant 0 : index
    %290 = vector.load %arg8[%c5_276, %c0_277, %c0_278] : memref<9x256x256xbf16, #tpu.memory_space<vmem>>, vector<1x256x256xbf16>
    %291 = vector.shape_cast %290 : vector<1x256x256xbf16> to vector<256x256xbf16>
    %cst_279 = arith.constant dense<0.000000e+00> : vector<24x256xf32>
    %292 = tpu.matmul %289, %291, %cst_279 {dimension_numbers = #tpu.dot_dimension_numbers<[1], [0], [0], [1], [0, 0, 1, 1], [], []>} : vector<24x256xbf16>, vector<256x256xbf16>, vector<24x256xf32> -> vector<24x256xf32>
    %293 = arith.addf %288, %292 : vector<24x256xf32>
    %c16_280 = arith.constant 16 : index
    %c0_281 = arith.constant 0 : index
    %294 = vector.load %arg26[%c16_280, %c0_281] : memref<48x256xbf16, #tpu.memory_space<vmem>>, vector<24x256xbf16>
    %c6_282 = arith.constant 6 : index
    %c0_283 = arith.constant 0 : index
    %c0_284 = arith.constant 0 : index
    %295 = vector.load %arg8[%c6_282, %c0_283, %c0_284] : memref<9x256x256xbf16, #tpu.memory_space<vmem>>, vector<1x256x256xbf16>
    %296 = vector.shape_cast %295 : vector<1x256x256xbf16> to vector<256x256xbf16>
    %cst_285 = arith.constant dense<0.000000e+00> : vector<24x256xf32>
    %297 = tpu.matmul %294, %296, %cst_285 {dimension_numbers = #tpu.dot_dimension_numbers<[1], [0], [0], [1], [0, 0, 1, 1], [], []>} : vector<24x256xbf16>, vector<256x256xbf16>, vector<24x256xf32> -> vector<24x256xf32>
    %298 = arith.addf %293, %297 : vector<24x256xf32>
    %c17_286 = arith.constant 17 : index
    %c0_287 = arith.constant 0 : index
    %299 = vector.load %arg26[%c17_286, %c0_287] : memref<48x256xbf16, #tpu.memory_space<vmem>>, vector<24x256xbf16>
    %c7_288 = arith.constant 7 : index
    %c0_289 = arith.constant 0 : index
    %c0_290 = arith.constant 0 : index
    %300 = vector.load %arg8[%c7_288, %c0_289, %c0_290] : memref<9x256x256xbf16, #tpu.memory_space<vmem>>, vector<1x256x256xbf16>
    %301 = vector.shape_cast %300 : vector<1x256x256xbf16> to vector<256x256xbf16>
    %cst_291 = arith.constant dense<0.000000e+00> : vector<24x256xf32>
    %302 = tpu.matmul %299, %301, %cst_291 {dimension_numbers = #tpu.dot_dimension_numbers<[1], [0], [0], [1], [0, 0, 1, 1], [], []>} : vector<24x256xbf16>, vector<256x256xbf16>, vector<24x256xf32> -> vector<24x256xf32>
    %303 = arith.addf %298, %302 : vector<24x256xf32>
    %c18_292 = arith.constant 18 : index
    %c0_293 = arith.constant 0 : index
    %304 = vector.load %arg26[%c18_292, %c0_293] : memref<48x256xbf16, #tpu.memory_space<vmem>>, vector<24x256xbf16>
    %c8_294 = arith.constant 8 : index
    %c0_295 = arith.constant 0 : index
    %c0_296 = arith.constant 0 : index
    %305 = vector.load %arg8[%c8_294, %c0_295, %c0_296] : memref<9x256x256xbf16, #tpu.memory_space<vmem>>, vector<1x256x256xbf16>
    %306 = vector.shape_cast %305 : vector<1x256x256xbf16> to vector<256x256xbf16>
    %cst_297 = arith.constant dense<0.000000e+00> : vector<24x256xf32>
    %307 = tpu.matmul %304, %306, %cst_297 {dimension_numbers = #tpu.dot_dimension_numbers<[1], [0], [0], [1], [0, 0, 1, 1], [], []>} : vector<24x256xbf16>, vector<256x256xbf16>, vector<24x256xf32> -> vector<24x256xf32>
    %308 = arith.addf %303, %307 : vector<24x256xf32>
    %c0_298 = arith.constant 0 : index
    %c0_299 = arith.constant 0 : index
    %309 = vector.load %arg9[%c0_298, %c0_299] : memref<1x256xf32, #tpu.memory_space<vmem>>, vector<1x256xf32>
    %310 = vector.broadcast %309 : vector<1x256xf32> to vector<24x256xf32>
    %311 = arith.addf %308, %310 : vector<24x256xf32>
    %cst_300 = arith.constant 0.000000e+00 : f32
    %312 = vector.broadcast %cst_300 : f32 to vector<24x256xf32>
    %313 = arith.maximumf %311, %312 : vector<24x256xf32>
    %cst_301 = arith.constant 0.000000e+00 : f32
    %314 = vector.broadcast %cst_301 : f32 to vector<48x256xf32>
    %c0_302 = arith.constant 0 : index
    %c0_303 = arith.constant 0 : index
    %315 = vector.load %arg27[%c0_302, %c0_303] : memref<48x256xf32, #tpu.memory_space<vmem>>, vector<48x256xf32>
    tpu.vector_store %arg27[%c0_302, %c0_303], %314 {strides = array<i32>} : memref<48x256xf32, #tpu.memory_space<vmem>>, vector<48x256xf32>,
    %cst_304 = arith.constant 0.000000e+00 : f32
    %316 = vector.broadcast %cst_304 : f32 to vector<24x256xf32>
    %317 = arith.select %202, %313, %316 : vector<24x256xi1>, vector<24x256xf32>
    %318 = vector.extract_strided_slice %317 {offsets = [0, 0], sizes = [19, 256], strides = [1, 1]} : vector<24x256xf32> to vector<19x256xf32>
    %c9_305 = arith.constant 9 : index
    %c0_306 = arith.constant 0 : index
    %319 = vector.load %arg27[%c9_305, %c0_306] : memref<48x256xf32, #tpu.memory_space<vmem>>, vector<19x256xf32>
    tpu.vector_store %arg27[%c9_305, %c0_306], %318 {strides = array<i32>} : memref<48x256xf32, #tpu.memory_space<vmem>>, vector<19x256xf32>,
    %c0_307 = arith.constant 0 : index
    %c0_308 = arith.constant 0 : index
    %320 = vector.load %arg27[%c0_307, %c0_308] : memref<48x256xf32, #tpu.memory_space<vmem>>, vector<48x256xf32>
    %321 = arith.truncf %320 : vector<48x256xf32> to vector<48x256xbf16>
    %c0_309 = arith.constant 0 : index
    %c0_310 = arith.constant 0 : index
    %322 = vector.load %arg28[%c0_309, %c0_310] : memref<48x256xbf16, #tpu.memory_space<vmem>>, vector<48x256xbf16>
    tpu.vector_store %arg28[%c0_309, %c0_310], %321 {strides = array<i32>} : memref<48x256xbf16, #tpu.memory_space<vmem>>, vector<48x256xbf16>,
    %cst_311 = arith.constant 0.000000e+00 : f32
    %323 = vector.broadcast %cst_311 : f32 to vector<24x128xf32>
    %c0_312 = arith.constant 0 : index
    %c0_313 = arith.constant 0 : index
    %324 = vector.load %arg28[%c0_312, %c0_313] : memref<48x256xbf16, #tpu.memory_space<vmem>>, vector<24x256xbf16>
    %c0_314 = arith.constant 0 : index
    %c0_315 = arith.constant 0 : index
    %c0_316 = arith.constant 0 : index
    %325 = vector.load %arg10[%c0_314, %c0_315, %c0_316] : memref<9x256x128xbf16, #tpu.memory_space<vmem>>, vector<1x256x128xbf16>
    %326 = vector.shape_cast %325 : vector<1x256x128xbf16> to vector<256x128xbf16>
    %cst_317 = arith.constant dense<0.000000e+00> : vector<24x128xf32>
    %327 = tpu.matmul %324, %326, %cst_317 {dimension_numbers = #tpu.dot_dimension_numbers<[1], [0], [0], [1], [0, 0, 1, 1], [], []>} : vector<24x256xbf16>, vector<256x128xbf16>, vector<24x128xf32> -> vector<24x128xf32>
    %328 = arith.addf %323, %327 : vector<24x128xf32>
    %c1_318 = arith.constant 1 : index
    %c0_319 = arith.constant 0 : index
    %329 = vector.load %arg28[%c1_318, %c0_319] : memref<48x256xbf16, #tpu.memory_space<vmem>>, vector<24x256xbf16>
    %c1_320 = arith.constant 1 : index
    %c0_321 = arith.constant 0 : index
    %c0_322 = arith.constant 0 : index
    %330 = vector.load %arg10[%c1_320, %c0_321, %c0_322] : memref<9x256x128xbf16, #tpu.memory_space<vmem>>, vector<1x256x128xbf16>
    %331 = vector.shape_cast %330 : vector<1x256x128xbf16> to vector<256x128xbf16>
    %cst_323 = arith.constant dense<0.000000e+00> : vector<24x128xf32>
    %332 = tpu.matmul %329, %331, %cst_323 {dimension_numbers = #tpu.dot_dimension_numbers<[1], [0], [0], [1], [0, 0, 1, 1], [], []>} : vector<24x256xbf16>, vector<256x128xbf16>, vector<24x128xf32> -> vector<24x128xf32>
    %333 = arith.addf %328, %332 : vector<24x128xf32>
    %c2_324 = arith.constant 2 : index
    %c0_325 = arith.constant 0 : index
    %334 = vector.load %arg28[%c2_324, %c0_325] : memref<48x256xbf16, #tpu.memory_space<vmem>>, vector<24x256xbf16>
    %c2_326 = arith.constant 2 : index
    %c0_327 = arith.constant 0 : index
    %c0_328 = arith.constant 0 : index
    %335 = vector.load %arg10[%c2_326, %c0_327, %c0_328] : memref<9x256x128xbf16, #tpu.memory_space<vmem>>, vector<1x256x128xbf16>
    %336 = vector.shape_cast %335 : vector<1x256x128xbf16> to vector<256x128xbf16>
    %cst_329 = arith.constant dense<0.000000e+00> : vector<24x128xf32>
    %337 = tpu.matmul %334, %336, %cst_329 {dimension_numbers = #tpu.dot_dimension_numbers<[1], [0], [0], [1], [0, 0, 1, 1], [], []>} : vector<24x256xbf16>, vector<256x128xbf16>, vector<24x128xf32> -> vector<24x128xf32>
    %338 = arith.addf %333, %337 : vector<24x128xf32>
    %c8_330 = arith.constant 8 : index
    %c0_331 = arith.constant 0 : index
    %339 = vector.load %arg28[%c8_330, %c0_331] : memref<48x256xbf16, #tpu.memory_space<vmem>>, vector<24x256xbf16>
    %c3_332 = arith.constant 3 : index
    %c0_333 = arith.constant 0 : index
    %c0_334 = arith.constant 0 : index
    %340 = vector.load %arg10[%c3_332, %c0_333, %c0_334] : memref<9x256x128xbf16, #tpu.memory_space<vmem>>, vector<1x256x128xbf16>
    %341 = vector.shape_cast %340 : vector<1x256x128xbf16> to vector<256x128xbf16>
    %cst_335 = arith.constant dense<0.000000e+00> : vector<24x128xf32>
    %342 = tpu.matmul %339, %341, %cst_335 {dimension_numbers = #tpu.dot_dimension_numbers<[1], [0], [0], [1], [0, 0, 1, 1], [], []>} : vector<24x256xbf16>, vector<256x128xbf16>, vector<24x128xf32> -> vector<24x128xf32>
    %343 = arith.addf %338, %342 : vector<24x128xf32>
    %c9_336 = arith.constant 9 : index
    %c0_337 = arith.constant 0 : index
    %344 = vector.load %arg28[%c9_336, %c0_337] : memref<48x256xbf16, #tpu.memory_space<vmem>>, vector<24x256xbf16>
    %c4_338 = arith.constant 4 : index
    %c0_339 = arith.constant 0 : index
    %c0_340 = arith.constant 0 : index
    %345 = vector.load %arg10[%c4_338, %c0_339, %c0_340] : memref<9x256x128xbf16, #tpu.memory_space<vmem>>, vector<1x256x128xbf16>
    %346 = vector.shape_cast %345 : vector<1x256x128xbf16> to vector<256x128xbf16>
    %cst_341 = arith.constant dense<0.000000e+00> : vector<24x128xf32>
    %347 = tpu.matmul %344, %346, %cst_341 {dimension_numbers = #tpu.dot_dimension_numbers<[1], [0], [0], [1], [0, 0, 1, 1], [], []>} : vector<24x256xbf16>, vector<256x128xbf16>, vector<24x128xf32> -> vector<24x128xf32>
    %348 = arith.addf %343, %347 : vector<24x128xf32>
    %c10_342 = arith.constant 10 : index
    %c0_343 = arith.constant 0 : index
    %349 = vector.load %arg28[%c10_342, %c0_343] : memref<48x256xbf16, #tpu.memory_space<vmem>>, vector<24x256xbf16>
    %c5_344 = arith.constant 5 : index
    %c0_345 = arith.constant 0 : index
    %c0_346 = arith.constant 0 : index
    %350 = vector.load %arg10[%c5_344, %c0_345, %c0_346] : memref<9x256x128xbf16, #tpu.memory_space<vmem>>, vector<1x256x128xbf16>
    %351 = vector.shape_cast %350 : vector<1x256x128xbf16> to vector<256x128xbf16>
    %cst_347 = arith.constant dense<0.000000e+00> : vector<24x128xf32>
    %352 = tpu.matmul %349, %351, %cst_347 {dimension_numbers = #tpu.dot_dimension_numbers<[1], [0], [0], [1], [0, 0, 1, 1], [], []>} : vector<24x256xbf16>, vector<256x128xbf16>, vector<24x128xf32> -> vector<24x128xf32>
    %353 = arith.addf %348, %352 : vector<24x128xf32>
    %c16_348 = arith.constant 16 : index
    %c0_349 = arith.constant 0 : index
    %354 = vector.load %arg28[%c16_348, %c0_349] : memref<48x256xbf16, #tpu.memory_space<vmem>>, vector<24x256xbf16>
    %c6_350 = arith.constant 6 : index
    %c0_351 = arith.constant 0 : index
    %c0_352 = arith.constant 0 : index
    %355 = vector.load %arg10[%c6_350, %c0_351, %c0_352] : memref<9x256x128xbf16, #tpu.memory_space<vmem>>, vector<1x256x128xbf16>
    %356 = vector.shape_cast %355 : vector<1x256x128xbf16> to vector<256x128xbf16>
    %cst_353 = arith.constant dense<0.000000e+00> : vector<24x128xf32>
    %357 = tpu.matmul %354, %356, %cst_353 {dimension_numbers = #tpu.dot_dimension_numbers<[1], [0], [0], [1], [0, 0, 1, 1], [], []>} : vector<24x256xbf16>, vector<256x128xbf16>, vector<24x128xf32> -> vector<24x128xf32>
    %358 = arith.addf %353, %357 : vector<24x128xf32>
    %c17_354 = arith.constant 17 : index
    %c0_355 = arith.constant 0 : index
    %359 = vector.load %arg28[%c17_354, %c0_355] : memref<48x256xbf16, #tpu.memory_space<vmem>>, vector<24x256xbf16>
    %c7_356 = arith.constant 7 : index
    %c0_357 = arith.constant 0 : index
    %c0_358 = arith.constant 0 : index
    %360 = vector.load %arg10[%c7_356, %c0_357, %c0_358] : memref<9x256x128xbf16, #tpu.memory_space<vmem>>, vector<1x256x128xbf16>
    %361 = vector.shape_cast %360 : vector<1x256x128xbf16> to vector<256x128xbf16>
    %cst_359 = arith.constant dense<0.000000e+00> : vector<24x128xf32>
    %362 = tpu.matmul %359, %361, %cst_359 {dimension_numbers = #tpu.dot_dimension_numbers<[1], [0], [0], [1], [0, 0, 1, 1], [], []>} : vector<24x256xbf16>, vector<256x128xbf16>, vector<24x128xf32> -> vector<24x128xf32>
    %363 = arith.addf %358, %362 : vector<24x128xf32>
    %c18_360 = arith.constant 18 : index
    %c0_361 = arith.constant 0 : index
    %364 = vector.load %arg28[%c18_360, %c0_361] : memref<48x256xbf16, #tpu.memory_space<vmem>>, vector<24x256xbf16>
    %c8_362 = arith.constant 8 : index
    %c0_363 = arith.constant 0 : index
    %c0_364 = arith.constant 0 : index
    %365 = vector.load %arg10[%c8_362, %c0_363, %c0_364] : memref<9x256x128xbf16, #tpu.memory_space<vmem>>, vector<1x256x128xbf16>
    %366 = vector.shape_cast %365 : vector<1x256x128xbf16> to vector<256x128xbf16>
    %cst_365 = arith.constant dense<0.000000e+00> : vector<24x128xf32>
    %367 = tpu.matmul %364, %366, %cst_365 {dimension_numbers = #tpu.dot_dimension_numbers<[1], [0], [0], [1], [0, 0, 1, 1], [], []>} : vector<24x256xbf16>, vector<256x128xbf16>, vector<24x128xf32> -> vector<24x128xf32>
    %368 = arith.addf %363, %367 : vector<24x128xf32>
    %c0_366 = arith.constant 0 : index
    %c0_367 = arith.constant 0 : index
    %369 = vector.load %arg11[%c0_366, %c0_367] : memref<1x128xf32, #tpu.memory_space<vmem>>, vector<1x128xf32>
    %370 = vector.broadcast %369 : vector<1x128xf32> to vector<24x128xf32>
    %371 = arith.addf %368, %370 : vector<24x128xf32>
    %cst_368 = arith.constant 0.000000e+00 : f32
    %372 = vector.broadcast %cst_368 : f32 to vector<24x128xf32>
    %373 = arith.maximumf %371, %372 : vector<24x128xf32>
    %374 = arith.truncf %373 : vector<24x128xf32> to vector<24x128xbf16>
    %cst_369 = arith.constant 0.000000e+00 : f32
    %375 = vector.broadcast %cst_369 : f32 to vector<1x128xf32>
    %376 = vector.extract_strided_slice %374 {offsets = [0, 0], sizes = [1, 128], strides = [1, 1]} : vector<24x128xbf16> to vector<1x128xbf16>
    %c0_370 = arith.constant 0 : index
    %c0_371 = arith.constant 0 : index
    %c0_372 = arith.constant 0 : index
    %377 = vector.load %arg12[%c0_370, %c0_371, %c0_372] : memref<9x128x128xbf16, #tpu.memory_space<vmem>>, vector<1x128x128xbf16>
    %378 = vector.shape_cast %377 : vector<1x128x128xbf16> to vector<128x128xbf16>
    %cst_373 = arith.constant dense<0.000000e+00> : vector<1x128xf32>
    %379 = tpu.matmul %376, %378, %cst_373 {dimension_numbers = #tpu.dot_dimension_numbers<[1], [0], [0], [1], [0, 0, 1, 1], [], []>} : vector<1x128xbf16>, vector<128x128xbf16>, vector<1x128xf32> -> vector<1x128xf32>
    %380 = arith.addf %375, %379 : vector<1x128xf32>
    %381 = vector.extract_strided_slice %374 {offsets = [1, 0], sizes = [1, 128], strides = [1, 1]} : vector<24x128xbf16> to vector<1x128xbf16>
    %c1_374 = arith.constant 1 : index
    %c0_375 = arith.constant 0 : index
    %c0_376 = arith.constant 0 : index
    %382 = vector.load %arg12[%c1_374, %c0_375, %c0_376] : memref<9x128x128xbf16, #tpu.memory_space<vmem>>, vector<1x128x128xbf16>
    %383 = vector.shape_cast %382 : vector<1x128x128xbf16> to vector<128x128xbf16>
    %cst_377 = arith.constant dense<0.000000e+00> : vector<1x128xf32>
    %384 = tpu.matmul %381, %383, %cst_377 {dimension_numbers = #tpu.dot_dimension_numbers<[1], [0], [0], [1], [0, 0, 1, 1], [], []>} : vector<1x128xbf16>, vector<128x128xbf16>, vector<1x128xf32> -> vector<1x128xf32>
    %385 = arith.addf %380, %384 : vector<1x128xf32>
    %386 = vector.extract_strided_slice %374 {offsets = [2, 0], sizes = [1, 128], strides = [1, 1]} : vector<24x128xbf16> to vector<1x128xbf16>
    %c2_378 = arith.constant 2 : index
    %c0_379 = arith.constant 0 : index
    %c0_380 = arith.constant 0 : index
    %387 = vector.load %arg12[%c2_378, %c0_379, %c0_380] : memref<9x128x128xbf16, #tpu.memory_space<vmem>>, vector<1x128x128xbf16>
    %388 = vector.shape_cast %387 : vector<1x128x128xbf16> to vector<128x128xbf16>
    %cst_381 = arith.constant dense<0.000000e+00> : vector<1x128xf32>
    %389 = tpu.matmul %386, %388, %cst_381 {dimension_numbers = #tpu.dot_dimension_numbers<[1], [0], [0], [1], [0, 0, 1, 1], [], []>} : vector<1x128xbf16>, vector<128x128xbf16>, vector<1x128xf32> -> vector<1x128xf32>
    %390 = arith.addf %385, %389 : vector<1x128xf32>
    %391 = vector.extract_strided_slice %374 {offsets = [8, 0], sizes = [1, 128], strides = [1, 1]} : vector<24x128xbf16> to vector<1x128xbf16>
    %c3_382 = arith.constant 3 : index
    %c0_383 = arith.constant 0 : index
    %c0_384 = arith.constant 0 : index
    %392 = vector.load %arg12[%c3_382, %c0_383, %c0_384] : memref<9x128x128xbf16, #tpu.memory_space<vmem>>, vector<1x128x128xbf16>
    %393 = vector.shape_cast %392 : vector<1x128x128xbf16> to vector<128x128xbf16>
    %cst_385 = arith.constant dense<0.000000e+00> : vector<1x128xf32>
    %394 = tpu.matmul %391, %393, %cst_385 {dimension_numbers = #tpu.dot_dimension_numbers<[1], [0], [0], [1], [0, 0, 1, 1], [], []>} : vector<1x128xbf16>, vector<128x128xbf16>, vector<1x128xf32> -> vector<1x128xf32>
    %395 = arith.addf %390, %394 : vector<1x128xf32>
    %396 = vector.extract_strided_slice %374 {offsets = [9, 0], sizes = [1, 128], strides = [1, 1]} : vector<24x128xbf16> to vector<1x128xbf16>
    %c4_386 = arith.constant 4 : index
    %c0_387 = arith.constant 0 : index
    %c0_388 = arith.constant 0 : index
    %397 = vector.load %arg12[%c4_386, %c0_387, %c0_388] : memref<9x128x128xbf16, #tpu.memory_space<vmem>>, vector<1x128x128xbf16>
    %398 = vector.shape_cast %397 : vector<1x128x128xbf16> to vector<128x128xbf16>
    %cst_389 = arith.constant dense<0.000000e+00> : vector<1x128xf32>
    %399 = tpu.matmul %396, %398, %cst_389 {dimension_numbers = #tpu.dot_dimension_numbers<[1], [0], [0], [1], [0, 0, 1, 1], [], []>} : vector<1x128xbf16>, vector<128x128xbf16>, vector<1x128xf32> -> vector<1x128xf32>
    %400 = arith.addf %395, %399 : vector<1x128xf32>
    %401 = vector.extract_strided_slice %374 {offsets = [10, 0], sizes = [1, 128], strides = [1, 1]} : vector<24x128xbf16> to vector<1x128xbf16>
    %c5_390 = arith.constant 5 : index
    %c0_391 = arith.constant 0 : index
    %c0_392 = arith.constant 0 : index
    %402 = vector.load %arg12[%c5_390, %c0_391, %c0_392] : memref<9x128x128xbf16, #tpu.memory_space<vmem>>, vector<1x128x128xbf16>
    %403 = vector.shape_cast %402 : vector<1x128x128xbf16> to vector<128x128xbf16>
    %cst_393 = arith.constant dense<0.000000e+00> : vector<1x128xf32>
    %404 = tpu.matmul %401, %403, %cst_393 {dimension_numbers = #tpu.dot_dimension_numbers<[1], [0], [0], [1], [0, 0, 1, 1], [], []>} : vector<1x128xbf16>, vector<128x128xbf16>, vector<1x128xf32> -> vector<1x128xf32>
    %405 = arith.addf %400, %404 : vector<1x128xf32>
    %406 = vector.extract_strided_slice %374 {offsets = [16, 0], sizes = [1, 128], strides = [1, 1]} : vector<24x128xbf16> to vector<1x128xbf16>
    %c6_394 = arith.constant 6 : index
    %c0_395 = arith.constant 0 : index
    %c0_396 = arith.constant 0 : index
    %407 = vector.load %arg12[%c6_394, %c0_395, %c0_396] : memref<9x128x128xbf16, #tpu.memory_space<vmem>>, vector<1x128x128xbf16>
    %408 = vector.shape_cast %407 : vector<1x128x128xbf16> to vector<128x128xbf16>
    %cst_397 = arith.constant dense<0.000000e+00> : vector<1x128xf32>
    %409 = tpu.matmul %406, %408, %cst_397 {dimension_numbers = #tpu.dot_dimension_numbers<[1], [0], [0], [1], [0, 0, 1, 1], [], []>} : vector<1x128xbf16>, vector<128x128xbf16>, vector<1x128xf32> -> vector<1x128xf32>
    %410 = arith.addf %405, %409 : vector<1x128xf32>
    %411 = vector.extract_strided_slice %374 {offsets = [17, 0], sizes = [1, 128], strides = [1, 1]} : vector<24x128xbf16> to vector<1x128xbf16>
    %c7_398 = arith.constant 7 : index
    %c0_399 = arith.constant 0 : index
    %c0_400 = arith.constant 0 : index
    %412 = vector.load %arg12[%c7_398, %c0_399, %c0_400] : memref<9x128x128xbf16, #tpu.memory_space<vmem>>, vector<1x128x128xbf16>
    %413 = vector.shape_cast %412 : vector<1x128x128xbf16> to vector<128x128xbf16>
    %cst_401 = arith.constant dense<0.000000e+00> : vector<1x128xf32>
    %414 = tpu.matmul %411, %413, %cst_401 {dimension_numbers = #tpu.dot_dimension_numbers<[1], [0], [0], [1], [0, 0, 1, 1], [], []>} : vector<1x128xbf16>, vector<128x128xbf16>, vector<1x128xf32> -> vector<1x128xf32>
    %415 = arith.addf %410, %414 : vector<1x128xf32>
    %416 = vector.extract_strided_slice %374 {offsets = [18, 0], sizes = [1, 128], strides = [1, 1]} : vector<24x128xbf16> to vector<1x128xbf16>
    %c8_402 = arith.constant 8 : index
    %c0_403 = arith.constant 0 : index
    %c0_404 = arith.constant 0 : index
    %417 = vector.load %arg12[%c8_402, %c0_403, %c0_404] : memref<9x128x128xbf16, #tpu.memory_space<vmem>>, vector<1x128x128xbf16>
    %418 = vector.shape_cast %417 : vector<1x128x128xbf16> to vector<128x128xbf16>
    %cst_405 = arith.constant dense<0.000000e+00> : vector<1x128xf32>
    %419 = tpu.matmul %416, %418, %cst_405 {dimension_numbers = #tpu.dot_dimension_numbers<[1], [0], [0], [1], [0, 0, 1, 1], [], []>} : vector<1x128xbf16>, vector<128x128xbf16>, vector<1x128xf32> -> vector<1x128xf32>
    %420 = arith.addf %415, %419 : vector<1x128xf32>
    %c0_406 = arith.constant 0 : index
    %c0_407 = arith.constant 0 : index
    %421 = vector.load %arg13[%c0_406, %c0_407] : memref<1x128xf32, #tpu.memory_space<vmem>>, vector<1x128xf32>
    %422 = arith.addf %420, %421 : vector<1x128xf32>
    %cst_408 = arith.constant 0.000000e+00 : f32
    %423 = vector.broadcast %cst_408 : f32 to vector<1x128xf32>
    %424 = arith.maximumf %422, %423 : vector<1x128xf32>
    %425 = arith.truncf %424 : vector<1x128xf32> to vector<1x128xbf16>
    %c0_409 = arith.constant 0 : index
    %c0_410 = arith.constant 0 : index
    %426 = vector.load %arg14[%c0_409, %c0_410] : memref<128x128xbf16, #tpu.memory_space<vmem>>, vector<128x128xbf16>
    %cst_411 = arith.constant dense<0.000000e+00> : vector<1x128xf32>
    %427 = tpu.matmul %425, %426, %cst_411 {dimension_numbers = #tpu.dot_dimension_numbers<[1], [0], [0], [1], [0, 0, 1, 1], [], []>} : vector<1x128xbf16>, vector<128x128xbf16>, vector<1x128xf32> -> vector<1x128xf32>
    %c0_412 = arith.constant 0 : index
    %c0_413 = arith.constant 0 : index
    %428 = vector.load %arg15[%c0_412, %c0_413] : memref<1x128xf32, #tpu.memory_space<vmem>>, vector<1x128xf32>
    %429 = arith.addf %427, %428 : vector<1x128xf32>
    %cst_414 = arith.constant 0.000000e+00 : f32
    %430 = vector.broadcast %cst_414 : f32 to vector<1x128xf32>
    %431 = arith.maximumf %429, %430 : vector<1x128xf32>
    %432 = arith.truncf %431 : vector<1x128xf32> to vector<1x128xbf16>
    %c0_415 = arith.constant 0 : index
    %c0_416 = arith.constant 0 : index
    %433 = vector.load %arg16[%c0_415, %c0_416] : memref<128x128xbf16, #tpu.memory_space<vmem>>, vector<128x128xbf16>
    %cst_417 = arith.constant dense<0.000000e+00> : vector<1x128xf32>
    %434 = tpu.matmul %432, %433, %cst_417 {dimension_numbers = #tpu.dot_dimension_numbers<[1], [0], [0], [1], [0, 0, 1, 1], [], []>} : vector<1x128xbf16>, vector<128x128xbf16>, vector<1x128xf32> -> vector<1x128xf32>
    %c0_418 = arith.constant 0 : index
    %c0_419 = arith.constant 0 : index
    %435 = vector.load %arg17[%c0_418, %c0_419] : memref<1x128xf32, #tpu.memory_space<vmem>>, vector<1x128xf32>
    %436 = arith.addf %434, %435 : vector<1x128xf32>
    %437 = vector.shape_cast %436 : vector<1x128xf32> to vector<1x128xf32>
    %438 = vector.broadcast %437 : vector<1x128xf32> to vector<8x128xf32>
    %c0_420 = arith.constant 0 : index
    %c0_421 = arith.constant 0 : index
    %c0_422 = arith.constant 0 : index
    %439 = vector.load %arg18[%c0_420, %c0_421, %c0_422] : memref<1x8x128xf32, #tpu.memory_space<vmem>>, vector<1x8x128xf32>
    %440 = vector.shape_cast %439 : vector<1x8x128xf32> to vector<8x128xf32>
    %441 = vector.shape_cast %438 : vector<8x128xf32> to vector<1x8x128xf32>
    tpu.vector_store %arg18[%c0_420, %c0_421, %c0_422], %441 {strides = array<i32>} : memref<1x8x128xf32, #tpu.memory_space<vmem>>, vector<1x8x128xf32>,
    return
  }
  func.func @transform_0(%arg0: i32) -> (i32, i32, i32) {
    %c0_i32 = arith.constant 0 : i32
    %c0_i32_0 = arith.constant 0 : i32
    %c0_i32_1 = arith.constant 0 : i32
    return %arg0, %c0_i32, %c0_i32_0 : i32, i32, i32
  }
  func.func @transform_1(%arg0: i32) -> (i32, i32) {
    %c0_i32 = arith.constant 0 : i32
    %c0_i32_0 = arith.constant 0 : i32
    %c0_i32_1 = arith.constant 0 : i32
    return %c0_i32, %c0_i32_0 : i32, i32
  }
  func.func @transform_2(%arg0: i32) -> (i32, i32) {
    %c0_i32 = arith.constant 0 : i32
    %c0_i32_0 = arith.constant 0 : i32
    %c0_i32_1 = arith.constant 0 : i32
    return %c0_i32, %c0_i32_0 : i32, i32
  }
  func.func @transform_3(%arg0: i32) -> (i32, i32, i32) {
    %c0_i32 = arith.constant 0 : i32
    %c0_i32_0 = arith.constant 0 : i32
    %c0_i32_1 = arith.constant 0 : i32
    %c0_i32_2 = arith.constant 0 : i32
    return %c0_i32, %c0_i32_0, %c0_i32_1 : i32, i32, i32
  }
  func.func @transform_4(%arg0: i32) -> (i32, i32) {
    %c0_i32 = arith.constant 0 : i32
    %c0_i32_0 = arith.constant 0 : i32
    %c0_i32_1 = arith.constant 0 : i32
    return %c0_i32, %c0_i32_0 : i32, i32
  }
  func.func @transform_5(%arg0: i32) -> (i32, i32, i32) {
    %c0_i32 = arith.constant 0 : i32
    %c0_i32_0 = arith.constant 0 : i32
    %c0_i32_1 = arith.constant 0 : i32
    %c0_i32_2 = arith.constant 0 : i32
    return %c0_i32, %c0_i32_0, %c0_i32_1 : i32, i32, i32
  }
  func.func @transform_6(%arg0: i32) -> (i32, i32) {
    %c0_i32 = arith.constant 0 : i32
    %c0_i32_0 = arith.constant 0 : i32
    %c0_i32_1 = arith.constant 0 : i32
    return %c0_i32, %c0_i32_0 : i32, i32
  }
  func.func @transform_7(%arg0: i32) -> (i32, i32, i32) {
    %c0_i32 = arith.constant 0 : i32
    %c0_i32_0 = arith.constant 0 : i32
    %c0_i32_1 = arith.constant 0 : i32
    %c0_i32_2 = arith.constant 0 : i32
    return %c0_i32, %c0_i32_0, %c0_i32_1 : i32, i32, i32
  }
  func.func @transform_8(%arg0: i32) -> (i32, i32) {
    %c0_i32 = arith.constant 0 : i32
    %c0_i32_0 = arith.constant 0 : i32
    %c0_i32_1 = arith.constant 0 : i32
    return %c0_i32, %c0_i32_0 : i32, i32
  }
  func.func @transform_9(%arg0: i32) -> (i32, i32, i32) {
    %c0_i32 = arith.constant 0 : i32
    %c0_i32_0 = arith.constant 0 : i32
    %c0_i32_1 = arith.constant 0 : i32
    %c0_i32_2 = arith.constant 0 : i32
    return %c0_i32, %c0_i32_0, %c0_i32_1 : i32, i32, i32
  }
  func.func @transform_10(%arg0: i32) -> (i32, i32) {
    %c0_i32 = arith.constant 0 : i32
    %c0_i32_0 = arith.constant 0 : i32
    %c0_i32_1 = arith.constant 0 : i32
    return %c0_i32, %c0_i32_0 : i32, i32
  }
  func.func @transform_11(%arg0: i32) -> (i32, i32, i32) {
    %c0_i32 = arith.constant 0 : i32
    %c0_i32_0 = arith.constant 0 : i32
    %c0_i32_1 = arith.constant 0 : i32
    %c0_i32_2 = arith.constant 0 : i32
    return %c0_i32, %c0_i32_0, %c0_i32_1 : i32, i32, i32
  }
  func.func @transform_12(%arg0: i32) -> (i32, i32) {
    %c0_i32 = arith.constant 0 : i32
    %c0_i32_0 = arith.constant 0 : i32
    %c0_i32_1 = arith.constant 0 : i32
    return %c0_i32, %c0_i32_0 : i32, i32
  }
  func.func @transform_13(%arg0: i32) -> (i32, i32) {
    %c0_i32 = arith.constant 0 : i32
    %c0_i32_0 = arith.constant 0 : i32
    %c0_i32_1 = arith.constant 0 : i32
    return %c0_i32, %c0_i32_0 : i32, i32
  }
  func.func @transform_14(%arg0: i32) -> (i32, i32) {
    %c0_i32 = arith.constant 0 : i32
    %c0_i32_0 = arith.constant 0 : i32
    %c0_i32_1 = arith.constant 0 : i32
    return %c0_i32, %c0_i32_0 : i32, i32
  }
  func.func @transform_15(%arg0: i32) -> (i32, i32) {
    %c0_i32 = arith.constant 0 : i32
    %c0_i32_0 = arith.constant 0 : i32
    %c0_i32_1 = arith.constant 0 : i32
    return %c0_i32, %c0_i32_0 : i32, i32
  }
  func.func @transform_16(%arg0: i32) -> (i32, i32) {
    %c0_i32 = arith.constant 0 : i32
    %c0_i32_0 = arith.constant 0 : i32
    %c0_i32_1 = arith.constant 0 : i32
    return %c0_i32, %c0_i32_0 : i32, i32
  }
  func.func @transform_17(%arg0: i32) -> (i32, i32, i32) {
    %c0_i32 = arith.constant 0 : i32
    %c0_i32_0 = arith.constant 0 : i32
    %c0_i32_1 = arith.constant 0 : i32
    return %arg0, %c0_i32, %c0_i32_0 : i32, i32, i32
  }
}

</mosaic_0001>

<bundles_post_ra>
// kernel: alexnet_forward.1
= control target key start
LH: loop header
LB: loop body
LE: loop exit
PB: predicated region body
PF: predicated region fallthrough
CT: control target
= control target key end

     0   :  { %s19338_s24 = smov 0   ;;  %s25542_s0 = inlined_call_operand.vmem [shape: bf16[2,240,256], index: 0, kind: input, shape index: {}]   ;;  %s25543_s1 = inlined_call_operand.vmem [shape: bf16[256,128], index: 1, kind: input, shape index: {}]   ;;  %s25544_s2 = inlined_call_operand.vmem [shape: f32[1,128], index: 2, kind: input, shape index: {}]   ;;  %s25545_s3 = inlined_call_operand.vmem [shape: bf16[13,256,128], index: 3, kind: input, shape index: {}]   ;;  %s25546_s4 = inlined_call_operand.vmem [shape: f32[1,128], index: 4, kind: input, shape index: {}]   ;;  %s25547_s5 = inlined_call_operand.vmem [shape: bf16[9,128,256], index: 5, kind: input, shape index: {}]   ;;  %s25548_s6 = inlined_call_operand.vmem [shape: f32[1,256], index: 6, kind: input, shape index: {}]   ;;  %s25549_s7 = inlined_call_operand.vmem [shape: bf16[9,256,256], index: 7, kind: input, shape index: {}]   ;;  %s25550_s8 = inlined_call_operand.vmem [shape: f32[1,256], index: 8, kind: input, shape index: {}]   ;;  %s25551_s9 = inlined_call_operand.vmem [shape: bf16[9,256,128], index: 9, kind: input, shape index: {}]   ;;  %s25552_s10 = inlined_call_operand.vmem [shape: f32[1,128], index: 10, kind: input, shape index: {}]   ;;  %s25553_s11 = inlined_call_operand.vmem [shape: bf16[9,128,128], index: 11, kind: input, shape index: {}]   ;;  %s25554_s12 = inlined_call_operand.vmem [shape: f32[1,128], index: 12, kind: input, shape index: {}]   ;;  %s25555_s13 = inlined_call_operand.vmem [shape: bf16[128,128], index: 13, kind: input, shape index: {}]   ;;  %s25556_s14 = inlined_call_operand.vmem [shape: f32[1,128], index: 14, kind: input, shape index: {}]   ;;  %s25557_s15 = inlined_call_operand.vmem [shape: bf16[128,128], index: 15, kind: input, shape index: {}]   ;;  %s25558_s16 = inlined_call_operand.vmem [shape: f32[1,128], index: 16, kind: input, shape index: {}]   ;;  %s25559_s17 = inlined_call_operand.vmem [shape: f32[2,8,128], index: 17, kind: output, shape index: {}]  }
   0x1   :  { %25635 = sst [smem:[#allocation54_spill]] %s25542_s0 }
   0x2   :  { %25636 = sst [smem:[#allocation55_spill]] %s25543_s1 }
   0x3 LB: > { %25637 = sst [smem:[#allocation12_spill]] %s19243_s24  ;;  %s13035_s25 = sadd.s32 4294967295, %s19243_s24   ;;  %s19243_s24 = sphi %s19338_s24, %s27_s24  }
   0x4   : > { %p13039_p0 = scmp.ge.s32.totalorder %s19243_s24, 1  ;;  %p487_p1 = scmp.lt.s32.totalorder %s19243_s24, 3 }
   0x6   : > { %p488_p2 = pnand %p13039_p0, %p487_p1 }
   0x8   : > { %491 = sbr.rel (%p488_p2) target bundleno = 2912 (0xb60), region = 88 }
   0xd   : > { %s25638_s28 = sld [smem:[#allocation55_spill]]  ;;  %p538_p3 = scmp.lt.s32.totalorder %s13035_s25, 1  ;;  %vm1584_vm0 = vcmask 1046528   ;;  %vm1427_vm1 = vsmask.f32 7424  ;;  %vm2097_vm3 = vcmask 1045504  }
   0xe   : > { %s25639_s1 = sld [smem:[#allocation54_spill]]  ;;  %vm2829_vm2 = vsmask.f32 6400  ;;  %vm2050_vm4 = vcmask 1041408   ;;  %vm7468_vm7 = vcmask 1040384  }
   0xf   : > { %s25772_s25 = smov (!%p538_p3, %s13035_s25), 1 }
  0x10   : > { %s19196_s26 = smul.u32 240, %s25772_s25  ;;  %s13041_s29 = sshll.u32 %s25772_s25, 3 }
  0x11   : > { %s546_s18 = scalar_lea.vmem %s25559_s17, %s13041_s29 }
  0x13   : > { %v18129_v0 = vld [vmem:[%s25638_s28 + $0x38] sm:$0xff]  ;;  %v18128_v2 = vld [vmem:[%s25638_s28 + $0x30] sm:$0xff]  ;;  %v18127_v4 = vld [vmem:[%s25638_s28 + $0x28] sm:$0xff] }
  0x14   : > { %v18137_v1 = vld [vmem:[%s25638_s28 + $0x78] sm:$0xff]  ;;  %859 = vmatpush.bf16.msra.mxu0 %v18129_v0  ;;  %v18136_v3 = vld [vmem:[%s25638_s28 + $0x70] sm:$0xff]  ;;  %v18135_v5 = vld [vmem:[%s25638_s28 + $0x68] sm:$0xff]  ;;  %s19394_s20 = scalar_lea.vmem %s25639_s1, %s19196_s26 }
  0x15   : > { %943 = vmatpush.bf16.msra.mxu1 %v18137_v1  ;;  %v18126_v6 = vld [vmem:[%s25638_s28 + $0x20] sm:$0xff]  ;;  %v18125_v8 = vld [vmem:[%s25638_s28 + $0x18] sm:$0xff]  ;;  %v18124_v10 = vld [vmem:[%s25638_s28 + $0x10] sm:$0xff] }
  0x16   : > { %v18134_v7 = vld [vmem:[%s25638_s28 + $0x60] sm:$0xff]  ;;  %v18133_v9 = vld [vmem:[%s25638_s28 + $0x58] sm:$0xff]  ;;  %v18132_v11 = vld [vmem:[%s25638_s28 + $0x50] sm:$0xff] }
  0x17   : > { %v18123_v12 = vld [vmem:[%s25638_s28 + $0x8] sm:$0xff]  ;;  %v18122_v14 = vld [vmem:[%s25638_s28] sm:$0xff]  ;;  %v13052_v22 = vld [vmem:[%s19394_s20 + $0x10] sm:$0xf] }
  0x18   : > { %860 = vmatpush.bf16.msra.mxu0 %v18128_v2  ;;  %v18131_v13 = vld [vmem:[%s25638_s28 + $0x48] sm:$0xff]  ;;  %v18130_v15 = vld [vmem:[%s25638_s28 + $0x40] sm:$0xff]  ;;  %v18095_v23 = vld [vmem:[%s19394_s20 + $0x14] sm:$0xf0] }
  0x19   : > { %944 = vmatpush.bf16.msra.mxu1 %v18136_v3  ;;  %v13044_v16 = vld [vmem:[%s19394_s20] sm:$0xf]  ;;  %v18093_v17 = vld [vmem:[%s19394_s20 + $0x4] sm:$0xf0]  ;;  %v18092_v18 = vld [vmem:[%s19394_s20 + $0x4] sm:$0xf]  ;;  %v13053_v26 = vor.u32 %v18095_v23, %v13052_v22 }
  0x1a   : > { %v13046_v19 = vld [vmem:[%s19394_s20 + $0x8] sm:$0xf0]  ;;  %v13045_v20 = vor.u32 %v18093_v17, %v13044_v16  ;;  %v18094_v24 = vld [vmem:[%s19394_s20 + $0x14] sm:$0xf]  ;;  %v13054_v25 = vld [vmem:[%s19394_s20 + $0x18] sm:$0xf0] }
  0x1b   : > { %v13049_v21 = vor.u32 %v18092_v18, %v13046_v19  ;;  %v13057_v27 = vor.u32 %v18094_v24, %v13054_v25  ;;  %v13060_v28 = vld [vmem:[%s19394_s20 + $0x20] sm:$0xf]  ;;  %v18097_v29 = vld [vmem:[%s19394_s20 + $0x24] sm:$0xf0]  ;;  %v18096_v30 = vld [vmem:[%s19394_s20 + $0x24] sm:$0xf] }
  0x1c   : > { %861 = vmatpush.bf16.msra.mxu0 %v18127_v4  ;;  %v13062_v31 = vld [vmem:[%s19394_s20 + $0x28] sm:$0xf0]  ;;  %v13061_v32 = vor.u32 %v18097_v29, %v13060_v28  ;;  %v13068_v34 = vld [vmem:[%s19394_s20 + $0x30] sm:$0xf]  ;;  %v18099_v35 = vld [vmem:[%s19394_s20 + $0x34] sm:$0xf0] }
  0x1d   : > { %945 = vmatpush.bf16.msra.mxu1 %v18135_v5  ;;  %v13065_v33 = vor.u32 %v18096_v30, %v13062_v31  ;;  %v18098_v36 = vld [vmem:[%s19394_s20 + $0x34] sm:$0xf]  ;;  %v13070_v37 = vld [vmem:[%s19394_s20 + $0x38] sm:$0xf0]  ;;  %v13069_v38 = vor.u32 %v18099_v35, %v13068_v34  ;;  %v13076_v40 = vld [vmem:[%s19394_s20 + $0x40] sm:$0xf] }
  0x1e   : > { %v13073_v39 = vor.u32 %v18098_v36, %v13070_v37  ;;  %v18101_v41 = vld [vmem:[%s19394_s20 + $0x44] sm:$0xf0]  ;;  %v18100_v42 = vld [vmem:[%s19394_s20 + $0x44] sm:$0xf]  ;;  %v13078_v43 = vld [vmem:[%s19394_s20 + $0x48] sm:$0xf0] }
  0x1f   : > { %v13077_v44 = vor.u32 %v18101_v41, %v13076_v40  ;;  %v13081_v45 = vor.u32 %v18100_v42, %v13078_v43  ;;  %v13084_v46 = vld [vmem:[%s19394_s20 + $0x50] sm:$0xf]  ;;  %v18103_v47 = vld [vmem:[%s19394_s20 + $0x54] sm:$0xf0]  ;;  %v18102_v48 = vld [vmem:[%s19394_s20 + $0x54] sm:$0xf] }
  0x20   : > { %862 = vmatpush.bf16.msra.mxu0 %v18126_v6  ;;  %v13086_v49 = vld [vmem:[%s19394_s20 + $0x58] sm:$0xf0]  ;;  %v13085_v50 = vor.u32 %v18103_v47, %v13084_v46  ;;  %v13092_v52 = vld [vmem:[%s19394_s20 + $0x60] sm:$0xf]  ;;  %v18105_v53 = vld [vmem:[%s19394_s20 + $0x64] sm:$0xf0] }
  0x21   : > { %946 = vmatpush.bf16.msra.mxu1 %v18134_v7  ;;  %v13089_v51 = vor.u32 %v18102_v48, %v13086_v49  ;;  %v18104_v54 = vld [vmem:[%s19394_s20 + $0x64] sm:$0xf]  ;;  %v13094_v55 = vld [vmem:[%s19394_s20 + $0x68] sm:$0xf0]  ;;  %v13093_v56 = vor.u32 %v18105_v53, %v13092_v52  ;;  %v13100_v58 = vld [vmem:[%s19394_s20 + $0x70] sm:$0xf] }
  0x22   : > { %v13097_v57 = vor.u32 %v18104_v54, %v13094_v55  ;;  %v18107_v59 = vld [vmem:[%s19394_s20 + $0x74] sm:$0xf0]  ;;  %v18106_v60 = vld [vmem:[%s19394_s20 + $0x74] sm:$0xf]  ;;  %v13102_v61 = vld [vmem:[%s19394_s20 + $0x78] sm:$0xf0] }
  0x23   : > { %v13101_v62 = vor.u32 %v18107_v59, %v13100_v58  ;;  %v13105_v63 = vor.u32 %v18106_v60, %v13102_v61  ;;  %v13108_v0 = vld [vmem:[%s19394_s20 + $0x80] sm:$0xf]  ;;  %v18109_v1 = vld [vmem:[%s19394_s20 + $0x84] sm:$0xf0]  ;;  %v18108_v2 = vld [vmem:[%s19394_s20 + $0x84] sm:$0xf] }
  0x24   : > { %863 = vmatpush.bf16.msra.mxu0 %v18125_v8  ;;  %v13110_v3 = vld [vmem:[%s19394_s20 + $0x88] sm:$0xf0]  ;;  %v19441_v4 = vld [vmem:[%s25544_s2] ss:$0 sm:$0xff]  ;;  %v13109_v5 = vor.u32 %v18109_v1, %v13108_v0  ;;  %v13116_v18 = vld [vmem:[%s19394_s20 + $0x90] sm:$0xf] }
  0x25   : > { %947 = vmatpush.bf16.msra.mxu1 %v18133_v9  ;;  %v13113_v6 = vor.u32 %v18108_v2, %v13110_v3  ;;  %v18111_v19 = vld [vmem:[%s19394_s20 + $0x94] sm:$0xf0]  ;;  %v18165_v22 = vld [vmem:[%s25545_s3 + $0xa8] sm:$0xff]  ;;  %v19245_v30 = vmov 0.0   ;;  %v13124_v36 = vld [vmem:[%s19394_s20 + $0xa0] sm:$0xf] }
  0x26   : > { %v13117_v24 = vor.u32 %v18111_v19, %v13116_v18  ;;  %1272 = vst [vmem:[#allocation3 + $0x20] sm:$0xff] %v19245_v30  ;;  %v18113_v37 = vld [vmem:[%s19394_s20 + $0xa4] sm:$0xf0]  ;;  %v13132_v59 = vld [vmem:[%s19394_s20 + $0xb0] sm:$0xf] }
  0x27   : > { %1273 = vst [vmem:[#allocation3 + $0x28] sm:$0xff] %v19245_v30  ;;  %v13125_v41 = vor.u32 %v18113_v37, %v13124_v36  ;;  %v18115_v60 = vld [vmem:[%s19394_s20 + $0xb4] sm:$0xf0]  ;;  %v18162_v2 = vld [vmem:[%s25545_s3 + $0x90] sm:$0xff] }
  0x28   : > { %864 = vmatpush.bf16.msra.mxu0 %v18124_v10  ;;  %1268 = vst [vmem:[#allocation3] sm:$0xff] %v19245_v30  ;;  %v13133_v3 = vor.u32 %v18115_v60, %v13132_v59  ;;  %v18171_v37 = vld [vmem:[%s25545_s3 + $0xd8] sm:$0xff] }
  0x29   : > { %948 = vmatpush.bf16.msra.mxu1 %v18132_v11  ;;  %v18167_v11 = vld [vmem:[%s25545_s3 + $0xb8] sm:$0xff]  ;;  %1274 = vst [vmem:[#allocation3 + $0x30] sm:$0xff] %v19245_v30 }
  0x2a   : > { %1725 = vmatpush.bf16.msra.mxu2 %v18167_v11  ;;  %1275 = vst [vmem:[#allocation3 + $0x38] sm:$0xff] %v19245_v30  ;;  %v18161_v11 = vld [vmem:[%s25545_s3 + $0x88] sm:$0xff]  ;;  %v18212_v60 = vld [vmem:[%s25545_s3 + $0x1b8] sm:$0xff] }
  0x2b   : > { %1276 = vst [vmem:[#allocation3 + $0x40] sm:$0xff] %v19245_v30 }
  0x2c   : > { %865 = vmatpush.bf16.msra.mxu0 %v18123_v12  ;;  %1277 = vst [vmem:[#allocation3 + $0x48] sm:$0xff] %v19245_v30 }
  0x2d   : > { %949 = vmatpush.bf16.msra.mxu1 %v18131_v13  ;;  %1278 = vst [vmem:[#allocation3 + $0x50] sm:$0xff] %v19245_v30 }
  0x2e   : > { %1279 = vst [vmem:[#allocation3 + $0x58] sm:$0xff] %v19245_v30 }
  0x2f   : > { %1280 = vst [vmem:[#allocation3 + $0x60] sm:$0xff] %v19245_v30 }
  0x30   : > { %866 = vmatpush.bf16.msra.mxu0 %v18122_v14  ;;  %1281 = vst [vmem:[#allocation3 + $0x68] sm:$0xff] %v19245_v30 }
  0x31   : > { %950 = vmatpush.bf16.msra.mxu1 %v18130_v15  ;;  %v18166_v15 = vld [vmem:[%s25545_s3 + $0xb0] sm:$0xff]  ;;  %1282 = vst [vmem:[#allocation3 + $0x70] sm:$0xff] %v19245_v30 }
  0x32   : > { %1726 = vmatpush.bf16.msra.mxu2 %v18166_v15  ;;  %1283 = vst [vmem:[#allocation3 + $0x78] sm:$0xff] %v19245_v30 }
  0x33   : > { %867 = vmatmul.bf16.vlgmr.msra.gmra.mxu0 %v13045_v20  ;;  %v18110_v20 = vld [vmem:[%s19394_s20 + $0x94] sm:$0xf]  ;;  %1284 = vst [vmem:[#allocation3 + $0x80] sm:$0xff] %v19245_v30 }
  0x34   : > { %951 = vmatmul.bf16.vlgmr.msra.gmra.mxu1 %v13049_v21  ;;  %v13118_v21 = vld [vmem:[%s19394_s20 + $0x98] sm:$0xf0]  ;;  %1285 = vst [vmem:[#allocation3 + $0x88] sm:$0xff] %v19245_v30  ;;  %2670 = vmatpush.bf16.msrb.mxu0 %v18212_v60 }
  0x35   : > { %v13121_v25 = vor.u32 %v18110_v20, %v13118_v21  ;;  %5982 = vst [vmem:[#allocation6 + $0x8] sm:$0xff] %v19245_v30  ;;  %v18160_v20 = vld [vmem:[%s25545_s3 + $0x80] sm:$0xff]  ;;  %v18173_v21 = vld [vmem:[%s25545_s3 + $0xe8] sm:$0xff] }
  0x36   : > { %1727 = vmatpush.bf16.msra.mxu2 %v18165_v22  ;;  %5983 = vst [vmem:[#allocation6 + $0x10] sm:$0xff] %v19245_v30 }
  0x37   : > { %5984 = vst [vmem:[#allocation6 + $0x18] sm:$0xff] %v19245_v30 }
  0x38   : > { %7446 = vst [vmem:[#allocation8 + $0x58] sm:$0xff] %v19245_v30 }
  0x39   : > { %7447 = vst [vmem:[#allocation8 + $0x18] sm:$0xff] %v19245_v30 }
  0x3a   : > { %7450 = vst [vmem:[#allocation8 + $0x8] sm:$0xff] %v19245_v30 }
  0x3b   : > { %7451 = vst [vmem:[#allocation8 + $0x38] sm:$0xff] %v19245_v30 }
  0x3c   : > { %10201 = vst [vmem:[#allocation10 + $0x50] sm:$0xff] %v19245_v30 }
  0x3d   : > { %10202 = vst [vmem:[#allocation10 + $0x30] sm:$0xff] %v19245_v30 }
  0x3e   : > { %10205 = vst [vmem:[#allocation10 + $0x18] sm:$0xff] %v19245_v30 }
  0x3f   : > { %10206 = vst [vmem:[#allocation10 + $0x40] sm:$0xff] %v19245_v30 }
  0x43   : > { %872 = vmatmul.bf16.gmra.mxu0 %v13053_v26 }
  0x44   : > { %956 = vmatmul.bf16.gmra.mxu1 %v13057_v27 }
  0x53   : > { %877 = vmatmul.bf16.gmra.mxu0 %v13061_v32 }
  0x54   : > { %961 = vmatmul.bf16.gmra.mxu1 %v13065_v33 }
  0x63   : > { %882 = vmatmul.bf16.gmra.mxu0 %v13069_v38  ;;  %v18112_v38 = vld [vmem:[%s19394_s20 + $0xa4] sm:$0xf] }
  0x64   : > { %966 = vmatmul.bf16.gmra.mxu1 %v13073_v39  ;;  %v13126_v39 = vld [vmem:[%s19394_s20 + $0xa8] sm:$0xf0] }
  0x65   : > { %v13129_v42 = vor.u32 %v18112_v38, %v13126_v39 }
  0x73   : > { %887 = vmatmul.bf16.gmra.mxu0 %v13077_v44 }
  0x74   : > { %971 = vmatmul.bf16.gmra.mxu1 %v13081_v45 }
  0x83   : > { %892 = vmatmul.bf16.gmra.mxu0 %v13085_v50  ;;  %v18164_v50 = vld [vmem:[%s25545_s3 + $0xa0] sm:$0xff] }
  0x84   : > { %976 = vmatmul.bf16.gmra.mxu1 %v13089_v51  ;;  %1728 = vmatpush.bf16.msra.mxu2 %v18164_v50  ;;  %v13148_v50 = vld [vmem:[%s19394_s20 + $0xd0] sm:$0xf] }
  0x93   : > { %897 = vmatmul.bf16.gmra.mxu0 %v13093_v56 }
  0x94   : > { %981 = vmatmul.bf16.gmra.mxu1 %v13097_v57  ;;  %v18163_v57 = vld [vmem:[%s25545_s3 + $0x98] sm:$0xff] }
  0x95   : > { %1729 = vmatpush.bf16.msra.mxu2 %v18163_v57 }
  0x99   : > { %1730 = vmatpush.bf16.msra.mxu2 %v18162_v2  ;;  %v18168_v2 = vld [vmem:[%s25545_s3 + $0xc0] sm:$0xff] }
  0x9d   : > { %1731 = vmatpush.bf16.msra.mxu2 %v18161_v11 }
  0xa1   : > { %1732 = vmatpush.bf16.msra.mxu2 %v18160_v20 }
  0xa3   : > { %902 = vmatmul.bf16.gmra.mxu0 %v13101_v62  ;;  %v18114_v62 = vld [vmem:[%s19394_s20 + $0xb4] sm:$0xf] }
  0xa4   : > { %986 = vmatmul.bf16.gmra.mxu1 %v13105_v63  ;;  %v13134_v63 = vld [vmem:[%s19394_s20 + $0xb8] sm:$0xf0] }
  0xb0   : > { %v868_v7 = vpop.f32.mrf.mxu0 }
  0xb1   : > { %v952_v8 = vpop.f32.mrf.mxu1  ;;  %v869_v9 = vadd.f32 %v19441_v4, %v868_v7 }
  0xb3   : > { %v953_v10 = vadd.f32 %v952_v8, %v869_v9  ;;  %907 = vmatmul.bf16.gmra.mxu0 %v13109_v5  ;;  %v13137_v5 = vor.u32 %v18114_v62, %v13134_v63  ;;  %v13150_v62 = vld [vmem:[%s19394_s20 + $0xd8] sm:$0xf0] }
  0xb4   : > { %991 = vmatmul.bf16.gmra.mxu1 %v13113_v6  ;;  %v18175_v6 = vld [vmem:[%s25545_s3 + $0xf8] sm:$0xff] }
  0xb5   : > { %v1027_v12 = vmax.f32 %v953_v10, 0.0  ;;  %1769 = vmatpush.bf16.msra.mxu3 %v18175_v6  ;;  %v18211_v6 = vld [vmem:[%s25545_s3 + $0x1b0] sm:$0xff] }
  0xb6   : > { %2671 = vmatpush.bf16.msrb.mxu0 %v18211_v6 }
  0xb7   : > { %1057 = vst [vmem:[#allocation2] sm:$0xff] %v1027_v12  ;;  %v18174_v12 = vld [vmem:[%s25545_s3 + $0xf0] sm:$0xff] }
  0xb8   : > { %v870_v13 = vpop.f32.mrf.mxu0 }
  0xb9   : > { %v954_v14 = vpop.f32.mrf.mxu1  ;;  %v871_v16 = vadd.f32 %v19441_v4, %v870_v13  ;;  %1770 = vmatpush.bf16.msra.mxu3 %v18174_v12 }
  0xbb   : > { %v955_v17 = vadd.f32 %v954_v14, %v871_v16 }
  0xbd   : > { %v1028_v23 = vmax.f32 %v955_v17, 0.0  ;;  %1771 = vmatpush.bf16.msra.mxu3 %v18173_v21 }
  0xbf   : > { %1058 = vst [vmem:[#allocation2 + $0x8] sm:$0xff] %v1028_v23 }
  0xc0   : > { %v873_v26 = vpop.f32.mrf.mxu0 }
  0xc1   : > { %v957_v27 = vpop.f32.mrf.mxu1  ;;  %v874_v28 = vadd.f32 %v19441_v4, %v873_v26 }
  0xc3   : > { %v958_v29 = vadd.f32 %v957_v27, %v874_v28  ;;  %912 = vmatmul.bf16.gmra.mxu0 %v13117_v24  ;;  %v13140_v24 = vld [vmem:[%s19394_s20 + $0xc0] sm:$0xf]  ;;  %v18116_v27 = vld [vmem:[%s19394_s20 + $0xc4] sm:$0xf]  ;;  %v13142_v28 = vld [vmem:[%s19394_s20 + $0xc8] sm:$0xf0] }
  0xc4   : > { %996 = vmatmul.bf16.gmra.mxu1 %v13121_v25  ;;  %v18117_v25 = vld [vmem:[%s19394_s20 + $0xc4] sm:$0xf0] }
  0xc5   : > { %v1029_v31 = vmax.f32 %v958_v29, 0.0  ;;  %v13141_v29 = vor.u32 %v18117_v25, %v13140_v24  ;;  %v13156_v24 = vld [vmem:[%s19394_s20 + $0xe0] sm:$0xf] }
  0xc6   : > { %v1087_v47 = vld [vmem:[#allocation2] ss:$2 sm:$0x7f]  ;;  %v1101_v48 = vld [vmem:[#allocation2 + $0x1] ss:$2 sm:$0x7f] }
  0xc7   : > { %1059 = vst [vmem:[#allocation2 + $0x10] sm:$0xff] %v1029_v31  ;;  %v1114_v51 = vmax.f32 %v1087_v47, %v1101_v48  ;;  %v1122_v54 = vld [vmem:[#allocation2 + $0x2] ss:$2 sm:$0x7f]  ;;  %v13145_v31 = vor.u32 %v18116_v27, %v13142_v28 }
  0xc8   : > { %v875_v32 = vpop.f32.mrf.mxu0  ;;  %v18121_v28 = vld [vmem:[%s19394_s20 + $0xe4] sm:$0xf0] }
  0xc9   : > { %v959_v33 = vpop.f32.mrf.mxu1  ;;  %v876_v34 = vadd.f32 %v19441_v4, %v875_v32  ;;  %v1135_v61 = vmax.f32 %v1114_v51, %v1122_v54  ;;  %v18119_v51 = vld [vmem:[%s19394_s20 + $0xd4] sm:$0xf0] }
  0xca   : > { %v13149_v30 = vor.u32 %v18119_v51, %v13148_v50  ;;  %v18217_v51 = vld [vmem:[%s25545_s3 + $0x1e0] sm:$0xff] }
  0xcb   : > { %v960_v35 = vadd.f32 %v959_v33, %v876_v34  ;;  %v18172_v34 = vld [vmem:[%s25545_s3 + $0xe0] sm:$0xff] }
  0xcc   : > { %1772 = vmatpush.bf16.msra.mxu3 %v18172_v34 }
  0xcd   : > { %v1030_v40 = vmax.f32 %v960_v35, 0.0 }
  0xcf   : > { %1060 = vst [vmem:[#allocation2 + $0x18] sm:$0xff] %v1030_v40 }
  0xd0   : > { %v878_v43 = vpop.f32.mrf.mxu0  ;;  %1773 = vmatpush.bf16.msra.mxu3 %v18171_v37 }
  0xd1   : > { %v962_v44 = vpop.f32.mrf.mxu1  ;;  %v879_v45 = vadd.f32 %v19441_v4, %v878_v43  ;;  %v18170_v43 = vld [vmem:[%s25545_s3 + $0xd0] sm:$0xff] }
  0xd3   : > { %v963_v46 = vadd.f32 %v962_v44, %v879_v45  ;;  %917 = vmatmul.bf16.gmra.mxu0 %v13125_v41 }
  0xd4   : > { %1001 = vmatmul.bf16.gmra.mxu1 %v13129_v42  ;;  %1774 = vmatpush.bf16.msra.mxu3 %v18170_v43 }
  0xd5   : > { %v1031_v49 = vmax.f32 %v963_v46, 0.0 }
  0xd6   : > { %v1143_v56 = vld [vmem:[#allocation2 + $0x10] ss:$2 sm:$0x7f]  ;;  %v1164_v9 = vld [vmem:[#allocation2 + $0x11] ss:$2 sm:$0x7f] }
  0xd7   : > { %1061 = vst [vmem:[#allocation2 + $0x20] sm:$0xff] %v1031_v49  ;;  %v1156_v1 = vmax.f32 %v1135_v61, %v1143_v56  ;;  %v1185_v13 = vld [vmem:[#allocation2 + $0x12] ss:$2 sm:$0x7f]  ;;  %v18169_v49 = vld [vmem:[%s25545_s3 + $0xc8] sm:$0xff] }
  0xd8   : > { %v880_v52 = vpop.f32.mrf.mxu0  ;;  %1775 = vmatpush.bf16.msra.mxu3 %v18169_v49  ;;  %v18118_v61 = vld [vmem:[%s19394_s20 + $0xd4] sm:$0xf] }
  0xd9   : > { %v964_v53 = vpop.f32.mrf.mxu1  ;;  %v881_v55 = vadd.f32 %v19441_v4, %v880_v52  ;;  %v1177_v10 = vmax.f32 %v1156_v1, %v1164_v9  ;;  %v13153_v1 = vor.u32 %v18118_v61, %v13150_v62  ;;  %v18219_v9 = vld [vmem:[%s25545_s3 + $0x1f0] sm:$0xff]  ;;  %v18216_v62 = vld [vmem:[%s25545_s3 + $0x1d8] sm:$0xff] }
  0xdb   : > { %v965_v58 = vadd.f32 %v964_v53, %v881_v55  ;;  %v1198_v14 = vmax.f32 %v1177_v10, %v1185_v13  ;;  %v18210_v13 = vld [vmem:[%s25545_s3 + $0x1a8] sm:$0xff] }
  0xdc   : > { %1776 = vmatpush.bf16.msra.mxu3 %v18168_v2  ;;  %2672 = vmatpush.bf16.msrb.mxu0 %v18210_v13  ;;  %v18206_v13 = vld [vmem:[%s25545_s3 + $0x188] sm:$0xff] }
  0xdd   : > { %v1032_v0 = vmax.f32 %v965_v58, 0.0 }
  0xdf   : > { %1062 = vst [vmem:[#allocation2 + $0x28] sm:$0xff] %v1032_v0 }
  0xe0   : > { %v883_v7 = vpop.f32.mrf.mxu0 }
  0xe1   : > { %v967_v8 = vpop.f32.mrf.mxu1  ;;  %v884_v35 = vadd.f32 %v19441_v4, %v883_v7  ;;  %v18220_v7 = vld [vmem:[%s25545_s3 + $0x1f8] sm:$0xff] }
  0xe2   : > { %2714 = vmatpush.bf16.msrb.mxu1 %v18220_v7 }
  0xe3   : > { %922 = vmatmul.bf16.gmra.mxu0 %v13133_v3  ;;  %v968_v39 = vadd.f32 %v967_v8, %v884_v35 }
  0xe4   : > { %1006 = vmatmul.bf16.gmra.mxu1 %v13137_v5  ;;  %v19246_v5 = vmov 0.0|0.0  }
  0xe5   : > { %v1033_v46 = vmax.f32 %v968_v39, 0.0  ;;  %19070 = vst [vmem:[#allocation4] sm:$0xff] %v19246_v5   ;;  %v18208_v39 = vld [vmem:[%s25545_s3 + $0x198] sm:$0xff] }
  0xe6   : > { %v1206_v15 = vld [vmem:[#allocation2 + $0x20] ss:$2 sm:$0x7f]  ;;  %v1227_v19 = vld [vmem:[#allocation2 + $0x21] ss:$2 sm:$0x7f]  ;;  %2715 = vmatpush.bf16.msrb.mxu1 %v18219_v9 }
  0xe7   : > { %v1219_v16 = vmax.f32 %v1198_v14, %v1206_v15  ;;  %v1248_v23 = vld [vmem:[#allocation2 + $0x22] ss:$2 sm:$0x7f]  ;;  %v1103_v56 = vld [vmem:[#allocation2 + $0x21] ss:$2 sm:$0x7f] }
  0xe8   : > { %v885_v17 = vpop.f32.mrf.mxu0  ;;  %v1089_v53 = vld [vmem:[#allocation2 + $0x20] ss:$2 sm:$0x7f]  ;;  %1063 = vst [vmem:[#allocation2 + $0x30] sm:$0xff] %v1033_v46 }
  0xe9   : > { %v969_v18 = vpop.f32.mrf.mxu1  ;;  %v1240_v22 = vmax.f32 %v1219_v16, %v1227_v19  ;;  %v886_v36 = vadd.f32 %v19441_v4, %v885_v17  ;;  %v1115_v3 = vmax.f32 %v1089_v53, %v1103_v56  ;;  %19168 = vst [vmem:[#allocation4 + $0x8] sm:$0xff] %v19246_v5   ;;  %v1124_v10 = vld [vmem:[#allocation2 + $0x22] ss:$2 sm:$0x7f]  ;;  %v19563_v16 = vunpack.c.h.b16 %v19246_v5 }
  0xea   : > { %v18218_v19 = vld [vmem:[%s25545_s3 + $0x1e8] sm:$0xff] }
  0xeb   : > { %v1261_v26 = vmax.f32 %v1240_v22, %v1248_v23  ;;  %v970_v40 = vadd.f32 %v969_v18, %v886_v36  ;;  %v1136_v12 = vmax.f32 %v1115_v3, %v1124_v10  ;;  %v18209_v23 = vld [vmem:[%s25545_s3 + $0x1a0] sm:$0xff]  ;;  %2716 = vmatpush.bf16.msrb.mxu1 %v18218_v19 }
  0xec   : > { %v1527_v21 = vld [vmem:[#allocation4] sm:$0xe]  ;;  %2673 = vmatpush.bf16.msrb.mxu0 %v18209_v23 }
  0xed   : > { %1291 = vst [vmem:[#allocation3 + $0x22] sm:$0x7f] %v1261_v26  ;;  %v1034_v47 = vmax.f32 %v970_v40, 0.0  ;;  %v1530_v27 = vunpack.c.l.b16 %v1527_v21 }
  0xef   : > { %1064 = vst [vmem:[#allocation2 + $0x38] sm:$0xff] %v1034_v47  ;;  %v1531_v35 = vpack.c.b16 %v19563_v16, %v1530_v27  ;;  %2717 = vmatpush.bf16.msrb.mxu1 %v18217_v51 }
  0xf0   : > { %v888_v32 = vpop.f32.mrf.mxu0  ;;  %v19573_v26 = vld [vmem:[#allocation4 + $0x8] sm:$0xff]  ;;  %2674 = vmatpush.bf16.msrb.mxu0 %v18208_v39 }
  0xf1   : > { %v972_v33 = vpop.f32.mrf.mxu1  ;;  %v889_v38 = vadd.f32 %v19441_v4, %v888_v32  ;;  %v1586_v36 = vrot.slane %v19573_v26, 1  ;;  %v2355_v40 = vld [vmem:[#allocation4 + $0x8] sm:$0xe]  ;;  %v1440_v49 = vshrl.u32 %v19573_v26, 16  ;;  %v1538_v60 = vshll.u32 %v1531_v35, 16 }
  0xf2   : > { %v2773_v46 = vld [vmem:[#allocation4 + $0x8] sm:$0xc] }
  0xf3   : > { %927 = vmatmul.bf16.gmra.mxu0 %v13141_v29  ;;  %v973_v44 = vadd.f32 %v972_v33, %v889_v38  ;;  %v18120_v29 = vld [vmem:[%s19394_s20 + $0xe4] sm:$0xf]  ;;  %v13158_v33 = vld [vmem:[%s19394_s20 + $0xe8] sm:$0xf0]  ;;  %v1540_v3 = vrot.slane %v1538_v60, 1  ;;  %2718 = vmatpush.bf16.msrb.mxu1 %v18216_v62 }
  0xf4   : > { %1011 = vmatmul.bf16.gmra.mxu1 %v13145_v31  ;;  %v1302_v54 = vld [vmem:[#allocation3 + $0x20] sm:$0xff]  ;;  %v1303_v55 = vld [vmem:[#allocation3 + $0x28] sm:$0xff] }
  0xf5   : > { %v1035_v52 = vmax.f32 %v973_v44, 0.0  ;;  %v19079_v0 = vpack.c.bf16 %v1303_v55, %v1302_v54  ;;  %v13157_v44 = vor.u32 %v18121_v28, %v13156_v24  ;;  %v1536_v55 = vshrl.u32 %v1531_v35, 16 }
  0xf6   : > { %v1145_v14 = vld [vmem:[#allocation2 + $0x30] ss:$2 sm:$0x7f]  ;;  %v1166_v20 = vld [vmem:[#allocation2 + $0x31] ss:$2 sm:$0x7f] }
  0xf7   : > { %1065 = vst [vmem:[#allocation2 + $0x40] sm:$0xff] %v1035_v52  ;;  %v1157_v15 = vmax.f32 %v1136_v12, %v1145_v14  ;;  %v1187_v31 = vld [vmem:[#allocation2 + $0x32] ss:$2 sm:$0x7f]  ;;  %v1541_v9 = vor.u32 %v1540_v3, %v1536_v55 }
  0xf8   : > { %v890_v41 = vpop.f32.mrf.mxu0  ;;  %19169 = vst [vmem:[#allocation4 + $0x10] sm:$0xff] %v19079_v0   ;;  %v18207_v0 = vld [vmem:[%s25545_s3 + $0x190] sm:$0xff] }
  0xf9   : > { %v974_v42 = vpop.f32.mrf.mxu1  ;;  %v891_v45 = vadd.f32 %v19441_v4, %v890_v41  ;;  %v1178_v25 = vmax.f32 %v1157_v15, %v1166_v20  ;;  %v1585_v41 = vrot.slane %v1531_v35, 1  ;;  %2675 = vmatpush.bf16.msrb.mxu0 %v18207_v0 }
  0xfb   : > { %v975_v48 = vadd.f32 %v974_v42, %v891_v45  ;;  %v1199_v34 = vmax.f32 %v1178_v25, %v1187_v31  ;;  %v13161_v45 = vor.u32 %v18120_v29, %v13158_v33  ;;  %v1587_v52 = vsel %vm1584_vm0, %v1585_v41, %v1586_v36  ;;  %v18214_v29 = vld [vmem:[%s25545_s3 + $0x1c8] sm:$0xff] }
  0xfc   : > { %1733 = vmatmul.bf16.vlgmr.msra.gmra.mxu2 %v1587_v52 }
  0xfd   : > { %v1036_v57 = vmax.f32 %v975_v48, 0.0  ;;  %v1436_v48 = vshll.u32 %v19573_v26, 16  ;;  %2676 = vmatpush.bf16.msrb.mxu0 %v18206_v13 }
  0xff   : > { %1066 = vst [vmem:[#allocation2 + $0x48] sm:$0xff] %v1036_v57  ;;  %v19580_v37 = vld [vmem:[#allocation4 + $0x10] sm:$0xff] }
 0x100   : > { %v893_v58 = vpop.f32.mrf.mxu0  ;;  %v1444_v50 = vshll.u32 %v19580_v37, 16  ;;  %v19617_v14 = vld [vmem:[#allocation4 + $0x10] sm:$0xff]  ;;  %v1591_v24 = vrot.slane %v19580_v37, 1 }
 0x101   : > { %v977_v59 = vpop.f32.mrf.mxu1  ;;  %v894_v63 = vadd.f32 %v19441_v4, %v893_v58  ;;  %v19594_v58 = vrot.slane %v1436_v48, 1  ;;  %v2405_v33 = vshll.u32 %v19617_v14, 16  ;;  %v18213_v48 = vld [vmem:[%s25545_s3 + $0x1c0] sm:$0xff]  ;;  %v19644_v26 = vld [vmem:[#allocation4 + $0x10] sm:$0xff]  }
 0x102   : > { %v3477_v62 = vld [vmem:[#allocation4 + $0x10] sm:$0xe] }
 0x103   : > { %v978_v8 = vadd.f32 %v977_v59, %v894_v63  ;;  %932 = vmatmul.bf16.gmra.mxu0 %v13149_v30  ;;  %v2395_v30 = vunpack.c.l.b16 %v2355_v40  ;;  %v19596_v59 = vrot.slane %v1444_v50, 1  ;;  %v1442_v2 = vor.u32 %v1440_v49, %v19594_v58 }
 0x104   : > { %1016 = vmatmul.bf16.gmra.mxu1 %v13153_v1  ;;  %v2778_v1 = vunpack.c.l.b16 %v2773_v46  ;;  %v1592_v46 = vsel %vm1584_vm0, %v1586_v36, %v1591_v24  ;;  %v2407_v51 = vrot.slane %v2405_v33, 1 }
 0x105   : > { %v1037_v11 = vmax.f32 %v978_v8, 0.0  ;;  %v19608_v8 = vsel %vm1427_vm1, %v1442_v2, %v19596_v59  ;;  %v2396_v12 = vpack.c.b16 %v19563_v16, %v2395_v30 }
 0x106   : > { %v1208_v38 = vld [vmem:[#allocation2 + $0x40] ss:$2 sm:$0x7f]  ;;  %v1229_v43 = vld [vmem:[#allocation2 + $0x41] ss:$2 sm:$0x7f]  ;;  %v2779_v15 = vpack.c.b16 %v19563_v16, %v2778_v1 }
 0x107   : > { %1067 = vst [vmem:[#allocation2 + $0x50] sm:$0xff] %v1037_v11  ;;  %v1220_v42 = vmax.f32 %v1199_v34, %v1208_v38  ;;  %v1250_v54 = vld [vmem:[#allocation2 + $0x42] ss:$2 sm:$0x7f]  ;;  %v18215_v11 = vld [vmem:[%s25545_s3 + $0x1d0] sm:$0xff]  ;;  %v2400_v28 = vshll.u32 %v2396_v12, 16 }
 0x108   : > { %v895_v17 = vpop.f32.mrf.mxu0  ;;  %v1091_v6 = vld [vmem:[#allocation2 + $0x40] ss:$2 sm:$0x7f]  ;;  %v1105_v7 = vld [vmem:[#allocation2 + $0x41] ss:$2 sm:$0x7f]  ;;  %2719 = vmatpush.bf16.msrb.mxu1 %v18215_v11 }
 0x109   : > { %v979_v18 = vpop.f32.mrf.mxu1  ;;  %v896_v22 = vadd.f32 %v19441_v4, %v895_v17  ;;  %v1241_v53 = vmax.f32 %v1220_v42, %v1229_v43  ;;  %v1542_v17 = vsel %vm1427_vm1, %v1541_v9, %v19594_v58  ;;  %v1116_v19 = vmax.f32 %v1091_v6, %v1105_v7  ;;  %v1126_v31 = vld [vmem:[#allocation2 + $0x42] ss:$2 sm:$0x7f] }
 0x10a   : > { %v1588_v25 = vrot.slane %v1542_v17, 1  ;;  %v2783_v34 = vshll.u32 %v2779_v15, 16  ;;  %v2398_v42 = vshrl.u32 %v2396_v12, 16  ;;  %v2402_v49 = vrot.slane %v2400_v28, 1 }
 0x10b   : > { %v980_v32 = vadd.f32 %v979_v18, %v896_v22  ;;  %v1262_v63 = vmax.f32 %v1241_v53, %v1250_v54  ;;  %v1589_v18 = vrot.slane %v19608_v8, 1  ;;  %v19247_v22 = vmov 0  }
 0x10c   : > { %v2497_v23 = vrot.slane %v19247_v22, 1  ;;  %v1137_v43 = vmax.f32 %v1116_v19, %v1126_v31  ;;  %2720 = vmatpush.bf16.msrb.mxu1 %v18214_v29  ;;  %v2781_v52 = vshrl.u32 %v2779_v15, 16  ;;  %v2785_v53 = vrot.slane %v2783_v34, 1  ;;  %1738 = vmatmul.bf16.gmra.mxu2 %v1592_v46 }
 0x10d   : > { %v1038_v47 = vmax.f32 %v980_v32, 0.0  ;;  %1292 = vst [vmem:[#allocation3 + $0x32] sm:$0x7f] %v1262_v63  ;;  %v18205_v32 = vld [vmem:[%s25545_s3 + $0x180] sm:$0xff]  ;;  %v1590_v38 = vsel %vm1584_vm0, %v1588_v25, %v1589_v18  ;;  %v2830_v54 = vrot.slane %v2398_v42, 1  ;;  %v2831_v36 = vrot.slane %v2400_v28, 2 }
 0x10e   : > { %1777 = vmatmul.bf16.vlgmr.msra.gmra.mxu3 %v1590_v38  ;;  %2677 = vmatpush.bf16.msrb.mxu0 %v18205_v32  ;;  %v2834_v63 = vrot.slane %v2405_v33, 2  ;;  %v2499_v1 = vsel %vm1427_vm1, %v2497_v23, %v2407_v51  ;;  %v2786_v3 = vor.u32 %v2785_v53, %v2781_v52  ;;  %v25571_v7 = vunpack.c.h.b16 %v19644_v26 }
 0x10f   : > { %1068 = vst [vmem:[#allocation2 + $0x58] sm:$0xff] %v1038_v47  ;;  %v2832_v2 = vor.u32 %v2831_v36, %v2830_v54  ;;  %v3480_v9 = vunpack.c.l.b16 %v3477_v62 }
 0x110   : > { %v898_v56 = vpop.f32.mrf.mxu0  ;;  %2721 = vmatpush.bf16.msrb.mxu1 %v18213_v48 }
 0x111   : > { %v982_v57 = vpop.f32.mrf.mxu1  ;;  %v899_v61 = vadd.f32 %v19441_v4, %v898_v56  ;;  %v19666_v29 = vpack.c.b16 %v25571_v7, %v3480_v9 }
 0x113   : > { %v983_v5 = vadd.f32 %v982_v57, %v899_v61  ;;  %937 = vmatmul.bf16.gmra.mxu0 %v13157_v44  ;;  %v2409_v44 = vshrl.u32 %v19617_v14, 16  ;;  %v2403_v61 = vor.u32 %v2402_v49, %v2398_v42  ;;  %25640 = vst [vmem:[#allocation13_spill] sm:$0xff] %v19666_v29  ;;  %v3488_v52 = vshll.u32 %v19666_v29, 16 }
 0x114   : > { %1021 = vmatmul.bf16.gmra.mxu1 %v13161_v45  ;;  %v1304_v40 = vld [vmem:[#allocation3 + $0x30] sm:$0xff]  ;;  %v1305_v41 = vld [vmem:[#allocation3 + $0x38] sm:$0xff] }
 0x115   : > { %v1039_v10 = vmax.f32 %v983_v5, 0.0  ;;  %v19084_v45 = vpack.c.bf16 %v1305_v41, %v1304_v40  ;;  %v2833_v57 = vrot.slane %v2409_v44, 1  ;;  %v2408_v13 = vsel %vm1427_vm1, %v2403_v61, %v2407_v51 }
 0x116   : > { %v1147_v35 = vld [vmem:[#allocation2 + $0x50] ss:$2 sm:$0x7f]  ;;  %v1168_v30 = vld [vmem:[#allocation2 + $0x51] ss:$2 sm:$0x7f] }
 0x117   : > { %1069 = vst [vmem:[#allocation2 + $0x60] sm:$0xff] %v1039_v10  ;;  %v1158_v50 = vmax.f32 %v1137_v43, %v1147_v35  ;;  %v19650_v6 = vor.u32 %v2834_v63, %v2833_v57  ;;  %v1189_v10 = vld [vmem:[#allocation2 + $0x52] ss:$2 sm:$0x7f]  ;;  %v2503_v28 = vshll.u32 %v2408_v13, 16  ;;  %v2501_v54 = vshrl.u32 %v2408_v13, 16 }
 0x118   : > { %v900_v20 = vpop.f32.mrf.mxu0  ;;  %19170 = vst [vmem:[#allocation4 + $0x18] sm:$0xff] %v19084_v45   ;;  %v2411_v45 = vor.u32 %v2409_v44, %v2407_v51  ;;  %v3490_v63 = vrot.slane %v3488_v52, 1 }
 0x119   : > { %v984_v21 = vpop.f32.mrf.mxu1  ;;  %v901_v27 = vadd.f32 %v19441_v4, %v900_v20  ;;  %v1179_v0 = vmax.f32 %v1158_v50, %v1168_v30  ;;  %v19658_v15 = vsel %vm2829_vm2, %v2832_v2, %v19650_v6  ;;  %v2787_v20 = vsel %vm1427_vm1, %v2786_v3, %v2407_v51 }
 0x11a   : > { %v2838_v34 = vshrl.u32 %v2787_v20, 16  ;;  %v2505_v50 = vrot.slane %v2503_v28, 1 }
 0x11b   : > { %v985_v39 = vadd.f32 %v984_v21, %v901_v27  ;;  %v1200_v17 = vmax.f32 %v1179_v0, %v1189_v10  ;;  %v1448_v27 = vshrl.u32 %v19580_v37, 16  ;;  %v3486_v10 = vshrl.u32 %v19666_v29, 16 }
 0x11d   : > { %v1040_v47 = vmax.f32 %v985_v39, 0.0  ;;  %v1450_v39 = vor.u32 %v1448_v27, %v19596_v59 }
 0x11f   : > { %1070 = vst [vmem:[#allocation2 + $0x68] sm:$0xff] %v1040_v47  ;;  %v19653_v12 = vld [vmem:[#allocation4 + $0x18] sm:$0xff]  ;;  %v2841_v47 = vshll.u32 %v2787_v20, 16 }
 0x120   : > { %v903_v55 = vpop.f32.mrf.mxu0  ;;  %v19660_v19 = vld [vmem:[#allocation4 + $0x18] sm:$0xff]  ;;  %v1452_v33 = vshll.u32 %v19653_v12, 16  ;;  %v1595_v38 = vrot.slane %v19653_v12, 1 }
 0x121   : > { %v987_v56 = vpop.f32.mrf.mxu1  ;;  %v904_v60 = vadd.f32 %v19441_v4, %v903_v55  ;;  %v2413_v40 = vshll.u32 %v19660_v19, 16  ;;  %v18237_v46 = vld [vmem:[#allocation4 + $0x18] sm:$0xff]  ;;  %v2840_v55 = vrot.slane %v2838_v34, 1  ;;  %v3491_v34 = vor.u32 %v3490_v63, %v3486_v10 }
 0x122   : > { %v19673_v43 = vrot.slane %v1452_v33, 1  ;;  %v1596_v14 = vsel %vm1584_vm0, %v1591_v24, %v1595_v38  ;;  %v3187_v30 = vshll.u32 %v18237_v46, 16  ;;  %v2506_v24 = vor.u32 %v2505_v50, %v2501_v54  ;;  %v4132_v9 = vld [vmem:[#allocation4 + $0x18] sm:$0xe] }
 0x123   : > { %v988_v5 = vadd.f32 %v987_v56, %v904_v60  ;;  %2678 = vmatmul.bf16.vlgmr.msrb.gmra.mxu0 %v2499_v1  ;;  %v19677_v49 = vrot.slane %v2413_v40, 1  ;;  %v2417_v56 = vshrl.u32 %v19660_v19, 16  ;;  %v2843_v60 = vrot.slane %v2841_v47, 2  ;;  %1743 = vmatmul.bf16.gmra.mxu2 %v1596_v14 }
 0x124   : > { %v19682_v59 = vsel %vm1427_vm1, %v1450_v39, %v19673_v43  ;;  %v4172_v27 = vunpack.c.l.b16 %v4132_v9 }
 0x125   : > { %v1041_v11 = vmax.f32 %v988_v5, 0.0  ;;  %v1593_v44 = vrot.slane %v19682_v59, 1  ;;  %v19692_v51 = vsel %vm1427_vm1, %v2411_v45, %v19677_v49  ;;  %v19707_v5 = vld [vmem:[#allocation4 + $0x18] sm:$0xff]   ;;  %v2844_v20 = vor.u32 %v2843_v60, %v2840_v55 }
 0x126   : > { %v1210_v21 = vld [vmem:[#allocation2 + $0x60] ss:$2 sm:$0x7f]  ;;  %v1231_v31 = vld [vmem:[#allocation2 + $0x61] ss:$2 sm:$0x7f] }
 0x127   : > { %v1221_v22 = vmax.f32 %v1200_v17, %v1210_v21  ;;  %1071 = vst [vmem:[#allocation2 + $0x70] sm:$0xff] %v1041_v11  ;;  %v1252_v41 = vld [vmem:[#allocation2 + $0x62] ss:$2 sm:$0x7f]  ;;  %v2508_v36 = vshll.u32 %v19692_v51, 16  ;;  %v2512_v57 = vshrl.u32 %v19692_v51, 16  ;;  %v1594_v37 = vsel %vm1584_vm0, %v1589_v18, %v1593_v44 }
 0x128   : > { %v905_v23 = vpop.f32.mrf.mxu0  ;;  %1782 = vmatmul.bf16.gmra.mxu3 %v1594_v37  ;;  %v2849_v18 = vrot.slane %v2417_v56, 1  ;;  %v19715_v17 = vrot.slane %v3187_v30, 1  ;;  %v1093_v21 = vld [vmem:[#allocation2 + $0x60] ss:$2 sm:$0x7f] }
 0x129   : > { %v989_v25 = vpop.f32.mrf.mxu1  ;;  %v906_v32 = vadd.f32 %v19441_v4, %v905_v23  ;;  %v1242_v35 = vmax.f32 %v1221_v22, %v1231_v31  ;;  %v19702_v0 = vrot.slane %v2508_v36, 1  ;;  %v2846_v1 = vrot.slane %v2508_v36, 2  ;;  %v1107_v28 = vld [vmem:[#allocation2 + $0x61] ss:$2 sm:$0x7f] }
 0x12a   : > { %v2845_v3 = vrot.slane %v2512_v57, 1  ;;  %v2850_v22 = vrot.slane %v2413_v40, 2  ;;  %v1117_v45 = vmax.f32 %v1093_v21, %v1107_v28  ;;  %v1128_v55 = vld [vmem:[#allocation2 + $0x62] ss:$2 sm:$0x7f] }
 0x12b   : > { %v990_v42 = vadd.f32 %v989_v25, %v906_v32  ;;  %v1263_v48 = vmax.f32 %v1242_v35, %v1252_v41  ;;  %v2511_v11 = vsel %vm1427_vm1, %v2506_v24, %v19702_v0  ;;  %v25566_v25 = vunpack.c.h.b16 %v19707_v5 }
 0x12c   : > { %2722 = vmatmul.bf16.vlgmr.msrb.gmra.mxu1 %v2511_v11  ;;  %v19717_v23 = vor.u32 %v2846_v1, %v2845_v3  ;;  %v19720_v39 = vor.u32 %v2850_v22, %v2849_v18  ;;  %v1138_v30 = vmax.f32 %v1117_v45, %v1128_v55  ;;  %v2419_v11 = vor.u32 %v2417_v56, %v19677_v49 }
 0x12d   : > { %v1042_v53 = vmax.f32 %v990_v42, 0.0  ;;  %1293 = vst [vmem:[#allocation3 + $0x42] sm:$0x7f] %v1263_v48  ;;  %v19728_v40 = vpack.c.b16 %v25566_v25, %v4172_v27  ;;  %v19732_v42 = vsel %vm1427_vm1, %v3491_v34, %v19715_v17 }
 0x12e   : > { %v19724_v41 = vsel %vm2829_vm2, %v2844_v20, %v19717_v23  ;;  %25641 = vst [vmem:[#allocation14_spill] sm:$0xff] %v19732_v42  ;;  %v19737_v48 = vsel %vm2829_vm2, %v19650_v6, %v19720_v39  ;;  %v18251_v42 = vld [vmem:[%s25545_s3 + $0x2c0] sm:$0xff] }
 0x12f   : > { %1072 = vst [vmem:[#allocation2 + $0x78] sm:$0xff] %v1042_v53  ;;  %v25564_v50 = vshll.u32 %v19728_v40, 16  ;;  %v25565_v53 = vshrl.u32 %v19728_v40, 16 }
 0x130   : > { %v908_v61 = vpop.f32.mrf.mxu0 }
 0x131   : > { %v992_v62 = vpop.f32.mrf.mxu1  ;;  %v909_v2 = vadd.f32 %v19441_v4, %v908_v61  ;;  %v4179_v54 = vrot.slane %v25564_v50, 1 }
 0x133   : > { %v993_v13 = vadd.f32 %v992_v62, %v909_v2  ;;  %2683 = vmatmul.bf16.gmra.mxu0 %v19692_v51  ;;  %v19746_v60 = vor.u32 %v4179_v54, %v25565_v53 }
 0x134   : > { %v1306_v32 = vld [vmem:[#allocation3 + $0x40] sm:$0xff]  ;;  %v1307_v33 = vld [vmem:[#allocation3 + $0x48] sm:$0xff] }
 0x135   : > { %v1043_v31 = vmax.f32 %v993_v13, 0.0  ;;  %v19089_v35 = vpack.c.bf16 %v1307_v33, %v1306_v32  ;;  %v1456_v13 = vshrl.u32 %v19653_v12, 16 }
 0x136   : > { %v1149_v14 = vld [vmem:[#allocation2 + $0x70] ss:$2 sm:$0x7f]  ;;  %v1170_v1 = vld [vmem:[#allocation2 + $0x71] ss:$2 sm:$0x7f] }
 0x137   : > { %1073 = vst [vmem:[#allocation2 + $0x80] sm:$0xff] %v1043_v31  ;;  %v1159_v6 = vmax.f32 %v1138_v30, %v1149_v14  ;;  %v1191_v27 = vld [vmem:[#allocation2 + $0x72] ss:$2 sm:$0x7f]  ;;  %v1458_v49 = vor.u32 %v1456_v13, %v19673_v43  ;;  %v2514_v14 = vor.u32 %v2512_v57, %v19702_v0 }
 0x138   : > { %v910_v46 = vpop.f32.mrf.mxu0  ;;  %19171 = vst [vmem:[#allocation4 + $0x20] sm:$0xff] %v19089_v35   ;;  %v4272_v35 = vshll.u32 %v19707_v5, 16 }
 0x139   : > { %v994_v47 = vpop.f32.mrf.mxu1  ;;  %v911_v52 = vadd.f32 %v19441_v4, %v910_v46  ;;  %v1180_v18 = vmax.f32 %v1159_v6, %v1170_v1 }
 0x13a   : > { %v4274_v0 = vrot.slane %v4272_v35, 1 }
 0x13b   : > { %v995_v36 = vadd.f32 %v994_v47, %v911_v52  ;;  %v1201_v56 = vmax.f32 %v1180_v18, %v1191_v27  ;;  %v19786_v47 = vld [vmem:[%s25544_s2] ss:$0 sm:$0xff]  ;;  %v18151_v18 = vld [vmem:[%s25545_s3 + $0x38] sm:$0xff] }
 0x13c   : > { %1909 = vmatpush.bf16.msrb.mxu2 %v18151_v18 }
 0x13d   : > { %v1044_v37 = vmax.f32 %v995_v36, 0.0 }
 0x13f   : > { %1074 = vst [vmem:[#allocation2 + $0x88] sm:$0xff] %v1044_v37  ;;  %v19748_v24 = vld [vmem:[#allocation4 + $0x20] sm:$0xff] }
 0x140   : > { %v19750_v61 = vld [vmem:[#allocation4 + $0x20] sm:$0xff]  ;;  %v913_v62 = vpop.f32.mrf.mxu0  ;;  %v1599_v3 = vrot.slane %v19748_v24, 1  ;;  %v1460_v10 = vshll.u32 %v19748_v24, 16 }
 0x141   : > { %v997_v63 = vpop.f32.mrf.mxu1  ;;  %v914_v2 = vadd.f32 %v19441_v4, %v913_v62  ;;  %v2421_v9 = vshll.u32 %v19750_v61, 16  ;;  %v2425_v34 = vshrl.u32 %v19750_v61, 16  ;;  %v19793_v36 = vld [vmem:[#allocation4 + $0x20] sm:$0xff] }
 0x142   : > { %v1600_v4 = vsel %vm1584_vm0, %v1595_v38, %v1599_v3  ;;  %v19767_v22 = vrot.slane %v1460_v10, 1  ;;  %v25567_v13 = vshll.u32 %v19793_v36, 16 }
 0x143   : > { %v998_v20 = vadd.f32 %v997_v63, %v914_v2  ;;  %v19765_v21 = vrot.slane %v2421_v9, 1  ;;  %1748 = vmatmul.bf16.gmra.mxu2 %v1600_v4  ;;  %v2857_v57 = vrot.slane %v2425_v34, 1 }
 0x144   : > { %v19777_v12 = vsel %vm1427_vm1, %v1458_v49, %v19767_v22  ;;  %v19821_v49 = vrot.slane %v25567_v13, 1 }
 0x145   : > { %v1045_v28 = vmax.f32 %v998_v20, 0.0  ;;  %v19771_v19 = vsel %vm1427_vm1, %v2419_v11, %v19765_v21  ;;  %v1597_v55 = vrot.slane %v19777_v12, 1  ;;  %v18159_v11 = vld [vmem:[%s25545_s3 + $0x78] sm:$0xff] }
 0x146   : > { %2688 = vmatmul.bf16.gmra.mxu0 %v19771_v19  ;;  %v1212_v31 = vld [vmem:[#allocation2 + $0x80] ss:$2 sm:$0x7f]  ;;  %v1233_v45 = vld [vmem:[#allocation2 + $0x81] ss:$2 sm:$0x7f]  ;;  %1953 = vmatpush.bf16.msrb.mxu3 %v18159_v11 }
 0x147   : > { %v1222_v38 = vmax.f32 %v1201_v56, %v1212_v31  ;;  %1075 = vst [vmem:[#allocation2 + $0x90] sm:$0xff] %v1045_v28  ;;  %v2516_v46 = vshll.u32 %v19771_v19, 16  ;;  %v2520_v43 = vshrl.u32 %v19771_v19, 16  ;;  %v1254_v30 = vld [vmem:[#allocation2 + $0x82] ss:$2 sm:$0x7f]  ;;  %v1598_v2 = vsel %vm1584_vm0, %v1593_v44, %v1597_v55 }
 0x148   : > { %v915_v32 = vpop.f32.mrf.mxu0  ;;  %1787 = vmatmul.bf16.gmra.mxu3 %v1598_v2  ;;  %v2858_v44 = vrot.slane %v2421_v9, 2  ;;  %v4270_v9 = vshrl.u32 %v19707_v5, 16  ;;  %v1095_v35 = vld [vmem:[#allocation2 + $0x80] ss:$2 sm:$0x7f] }
 0x149   : > { %v999_v33 = vpop.f32.mrf.mxu1  ;;  %v916_v52 = vadd.f32 %v19786_v47, %v915_v32  ;;  %v1243_v54 = vmax.f32 %v1222_v38, %v1233_v45  ;;  %v19795_v37 = vrot.slane %v2516_v46, 1  ;;  %v2853_v6 = vrot.slane %v2520_v43, 1 }
 0x14a   : > { %v2854_v62 = vrot.slane %v2516_v46, 2  ;;  %v19817_v28 = vor.u32 %v2858_v44, %v2857_v57  ;;  %v4275_v32 = vor.u32 %v4274_v0, %v4270_v9  ;;  %v1109_v46 = vld [vmem:[#allocation2 + $0x81] ss:$2 sm:$0x7f]  ;;  %v18158_v57 = vld [vmem:[%s25545_s3 + $0x70] sm:$0xff] }
 0x14b   : > { %v1000_v63 = vadd.f32 %v999_v33, %v916_v52  ;;  %v1264_v1 = vmax.f32 %v1243_v54, %v1254_v30  ;;  %v2519_v51 = vsel %vm1427_vm1, %v2514_v14, %v19795_v37  ;;  %v19842_v30 = vsel %vm1427_vm1, %v19746_v60, %v19821_v49  ;;  %1954 = vmatpush.bf16.msrb.mxu3 %v18158_v57  ;;  %v19883_v57 = vld [vmem:[#allocation4 + $0x20] sm:$0xff]  }
 0x14c   : > { %2727 = vmatmul.bf16.gmra.mxu1 %v2519_v51  ;;  %v19815_v20 = vor.u32 %v2854_v62, %v2853_v6  ;;  %v19833_v38 = vsel %vm2829_vm2, %v19720_v39, %v19817_v28  ;;  %v19837_v45 = vsel %vm1427_vm1, %v4275_v32, %v19821_v49  ;;  %v1118_v39 = vmax.f32 %v1095_v35, %v1109_v46  ;;  %v18150_v51 = vld [vmem:[%s25545_s3 + $0x30] sm:$0xff] }
 0x14d   : > { %v1046_v10 = vmax.f32 %v1000_v63, 0.0  ;;  %1294 = vst [vmem:[#allocation3 + $0x52] sm:$0x7f] %v1264_v1  ;;  %v1130_v1 = vld [vmem:[#allocation2 + $0x82] ss:$2 sm:$0x7f]  ;;  %1910 = vmatpush.bf16.msrb.mxu2 %v18150_v51 }
 0x14e   : > { %v19826_v56 = vsel %vm2829_vm2, %v19717_v23, %v19815_v20  ;;  %25642 = vst [vmem:[#allocation15_spill] sm:$0xff] %v19837_v45  ;;  %v1139_v60 = vmax.f32 %v1118_v39, %v1130_v1  ;;  %v5005_v50 = vshrl.u32 %v19883_v57, 16 }
 0x14f   : > { %1076 = vst [vmem:[#allocation2 + $0x98] sm:$0xff] %v1046_v10 }
 0x150   : > { %v918_v4 = vpop.f32.mrf.mxu0  ;;  %25643 = vst [vmem:[#allocation16_spill] sm:$0xff] %v19883_v57 }
 0x151   : > { %v1002_v27 = vpop.f32.mrf.mxu1  ;;  %v919_v31 = vadd.f32 %v19786_v47, %v918_v4 }
 0x153   : > { %v1003_v33 = vadd.f32 %v1002_v27, %v919_v31 }
 0x154   : > { %v1308_v23 = vld [vmem:[#allocation3 + $0x50] sm:$0xff]  ;;  %v1309_v54 = vld [vmem:[#allocation3 + $0x58] sm:$0xff] }
 0x155   : > { %v1047_v52 = vmax.f32 %v1003_v33, 0.0  ;;  %v19094_v14 = vpack.c.bf16 %v1309_v54, %v1308_v23  ;;  %v1464_v23 = vshrl.u32 %v19748_v24, 16 }
 0x156   : > { %v1151_v2 = vld [vmem:[#allocation2 + $0x90] ss:$2 sm:$0x7f]  ;;  %v1172_v9 = vld [vmem:[#allocation2 + $0x91] ss:$2 sm:$0x7f] }
 0x157   : > { %1077 = vst [vmem:[#allocation2 + $0xa0] sm:$0xff] %v1047_v52  ;;  %v1160_v18 = vmax.f32 %v1139_v60, %v1151_v2  ;;  %v2427_v52 = vor.u32 %v2425_v34, %v19765_v21  ;;  %v1466_v21 = vor.u32 %v1464_v23, %v19767_v22 }
 0x158   : > { %v920_v6 = vpop.f32.mrf.mxu0  ;;  %19172 = vst [vmem:[#allocation4 + $0x28] sm:$0xff] %v19094_v14  }
 0x159   : > { %v1004_v62 = vpop.f32.mrf.mxu1  ;;  %v921_v63 = vadd.f32 %v19786_v47, %v920_v6  ;;  %v1181_v46 = vmax.f32 %v1160_v18, %v1172_v9 }
 0x15b   : > { %v1005_v10 = vadd.f32 %v1004_v62, %v921_v63  ;;  %v1193_v62 = vld [vmem:[#allocation2 + $0x92] ss:$2 sm:$0x7f] }
 0x15c   : > { %v1202_v34 = vmax.f32 %v1181_v46, %v1193_v62 }
 0x15d   : > { %v1048_v0 = vmax.f32 %v1005_v10, 0.0 }
 0x15f   : > { %1078 = vst [vmem:[#allocation2 + $0xa8] sm:$0xff] %v1048_v0  ;;  %v19851_v11 = vld [vmem:[#allocation4 + $0x28] sm:$0xff] }
 0x160   : > { %v19853_v44 = vld [vmem:[#allocation4 + $0x28] sm:$0xff]  ;;  %v923_v4 = vpop.f32.mrf.mxu0  ;;  %v1603_v32 = vrot.slane %v19851_v11, 1  ;;  %v1468_v35 = vshll.u32 %v19851_v11, 16 }
 0x161   : > { %v1007_v27 = vpop.f32.mrf.mxu1  ;;  %v924_v31 = vadd.f32 %v19786_v47, %v923_v4  ;;  %v2429_v33 = vshll.u32 %v19853_v44, 16  ;;  %v2433_v51 = vshrl.u32 %v19853_v44, 16  ;;  %v2522_v4 = vor.u32 %v2520_v43, %v19795_v37 }
 0x162   : > { %v1604_v14 = vsel %vm1584_vm0, %v1599_v3, %v1603_v32  ;;  %v19870_v6 = vrot.slane %v1468_v35, 1  ;;  %v5601_v35 = vld [vmem:[#allocation4 + $0x20] sm:$0xc]  ;;  %v25563_v43 = vunpack.c.h.b16 %v19883_v57 }
 0x163   : > { %v1008_v54 = vadd.f32 %v1007_v27, %v924_v31  ;;  %v19868_v39 = vrot.slane %v2429_v33, 1  ;;  %1753 = vmatmul.bf16.gmra.mxu2 %v1604_v14  ;;  %v19892_v31 = vld [vmem:[#allocation4 + $0x28] sm:$0xff] }
 0x164   : > { %v19880_v24 = vsel %vm1427_vm1, %v1466_v21, %v19870_v6  ;;  %v2865_v21 = vrot.slane %v2433_v51, 1 }
 0x165   : > { %v1049_v63 = vmax.f32 %v1008_v54, 0.0  ;;  %v19874_v61 = vsel %vm1427_vm1, %v2427_v52, %v19868_v39  ;;  %v1601_v9 = vrot.slane %v19880_v24, 1 }
 0x166   : > { %2693 = vmatmul.bf16.gmra.mxu0 %v19874_v61  ;;  %v1214_v1 = vld [vmem:[#allocation2 + $0xa0] ss:$2 sm:$0x7f]  ;;  %v1235_v60 = vld [vmem:[#allocation2 + $0xa1] ss:$2 sm:$0x7f] }
 0x167   : > { %v1223_v3 = vmax.f32 %v1202_v34, %v1214_v1  ;;  %1079 = vst [vmem:[#allocation2 + $0xb0] sm:$0xff] %v1049_v63  ;;  %v2524_v0 = vshll.u32 %v19874_v61, 16  ;;  %v2528_v22 = vshrl.u32 %v19874_v61, 16  ;;  %v1256_v46 = vld [vmem:[#allocation2 + $0xa2] ss:$2 sm:$0x7f]  ;;  %v1602_v19 = vsel %vm1584_vm0, %v1597_v55, %v1601_v9 }
 0x168   : > { %v925_v2 = vpop.f32.mrf.mxu0  ;;  %1792 = vmatmul.bf16.gmra.mxu3 %v1602_v19  ;;  %v4280_v34 = vshll.u32 %v19842_v30, 16  ;;  %v25568_v1 = vshrl.u32 %v19793_v36, 16  ;;  %v5603_v55 = vunpack.c.l.b16 %v5601_v35 }
 0x169   : > { %v1009_v10 = vpop.f32.mrf.mxu1  ;;  %v926_v18 = vadd.f32 %v19786_v47, %v925_v2  ;;  %v1244_v27 = vmax.f32 %v1223_v3, %v1235_v60  ;;  %v19894_v52 = vrot.slane %v2524_v0, 1  ;;  %v2861_v23 = vrot.slane %v2528_v22, 1 }
 0x16a   : > { %v2862_v54 = vrot.slane %v2524_v0, 2  ;;  %v2866_v3 = vrot.slane %v2429_v33, 2  ;;  %v25562_v2 = vshll.u32 %v19892_v31, 16  ;;  %v5007_v60 = vshll.u32 %v19883_v57, 16  ;;  %v19923_v33 = vld [vmem:[#allocation4 + $0x28] sm:$0xff] }
 0x16b   : > { %v1010_v14 = vadd.f32 %v1009_v10, %v926_v18  ;;  %v1265_v62 = vmax.f32 %v1244_v27, %v1256_v46  ;;  %v2527_v63 = vsel %vm1427_vm1, %v2522_v4, %v19894_v52  ;;  %v4188_v4 = vor.u32 %v25568_v1, %v19821_v49 }
 0x16c   : > { %2732 = vmatmul.bf16.gmra.mxu1 %v2527_v63  ;;  %v19911_v10 = vor.u32 %v2862_v54, %v2861_v23  ;;  %v19917_v27 = vor.u32 %v2866_v3, %v2865_v21  ;;  %v19921_v46 = vrot.slane %v25562_v2, 1  ;;  %v4282_v54 = vrot.slane %v4280_v34, 1  ;;  %v1111_v34 = vld [vmem:[#allocation2 + $0xa1] ss:$2 sm:$0x7f] }
 0x16d   : > { %v1050_v37 = vmax.f32 %v1010_v14, 0.0  ;;  %1295 = vst [vmem:[#allocation3 + $0x62] sm:$0x7f] %v1265_v62  ;;  %v5604_v19 = vpack.c.b16 %v25563_v43, %v5603_v55  ;;  %v5009_v3 = vrot.slane %v5007_v60, 1 }
 0x16e   : > { %v19929_v23 = vsel %vm2829_vm2, %v19815_v20, %v19911_v10  ;;  %v19934_v14 = vsel %vm2829_vm2, %v19817_v28, %v19917_v27  ;;  %v19938_v62 = vsel %vm1427_vm1, %v4188_v4, %v19921_v46  ;;  %v4278_v20 = vshrl.u32 %v19842_v30, 16  ;;  %v18149_v28 = vld [vmem:[%s25545_s3 + $0x28] sm:$0xff] }
 0x16f   : > { %1080 = vst [vmem:[#allocation2 + $0xb8] sm:$0xff] %v1050_v37  ;;  %v1097_v37 = vld [vmem:[#allocation2 + $0xa0] ss:$2 sm:$0x7f]  ;;  %v25569_v21 = vshll.u32 %v19938_v62, 16  ;;  %v5012_v4 = vshll.u32 %v19923_v33, 16  ;;  %1911 = vmatpush.bf16.msrb.mxu2 %v18149_v28 }
 0x170   : > { %v928_v0 = vpop.f32.mrf.mxu0  ;;  %v25570_v60 = vshrl.u32 %v19938_v62, 16  ;;  %v1119_v13 = vmax.f32 %v1097_v37, %v1111_v34  ;;  %v25573_v28 = vrot.slane %v19923_v33, 2  ;;  %v1132_v37 = vld [vmem:[#allocation2 + $0xa2] ss:$2 sm:$0x7f] }
 0x171   : > { %v1012_v18 = vpop.f32.mrf.mxu1  ;;  %v929_v35 = vadd.f32 %v19786_v47, %v928_v0  ;;  %v18157_v0 = vld [vmem:[%s25545_s3 + $0x68] sm:$0xff]  ;;  %v19955_v53 = vrot.slane %v5012_v4, 1 }
 0x172   : > { %1955 = vmatpush.bf16.msrb.mxu3 %v18157_v0 }
 0x173   : > { %v1013_v63 = vadd.f32 %v1012_v18, %v929_v35  ;;  %v4283_v18 = vor.u32 %v4282_v54, %v4278_v20  ;;  %v4287_v35 = vrot.slane %v25569_v21, 1  ;;  %25644 = vst [vmem:[#allocation17_spill] sm:$0xff] %v19955_v53 }
 0x174   : > { %v1310_v55 = vld [vmem:[#allocation3 + $0x60] sm:$0xff]  ;;  %v1311_v43 = vld [vmem:[#allocation3 + $0x68] sm:$0xff] }
 0x175   : > { %v1051_v2 = vmax.f32 %v1013_v63, 0.0  ;;  %v19099_v30 = vpack.c.bf16 %v1311_v43, %v1310_v55  ;;  %v19958_v25 = vsel %vm1427_vm1, %v4283_v18, %v4287_v35  ;;  %v5638_v63 = vrot.slane %v5604_v19, 2 }
 0x176   : > { %25645 = vst [vmem:[#allocation18_spill] sm:$0xff] %v19958_v25  ;;  %v19962_v20 = vor.u32 %v25570_v60, %v4287_v35  ;;  %v5010_v43 = vor.u32 %v5009_v3, %v5005_v50  ;;  %v1153_v34 = vld [vmem:[#allocation2 + $0xb0] ss:$2 sm:$0x7f]  ;;  %v1140_v55 = vmax.f32 %v1119_v13, %v1132_v37  ;;  %v18148_v50 = vld [vmem:[%s25545_s3 + $0x20] sm:$0xff] }
 0x177   : > { %1081 = vst [vmem:[#allocation2 + $0xc0] sm:$0xff] %v1051_v2  ;;  %v19973_v19 = vsel %vm2097_vm3, %v5638_v63, %v25573_v28  ;;  %1912 = vmatpush.bf16.msrb.mxu2 %v18148_v50  ;;  %v1174_v13 = vld [vmem:[#allocation2 + $0xb1] ss:$2 sm:$0x7f] }
 0x178   : > { %v930_v1 = vpop.f32.mrf.mxu0  ;;  %19173 = vst [vmem:[#allocation4 + $0x30] sm:$0xff] %v19099_v30   ;;  %v19968_v2 = vsel %vm1427_vm1, %v5010_v43, %v19955_v53  ;;  %v1161_v18 = vmax.f32 %v1140_v55, %v1153_v34  ;;  %v2435_v34 = vor.u32 %v2433_v51, %v19868_v39  ;;  %v1472_v55 = vshrl.u32 %v19851_v11, 16  ;;  %v1195_v60 = vld [vmem:[#allocation2 + $0xb2] ss:$2 sm:$0x7f] }
 0x179   : > { %v1014_v54 = vpop.f32.mrf.mxu1  ;;  %v931_v0 = vadd.f32 %v19786_v47, %v930_v1  ;;  %25646 = vst [vmem:[#allocation19_spill] sm:$0xff] %v19968_v2  ;;  %v18156_v1 = vld [vmem:[%s25545_s3 + $0x60] sm:$0xff] }
 0x17a   : > { %25647 = vst [vmem:[#allocation20_spill] sm:$0xff] %v19973_v19  ;;  %1956 = vmatpush.bf16.msrb.mxu3 %v18156_v1  ;;  %v1474_v39 = vor.u32 %v1472_v55, %v19870_v6 }
 0x17b   : > { %v1015_v4 = vadd.f32 %v1014_v54, %v931_v0 }
 0x17d   : > { %v1052_v3 = vmax.f32 %v1015_v4, 0.0  ;;  %v1182_v4 = vmax.f32 %v1161_v18, %v1174_v13 }
 0x17f   : > { %1082 = vst [vmem:[#allocation2 + $0xc8] sm:$0xff] %v1052_v3  ;;  %v19981_v35 = vld [vmem:[#allocation4 + $0x30] sm:$0xff]  ;;  %v1203_v51 = vmax.f32 %v1182_v4, %v1195_v60  ;;  %v2530_v60 = vor.u32 %v2528_v22, %v19894_v52 }
 0x180   : > { %v19983_v30 = vld [vmem:[#allocation4 + $0x30] sm:$0xff]  ;;  %v933_v63 = vpop.f32.mrf.mxu0  ;;  %v25572_v0 = vrot.slane %v19981_v35, 1  ;;  %v1476_v21 = vshll.u32 %v19981_v35, 16 }
 0x181   : > { %v1017_v54 = vpop.f32.mrf.mxu1  ;;  %v934_v43 = vadd.f32 %v19786_v47, %v933_v63  ;;  %v2437_v37 = vshll.u32 %v19983_v30, 16  ;;  %v18147_v22 = vld [vmem:[%s25545_s3 + $0x18] sm:$0xff] }
 0x182   : > { %v1608_v1 = vsel %vm1584_vm0, %v1603_v32, %v25572_v0  ;;  %v20000_v63 = vrot.slane %v1476_v21, 1  ;;  %v18155_v52 = vld [vmem:[%s25545_s3 + $0x58] sm:$0xff]  ;;  %1913 = vmatpush.bf16.msrb.mxu2 %v18147_v22 }
 0x183   : > { %v1018_v50 = vadd.f32 %v1017_v54, %v934_v43  ;;  %v19998_v3 = vrot.slane %v2437_v37, 1  ;;  %1758 = vmatmul.bf16.gmra.mxu2 %v1608_v1  ;;  %v25581_v43 = vshrl.u32 %v19983_v30, 16  ;;  %1957 = vmatpush.bf16.msrb.mxu3 %v18155_v52 }
 0x184   : > { %v20010_v11 = vsel %vm1427_vm1, %v1474_v39, %v20000_v63  ;;  %v20020_v39 = vld [vmem:[#allocation4 + $0x30] sm:$0xff] }
 0x185   : > { %v1053_v18 = vmax.f32 %v1018_v50, 0.0  ;;  %v20004_v44 = vsel %vm1427_vm1, %v2435_v34, %v19998_v3  ;;  %v25576_v55 = vrot.slane %v20010_v11, 1 }
 0x186   : > { %2698 = vmatmul.bf16.gmra.mxu0 %v20004_v44  ;;  %v1216_v54 = vld [vmem:[#allocation2 + $0xc0] ss:$2 sm:$0x7f]  ;;  %v1237_v50 = vld [vmem:[#allocation2 + $0xc1] ss:$2 sm:$0x7f] }
 0x187   : > { %v1224_v32 = vmax.f32 %v1203_v51, %v1216_v54  ;;  %1083 = vst [vmem:[#allocation2 + $0xd0] sm:$0xff] %v1053_v18  ;;  %v2532_v34 = vshll.u32 %v20004_v44, 16  ;;  %v25580_v1 = vshrl.u32 %v20004_v44, 16  ;;  %v1258_v51 = vld [vmem:[#allocation2 + $0xc2] ss:$2 sm:$0x7f]  ;;  %v1606_v61 = vsel %vm1584_vm0, %v1601_v9, %v25576_v55 }
 0x188   : > { %v935_v21 = vpop.f32.mrf.mxu0  ;;  %1797 = vmatmul.bf16.gmra.mxu3 %v1606_v61  ;;  %v18146_v9 = vld [vmem:[%s25545_s3 + $0x10] sm:$0xff] }
 0x189   : > { %v1019_v13 = vpop.f32.mrf.mxu1  ;;  %v936_v6 = vadd.f32 %v19786_v47, %v935_v21  ;;  %v1245_v4 = vmax.f32 %v1224_v32, %v1237_v50  ;;  %v20022_v54 = vrot.slane %v2532_v34, 1  ;;  %v2869_v18 = vrot.slane %v25580_v1, 1  ;;  %1914 = vmatpush.bf16.msrb.mxu2 %v18146_v9 }
 0x18a   : > { %v2870_v7 = vrot.slane %v2532_v34, 2  ;;  %v25575_v50 = vshrl.u32 %v19892_v31, 16  ;;  %v2874_v34 = vrot.slane %v2437_v37, 2 }
 0x18b   : > { %v1020_v0 = vadd.f32 %v1019_v13, %v936_v6  ;;  %v1266_v28 = vmax.f32 %v1245_v4, %v1258_v51  ;;  %v2535_v21 = vsel %vm1427_vm1, %v2530_v60, %v20022_v54  ;;  %v2873_v13 = vrot.slane %v25581_v43, 1 }
 0x18c   : > { %2737 = vmatmul.bf16.gmra.mxu1 %v2535_v21  ;;  %v25574_v6 = vshll.u32 %v20020_v39, 16  ;;  %v20049_v60 = vor.u32 %v2870_v7, %v2869_v18  ;;  %v4196_v51 = vor.u32 %v25575_v50, %v19921_v46  ;;  %v20076_v21 = vld [vmem:[#allocation4 + $0x30] sm:$0xff] }
 0x18d   : > { %v1054_v32 = vmax.f32 %v1020_v0, 0.0  ;;  %1296 = vst [vmem:[#allocation3 + $0x72] sm:$0x7f] %v1266_v28  ;;  %v18154_v0 = vld [vmem:[%s25545_s3 + $0x50] sm:$0xff]  ;;  %v20054_v61 = vor.u32 %v2874_v34, %v2873_v13 }
 0x18e   : > { %v20058_v37 = vrot.slane %v25574_v6, 1  ;;  %v20064_v52 = vsel %vm2829_vm2, %v19911_v10, %v20049_v60  ;;  %1958 = vmatpush.bf16.msrb.mxu3 %v18154_v0  ;;  %v1099_v13 = vld [vmem:[#allocation2 + $0xc0] ss:$2 sm:$0x7f] }
 0x18f   : > { %1084 = vst [vmem:[#allocation2 + $0xd8] sm:$0xff] %v1054_v32  ;;  %v20069_v7 = vsel %vm2829_vm2, %v19917_v27, %v20054_v61  ;;  %v1113_v34 = vld [vmem:[#allocation2 + $0xc1] ss:$2 sm:$0x7f] }
 0x190   : > { %v938_v28 = vpop.f32.mrf.mxu0  ;;  %v20073_v46 = vsel %vm1427_vm1, %v4196_v51, %v20058_v37  ;;  %v1120_v55 = vmax.f32 %v1099_v13, %v1113_v34  ;;  %v25649_v13 = vrot.slane %v19923_v33, 2  ;;  %v18250_v33 = vld [vmem:[%s25545_s3 + $0x2b8] sm:$0xff] }
 0x191   : > { %v1022_v4 = vpop.f32.mrf.mxu1  ;;  %v939_v22 = vadd.f32 %v19786_v47, %v938_v28  ;;  %v25577_v32 = vshll.u32 %v20073_v46, 16  ;;  %v25578_v50 = vshrl.u32 %v20073_v46, 16  ;;  %3375 = vmatpush.bf16.msra.mxu0 %v18250_v33  ;;  %v18248_v33 = vld [vmem:[%s25545_s3 + $0x2a8] sm:$0xff] }
 0x193   : > { %v1023_v18 = vadd.f32 %v1022_v4, %v939_v22  ;;  %v4295_v6 = vrot.slane %v25577_v32, 1 }
 0x194   : > { %v1312_v28 = vld [vmem:[#allocation3 + $0x70] sm:$0xff]  ;;  %v1313_v9 = vld [vmem:[#allocation3 + $0x78] sm:$0xff] }
 0x195   : > { %v1055_v10 = vmax.f32 %v1023_v18, 0.0  ;;  %v19104_v27 = vpack.c.bf16 %v1313_v9, %v1312_v28  ;;  %v20083_v0 = vsel %vm1427_vm1, %v19962_v20, %v4295_v6  ;;  %v20087_v22 = vor.u32 %v25578_v50, %v4295_v6  ;;  %v1134_v28 = vld [vmem:[#allocation2 + $0xc2] ss:$2 sm:$0x7f] }
 0x196   : > { %25648 = vst [vmem:[#allocation21_spill] sm:$0xff] %v20083_v0  ;;  %v25579_v18 = vrot.slane %v20076_v21, 2  ;;  %v1155_v9 = vld [vmem:[#allocation2 + $0xd0] ss:$2 sm:$0x7f]  ;;  %v1141_v34 = vmax.f32 %v1120_v55, %v1134_v28  ;;  %v18145_v6 = vld [vmem:[%s25545_s3 + $0x8] sm:$0xff]  ;;  %v1734_v28 = vpop.f32.mrf.mxu2 }
 0x197   : > { %1085 = vst [vmem:[#allocation2 + $0xe0] sm:$0xff] %v1055_v10  ;;  %1915 = vmatpush.bf16.msrb.mxu2 %v18145_v6  ;;  %v18144_v55 = vld [vmem:[%s25545_s3] sm:$0xff] }
 0x198   : > { %v940_v4 = vpop.f32.mrf.mxu0  ;;  %19174 = vst [vmem:[#allocation4 + $0x38] sm:$0xff] %v19104_v27   ;;  %v20096_v20 = vsel %vm2097_vm3, %v25649_v13, %v25579_v18  ;;  %v18153_v27 = vld [vmem:[%s25545_s3 + $0x48] sm:$0xff] }
 0x199   : > { %v1024_v51 = vpop.f32.mrf.mxu1  ;;  %v941_v32 = vadd.f32 %v19786_v47, %v940_v4  ;;  %25650 = vst [vmem:[#allocation22_spill] sm:$0xff] %v20096_v20  ;;  %v1162_v47 = vmax.f32 %v1141_v34, %v1155_v9  ;;  %v1176_v4 = vld [vmem:[#allocation2 + $0xd1] ss:$2 sm:$0x7f]  ;;  %1959 = vmatpush.bf16.msrb.mxu3 %v18153_v27  ;;  %v1778_v9 = vpop.f32.mrf.mxu3 }
 0x19a   : > { %v20118_v6 = vadd.f32 %v1778_v9, %v1734_v28  ;;  %v1197_v20 = vld [vmem:[#allocation2 + $0xd2] ss:$2 sm:$0x7f] }
 0x19b   : > { %v1025_v10 = vadd.f32 %v1024_v51, %v941_v32  ;;  %v18152_v32 = vld [vmem:[%s25545_s3 + $0x40] sm:$0xff]  ;;  %v18249_v51 = vld [vmem:[%s25545_s3 + $0x2b0] sm:$0xff]  ;;  %v1183_v1 = vmax.f32 %v1162_v47, %v1176_v4  ;;  %1916 = vmatpush.bf16.msrb.mxu2 %v18144_v55  ;;  %v1480_v55 = vshrl.u32 %v19981_v35, 16 }
 0x19c   : > { %3376 = vmatpush.bf16.msra.mxu0 %v18249_v51 }
 0x19d   : > { %v1056_v50 = vmax.f32 %v1025_v10, 0.0  ;;  %1960 = vmatpush.bf16.msrb.mxu3 %v18152_v32  ;;  %v1204_v9 = vmax.f32 %v1183_v1, %v1197_v20  ;;  %v25652_v32 = vrot.slane %v19981_v35, 1  ;;  %v18247_v1 = vld [vmem:[%s25545_s3 + $0x2a0] sm:$0xff] }
 0x19f   : > { %1086 = vst [vmem:[#allocation2 + $0xe8] sm:$0xff] %v1056_v50  ;;  %v1381_v13 = vld [vmem:[#allocation4 + $0x38] sm:$0x1]  ;;  %v25651_v50 = vshrl.u32 %v19983_v30, 16 }
 0x1a0   : > { %v20116_v34 = vld [vmem:[#allocation4 + $0x38] sm:$0xff]  ;;  %v1425_v27 = vunpack.c.l.b16 %v1381_v13  ;;  %3377 = vmatpush.bf16.msra.mxu0 %v18248_v33 }
 0x1a1   : > { %v1528_v10 = vld [vmem:[#allocation4 + $0x38] sm:$0x3]  ;;  %v2445_v43 = vshll.u32 %v20116_v34, 16  ;;  %v2443_v0 = vor.u32 %v25651_v50, %v19998_v3 }
 0x1a2   : > { %v1533_v18 = vunpack.c.l.b16 %v1528_v10  ;;  %v1426_v19 = vpack.c.b16 %v1425_v27, %v1425_v27  ;;  %v1482_v27 = vor.u32 %v1480_v55, %v20000_v63 }
 0x1a3   : > { %v20126_v25 = vrot.slane %v2445_v43, 1 }
 0x1a4   : > { %v20121_v2 = vpack.c.b16 %v1533_v18, %v1533_v18  ;;  %v1611_v47 = vrot.slane %v1426_v19, 1  ;;  %v1484_v28 = vshll.u32 %v1426_v19, 16  ;;  %3378 = vmatpush.bf16.msra.mxu0 %v18247_v1  ;;  %v18190_v1 = vld [vmem:[%s25545_s3 + $0x138] sm:$0xff] }
 0x1a5   : > { %v20134_v18 = vsel %vm1427_vm1, %v2443_v0, %v20126_v25  ;;  %2238 = vmatpush.bf16.msra.mxu2 %v18190_v1 }
 0x1a6   : > { %v1544_v4 = vshll.u32 %v20121_v2, 16  ;;  %v1218_v30 = vld [vmem:[#allocation2 + $0xe0] ss:$2 sm:$0x7f]  ;;  %v1612_v51 = vsel %vm1584_vm0, %v25652_v32, %v1611_v47  ;;  %2703 = vmatmul.bf16.gmra.mxu0 %v20134_v18  ;;  %v2540_v10 = vshll.u32 %v20134_v18, 16  ;;  %v1486_v50 = vrot.slane %v1484_v28, 1 }
 0x1a7   : > { %v1239_v3 = vld [vmem:[#allocation2 + $0xe1] ss:$2 sm:$0x7f]  ;;  %v1225_v13 = vmax.f32 %v1204_v9, %v1218_v30  ;;  %1763 = vmatmul.bf16.gmra.mxu2 %v1612_v51  ;;  %v1260_v0 = vld [vmem:[#allocation2 + $0xe2] ss:$2 sm:$0x7f]  ;;  %v1736_v51 = vpop.f32.mrf.mxu2 }
 0x1a8   : > { %v1546_v19 = vrot.slane %v1544_v4, 1  ;;  %v25653_v47 = vshrl.u32 %v20004_v44, 16  ;;  %v20150_v30 = vrot.slane %v2540_v10, 1  ;;  %v25586_v4 = vshrl.u32 %v20116_v34, 16  ;;  %v20162_v44 = vld [vmem:[#allocation4 + $0x38] sm:$0xff] }
 0x1a9   : > { %v1246_v9 = vmax.f32 %v1225_v13, %v1239_v3  ;;  %v20157_v45 = vsel %vm1427_vm1, %v1482_v27, %v1486_v50  ;;  %25654 = vst [vmem:[#allocation23_spill] sm:$0xff] %v20162_v44  ;;  %v25655_v55 = vshrl.u32 %v20134_v18, 16  ;;  %v2878_v13 = vrot.slane %v2540_v10, 2  ;;  %v18198_v10 = vld [vmem:[%s25545_s3 + $0x178] sm:$0xff] }
 0x1aa   : > { %v2538_v32 = vor.u32 %v25653_v47, %v20022_v54  ;;  %v20153_v33 = vsel %vm1427_vm1, %v1482_v27, %v1546_v19  ;;  %v1780_v54 = vpop.f32.mrf.mxu3  ;;  %v18246_v27 = vld [vmem:[%s25545_s3 + $0x298] sm:$0xff]  ;;  %v2881_v47 = vrot.slane %v25586_v4, 1  ;;  %2282 = vmatpush.bf16.msra.mxu3 %v18198_v10 }
 0x1ab   : > { %v1267_v20 = vmax.f32 %v1246_v9, %v1260_v0  ;;  %v25587_v63 = vrot.slane %v20153_v33, 1  ;;  %v2877_v3 = vrot.slane %v25655_v55, 1  ;;  %v25656_v0 = vrot.slane %v20010_v11, 1  ;;  %3379 = vmatpush.bf16.msra.mxu0 %v18246_v27  ;;  %v2679_v54 = vpop.f32.mrf.mxu0  ;;  %v2723_v55 = vpop.f32.mrf.mxu1  ;;  %v19210_v27 = vld [vmem:[#allocation3] sm:$0xff] }
 0x1ac   : > { %v2543_v28 = vsel %vm1427_vm1, %v2538_v32, %v20150_v30  ;;  %v2882_v32 = vrot.slane %v2445_v43, 2  ;;  %v25584_v9 = vshll.u32 %v20162_v44, 16  ;;  %v18258_v43 = vld [vmem:[%s25545_s3 + $0x2f8] sm:$0xff] }
 0x1ad   : > { %2742 = vmatmul.bf16.gmra.mxu1 %v2543_v28  ;;  %1297 = vst [vmem:[#allocation3 + $0x82] sm:$0x7f] %v1267_v20  ;;  %v1610_v50 = vsel %vm1584_vm0, %v25656_v0, %v25587_v63  ;;  %v25585_v20 = vshrl.u32 %v20020_v39, 16  ;;  %v20186_v28 = vor.u32 %v2878_v13, %v2877_v3  ;;  %v18245_v0 = vld [vmem:[%s25545_s3 + $0x290] sm:$0xff]  ;;  %v20201_v13 = vadd.f32 %v2723_v55, %v2679_v54  ;;  %v20218_v54 = vld [vmem:[#allocation4 + $0x38] sm:$0xff]  ;;  %v19211_v63 = vld [vmem:[#allocation4] sm:$0xff] }
 0x1ae   : > { %1802 = vmatmul.bf16.gmra.mxu3 %v1610_v50  ;;  %v20184_v51 = vor.u32 %v2882_v32, %v2881_v47  ;;  %v19114_v50 = vpack.c.bf16 %v19210_v27, %v19210_v27  ;;  %v20199_v3 = vrot.slane %v25584_v9, 1  ;;  %v1548_v47 = vshrl.u32 %v20121_v2, 16  ;;  %3419 = vmatpush.bf16.msra.mxu1 %v18258_v43 }
 0x1af   : > { %v4204_v1 = vor.u32 %v25585_v20, %v20058_v37  ;;  %3380 = vmatpush.bf16.msra.mxu0 %v18245_v0  ;;  %v20212_v37 = vsel %vm2829_vm2, %v20049_v60, %v20186_v28  ;;  %v1739_v55 = vpop.f32.mrf.mxu2  ;;  %v18244_v0 = vld [vmem:[%s25545_s3 + $0x288] sm:$0xff] }
 0x1b0   : > { %25657 = vst [vmem:[#allocation24_spill] sm:$0xff] %v20184_v51  ;;  %v20206_v10 = vsel %vm2829_vm2, %v20054_v61, %v20184_v51  ;;  %v1550_v60 = vor.u32 %v1548_v47, %v1546_v19  ;;  %v18243_v19 = vld [vmem:[%s25545_s3 + $0x280] sm:$0xff] }
 0x1b1   : > { %25658 = vst [vmem:[#allocation25_spill] sm:$0xff] %v20206_v10  ;;  %v20216_v32 = vsel %vm1427_vm1, %v4204_v1, %v20199_v3  ;;  %v18257_v1 = vld [vmem:[%s25545_s3 + $0x2f0] sm:$0xff] }
 0x1b2   : > { %19176 = vst [vmem:[#allocation4 + $0x48] sm:$0xff] %v19114_v50   ;;  %v1783_v27 = vpop.f32.mrf.mxu3  ;;  %v25591_v43 = vshll.u32 %v20216_v32, 16  ;;  %v25592_v53 = vshrl.u32 %v20216_v32, 16  ;;  %3420 = vmatpush.bf16.msra.mxu1 %v18257_v1 }
 0x1b3   : > { %25659 = vst [vmem:[#allocation26_spill] sm:$0xff] %v20212_v37  ;;  %v20224_v20 = vadd.f32 %v1783_v27, %v1739_v55  ;;  %3381 = vmatpush.bf16.msra.mxu0 %v18244_v0  ;;  %v25593_v55 = vrot.slane %v20218_v54, 2  ;;  %v1613_v27 = vrot.slane %v1550_v60, 1  ;;  %v25662_v0 = vrot.slane %v20076_v21, 2 }
 0x1b4   : > { %25660 = vst [vmem:[#allocation27_spill] sm:$0xff] %v20216_v32  ;;  %v1314_v61 = vld [vmem:[#allocation3 + $0x80] sm:$0xff]  ;;  %v1315_v9 = vld [vmem:[#allocation3 + $0x88] sm:$0xff]  ;;  %v4303_v57 = vrot.slane %v25591_v43, 1 }
 0x1b5   : > { %v19109_v4 = vpack.c.bf16 %v1315_v9, %v1314_v61  ;;  %19177 = vst [vmem:[#allocation4 + $0x50] sm:$0xff] %v19114_v50   ;;  %v18256_v9 = vld [vmem:[%s25545_s3 + $0x2e8] sm:$0xff]  ;;  %v18197_v61 = vld [vmem:[%s25545_s3 + $0x170] sm:$0xff]  ;;  %v20258_v60 = vsel %vm2097_vm3, %v25662_v0, %v25593_v55  ;;  %v2725_v55 = vpop.f32.mrf.mxu1 }
 0x1b6   : > { %v20244_v50 = vsel %vm1427_vm1, %v20087_v22, %v4303_v57  ;;  %v20248_v47 = vor.u32 %v25592_v53, %v4303_v57  ;;  %25663 = vst [vmem:[#allocation29_spill] sm:$0xff] %v20258_v60  ;;  %3421 = vmatpush.bf16.msra.mxu1 %v18256_v9  ;;  %2283 = vmatpush.bf16.msra.mxu3 %v18197_v61  ;;  %v18255_v57 = vld [vmem:[%s25545_s3 + $0x2e0] sm:$0xff]  ;;  %v25664_v22 = vrot.slane %v20153_v33, 1 }
 0x1b7   : > { %1917 = vmatmul.bf16.vlgmr.msrb.gmra.mxu2 %v19211_v63  ;;  %19175 = vst [vmem:[#allocation4 + $0x40] sm:$0xff] %v19109_v4   ;;  %v18189_v4 = vld [vmem:[%s25545_s3 + $0x130] sm:$0xff]  ;;  %3382 = vmatpush.bf16.msra.mxu0 %v18243_v19  ;;  %v18254_v19 = vld [vmem:[%s25545_s3 + $0x2d8] sm:$0xff] }
 0x1b8   : > { %25661 = vst [vmem:[#allocation28_spill] sm:$0xff] %v20244_v50  ;;  %2239 = vmatpush.bf16.msra.mxu2 %v18189_v4  ;;  %v1614_v1 = vsel %vm1584_vm0, %v25664_v22, %v1613_v27  ;;  %v1431_v50 = vshll.u32 %v19211_v63, 16  ;;  %v2681_v4 = vpop.f32.mrf.mxu0  ;;  %v1429_v27 = vshrl.u32 %v19211_v63, 16 }
 0x1b9   : > { %v20281_v4 = vld [vmem:[#allocation4 + $0x8] sm:$0xff] }
 0x1ba   : > { %3422 = vmatpush.bf16.msra.mxu1 %v18255_v57  ;;  %v1433_v22 = vrot.slane %v1431_v50, 1  ;;  %v25666_v57 = vshrl.u32 %v20116_v34, 16  ;;  %v18188_v50 = vld [vmem:[%s25545_s3 + $0x128] sm:$0xff]  ;;  %v1741_v34 = vpop.f32.mrf.mxu2  ;;  %v20390_v32 = vld [vmem:[#allocation4 + $0x48] sm:$0xff] }
 0x1bb   : > { %25675 = vst [vmem:[#allocation38_spill] sm:$0xff] %v20390_v32 }
 0x1bc   : > { %v1434_v63 = vor.u32 %v1433_v22, %v1429_v27  ;;  %2240 = vmatpush.bf16.msra.mxu2 %v18188_v50 }
 0x1be   : > { %1807 = vmatmul.bf16.gmra.mxu3 %v1614_v1  ;;  %v2354_v43 = vld [vmem:[#allocation4 + $0x40] sm:$0x1]  ;;  %3423 = vmatpush.bf16.msra.mxu1 %v18254_v19  ;;  %v2451_v1 = vor.u32 %v25666_v57, %v20126_v25  ;;  %v1785_v25 = vpop.f32.mrf.mxu3  ;;  %v25669_v57 = vshrl.u32 %v20134_v18, 16 }
 0x1bf   : > { %v2385_v53 = vunpack.c.l.b16 %v2354_v43  ;;  %v2772_v21 = vld [vmem:[#allocation4 + $0x40] sm:$0x3]  ;;  %v18253_v43 = vld [vmem:[%s25545_s3 + $0x2d0] sm:$0xff] }
 0x1c0   : > { %v2775_v9 = vunpack.c.l.b16 %v2772_v21  ;;  %v18196_v19 = vld [vmem:[%s25545_s3 + $0x168] sm:$0xff]  ;;  %v2684_v25 = vpop.f32.mrf.mxu0 }
 0x1c1   : > { %v20269_v61 = vpack.c.b16 %v2385_v53, %v2385_v53  ;;  %2284 = vmatpush.bf16.msra.mxu3 %v18196_v19  ;;  %v20298_v22 = vld [vmem:[#allocation4 + $0x40] sm:$0xff] }
 0x1c2   : > { %v20271_v0 = vpack.c.b16 %v2775_v9, %v2775_v9  ;;  %3424 = vmatpush.bf16.msra.mxu1 %v18253_v43  ;;  %25668 = vst [vmem:[#allocation32_spill] sm:$0xff] %v20298_v22  ;;  %v1439_v43 = vsel %vm1427_vm1, %v1434_v63, %v19594_v58  ;;  %v25599_v18 = vshll.u32 %v20298_v22, 16  ;;  %v3478_v63 = vld [vmem:[#allocation4 + $0x48] sm:$0x3] }
 0x1c3   : > { %v2453_v33 = vshll.u32 %v20269_v61, 16  ;;  %v2457_v29 = vshrl.u32 %v20269_v61, 16 }
 0x1c4   : > { %25665 = vst [vmem:[#allocation30_spill] sm:$0xff] %v20271_v0  ;;  %v25595_v53 = vshll.u32 %v20271_v0, 16 }
 0x1c5   : > { %v2455_v21 = vrot.slane %v2453_v33, 1  ;;  %v18252_v33 = vld [vmem:[%s25545_s3 + $0x2c8] sm:$0xff] }
 0x1c6   : > { %v20296_v27 = vrot.slane %v25595_v53, 1  ;;  %3425 = vmatpush.bf16.msra.mxu1 %v18252_v33 }
 0x1c7   : > { %1922 = vmatmul.bf16.gmra.mxu2 %v20281_v4  ;;  %v2456_v55 = vsel %vm1427_vm1, %v2451_v1, %v2455_v21  ;;  %v2546_v21 = vor.u32 %v25669_v57, %v20150_v30 }
 0x1c8   : > { %v2548_v9 = vshll.u32 %v2456_v55, 16  ;;  %2708 = vmatmul.bf16.gmra.mxu0 %v2456_v55  ;;  %25667 = vst [vmem:[#allocation31_spill] sm:$0xff] %v20296_v27  ;;  %v2792_v50 = vsel %vm1427_vm1, %v2451_v1, %v20296_v27  ;;  %v20316_v1 = vld [vmem:[#allocation4 + $0x48] sm:$0xff]  ;;  %v3483_v27 = vunpack.c.l.b16 %v3478_v63  ;;  %v2552_v63 = vshrl.u32 %v2456_v55, 16  ;;  %v18187_v55 = vld [vmem:[%s25545_s3 + $0x120] sm:$0xff] }
 0x1c9   : > { %v2728_v60 = vpop.f32.mrf.mxu1  ;;  %v2886_v30 = vshrl.u32 %v2792_v50, 16  ;;  %v2889_v58 = vshll.u32 %v2792_v50, 16  ;;  %25670 = vst [vmem:[#allocation33_spill] sm:$0xff] %v20316_v1  ;;  %v25603_v50 = vshrl.u32 %v20162_v44, 16  ;;  %v25601_v37 = vshll.u32 %v20316_v1, 16  ;;  %2241 = vmatpush.bf16.msra.mxu2 %v18187_v55 }
 0x1ca   : > { %v2550_v34 = vrot.slane %v2548_v9, 1  ;;  %v20307_v19 = vadd.f32 %v2728_v60, %v2684_v25  ;;  %v20314_v9 = vld [vmem:[#allocation4 + $0x40] sm:$0xff]  ;;  %v1744_v60 = vpop.f32.mrf.mxu2  ;;  %3426 = vmatpush.bf16.msra.mxu1 %v18251_v42 }
 0x1cb   : > { %v2888_v57 = vrot.slane %v2886_v30, 1  ;;  %v1788_v25 = vpop.f32.mrf.mxu3  ;;  %v2891_v33 = vrot.slane %v2889_v58, 2  ;;  %v25602_v30 = vshrl.u32 %v20298_v22, 16  ;;  %v4212_v61 = vor.u32 %v25603_v50, %v20199_v3  ;;  %v18346_v50 = vld [vmem:[#allocation4 + $0x40] sm:$0xff]  ;;  %v4131_v22 = vld [vmem:[#allocation4 + $0x50] sm:$0x1] }
 0x1cc   : > { %v2551_v53 = vsel %vm1427_vm1, %v2546_v21, %v2550_v34  ;;  %v20318_v21 = vadd.f32 %v1788_v25, %v1744_v60  ;;  %v20341_v25 = vpack.c.b16 %v3483_v27, %v3483_v27  ;;  %v3231_v3 = vshrl.u32 %v20314_v9, 16  ;;  %v18195_v27 = vld [vmem:[%s25545_s3 + $0x160] sm:$0xff] }
 0x1cd   : > { %2747 = vmatmul.bf16.gmra.mxu1 %v2551_v53  ;;  %v4216_v53 = vrot.slane %v25599_v18, 1  ;;  %v20324_v51 = vor.u32 %v2891_v33, %v2888_v57  ;;  %v2556_v57 = vshll.u32 %v2457_v29, 16  ;;  %v20343_v33 = vld [vmem:[#allocation4 + $0x10] sm:$0xff]  ;;  %v2554_v18 = vor.u32 %v2552_v63, %v2550_v34  ;;  %2285 = vmatpush.bf16.msra.mxu3 %v18195_v27 }
 0x1ce   : > { %1961 = vmatmul.bf16.vlgmr.msrb.gmra.mxu3 %v1439_v43  ;;  %v3227_v43 = vshll.u32 %v20314_v9, 16  ;;  %v5645_v0 = vrot.slane %v18346_v50, 2 }
 0x1cf   : > { %25671 = vst [vmem:[#allocation34_spill] sm:$0xff] %v20324_v51  ;;  %v20332_v42 = vsel %vm2829_vm2, %v20186_v28, %v20324_v51  ;;  %v4220_v58 = vor.u32 %v25602_v30, %v4216_v53  ;;  %v4224_v28 = vrot.slane %v25601_v37, 1  ;;  %v20348_v51 = vld [vmem:[#allocation4 + $0x10] sm:$0xff]   ;;  %v20353_v29 = vsel %vm1427_vm1, %v4212_v61, %v4216_v53 }
 0x1d0   : > { %25672 = vst [vmem:[#allocation35_spill] sm:$0xff] %v20332_v42  ;;  %v20339_v60 = vrot.slane %v3227_v43, 1  ;;  %v2558_v34 = vrot.slane %v2556_v57, 1  ;;  %v3494_v37 = vshll.u32 %v20341_v25, 16  ;;  %v25613_v53 = vshll.u32 %v20353_v29, 16  ;;  %v18186_v57 = vld [vmem:[%s25545_s3 + $0x118] sm:$0xff] }
 0x1d1   : > { %v20362_v43 = vsel %vm1427_vm1, %v4220_v58, %v4224_v28  ;;  %v3498_v58 = vshrl.u32 %v20341_v25, 16  ;;  %2242 = vmatpush.bf16.msra.mxu2 %v18186_v57 }
 0x1d2   : > { %25673 = vst [vmem:[#allocation36_spill] sm:$0xff] %v20362_v43  ;;  %v20365_v63 = vor.u32 %v3231_v3, %v20339_v60  ;;  %v2559_v61 = vsel %vm1427_vm1, %v2554_v18, %v2558_v34  ;;  %v25612_v30 = vshll.u32 %v20362_v43, 16  ;;  %v3496_v42 = vrot.slane %v3494_v37, 1  ;;  %v18194_v3 = vld [vmem:[%s25545_s3 + $0x158] sm:$0xff] }
 0x1d3   : > { %v4311_v27 = vrot.slane %v25613_v53, 1  ;;  %2286 = vmatpush.bf16.msra.mxu3 %v18194_v3  ;;  %v25614_v10 = vshrl.u32 %v20362_v43, 16  ;;  %v3182_v37 = vshll.u32 %v20348_v51, 16  ;;  %v2686_v3 = vpop.f32.mrf.mxu0  ;;  %v25680_v53 = vrot.slane %v20218_v54, 2 }
 0x1d4   : > { %v20381_v18 = vsel %vm1427_vm1, %v20365_v63, %v3496_v42  ;;  %v3500_v55 = vor.u32 %v3498_v58, %v3496_v42  ;;  %v4319_v34 = vrot.slane %v25612_v30, 1  ;;  %v2730_v30 = vpop.f32.mrf.mxu1 }
 0x1d5   : > { %25674 = vst [vmem:[#allocation37_spill] sm:$0xff] %v20381_v18  ;;  %v20395_v42 = vsel %vm1427_vm1, %v20248_v47, %v4311_v27  ;;  %v20411_v47 = vsel %vm2097_vm3, %v25680_v53, %v5645_v0  ;;  %v3184_v3 = vrot.slane %v3182_v37, 1  ;;  %v1746_v53 = vpop.f32.mrf.mxu2 }
 0x1d6   : > { %v3562_v44 = vrot.slane %v3500_v55, 1  ;;  %25676 = vst [vmem:[#allocation39_spill] sm:$0xff] %v20395_v42  ;;  %v4323_v55 = vor.u32 %v25614_v10, %v4319_v34  ;;  %v25616_v42 = vshrl.u32 %v20316_v1, 16  ;;  %v20423_v10 = vld [vmem:[#allocation4 + $0x18] sm:$0xff] }
 0x1d7   : > { %1927 = vmatmul.bf16.gmra.mxu2 %v20343_v33  ;;  %25681 = vst [vmem:[#allocation42_spill] sm:$0xff] %v20411_v47 }
 0x1d8   : > { %3383 = vmatmul.bf16.vlgmr.msra.gmra.mxu0 %v20348_v51 }
 0x1dd   : > { %2752 = vmatmul.bf16.gmra.mxu1 %v2559_v61  ;;  %v4162_v61 = vunpack.c.l.b16 %v4131_v22  ;;  %v25678_v22 = vrot.slane %v20381_v18, 1 }
 0x1de   : > { %1966 = vmatmul.bf16.gmra.mxu3 %v19608_v8  ;;  %v25615_v8 = vshrl.u32 %v20353_v29, 16 }
 0x1df   : > { %v20399_v57 = vpack.c.b16 %v4162_v61, %v4162_v61  ;;  %v20404_v50 = vsel %vm1584_vm0, %v25678_v22, %v3562_v44  ;;  %v25619_v61 = vrot.slane %v20390_v32, 2  ;;  %v20421_v44 = vor.u32 %v25616_v42, %v4224_v28  ;;  %v2689_v42 = vpop.f32.mrf.mxu0 }
 0x1e0   : > { %v4315_v58 = vor.u32 %v25615_v8, %v4311_v27  ;;  %25679 = vst [vmem:[#allocation41_spill] sm:$0xff] %v20404_v50  ;;  %v20432_v8 = vld [vmem:[#allocation4 + $0x18] sm:$0xff] }
 0x1e1   : > { %25677 = vst [vmem:[#allocation40_spill] sm:$0xff] %v20399_v57  ;;  %v4230_v30 = vshll.u32 %v20399_v57, 16  ;;  %v20429_v54 = vsel %vm2097_vm3, %v5645_v0, %v25619_v61  ;;  %v20451_v61 = vld [vmem:[#allocation4 + $0x20] sm:$0xff] }
 0x1e2   : > { %v20415_v27 = vsel %vm1427_vm1, %v4315_v58, %v4319_v34  ;;  %25683 = vst [vmem:[#allocation44_spill] sm:$0xff] %v20421_v44  ;;  %v1790_v34 = vpop.f32.mrf.mxu3  ;;  %v3180_v58 = vshrl.u32 %v20348_v51, 16 }
 0x1e3   : > { %25682 = vst [vmem:[#allocation43_spill] sm:$0xff] %v20415_v27  ;;  %v4232_v22 = vrot.slane %v4230_v30, 1 }
 0x1e4   : > { %25684 = vst [vmem:[#allocation45_spill] sm:$0xff] %v20429_v54  ;;  %v3185_v30 = vor.u32 %v3184_v3, %v3180_v58  ;;  %v3195_v58 = vshll.u32 %v20451_v61, 16 }
 0x1e5   : > { %v20437_v28 = vsel %vm1427_vm1, %v20421_v44, %v4232_v22  ;;  %v1749_v22 = vpop.f32.mrf.mxu2 }
 0x1e6   : > { %25685 = vst [vmem:[#allocation46_spill] sm:$0xff] %v20437_v28  ;;  %v4325_v37 = vshll.u32 %v20437_v28, 16  ;;  %v3190_v51 = vsel %vm1427_vm1, %v3185_v30, %v19715_v17  ;;  %v18286_v28 = vld [vmem:[%s25545_s3 + $0x3a0] sm:$0xff] }
 0x1e7   : > { %1932 = vmatmul.bf16.gmra.mxu2 %v20423_v10 }
 0x1e8   : > { %3388 = vmatmul.bf16.gmra.mxu0 %v20432_v8  ;;  %v20440_v47 = vrot.slane %v4325_v37, 1  ;;  %v3197_v37 = vrot.slane %v3195_v58, 1  ;;  %v2691_v58 = vpop.f32.mrf.mxu0 }
 0x1e9   : > { %v2733_v32 = vpop.f32.mrf.mxu1  ;;  %v18289_v58 = vld [vmem:[%s25545_s3 + $0x3b8] sm:$0xff] }
 0x1ea   : > { %25686 = vst [vmem:[#allocation47_spill] sm:$0xff] %v20440_v47  ;;  %v20442_v0 = vadd.f32 %v2733_v32, %v2689_v42  ;;  %v20448_v53 = vsel %vm1427_vm1, %v4323_v55, %v20440_v47  ;;  %v18185_v32 = vld [vmem:[%s25545_s3 + $0x110] sm:$0xff]  ;;  %v20462_v55 = vld [vmem:[#allocation4 + $0x20] sm:$0xff]  ;;  %4015 = vmatpush.bf16.msrb.mxu0 %v18289_v58 }
 0x1eb   : > { %25687 = vst [vmem:[#allocation48_spill] sm:$0xff] %v20448_v53  ;;  %v1793_v34 = vpop.f32.mrf.mxu3  ;;  %v18193_v42 = vld [vmem:[%s25545_s3 + $0x150] sm:$0xff]  ;;  %2243 = vmatpush.bf16.msra.mxu2 %v18185_v32  ;;  %v18192_v32 = vld [vmem:[%s25545_s3 + $0x148] sm:$0xff] }
 0x1ec   : > { %v20453_v3 = vadd.f32 %v1793_v34, %v1749_v22  ;;  %2287 = vmatpush.bf16.msra.mxu3 %v18193_v42  ;;  %v18184_v34 = vld [vmem:[%s25545_s3 + $0x108] sm:$0xff]  ;;  %v20479_v42 = vld [vmem:[#allocation4 + $0x28] sm:$0xff] }
 0x1ed   : > { %3427 = vmatmul.bf16.vlgmr.msra.gmra.mxu1 %v3190_v51  ;;  %v1751_v22 = vpop.f32.mrf.mxu2 }
 0x1ee   : > { %1971 = vmatmul.bf16.gmra.mxu3 %v19682_v59  ;;  %v3191_v59 = vshrl.u32 %v20432_v8, 16  ;;  %v20485_v22 = vld [vmem:[#allocation4 + $0x28] sm:$0xff] }
 0x1ef   : > { %2244 = vmatpush.bf16.msra.mxu2 %v18184_v34  ;;  %v3199_v34 = vshrl.u32 %v20451_v61, 16 }
 0x1f0   : > { %v3193_v30 = vor.u32 %v3191_v59, %v19715_v17  ;;  %2288 = vmatpush.bf16.msra.mxu3 %v18192_v32  ;;  %v18183_v17 = vld [vmem:[%s25545_s3 + $0x100] sm:$0xff] }
 0x1f1   : > { %v2735_v59 = vpop.f32.mrf.mxu1  ;;  %v3201_v47 = vor.u32 %v3199_v34, %v3197_v37 }
 0x1f2   : > { %v20469_v51 = vsel %vm1427_vm1, %v3193_v30, %v3197_v37  ;;  %v2694_v59 = vpop.f32.mrf.mxu0  ;;  %v18288_v37 = vld [vmem:[%s25545_s3 + $0x3b0] sm:$0xff] }
 0x1f3   : > { %25688 = vst [vmem:[#allocation49_spill] sm:$0xff] %v20469_v51  ;;  %2245 = vmatpush.bf16.msra.mxu2 %v18183_v17  ;;  %v1795_v54 = vpop.f32.mrf.mxu3  ;;  %4016 = vmatpush.bf16.msrb.mxu0 %v18288_v37 }
 0x1f4   : > { %v18191_v54 = vld [vmem:[%s25545_s3 + $0x140] sm:$0xff] }
 0x1f5   : > { %v1754_v30 = vpop.f32.mrf.mxu2  ;;  %2289 = vmatpush.bf16.msra.mxu3 %v18191_v54 }
 0x1f7   : > { %1937 = vmatmul.bf16.gmra.mxu2 %v20462_v55 }
 0x1f8   : > { %3393 = vmatmul.bf16.gmra.mxu0 %v20451_v61 }
 0x1fd   : > { %3432 = vmatmul.bf16.gmra.mxu1 %v20469_v51  ;;  %v18291_v51 = vld [vmem:[%s25545_s3 + $0x3c8] sm:$0xff] }
 0x1fe   : > { %1976 = vmatmul.bf16.gmra.mxu3 %v19777_v12  ;;  %v3203_v12 = vshll.u32 %v20479_v42, 16 }
 0x200   : > { %v3205_v32 = vrot.slane %v3203_v12, 1  ;;  %v1756_v12 = vpop.f32.mrf.mxu2 }
 0x202   : > { %v20496_v17 = vsel %vm1427_vm1, %v3201_v47, %v3205_v32 }
 0x203   : > { %25689 = vst [vmem:[#allocation50_spill] sm:$0xff] %v20496_v17 }
 0x207   : > { %1942 = vmatmul.bf16.gmra.mxu2 %v20485_v22 }
 0x208   : > { %3398 = vmatmul.bf16.gmra.mxu0 %v20479_v42  ;;  %v1759_v12 = vpop.f32.mrf.mxu2 }
 0x209   : > { %v2738_v57 = vpop.f32.mrf.mxu1 }
 0x20a   : > { %v20493_v53 = vadd.f32 %v2738_v57, %v2694_v59  ;;  %v20506_v57 = vld [vmem:[#allocation4 + $0x30] sm:$0xff]  ;;  %v1997_v59 = vld [vmem:[#allocation4] sm:$0xc] }
 0x20b   : > { %v1798_v34 = vpop.f32.mrf.mxu3  ;;  %v3211_v58 = vshll.u32 %v20506_v57, 16  ;;  %v2013_v37 = vunpack.c.l.b16 %v1997_v59 }
 0x20c   : > { %v20508_v47 = vadd.f32 %v1798_v34, %v1754_v30  ;;  %v3207_v30 = vshrl.u32 %v20479_v42, 16  ;;  %v2696_v34 = vpop.f32.mrf.mxu0 }
 0x20d   : > { %3437 = vmatmul.bf16.gmra.mxu1 %v20496_v17  ;;  %v3213_v54 = vrot.slane %v3211_v58, 1  ;;  %v2014_v18 = vpack.c.b16 %v19563_v16, %v2013_v37  ;;  %v20538_v58 = vld [vmem:[#allocation4 + $0x38] sm:$0xff]  ;;  %v18297_v37 = vld [vmem:[%s25545_s3 + $0x3f8] sm:$0xff]  ;;  %v18283_v34 = vld [vmem:[%s25545_s3 + $0x388] sm:$0xff] }
 0x20e   : > { %1981 = vmatmul.bf16.gmra.mxu3 %v19880_v24  ;;  %v18287_v24 = vld [vmem:[%s25545_s3 + $0x3a8] sm:$0xff]  ;;  %v3209_v27 = vor.u32 %v3207_v30, %v3205_v32  ;;  %v2099_v30 = vrot.slane %v20281_v4, 2  ;;  %4059 = vmatpush.bf16.msrb.mxu1 %v18297_v37  ;;  %v18282_v4 = vld [vmem:[%s25545_s3 + $0x380] sm:$0xff] }
 0x20f   : > { %4017 = vmatpush.bf16.msrb.mxu0 %v18287_v24  ;;  %v18285_v24 = vld [vmem:[%s25545_s3 + $0x398] sm:$0xff]  ;;  %v2098_v32 = vrot.slane %v2014_v18, 2 }
 0x210   : > { %v20524_v50 = vsel %vm1427_vm1, %v3209_v27, %v3213_v54  ;;  %v18284_v27 = vld [vmem:[%s25545_s3 + $0x390] sm:$0xff] }
 0x211   : > { %25690 = vst [vmem:[#allocation51_spill] sm:$0xff] %v20524_v50  ;;  %v2740_v59 = vpop.f32.mrf.mxu1  ;;  %v2100_v18 = vsel %vm2097_vm3, %v2098_v32, %v2099_v30 }
 0x213   : > { %4018 = vmatpush.bf16.msrb.mxu0 %v18286_v28  ;;  %v18236_v28 = vld [vmem:[%s25545_s3 + $0x278] sm:$0xff]  ;;  %v1800_v32 = vpop.f32.mrf.mxu3 }
 0x214   : > { %3061 = vmatpush.bf16.msrb.mxu3 %v18236_v28  ;;  %v2699_v16 = vpop.f32.mrf.mxu0  ;;  %v3215_v28 = vshrl.u32 %v20506_v57, 16  ;;  %v2104_v32 = vrot.slane %v20343_v33, 2  ;;  %v3223_v33 = vshrl.u32 %v20538_v58, 16 }
 0x217   : > { %1947 = vmatmul.bf16.gmra.mxu2 %v19981_v35  ;;  %4019 = vmatpush.bf16.msrb.mxu0 %v18285_v24  ;;  %v18228_v35 = vld [vmem:[%s25545_s3 + $0x238] sm:$0xff]  ;;  %v3219_v24 = vshll.u32 %v20538_v58, 16 }
 0x218   : > { %3403 = vmatmul.bf16.gmra.mxu0 %v20506_v57  ;;  %3017 = vmatpush.bf16.msrb.mxu2 %v18228_v35  ;;  %v18296_v35 = vld [vmem:[%s25545_s3 + $0x3f0] sm:$0xff] }
 0x219   : > { %4060 = vmatpush.bf16.msrb.mxu1 %v18296_v35 }
 0x21b   : > { %4020 = vmatpush.bf16.msrb.mxu0 %v18284_v27  ;;  %v3221_v27 = vrot.slane %v3219_v24, 1  ;;  %v18235_v24 = vld [vmem:[%s25545_s3 + $0x270] sm:$0xff] }
 0x21c   : > { %v2701_v17 = vpop.f32.mrf.mxu0  ;;  %3062 = vmatpush.bf16.msrb.mxu3 %v18235_v24 }
 0x21d   : > { %3442 = vmatmul.bf16.gmra.mxu1 %v20524_v50  ;;  %v3217_v50 = vor.u32 %v3215_v28, %v3213_v54  ;;  %v18294_v54 = vld [vmem:[%s25545_s3 + $0x3e0] sm:$0xff]  ;;  %v18176_v17 = vld [vmem:[#allocation4 + $0x8] sm:$0xff] }
 0x21e   : > { %1986 = vmatmul.bf16.gmra.mxu3 %v20010_v11  ;;  %v1761_v11 = vpop.f32.mrf.mxu2 }
 0x21f   : > { %4021 = vmatpush.bf16.msrb.mxu0 %v18283_v34  ;;  %v18295_v34 = vld [vmem:[%s25545_s3 + $0x3e8] sm:$0xff]  ;;  %v20569_v35 = vsel %vm1427_vm1, %v3217_v50, %v3221_v27 }
 0x220   : > { %25692 = vst [vmem:[#allocation53_spill] sm:$0xff] %v20569_v35  ;;  %4061 = vmatpush.bf16.msrb.mxu1 %v18295_v34 }
 0x223   : > { %4022 = vmatpush.bf16.msrb.mxu0 %v18282_v4 }
 0x224   : > { %4062 = vmatpush.bf16.msrb.mxu1 %v18294_v54 }
 0x227   : > { %2246 = vmatmul.bf16.vlgmr.msra.gmra.mxu2 %v2100_v18  ;;  %v18227_v18 = vld [vmem:[%s25545_s3 + $0x230] sm:$0xff] }
 0x228   : > { %3408 = vmatmul.bf16.gmra.mxu0 %v20538_v58  ;;  %3018 = vmatpush.bf16.msrb.mxu2 %v18227_v18  ;;  %v18293_v18 = vld [vmem:[%s25545_s3 + $0x3d8] sm:$0xff] }
 0x229   : > { %4063 = vmatpush.bf16.msrb.mxu1 %v18293_v18  ;;  %v3225_v18 = vor.u32 %v3223_v33, %v3221_v27  ;;  %v18290_v27 = vld [vmem:[%s25545_s3 + $0x3c0] sm:$0xff] }
 0x22a   : > { %v2743_v59 = vpop.f32.mrf.mxu1  ;;  %v1764_v37 = vpop.f32.mrf.mxu2 }
 0x22b   : > { %v20557_v11 = vadd.f32 %v2743_v59, %v2699_v16  ;;  %v20576_v16 = vld [vmem:[#allocation4 + $0x10] sm:$0xff]  ;;  %v2051_v59 = vrot.slane %v18176_v17, 6 }
 0x22c   : > { %v2052_v34 = vrot.slane %v20576_v16, 6 }
 0x22d   : > { %25691 = vst [vmem:[#allocation52_spill] sm:$0xff] %v20557_v11  ;;  %3447 = vmatmul.bf16.gmra.mxu1 %v20569_v35  ;;  %v2704_v35 = vpop.f32.mrf.mxu0  ;;  %v2101_v17 = vrot.slane %v2051_v59, 2 }
 0x22e   : > { %1991 = vmatmul.bf16.gmra.mxu3 %v20157_v45  ;;  %v18292_v45 = vld [vmem:[%s25545_s3 + $0x3d0] sm:$0xff]  ;;  %v2053_v24 = vsel %vm2050_vm4, %v2051_v59, %v2052_v34  ;;  %v20604_v59 = vsel %vm1427_vm1, %v3225_v18, %v20339_v60  ;;  %v25693_v60 = vunpack.c.h.b16 %v19644_v26  ;;  %v18233_v26 = vld [vmem:[%s25545_s3 + $0x260] sm:$0xff] }
 0x22f   : > { %4064 = vmatpush.bf16.msrb.mxu1 %v18292_v45  ;;  %v2102_v16 = vrot.slane %v2053_v24, 2 }
 0x231   : > { %v1803_v4 = vpop.f32.mrf.mxu3  ;;  %v2103_v33 = vsel %vm2097_vm3, %v2101_v17, %v2102_v16 }
 0x232   : > { %v20578_v28 = vadd.f32 %v1803_v4, %v1759_v12  ;;  %v1766_v50 = vpop.f32.mrf.mxu2  ;;  %v2105_v12 = vsel %vm2097_vm3, %v2099_v30, %v2104_v32  ;;  %v3776_v4 = vld [vmem:[#allocation4 + $0x10] sm:$0xc]  ;;  %v18226_v30 = vld [vmem:[%s25545_s3 + $0x228] sm:$0xff]  ;;  %v2745_v18 = vpop.f32.mrf.mxu1 }
 0x233   : > { %4065 = vmatpush.bf16.msrb.mxu1 %v18291_v51  ;;  %3019 = vmatpush.bf16.msrb.mxu2 %v18226_v30  ;;  %v3792_v44 = vunpack.c.l.b16 %v3776_v4  ;;  %v3876_v4 = vrot.slane %v20432_v8, 2 }
 0x235   : > { %v2706_v24 = vpop.f32.mrf.mxu0  ;;  %v3793_v51 = vpack.c.b16 %v25693_v60, %v3792_v44 }
 0x236   : > { %v2108_v24 = vrot.slane %v20423_v10, 2 }
 0x237   : > { %2251 = vmatmul.bf16.gmra.mxu2 %v2105_v12  ;;  %v18234_v12 = vld [vmem:[%s25545_s3 + $0x268] sm:$0xff]  ;;  %4066 = vmatpush.bf16.msrb.mxu1 %v18290_v27 }
 0x238   : > { %3413 = vmatmul.bf16.gmra.mxu0 %v20314_v9  ;;  %3063 = vmatpush.bf16.msrb.mxu3 %v18234_v12  ;;  %v18225_v12 = vld [vmem:[%s25545_s3 + $0x220] sm:$0xff]  ;;  %v2109_v10 = vsel %vm2097_vm3, %v2104_v32, %v2108_v24 }
 0x239   : > { %v1805_v54 = vpop.f32.mrf.mxu3  ;;  %3020 = vmatpush.bf16.msrb.mxu2 %v18225_v12 }
 0x23a   : > { %v1918_v50 = vpop.f32.mrf.mxu2  ;;  %v3133_v54 = vld [vmem:[#allocation4 + $0x48] sm:$0x1] }
 0x23b   : > { %v1919_v45 = vadd.f32 %v1918_v50, %v20118_v6  ;;  %v18178_v6 = vld [vmem:[#allocation4 + $0x18] sm:$0xff]  ;;  %v3177_v50 = vunpack.c.l.b16 %v3133_v54 }
 0x23c   : > { %v2054_v1 = vrot.slane %v18178_v6, 6  ;;  %3064 = vmatpush.bf16.msrb.mxu3 %v18233_v26  ;;  %v18179_v26 = vld [vmem:[#allocation4 + $0x20] sm:$0xff] }
 0x23d   : > { %3452 = vmatmul.bf16.gmra.mxu1 %v20604_v59  ;;  %v20616_v17 = vpack.c.b16 %v3177_v50, %v3177_v50 }
 0x23e   : > { %2290 = vmatmul.bf16.vlgmr.msra.gmra.mxu3 %v2103_v33 }
 0x23f   : > { %v3235_v44 = vshll.u32 %v20616_v17, 16 }
 0x241   : > { %v1808_v11 = vpop.f32.mrf.mxu3  ;;  %v3237_v54 = vrot.slane %v3235_v44, 1 }
 0x242   : > { %v20613_v30 = vadd.f32 %v1808_v11, %v1764_v37  ;;  %v1920_v43 = vpop.f32.mrf.mxu2  ;;  %v3875_v37 = vrot.slane %v3793_v51, 2 }
 0x243   : > { %v2055_v43 = vsel %vm2050_vm4, %v2052_v34, %v2054_v1  ;;  %v3238_v51 = vsel %vm1427_vm1, %v20365_v63, %v3237_v54  ;;  %v18276_v34 = vld [vmem:[#allocation4 + $0x20] sm:$0xff]  ;;  %v18232_v54 = vld [vmem:[%s25545_s3 + $0x258] sm:$0xff] }
 0x244   : > { %v3877_v8 = vsel %vm2097_vm3, %v3875_v37, %v3876_v4  ;;  %v2106_v33 = vrot.slane %v2055_v43, 2  ;;  %v18275_v37 = vld [vmem:[#allocation4 + $0x18] sm:$0xff]  ;;  %3065 = vmatpush.bf16.msrb.mxu3 %v18232_v54 }
 0x245   : > { %v2709_v11 = vpop.f32.mrf.mxu0  ;;  %v3829_v63 = vrot.slane %v18275_v37, 6 }
 0x246   : > { %v2107_v32 = vsel %vm2097_vm3, %v2102_v16, %v2106_v33  ;;  %v18224_v16 = vld [vmem:[%s25545_s3 + $0x218] sm:$0xff] }
 0x247   : > { %2256 = vmatmul.bf16.gmra.mxu2 %v2109_v10  ;;  %v3830_v10 = vrot.slane %v18276_v34, 6 }
 0x248   : > { %4023 = vmatmul.bf16.vlgmr.msrb.gmra.mxu0 %v3877_v8  ;;  %3021 = vmatpush.bf16.msrb.mxu2 %v18224_v16 }
 0x249   : > { %v1810_v27 = vpop.f32.mrf.mxu3 }
 0x24a   : > { %v1923_v6 = vpop.f32.mrf.mxu2  ;;  %v2748_v50 = vpop.f32.mrf.mxu1 }
 0x24b   : > { %v1924_v60 = vadd.f32 %v1923_v6, %v20224_v20  ;;  %v20630_v18 = vadd.f32 %v2748_v50, %v2704_v35  ;;  %v2112_v20 = vrot.slane %v20462_v55, 2  ;;  %v2056_v35 = vrot.slane %v18179_v26, 6 }
 0x24c   : > { %v3881_v6 = vrot.slane %v20451_v61, 2 }
 0x24d   : > { %v2711_v12 = vpop.f32.mrf.mxu0  ;;  %3457 = vmatmul.bf16.gmra.mxu1 %v3238_v51  ;;  %v2113_v51 = vsel %vm2097_vm3, %v2108_v24, %v2112_v20  ;;  %v2057_v55 = vsel %vm2050_vm4, %v2054_v1, %v2056_v35  ;;  %v18277_v1 = vld [vmem:[#allocation4 + $0x28] sm:$0xff] }
 0x24e   : > { %2295 = vmatmul.bf16.gmra.mxu3 %v2107_v32  ;;  %v3882_v61 = vsel %vm2097_vm3, %v3876_v4, %v3881_v6  ;;  %v2110_v34 = vrot.slane %v2057_v55, 2  ;;  %v18180_v4 = vld [vmem:[#allocation4 + $0x28] sm:$0xff] }
 0x250   : > { %v2111_v24 = vsel %vm2097_vm3, %v2106_v33, %v2110_v34  ;;  %v18223_v33 = vld [vmem:[%s25545_s3 + $0x210] sm:$0xff] }
 0x251   : > { %v1962_v44 = vpop.f32.mrf.mxu3  ;;  %3022 = vmatpush.bf16.msrb.mxu2 %v18223_v33  ;;  %v18181_v33 = vld [vmem:[#allocation4 + $0x30] sm:$0xff] }
 0x252   : > { %v20635_v43 = vadd.f32 %v1962_v44, %v1919_v45  ;;  %v1925_v8 = vpop.f32.mrf.mxu2  ;;  %v2750_v27 = vpop.f32.mrf.mxu1  ;;  %v3831_v45 = vsel %vm2050_vm4, %v3829_v63, %v3830_v10  ;;  %v3878_v44 = vrot.slane %v3829_v63, 2  ;;  %v2116_v63 = vrot.slane %v20485_v22, 2 }
 0x253   : > { %v3879_v32 = vrot.slane %v3831_v45, 2  ;;  %v3832_v45 = vrot.slane %v18277_v1, 6 }
 0x255   : > { %v3384_v50 = vpop.f32.mrf.mxu0  ;;  %v3880_v16 = vsel %vm2097_vm3, %v3878_v44, %v3879_v32  ;;  %v3833_v44 = vsel %vm2050_vm4, %v3830_v10, %v3832_v45 }
 0x257   : > { %2261 = vmatmul.bf16.gmra.mxu2 %v2113_v51 }
 0x258   : > { %4028 = vmatmul.bf16.gmra.mxu0 %v3882_v61 }
 0x259   : > { %v1964_v12 = vpop.f32.mrf.mxu3 }
 0x25a   : > { %v1928_v26 = vpop.f32.mrf.mxu2  ;;  %v2753_v37 = vpop.f32.mrf.mxu1 }
 0x25b   : > { %v1929_v8 = vadd.f32 %v1928_v26, %v20318_v21  ;;  %v20650_v27 = vadd.f32 %v2753_v37, %v2709_v11  ;;  %v2058_v21 = vrot.slane %v18180_v4, 6  ;;  %v3885_v11 = vrot.slane %v20479_v42, 2  ;;  %v18231_v26 = vld [vmem:[%s25545_s3 + $0x250] sm:$0xff] }
 0x25c   : > { %3066 = vmatpush.bf16.msrb.mxu3 %v18231_v26 }
 0x25d   : > { %v3386_v54 = vpop.f32.mrf.mxu0  ;;  %4067 = vmatmul.bf16.vlgmr.msrb.gmra.mxu1 %v3880_v16  ;;  %v2059_v22 = vsel %vm2050_vm4, %v2056_v35, %v2058_v21  ;;  %v3886_v42 = vsel %vm2097_vm3, %v3881_v6, %v3885_v11  ;;  %v3883_v16 = vrot.slane %v3833_v44, 2  ;;  %v18278_v35 = vld [vmem:[#allocation4 + $0x30] sm:$0xff] }
 0x25e   : > { %2300 = vmatmul.bf16.gmra.mxu3 %v2111_v24  ;;  %v2114_v54 = vrot.slane %v2059_v22, 2  ;;  %v3834_v26 = vrot.slane %v18278_v35, 6 }
 0x25f   : > { %v3884_v10 = vsel %vm2097_vm3, %v3879_v32, %v3883_v16  ;;  %v18230_v32 = vld [vmem:[%s25545_s3 + $0x248] sm:$0xff] }
 0x260   : > { %3067 = vmatpush.bf16.msrb.mxu3 %v18230_v32  ;;  %v20697_v32 = vld [vmem:[#allocation4 + $0x38] sm:$0xff] }
 0x261   : > { %v1967_v51 = vpop.f32.mrf.mxu3 }
 0x262   : > { %v20654_v61 = vadd.f32 %v1967_v51, %v1924_v60  ;;  %v1930_v55 = vpop.f32.mrf.mxu2  ;;  %v2755_v12 = vpop.f32.mrf.mxu1  ;;  %v2117_v60 = vsel %vm2097_vm3, %v2112_v20, %v2116_v63 }
 0x263   : > { %v2115_v12 = vsel %vm2097_vm3, %v2110_v34, %v2114_v54  ;;  %v3889_v34 = vrot.slane %v20506_v57, 2 }
 0x265   : > { %v3389_v37 = vpop.f32.mrf.mxu0 }
 0x267   : > { %2266 = vmatmul.bf16.gmra.mxu2 %v2117_v60 }
 0x268   : > { %4033 = vmatmul.bf16.gmra.mxu0 %v3886_v42  ;;  %v19219_v42 = vld [vmem:[#allocation4 + $0x30] sm:$0xff] }
 0x269   : > { %v1969_v24 = vpop.f32.mrf.mxu3 }
 0x26a   : > { %v1933_v1 = vpop.f32.mrf.mxu2  ;;  %v3428_v4 = vpop.f32.mrf.mxu1  ;;  %v2120_v24 = vrot.slane %v19219_v42, 2 }
 0x26b   : > { %v1934_v51 = vadd.f32 %v1933_v1, %v20453_v3  ;;  %v20669_v55 = vadd.f32 %v3428_v4, %v3384_v50  ;;  %v2060_v3 = vrot.slane %v18181_v33, 6  ;;  %v18222_v50 = vld [vmem:[%s25545_s3 + $0x208] sm:$0xff]  ;;  %v3835_v4 = vsel %vm2050_vm4, %v3832_v45, %v3834_v26  ;;  %v18327_v45 = vld [vmem:[%s25545_s3 + $0x4b8] sm:$0xff] }
 0x26c   : > { %3023 = vmatpush.bf16.msrb.mxu2 %v18222_v50  ;;  %v3887_v35 = vrot.slane %v3835_v4, 2  ;;  %v18279_v50 = vld [vmem:[#allocation4 + $0x38] sm:$0xff]  ;;  %4793 = vmatpush.bf16.msra.mxu0 %v18327_v45 }
 0x26d   : > { %v3391_v20 = vpop.f32.mrf.mxu0  ;;  %4072 = vmatmul.bf16.gmra.mxu1 %v3884_v10  ;;  %v2121_v10 = vsel %vm2097_vm3, %v2116_v63, %v2120_v24 }
 0x26e   : > { %2305 = vmatmul.bf16.gmra.mxu3 %v2115_v12  ;;  %v2061_v12 = vsel %vm2050_vm4, %v2058_v21, %v2060_v3  ;;  %v3890_v20 = vsel %vm2097_vm3, %v3885_v11, %v3889_v34  ;;  %v3888_v63 = vsel %vm2097_vm3, %v3883_v16, %v3887_v35  ;;  %v3836_v16 = vrot.slane %v18279_v50, 6 }
 0x26f   : > { %v2118_v33 = vrot.slane %v2061_v12, 2  ;;  %v2124_v12 = vrot.slane %v20121_v2, 2 }
 0x270   : > { %v3837_v45 = vsel %vm2050_vm4, %v3834_v26, %v3836_v16  ;;  %v18323_v26 = vld [vmem:[%s25545_s3 + $0x498] sm:$0xff] }
 0x271   : > { %v1972_v6 = vpop.f32.mrf.mxu3  ;;  %v2119_v21 = vsel %vm2097_vm3, %v2114_v54, %v2118_v33 }
 0x272   : > { %v20673_v44 = vadd.f32 %v1972_v6, %v1929_v8  ;;  %v1935_v60 = vpop.f32.mrf.mxu2  ;;  %v3430_v22 = vpop.f32.mrf.mxu1  ;;  %v18221_v8 = vld [vmem:[%s25545_s3 + $0x200] sm:$0xff] }
 0x273   : > { %3024 = vmatpush.bf16.msrb.mxu2 %v18221_v8 }
 0x275   : > { %v3394_v1 = vpop.f32.mrf.mxu0 }
 0x277   : > { %2271 = vmatmul.bf16.gmra.mxu2 %v2121_v10 }
 0x278   : > { %4038 = vmatmul.bf16.gmra.mxu0 %v3890_v20  ;;  %v2062_v20 = vrot.slane %v20697_v32, 6 }
 0x279   : > { %v1974_v57 = vpop.f32.mrf.mxu3 }
 0x27a   : > { %v1938_v6 = vpop.f32.mrf.mxu2  ;;  %v3433_v60 = vpop.f32.mrf.mxu1  ;;  %v3893_v57 = vrot.slane %v20538_v58, 2  ;;  %v2063_v2 = vsel %vm2050_vm4, %v2060_v3, %v2062_v20  ;;  %v3891_v58 = vrot.slane %v3837_v45, 2 }
 0x27b   : > { %v1939_v22 = vadd.f32 %v1938_v6, %v20508_v47  ;;  %v20690_v42 = vadd.f32 %v3433_v60, %v3389_v37  ;;  %v18229_v47 = vld [vmem:[%s25545_s3 + $0x240] sm:$0xff]  ;;  %v18326_v37 = vld [vmem:[%s25545_s3 + $0x4b0] sm:$0xff]  ;;  %v18325_v6 = vld [vmem:[%s25545_s3 + $0x4a8] sm:$0xff]  ;;  %v2122_v50 = vrot.slane %v2063_v2, 2  ;;  %v3897_v2 = vrot.slane %v20314_v9, 2 }
 0x27c   : > { %3068 = vmatpush.bf16.msrb.mxu3 %v18229_v47  ;;  %4794 = vmatpush.bf16.msra.mxu0 %v18326_v37 }
 0x27d   : > { %v3396_v11 = vpop.f32.mrf.mxu0  ;;  %4077 = vmatmul.bf16.gmra.mxu1 %v3888_v63  ;;  %v2125_v63 = vsel %vm2097_vm3, %v2120_v24, %v2124_v12  ;;  %v3892_v24 = vsel %vm2097_vm3, %v3887_v35, %v3891_v58  ;;  %v2123_v3 = vsel %vm2097_vm3, %v2118_v33, %v2122_v50  ;;  %v18274_v12 = vld [vmem:[%s25545_s3 + $0x378] sm:$0xff] }
 0x27e   : > { %2310 = vmatmul.bf16.gmra.mxu3 %v2119_v21  ;;  %v3894_v21 = vsel %vm2097_vm3, %v3889_v34, %v3893_v57 }
 0x280   : > { %4795 = vmatpush.bf16.msra.mxu0 %v18325_v6  ;;  %3718 = vmatpush.bf16.msra.mxu3 %v18274_v12  ;;  %v18332_v12 = vld [vmem:[%s25545_s3 + $0x4e0] sm:$0xff] }
 0x281   : > { %v1977_v8 = vpop.f32.mrf.mxu3 }
 0x282   : > { %v20705_v54 = vadd.f32 %v1977_v8, %v1934_v51  ;;  %v1940_v4 = vpop.f32.mrf.mxu2  ;;  %v3435_v10 = vpop.f32.mrf.mxu1  ;;  %v18324_v51 = vld [vmem:[%s25545_s3 + $0x4a0] sm:$0xff] }
 0x283   : > { %v18280_v4 = vld [vmem:[#allocation4 + $0x40] sm:$0xff]  ;;  %v18266_v10 = vld [vmem:[%s25545_s3 + $0x338] sm:$0xff] }
 0x284   : > { %4796 = vmatpush.bf16.msra.mxu0 %v18324_v51  ;;  %3674 = vmatpush.bf16.msra.mxu2 %v18266_v10  ;;  %v3838_v35 = vrot.slane %v18280_v4, 6  ;;  %v18335_v51 = vld [vmem:[%s25545_s3 + $0x4f8] sm:$0xff]  ;;  %v18265_v4 = vld [vmem:[%s25545_s3 + $0x330] sm:$0xff] }
 0x285   : > { %v3399_v60 = vpop.f32.mrf.mxu0  ;;  %4837 = vmatpush.bf16.msra.mxu1 %v18335_v51 }
 0x287   : > { %2276 = vmatmul.bf16.gmra.mxu2 %v2125_v63  ;;  %v18321_v63 = vld [vmem:[%s25545_s3 + $0x488] sm:$0xff] }
 0x288   : > { %4043 = vmatmul.bf16.gmra.mxu0 %v3894_v21  ;;  %v18334_v21 = vld [vmem:[%s25545_s3 + $0x4f0] sm:$0xff]  ;;  %3675 = vmatpush.bf16.msra.mxu2 %v18265_v4 }
 0x289   : > { %v1979_v11 = vpop.f32.mrf.mxu3  ;;  %4797 = vmatpush.bf16.msra.mxu0 %v18323_v26  ;;  %4838 = vmatpush.bf16.msra.mxu1 %v18334_v21  ;;  %v18331_v21 = vld [vmem:[%s25545_s3 + $0x4d8] sm:$0xff] }
 0x28a   : > { %v1943_v32 = vpop.f32.mrf.mxu2  ;;  %v3438_v47 = vpop.f32.mrf.mxu1 }
 0x28b   : > { %v1944_v37 = vadd.f32 %v1943_v32, %v20578_v28  ;;  %v20724_v8 = vadd.f32 %v3438_v47, %v3394_v1  ;;  %v18322_v28 = vld [vmem:[%s25545_s3 + $0x490] sm:$0xff]  ;;  %v18320_v32 = vld [vmem:[%s25545_s3 + $0x480] sm:$0xff]  ;;  %v3898_v47 = vsel %vm2097_vm3, %v3893_v57, %v3897_v2 }
 0x28d   : > { %v3401_v34 = vpop.f32.mrf.mxu0  ;;  %4082 = vmatmul.bf16.gmra.mxu1 %v3892_v24  ;;  %4798 = vmatpush.bf16.msra.mxu0 %v18322_v28  ;;  %v2126_v24 = vrot.slane %v2062_v20, 2 }
 0x28e   : > { %2315 = vmatmul.bf16.gmra.mxu3 %v2123_v3 }
 0x28f   : > { %v2127_v28 = vsel %vm2097_vm3, %v2122_v50, %v2126_v24 }
 0x291   : > { %v1982_v1 = vpop.f32.mrf.mxu3  ;;  %4799 = vmatpush.bf16.msra.mxu0 %v18321_v63  ;;  %v3901_v63 = vrot.slane %v20341_v25, 2 }
 0x292   : > { %v20737_v33 = vadd.f32 %v1982_v1, %v1939_v22  ;;  %v1945_v6 = vpop.f32.mrf.mxu2  ;;  %v3440_v45 = vpop.f32.mrf.mxu1  ;;  %v3839_v22 = vsel %vm2050_vm4, %v3836_v16, %v3838_v35  ;;  %v18333_v16 = vld [vmem:[%s25545_s3 + $0x4e8] sm:$0xff] }
 0x293   : > { %v3895_v26 = vrot.slane %v3839_v22, 2  ;;  %4839 = vmatpush.bf16.msra.mxu1 %v18333_v16  ;;  %v18281_v6 = vld [vmem:[#allocation4 + $0x48] sm:$0xff]  ;;  %v18329_v16 = vld [vmem:[%s25545_s3 + $0x4c8] sm:$0xff] }
 0x295   : > { %v3404_v11 = vpop.f32.mrf.mxu0  ;;  %4800 = vmatpush.bf16.msra.mxu0 %v18320_v32  ;;  %v3896_v20 = vsel %vm2097_vm3, %v3891_v58, %v3895_v26  ;;  %v18330_v32 = vld [vmem:[%s25545_s3 + $0x4d0] sm:$0xff] }
 0x297   : > { %3025 = vmatmul.bf16.vlgmr.msrb.gmra.mxu2 %v19658_v15  ;;  %v18273_v15 = vld [vmem:[%s25545_s3 + $0x370] sm:$0xff]  ;;  %4840 = vmatpush.bf16.msra.mxu1 %v18332_v12  ;;  %v25695_v12 = vshll.u32 %v19793_v36, 16 }
 0x298   : > { %4048 = vmatmul.bf16.gmra.mxu0 %v3898_v47  ;;  %3719 = vmatpush.bf16.msra.mxu3 %v18273_v15 }
 0x299   : > { %v1984_v9 = vpop.f32.mrf.mxu3 }
 0x29a   : > { %v1948_v3 = vpop.f32.mrf.mxu2  ;;  %v3443_v34 = vpop.f32.mrf.mxu1 }
 0x29b   : > { %v1949_v57 = vadd.f32 %v1948_v3, %v20613_v30  ;;  %v20765_v10 = vadd.f32 %v3443_v34, %v3399_v60  ;;  %v3840_v30 = vrot.slane %v18281_v6, 6  ;;  %4841 = vmatpush.bf16.msra.mxu1 %v18331_v21  ;;  %v4550_v3 = vld [vmem:[#allocation4 + $0x18] sm:$0xc]  ;;  %v25696_v6 = vunpack.c.h.b16 %v19707_v5 }
 0x29c   : > { %v4555_v15 = vunpack.c.l.b16 %v4550_v3  ;;  %v18271_v5 = vld [vmem:[%s25545_s3 + $0x360] sm:$0xff] }
 0x29d   : > { %v3406_v1 = vpop.f32.mrf.mxu0  ;;  %4087 = vmatmul.bf16.gmra.mxu1 %v3896_v20  ;;  %v3841_v50 = vsel %vm2050_vm4, %v3838_v35, %v3840_v30 }
 0x29e   : > { %2320 = vmatmul.bf16.gmra.mxu3 %v2127_v28  ;;  %v3899_v47 = vrot.slane %v3841_v50, 2  ;;  %v4610_v28 = vrot.slane %v25695_v12, 2 }
 0x29f   : > { %4842 = vmatpush.bf16.msra.mxu1 %v18330_v32 }
 0x2a0   : > { %v3900_v35 = vsel %vm2097_vm3, %v3895_v26, %v3899_v47  ;;  %v25694_v26 = vshrl.u32 %v19793_v36, 16  ;;  %v18263_v36 = vld [vmem:[%s25545_s3 + $0x320] sm:$0xff] }
 0x2a1   : > { %v1987_v45 = vpop.f32.mrf.mxu3 }
 0x2a2   : > { %v20772_v60 = vadd.f32 %v1987_v45, %v1944_v37  ;;  %v1950_v51 = vpop.f32.mrf.mxu2  ;;  %v3445_v58 = vpop.f32.mrf.mxu1  ;;  %v3902_v37 = vsel %vm2097_vm3, %v3897_v2, %v3901_v63  ;;  %v18272_v2 = vld [vmem:[%s25545_s3 + $0x368] sm:$0xff]  ;;  %v4609_v20 = vrot.slane %v25694_v26, 1  ;;  %v4556_v45 = vpack.c.b16 %v25696_v6, %v4555_v15 }
 0x2a3   : > { %4843 = vmatpush.bf16.msra.mxu1 %v18329_v16  ;;  %3720 = vmatpush.bf16.msra.mxu3 %v18272_v2  ;;  %v25697_v51 = vshrl.u32 %v19728_v40, 16  ;;  %v25698_v58 = vshll.u32 %v19728_v40, 16 }
 0x2a4   : > { %v4560_v3 = vshll.u32 %v4556_v45, 16  ;;  %v4558_v15 = vshrl.u32 %v4556_v45, 16 }
 0x2a5   : > { %v3409_v22 = vpop.f32.mrf.mxu0  ;;  %v4607_v63 = vrot.slane %v25698_v58, 2 }
 0x2a6   : > { %v4562_v16 = vrot.slane %v4560_v3, 1 }
 0x2a7   : > { %3030 = vmatmul.bf16.gmra.mxu2 %v19737_v48  ;;  %v18264_v48 = vld [vmem:[%s25545_s3 + $0x328] sm:$0xff]  ;;  %3721 = vmatpush.bf16.msra.mxu3 %v18271_v5 }
 0x2a8   : > { %4053 = vmatmul.bf16.gmra.mxu0 %v3902_v37  ;;  %3676 = vmatpush.bf16.msra.mxu2 %v18264_v48  ;;  %v4611_v37 = vor.u32 %v4610_v28, %v4609_v20  ;;  %v4563_v20 = vor.u32 %v4562_v16, %v4558_v15  ;;  %v25700_v28 = vshll.u32 %v19892_v31, 16 }
 0x2a9   : > { %v1989_v9 = vpop.f32.mrf.mxu3 }
 0x2aa   : > { %v2247_v25 = vpop.f32.mrf.mxu2  ;;  %v3448_v24 = vpop.f32.mrf.mxu1 }
 0x2ab   : > { %v20784_v34 = vadd.f32 %v3448_v24, %v3404_v11  ;;  %v18328_v11 = vld [vmem:[%s25545_s3 + $0x4c0] sm:$0xff] }
 0x2ac   : > { %4844 = vmatpush.bf16.msra.mxu1 %v18328_v11  ;;  %3677 = vmatpush.bf16.msra.mxu2 %v18263_v36 }
 0x2ad   : > { %v3411_v4 = vpop.f32.mrf.mxu0  ;;  %4092 = vmatmul.bf16.gmra.mxu1 %v3900_v35 }
 0x2ae   : > { %3069 = vmatmul.bf16.vlgmr.msrb.gmra.mxu3 %v19724_v41  ;;  %v4606_v41 = vrot.slane %v25697_v51, 1 }
 0x2b0   : > { %v4608_v24 = vor.u32 %v4607_v63, %v4606_v41 }
 0x2b1   : > { %v1992_v1 = vpop.f32.mrf.mxu3 }
 0x2b2   : > { %v20810_v21 = vadd.f32 %v1992_v1, %v1949_v57  ;;  %v2249_v50 = vpop.f32.mrf.mxu2  ;;  %v3450_v32 = vpop.f32.mrf.mxu1  ;;  %v4612_v40 = vsel %vm2829_vm2, %v4608_v24, %v4611_v37  ;;  %v3903_v57 = vrot.slane %v3840_v30, 2  ;;  %v4626_v30 = vrot.slane %v25700_v28, 2 }
 0x2b3   : > { %v4564_v1 = vsel %vm1427_vm1, %v4563_v20, %v19821_v49  ;;  %v25702_v32 = vshll.u32 %v19938_v62, 16  ;;  %v18270_v49 = vld [vmem:[%s25545_s3 + $0x358] sm:$0xff] }
 0x2b4   : > { %v3904_v11 = vsel %vm2097_vm3, %v3899_v47, %v3903_v57  ;;  %v4614_v41 = vshrl.u32 %v4564_v1, 16  ;;  %v4617_v47 = vshll.u32 %v4564_v1, 16  ;;  %3722 = vmatpush.bf16.msra.mxu3 %v18270_v49  ;;  %v25707_v49 = vld [vmem:[#allocation23_spill] sm:$0xff] }
 0x2b5   : > { %v3414_v9 = vpop.f32.mrf.mxu0  ;;  %v4622_v36 = vrot.slane %v25702_v32, 2 }
 0x2b6   : > { %v4616_v5 = vrot.slane %v4614_v41, 1  ;;  %v4619_v24 = vrot.slane %v4617_v47, 2 }
 0x2b7   : > { %3035 = vmatmul.bf16.gmra.mxu2 %v19833_v38  ;;  %v25699_v38 = vshrl.u32 %v19892_v31, 16  ;;  %v18262_v31 = vld [vmem:[%s25545_s3 + $0x318] sm:$0xff] }
 0x2b8   : > { %4801 = vmatmul.bf16.vlgmr.msra.gmra.mxu0 %v4612_v40  ;;  %3678 = vmatpush.bf16.msra.mxu2 %v18262_v31 }
 0x2b9   : > { %v1994_v35 = vpop.f32.mrf.mxu3  ;;  %v4625_v12 = vrot.slane %v25699_v38, 1 }
 0x2ba   : > { %v2252_v48 = vpop.f32.mrf.mxu2  ;;  %v3453_v2 = vpop.f32.mrf.mxu1 }
 0x2bb   : > { %v20820_v4 = vadd.f32 %v3453_v2, %v3409_v22  ;;  %v4627_v58 = vor.u32 %v4626_v30, %v4625_v12  ;;  %v4620_v2 = vor.u32 %v4619_v24, %v4616_v5 }
 0x2bd   : > { %v3416_v26 = vpop.f32.mrf.mxu0  ;;  %4097 = vmatmul.bf16.gmra.mxu1 %v3904_v11  ;;  %v4628_v3 = vsel %vm2829_vm2, %v4611_v37, %v4627_v58 }
 0x2be   : > { %3074 = vmatmul.bf16.gmra.mxu3 %v19826_v56  ;;  %v25701_v56 = vshrl.u32 %v19938_v62, 16 }
 0x2c0   : > { %v4621_v50 = vrot.slane %v25701_v56, 1 }
 0x2c1   : > { %v2291_v6 = vpop.f32.mrf.mxu3 }
 0x2c2   : > { %v2292_v22 = vadd.f32 %v2291_v6, %v2247_v25  ;;  %v2254_v51 = vpop.f32.mrf.mxu2  ;;  %v3455_v45 = vpop.f32.mrf.mxu1  ;;  %v4623_v40 = vor.u32 %v4622_v36, %v4621_v50  ;;  %v25705_v6 = vshrl.u32 %v20073_v46, 16 }
 0x2c3   : > { %v25706_v51 = vshll.u32 %v20073_v46, 16 }
 0x2c4   : > { %v2326_v63 = vadd.f32 %v2292_v22, %v20635_v43  ;;  %v4624_v11 = vsel %vm2829_vm2, %v4620_v2, %v4623_v40  ;;  %v4629_v22 = vrot.slane %v25705_v6, 1 }
 0x2c5   : > { %v4024_v25 = vpop.f32.mrf.mxu0  ;;  %v4630_v45 = vrot.slane %v25706_v51, 2 }
 0x2c6   : > { %v20842_v43 = vadd.f32 %v20201_v13, %v2326_v63  ;;  %v25703_v13 = vshrl.u32 %v20020_v39, 16 }
 0x2c7   : > { %3040 = vmatmul.bf16.gmra.mxu2 %v19934_v14  ;;  %v25704_v14 = vshll.u32 %v20020_v39, 16  ;;  %v18269_v39 = vld [vmem:[%s25545_s3 + $0x350] sm:$0xff]  ;;  %v4631_v47 = vor.u32 %v4630_v45, %v4629_v22  ;;  %v25714_v22 = vld [vmem:[#allocation30_spill] sm:$0xff] }
 0x2c8   : > { %4806 = vmatmul.bf16.gmra.mxu0 %v4628_v3  ;;  %v4633_v20 = vrot.slane %v25703_v13, 1  ;;  %3723 = vmatpush.bf16.msra.mxu3 %v18269_v39  ;;  %v2793_v51 = vshrl.u32 %v25714_v22, 16 }
 0x2c9   : > { %v2293_v57 = vpop.f32.mrf.mxu3  ;;  %v4634_v37 = vrot.slane %v25704_v14, 2  ;;  %v4632_v36 = vsel %vm2829_vm2, %v4623_v40, %v4631_v47  ;;  %v18268_v14 = vld [vmem:[%s25545_s3 + $0x348] sm:$0xff] }
 0x2ca   : > { %v2257_v35 = vpop.f32.mrf.mxu2  ;;  %v3458_v16 = vpop.f32.mrf.mxu1 }
 0x2cb   : > { %v20846_v15 = vadd.f32 %v3458_v16, %v3414_v9  ;;  %v4635_v1 = vor.u32 %v4634_v37, %v4633_v20 }
 0x2cc   : > { %3724 = vmatpush.bf16.msra.mxu3 %v18268_v14 }
 0x2cd   : > { %v4026_v26 = vpop.f32.mrf.mxu0  ;;  %4845 = vmatmul.bf16.vlgmr.msra.gmra.mxu1 %v4624_v11  ;;  %v25710_v11 = vld [vmem:[#allocation27_spill] sm:$0xff] }
 0x2ce   : > { %3079 = vmatmul.bf16.gmra.mxu3 %v19929_v23  ;;  %v18261_v23 = vld [vmem:[%s25545_s3 + $0x310] sm:$0xff]  ;;  %v25711_v26 = vshrl.u32 %v25710_v11, 16  ;;  %v25712_v13 = vshll.u32 %v25710_v11, 16 }
 0x2cf   : > { %3679 = vmatpush.bf16.msra.mxu2 %v18261_v23 }
 0x2d0   : > { %v4637_v40 = vrot.slane %v25711_v26, 1  ;;  %v4638_v20 = vrot.slane %v25712_v13, 2  ;;  %v25720_v26 = vshrl.u32 %v20353_v29, 16  ;;  %v25721_v13 = vshll.u32 %v20353_v29, 16 }
 0x2d1   : > { %v2296_v38 = vpop.f32.mrf.mxu3 }
 0x2d2   : > { %v2297_v12 = vadd.f32 %v2296_v38, %v2252_v48  ;;  %v2259_v28 = vpop.f32.mrf.mxu2  ;;  %v3460_v30 = vpop.f32.mrf.mxu1  ;;  %v25713_v38 = vld [vmem:[#allocation25_spill] sm:$0xff] }
 0x2d3   : > { %v4639_v28 = vor.u32 %v4638_v20, %v4637_v40  ;;  %v4645_v40 = vrot.slane %v25720_v26, 1  ;;  %v4646_v20 = vrot.slane %v25721_v13, 2  ;;  %v20970_v26 = vld [vmem:[#allocation4 + $0x18] sm:$0xff] }
 0x2d4   : > { %v2328_v9 = vadd.f32 %v2297_v12, %v20654_v61  ;;  %v4636_v61 = vsel %vm2829_vm2, %v4627_v58, %v4635_v1 }
 0x2d5   : > { %v4029_v48 = vpop.f32.mrf.mxu0  ;;  %v4640_v23 = vsel %vm2829_vm2, %v4631_v47, %v4639_v28  ;;  %v18371_v47 = vld [vmem:[%s25545_s3 + $0x5b0] sm:$0xff] }
 0x2d6   : > { %v20866_v41 = vadd.f32 %v20307_v19, %v2328_v9  ;;  %v25708_v19 = vshrl.u32 %v25707_v49, 16 }
 0x2d7   : > { %3045 = vmatmul.bf16.gmra.mxu2 %v20069_v7  ;;  %v25709_v7 = vshll.u32 %v25707_v49, 16 }
 0x2d8   : > { %4811 = vmatmul.bf16.gmra.mxu0 %v4636_v61  ;;  %v4641_v5 = vrot.slane %v25708_v19, 1  ;;  %v2894_v61 = vrot.slane %v2793_v51, 1 }
 0x2d9   : > { %v2298_v63 = vpop.f32.mrf.mxu3  ;;  %v4642_v24 = vrot.slane %v25709_v7, 2 }
 0x2da   : > { %v2262_v56 = vpop.f32.mrf.mxu2  ;;  %v4068_v50 = vpop.f32.mrf.mxu1  ;;  %v25716_v63 = vshll.u32 %v25714_v22, 16 }
 0x2db   : > { %v20870_v32 = vadd.f32 %v4068_v50, %v4024_v25  ;;  %v4643_v2 = vor.u32 %v4642_v24, %v4641_v5 }
 0x2dc   : > { %v2895_v50 = vrot.slane %v25716_v63, 2 }
 0x2dd   : > { %v4031_v31 = vpop.f32.mrf.mxu0  ;;  %4850 = vmatmul.bf16.gmra.mxu1 %v4632_v36  ;;  %v4644_v12 = vsel %vm2829_vm2, %v4635_v1, %v4643_v2  ;;  %v25715_v1 = vld [vmem:[#allocation26_spill] sm:$0xff]  ;;  %v25717_v36 = vld [vmem:[#allocation32_spill] sm:$0xff] }
 0x2de   : > { %3084 = vmatmul.bf16.gmra.mxu3 %v20064_v52  ;;  %v18260_v52 = vld [vmem:[%s25545_s3 + $0x308] sm:$0xff]  ;;  %v25718_v31 = vshrl.u32 %v25717_v36, 16  ;;  %v25719_v19 = vshll.u32 %v25717_v36, 16  ;;  %v25725_v36 = vld [vmem:[#allocation33_spill] sm:$0xff] }
 0x2df   : > { %3680 = vmatpush.bf16.msra.mxu2 %v18260_v52  ;;  %v18370_v52 = vld [vmem:[%s25545_s3 + $0x5a8] sm:$0xff] }
 0x2e0   : > { %v4649_v49 = vrot.slane %v25718_v31, 1  ;;  %v4650_v5 = vrot.slane %v25719_v19, 2  ;;  %v25726_v31 = vshrl.u32 %v25725_v36, 16 }
 0x2e1   : > { %v2301_v58 = vpop.f32.mrf.mxu3 }
 0x2e2   : > { %v2302_v3 = vadd.f32 %v2301_v58, %v2257_v35  ;;  %v2264_v57 = vpop.f32.mrf.mxu2  ;;  %v4070_v16 = vpop.f32.mrf.mxu1 }
 0x2e3   : > { %v2896_v57 = vor.u32 %v2895_v50, %v2894_v61  ;;  %v20919_v16 = vor.u32 %v4650_v5, %v4649_v49  ;;  %v4657_v49 = vrot.slane %v25726_v31, 1 }
 0x2e4   : > { %v2330_v25 = vadd.f32 %v2302_v3, %v20673_v44  ;;  %v18259_v44 = vld [vmem:[%s25545_s3 + $0x300] sm:$0xff] }
 0x2e5   : > { %v4034_v35 = vpop.f32.mrf.mxu0  ;;  %3681 = vmatpush.bf16.msra.mxu2 %v18259_v44 }
 0x2e6   : > { %v20893_v37 = vadd.f32 %v20442_v0, %v2330_v25  ;;  %v18372_v0 = vld [vmem:[%s25545_s3 + $0x5b8] sm:$0xff] }
 0x2e7   : > { %3050 = vmatmul.bf16.gmra.mxu2 %v25713_v38  ;;  %5499 = vmatpush.bf16.msrb.mxu0 %v18372_v0  ;;  %v4549_v0 = vld [vmem:[#allocation4 + $0x50] sm:$0x3] }
 0x2e8   : > { %4816 = vmatmul.bf16.gmra.mxu0 %v4644_v12  ;;  %v4652_v12 = vsel %vm2829_vm2, %v4643_v2, %v20919_v16  ;;  %v25723_v2 = vld [vmem:[#allocation31_spill] sm:$0xff]  ;;  %v4552_v50 = vunpack.c.l.b16 %v4549_v0 }
 0x2e9   : > { %v2303_v30 = vpop.f32.mrf.mxu3  ;;  %v2795_v63 = vor.u32 %v2793_v51, %v25723_v2  ;;  %v25727_v51 = vshll.u32 %v25725_v36, 16  ;;  %v18366_v0 = vld [vmem:[%s25545_s3 + $0x588] sm:$0xff] }
 0x2ea   : > { %v20897_v9 = vpop.f32.mrf.mxu2  ;;  %v4073_v6 = vpop.f32.mrf.mxu1  ;;  %v20941_v30 = vor.u32 %v4646_v20, %v4645_v40  ;;  %v3535_v40 = vrot.slane %v20970_v26, 1  ;;  %v5302_v26 = vld [vmem:[#allocation4 + $0x20] sm:$0xe] }
 0x2eb   : > { %v20900_v45 = vadd.f32 %v4073_v6, %v4029_v48  ;;  %v18267_v48 = vld [vmem:[%s25545_s3 + $0x340] sm:$0xff]  ;;  %5500 = vmatpush.bf16.msrb.mxu0 %v18371_v47  ;;  %v18367_v47 = vld [vmem:[%s25545_s3 + $0x590] sm:$0xff]  ;;  %v4658_v19 = vrot.slane %v25727_v51, 2 }
 0x2ec   : > { %3725 = vmatpush.bf16.msra.mxu3 %v18267_v48  ;;  %v25724_v48 = vld [vmem:[#allocation35_spill] sm:$0xff] }
 0x2ed   : > { %v4036_v39 = vpop.f32.mrf.mxu0  ;;  %4855 = vmatmul.bf16.gmra.mxu1 %v4640_v23  ;;  %v4659_v13 = vor.u32 %v4658_v19, %v4657_v49 }
 0x2ee   : > { %3089 = vmatmul.bf16.gmra.mxu3 %v25715_v1  ;;  %v4648_v1 = vsel %vm2829_vm2, %v4639_v28, %v20941_v30  ;;  %v18319_v28 = vld [vmem:[%s25545_s3 + $0x478] sm:$0xff] }
 0x2ef   : > { %5501 = vmatpush.bf16.msrb.mxu0 %v18370_v52  ;;  %v25728_v52 = vld [vmem:[#allocation13_spill] sm:$0xff] }
 0x2f0   : > { %4491 = vmatpush.bf16.msrb.mxu3 %v18319_v28  ;;  %v4660_v28 = vsel %vm2829_vm2, %v20919_v16, %v4659_v13  ;;  %v18378_v16 = vld [vmem:[%s25545_s3 + $0x5e8] sm:$0xff] }
 0x2f1   : > { %v2306_v7 = vpop.f32.mrf.mxu3 }
 0x2f2   : > { %v2307_v24 = vadd.f32 %v2306_v7, %v2262_v56  ;;  %v2269_v58 = vpop.f32.mrf.mxu2  ;;  %v4075_v3 = vpop.f32.mrf.mxu1  ;;  %v25722_v56 = vld [vmem:[#allocation24_spill] sm:$0xff]  ;;  %v2899_v7 = vshrl.u32 %v2795_v63, 16 }
 0x2f3   : > { %v2897_v44 = vsel %vm2829_vm2, %v25722_v56, %v2896_v57  ;;  %v20967_v58 = vpack.c.b16 %v4552_v50, %v4552_v50  ;;  %v3534_v56 = vrot.slane %v25728_v52, 1  ;;  %v18365_v50 = vld [vmem:[%s25545_s3 + $0x580] sm:$0xff] }
 0x2f4   : > { %v2332_v25 = vadd.f32 %v2307_v24, %v20705_v54  ;;  %v18369_v54 = vld [vmem:[%s25545_s3 + $0x5a0] sm:$0xff]  ;;  %v2902_v24 = vshll.u32 %v2795_v63, 16  ;;  %v18379_v63 = vld [vmem:[%s25545_s3 + $0x5f0] sm:$0xff] }
 0x2f5   : > { %v20929_v14 = vpop.f32.mrf.mxu0  ;;  %5502 = vmatpush.bf16.msrb.mxu0 %v18369_v54  ;;  %v3536_v2 = vsel %vm1584_vm0, %v3534_v56, %v3535_v40  ;;  %v4570_v51 = vshrl.u32 %v20967_v58, 16 }
 0x2f6   : > { %v20937_v38 = vadd.f32 %v20493_v53, %v2332_v25  ;;  %v18368_v53 = vld [vmem:[%s25545_s3 + $0x598] sm:$0xff] }
 0x2f7   : > { %3055 = vmatmul.bf16.gmra.mxu2 %v2897_v44  ;;  %v25729_v44 = vld [vmem:[#allocation36_spill] sm:$0xff] }
 0x2f8   : > { %4821 = vmatmul.bf16.gmra.mxu0 %v4652_v12  ;;  %v25730_v54 = vshrl.u32 %v25729_v44, 16 }
 0x2f9   : > { %v2308_v6 = vpop.f32.mrf.mxu3  ;;  %5503 = vmatpush.bf16.msrb.mxu0 %v18368_v53  ;;  %v2901_v53 = vrot.slane %v2899_v7, 1 }
 0x2fa   : > { %v20943_v22 = vpop.f32.mrf.mxu2  ;;  %v4078_v23 = vpop.f32.mrf.mxu1  ;;  %v4653_v12 = vrot.slane %v25730_v54, 1  ;;  %v25731_v6 = vshll.u32 %v25729_v44, 16  ;;  %v18377_v54 = vld [vmem:[%s25545_s3 + $0x5e0] sm:$0xff] }
 0x2fb   : > { %v20945_v39 = vadd.f32 %v4078_v23, %v4034_v35  ;;  %v18311_v35 = vld [vmem:[%s25545_s3 + $0x438] sm:$0xff] }
 0x2fc   : > { %4447 = vmatpush.bf16.msrb.mxu2 %v18311_v35  ;;  %v4654_v23 = vrot.slane %v25731_v6, 2 }
 0x2fd   : > { %v4041_v61 = vpop.f32.mrf.mxu0  ;;  %4860 = vmatmul.bf16.gmra.mxu1 %v4648_v1  ;;  %5504 = vmatpush.bf16.msrb.mxu0 %v18367_v47 }
 0x2fe   : > { %3094 = vmatmul.bf16.gmra.mxu3 %v25724_v48  ;;  %v4566_v61 = vshll.u32 %v20967_v58, 16  ;;  %v25732_v48 = vld [vmem:[#allocation52_spill] sm:$0xff]  ;;  %v4655_v47 = vor.u32 %v4654_v23, %v4653_v12 }
 0x2ff   : > { %v18318_v58 = vld [vmem:[%s25545_s3 + $0x470] sm:$0xff] }
 0x300   : > { %v4568_v49 = vrot.slane %v4566_v61, 1  ;;  %v4671_v52 = vrot.slane %v4566_v61, 2  ;;  %4492 = vmatpush.bf16.msrb.mxu3 %v18318_v58  ;;  %v19221_v61 = vld [vmem:[#allocation4 + $0x20] sm:$0xff] }
 0x301   : > { %v2311_v5 = vpop.f32.mrf.mxu3  ;;  %5505 = vmatpush.bf16.msrb.mxu0 %v18366_v0 }
 0x302   : > { %v2312_v3 = vadd.f32 %v2311_v5, %v20897_v9  ;;  %v2274_v57 = vpop.f32.mrf.mxu2  ;;  %v4080_v25 = vpop.f32.mrf.mxu1  ;;  %v18380_v9 = vld [vmem:[%s25545_s3 + $0x5f8] sm:$0xff] }
 0x303   : > { %5543 = vmatpush.bf16.msrb.mxu1 %v18380_v9  ;;  %v25733_v57 = vld [vmem:[#allocation34_spill] sm:$0xff] }
 0x304   : > { %v2334_v20 = vadd.f32 %v2312_v3, %v20737_v33  ;;  %v2904_v33 = vrot.slane %v2902_v24, 2  ;;  %v4656_v24 = vsel %vm2829_vm2, %v20941_v30, %v4655_v47  ;;  %v18310_v3 = vld [vmem:[%s25545_s3 + $0x430] sm:$0xff] }
 0x305   : > { %v20985_v1 = vpop.f32.mrf.mxu0  ;;  %5506 = vmatpush.bf16.msrb.mxu0 %v18365_v50  ;;  %v25734_v30 = vld [vmem:[#allocation44_spill] sm:$0xff]  ;;  %4448 = vmatpush.bf16.msrb.mxu2 %v18310_v3 }
 0x306   : > { %v20998_v35 = vadd.f32 %v25732_v48, %v2334_v20  ;;  %v2905_v31 = vor.u32 %v2904_v33, %v2901_v53  ;;  %v4670_v20 = vrot.slane %v4570_v51, 1  ;;  %v4569_v56 = vsel %vm1427_vm1, %v25734_v30, %v4568_v49  ;;  %v18309_v30 = vld [vmem:[%s25545_s3 + $0x428] sm:$0xff] }
 0x307   : > { %3682 = vmatmul.bf16.vlgmr.msra.gmra.mxu2 %v3536_v2  ;;  %5544 = vmatpush.bf16.msrb.mxu1 %v18379_v63  ;;  %v4662_v12 = vshrl.u32 %v4569_v56, 16  ;;  %v4665_v6 = vshll.u32 %v4569_v56, 16  ;;  %v3540_v2 = vrot.slane %v19221_v61, 1  ;;  %v5305_v56 = vunpack.c.l.b16 %v5302_v26 }
 0x308   : > { %4826 = vmatmul.bf16.gmra.mxu0 %v4660_v28  ;;  %v2906_v25 = vsel %vm2829_vm2, %v25733_v57, %v2905_v31  ;;  %v4672_v9 = vor.u32 %v4671_v52, %v4670_v20  ;;  %v18376_v28 = vld [vmem:[%s25545_s3 + $0x5d8] sm:$0xff]  ;;  %v18374_v52 = vld [vmem:[%s25545_s3 + $0x5c8] sm:$0xff] }
 0x309   : > { %v2313_v36 = vpop.f32.mrf.mxu3  ;;  %v4664_v50 = vrot.slane %v4662_v12, 1  ;;  %v4667_v48 = vrot.slane %v4665_v6, 2  ;;  %v18373_v12 = vld [vmem:[%s25545_s3 + $0x5c0] sm:$0xff]  ;;  %4449 = vmatpush.bf16.msrb.mxu2 %v18309_v30 }
 0x30a   : > { %v21003_v19 = vpop.f32.mrf.mxu2  ;;  %v4083_v5 = vpop.f32.mrf.mxu1  ;;  %v4673_v31 = vsel %vm2829_vm2, %v4659_v13, %v4672_v9 }
 0x30b   : > { %v21006_v7 = vadd.f32 %v4083_v5, %v20929_v14  ;;  %5545 = vmatpush.bf16.msrb.mxu1 %v18378_v16  ;;  %v18375_v5 = vld [vmem:[%s25545_s3 + $0x5d0] sm:$0xff]  ;;  %v25735_v16 = vld [vmem:[#allocation49_spill] sm:$0xff] }
 0x30c   : > { %v3538_v3 = vrot.slane %v25735_v16, 1  ;;  %v18308_v16 = vld [vmem:[%s25545_s3 + $0x420] sm:$0xff] }
 0x30d   : > { %v4046_v14 = vpop.f32.mrf.mxu0  ;;  %4865 = vmatmul.bf16.gmra.mxu1 %v4656_v24  ;;  %v4668_v24 = vor.u32 %v4667_v48, %v4664_v50  ;;  %4450 = vmatpush.bf16.msrb.mxu2 %v18308_v16  ;;  %v18307_v16 = vld [vmem:[%s25545_s3 + $0x418] sm:$0xff] }
 0x30e   : > { %3099 = vmatmul.bf16.gmra.mxu3 %v2906_v25  ;;  %v4572_v25 = vor.u32 %v4570_v51, %v4568_v49  ;;  %v25736_v14 = vld [vmem:[#allocation14_spill] sm:$0xff] }
 0x30f   : > { %5546 = vmatpush.bf16.msrb.mxu1 %v18377_v54  ;;  %v3537_v20 = vrot.slane %v25736_v14, 1  ;;  %v18317_v49 = vld [vmem:[%s25545_s3 + $0x468] sm:$0xff] }
 0x310   : > { %v4675_v54 = vshrl.u32 %v4572_v25, 16  ;;  %4493 = vmatpush.bf16.msrb.mxu3 %v18317_v49 }
 0x311   : > { %v2316_v23 = vpop.f32.mrf.mxu3  ;;  %v3539_v51 = vsel %vm1584_vm0, %v3537_v20, %v3538_v3  ;;  %v25739_v20 = vld [vmem:[#allocation50_spill] sm:$0xff]  ;;  %4451 = vmatpush.bf16.msrb.mxu2 %v18307_v16  ;;  %v18314_v16 = vld [vmem:[%s25545_s3 + $0x450] sm:$0xff] }
 0x312   : > { %v2317_v0 = vadd.f32 %v2316_v23, %v20943_v22  ;;  %v2279_v53 = vpop.f32.mrf.mxu2  ;;  %v4085_v33 = vpop.f32.mrf.mxu1  ;;  %v3541_v22 = vsel %vm1584_vm0, %v3535_v40, %v3540_v2  ;;  %v25737_v23 = vld [vmem:[#allocation16_spill] sm:$0xff]  ;;  %v4677_v48 = vrot.slane %v4675_v54, 1 }
 0x313   : > { %5547 = vmatpush.bf16.msrb.mxu1 %v18376_v28  ;;  %v25738_v9 = vunpack.c.h.b16 %v25737_v23 }
 0x314   : > { %v2336_v63 = vadd.f32 %v2317_v0, %v20772_v60 }
 0x315   : > { %v21031_v36 = vpop.f32.mrf.mxu0  ;;  %v5306_v0 = vpack.c.b16 %v25738_v9, %v5305_v56 }
 0x316   : > { %v21041_v60 = vadd.f32 %v20630_v18, %v2336_v63  ;;  %v4669_v18 = vsel %vm2829_vm2, %v4655_v47, %v4668_v24  ;;  %v4678_v47 = vshll.u32 %v4572_v25, 16  ;;  %v19222_v63 = vld [vmem:[#allocation4 + $0x28] sm:$0xff] }
 0x317   : > { %3687 = vmatmul.bf16.gmra.mxu2 %v3541_v22  ;;  %5548 = vmatpush.bf16.msrb.mxu1 %v18375_v5  ;;  %v3544_v50 = vrot.slane %v19222_v63, 1  ;;  %v25740_v63 = vld [vmem:[#allocation17_spill] sm:$0xff] }
 0x318   : > { %4831 = vmatmul.bf16.gmra.mxu0 %v4673_v31  ;;  %v4680_v28 = vrot.slane %v4678_v47, 2  ;;  %v19223_v31 = vld [vmem:[#allocation4 + $0x28] sm:$0xff]  ;;  %v5313_v47 = vshll.u32 %v5306_v0, 16 }
 0x319   : > { %v2318_v58 = vpop.f32.mrf.mxu3  ;;  %v5360_v22 = vrot.slane %v19223_v31, 1  ;;  %v3545_v26 = vsel %vm1584_vm0, %v3540_v2, %v3544_v50 }
 0x31a   : > { %v21044_v57 = vpop.f32.mrf.mxu2  ;;  %v4088_v13 = vpop.f32.mrf.mxu1  ;;  %v18316_v58 = vld [vmem:[%s25545_s3 + $0x460] sm:$0xff]  ;;  %v4681_v25 = vor.u32 %v4680_v28, %v4677_v48  ;;  %v5315_v9 = vrot.slane %v5313_v47, 1  ;;  %v5311_v28 = vshrl.u32 %v5306_v0, 16 }
 0x31b   : > { %v21047_v40 = vadd.f32 %v4088_v13, %v20985_v1  ;;  %5549 = vmatpush.bf16.msrb.mxu1 %v18374_v52  ;;  %v5359_v13 = vrot.slane %v5306_v0, 1  ;;  %4494 = vmatpush.bf16.msrb.mxu3 %v18316_v58 }
 0x31d   : > { %v4051_v1 = vpop.f32.mrf.mxu0  ;;  %4870 = vmatmul.bf16.gmra.mxu1 %v4669_v18  ;;  %v3542_v18 = vrot.slane %v25739_v20, 1  ;;  %v25741_v20 = vld [vmem:[#allocation51_spill] sm:$0xff] }
 0x31e   : > { %3726 = vmatmul.bf16.vlgmr.msra.gmra.mxu3 %v3539_v51  ;;  %v4682_v51 = vsel %vm2829_vm2, %v4668_v24, %v4681_v25 }
 0x31f   : > { %5550 = vmatpush.bf16.msrb.mxu1 %v18373_v12  ;;  %v3543_v2 = vsel %vm1584_vm0, %v3538_v3, %v3542_v18 }
 0x321   : > { %v2321_v6 = vpop.f32.mrf.mxu3 }
 0x322   : > { %v2322_v53 = vadd.f32 %v2321_v6, %v21003_v19  ;;  %v3028_v33 = vpop.f32.mrf.mxu2  ;;  %v4090_v61 = vpop.f32.mrf.mxu1  ;;  %v5016_v6 = vshrl.u32 %v19223_v31, 16  ;;  %v18315_v31 = vld [vmem:[%s25545_s3 + $0x458] sm:$0xff] }
 0x323   : > { %4495 = vmatpush.bf16.msrb.mxu3 %v18315_v31 }
 0x324   : > { %v2338_v5 = vadd.f32 %v2322_v53, %v20810_v21  ;;  %v5361_v21 = vsel %vm1584_vm0, %v5359_v13, %v5360_v22  ;;  %v5018_v48 = vor.u32 %v5016_v6, %v25740_v63  ;;  %v5316_v13 = vor.u32 %v5315_v9, %v5311_v28 }
 0x325   : > { %v4054_v19 = vpop.f32.mrf.mxu0 }
 0x326   : > { %v21076_v14 = vadd.f32 %v20650_v27, %v2338_v5  ;;  %v21085_v27 = vld [vmem:[#allocation4 + $0x30] sm:$0xff]  ;;  %v5317_v25 = vsel %vm1427_vm1, %v5316_v13, %v25740_v63  ;;  %v19227_v63 = vld [vmem:[#allocation4 + $0x38] sm:$0xff] }
 0x327   : > { %3692 = vmatmul.bf16.gmra.mxu2 %v3545_v26  ;;  %v5020_v54 = vshll.u32 %v21085_v27, 16  ;;  %v5365_v3 = vrot.slane %v21085_v27, 1  ;;  %v5024_v9 = vshrl.u32 %v21085_v27, 16  ;;  %4496 = vmatpush.bf16.msrb.mxu3 %v18314_v16  ;;  %v3554_v16 = vrot.slane %v20604_v59, 1 }
 0x328   : > { %5507 = vmatmul.bf16.vlgmr.msrb.gmra.mxu0 %v5361_v21 }
 0x329   : > { %v2323_v52 = vpop.f32.mrf.mxu3  ;;  %v5022_v23 = vrot.slane %v5020_v54, 1 }
 0x32a   : > { %v3031_v30 = vpop.f32.mrf.mxu2  ;;  %v4093_v49 = vpop.f32.mrf.mxu1  ;;  %v3546_v52 = vrot.slane %v25741_v20, 1 }
 0x32b   : > { %v21082_v1 = vadd.f32 %v4093_v49, %v21031_v36  ;;  %v19225_v36 = vld [vmem:[#allocation4 + $0x30] sm:$0xff]  ;;  %v21099_v58 = vsel %vm1427_vm1, %v5018_v48, %v5022_v23  ;;  %v3552_v48 = vrot.slane %v19227_v63, 1  ;;  %v5026_v28 = vor.u32 %v5024_v9, %v5022_v23 }
 0x32c   : > { %v3548_v61 = vrot.slane %v19225_v36, 1  ;;  %v5363_v21 = vrot.slane %v21099_v58, 1  ;;  %v3547_v54 = vsel %vm1584_vm0, %v3542_v18, %v3546_v52  ;;  %v18306_v18 = vld [vmem:[%s25545_s3 + $0x410] sm:$0xff] }
 0x32d   : > { %v4056_v56 = vpop.f32.mrf.mxu0  ;;  %4875 = vmatmul.bf16.gmra.mxu1 %v4682_v51  ;;  %4452 = vmatpush.bf16.msrb.mxu2 %v18306_v18 }
 0x32e   : > { %3731 = vmatmul.bf16.gmra.mxu3 %v3543_v2  ;;  %v3549_v26 = vsel %vm1584_vm0, %v3544_v50, %v3548_v61  ;;  %v5362_v50 = vrot.slane %v5317_v25, 1 }
 0x331   : > { %v3070_v12 = vpop.f32.mrf.mxu3 }
 0x332   : > { %v3071_v53 = vadd.f32 %v3070_v12, %v21044_v57  ;;  %v3033_v24 = vpop.f32.mrf.mxu2  ;;  %v4095_v33 = vpop.f32.mrf.mxu1 }
 0x334   : > { %v3105_v5 = vadd.f32 %v3071_v53, %v20842_v43  ;;  %v5366_v43 = vsel %vm1584_vm0, %v5360_v22, %v5365_v3  ;;  %v19226_v22 = vld [vmem:[#allocation4 + $0x38] sm:$0xff] }
 0x335   : > { %v4802_v57 = vpop.f32.mrf.mxu0  ;;  %v5028_v12 = vshll.u32 %v19226_v22, 16 }
 0x336   : > { %v21103_v0 = vadd.f32 %v20669_v55, %v3105_v5  ;;  %v5364_v55 = vsel %vm1584_vm0, %v5362_v50, %v5363_v21 }
 0x337   : > { %3697 = vmatmul.bf16.gmra.mxu2 %v3549_v26  ;;  %v5030_v53 = vrot.slane %v5028_v12, 1  ;;  %v25742_v26 = vld [vmem:[#allocation53_spill] sm:$0xff] }
 0x338   : > { %5512 = vmatmul.bf16.gmra.mxu0 %v5366_v43  ;;  %v3550_v43 = vrot.slane %v25742_v26, 1 }
 0x339   : > { %v3072_v49 = vpop.f32.mrf.mxu3  ;;  %v21123_v27 = vsel %vm1427_vm1, %v5026_v28, %v5030_v53 }
 0x33a   : > { %v3036_v51 = vpop.f32.mrf.mxu2  ;;  %v4098_v2 = vpop.f32.mrf.mxu1  ;;  %v5367_v13 = vrot.slane %v21123_v27, 1  ;;  %v3551_v50 = vsel %vm1584_vm0, %v3546_v52, %v3550_v43  ;;  %v18313_v52 = vld [vmem:[%s25545_s3 + $0x448] sm:$0xff] }
 0x33b   : > { %v21110_v56 = vadd.f32 %v4098_v2, %v4054_v19  ;;  %v5369_v19 = vrot.slane %v19226_v22, 1  ;;  %4497 = vmatpush.bf16.msrb.mxu3 %v18313_v52 }
 0x33d   : > { %v4804_v47 = vpop.f32.mrf.mxu0  ;;  %5551 = vmatmul.bf16.vlgmr.msrb.gmra.mxu1 %v5364_v55 }
 0x33e   : > { %3736 = vmatmul.bf16.gmra.mxu3 %v3547_v54  ;;  %v5032_v47 = vshrl.u32 %v19226_v22, 16 }
 0x341   : > { %v3075_v6 = vpop.f32.mrf.mxu3 }
 0x342   : > { %v3076_v24 = vadd.f32 %v3075_v6, %v3031_v30  ;;  %v3038_v33 = vpop.f32.mrf.mxu2  ;;  %v4100_v36 = vpop.f32.mrf.mxu1  ;;  %v3553_v30 = vsel %vm1584_vm0, %v3548_v61, %v3552_v48  ;;  %v5368_v61 = vsel %vm1584_vm0, %v5363_v21, %v5367_v13  ;;  %v18305_v21 = vld [vmem:[%s25545_s3 + $0x408] sm:$0xff] }
 0x343   : > { %v19229_v33 = vld [vmem:[#allocation4 + $0x40] sm:$0xff]  ;;  %4453 = vmatpush.bf16.msrb.mxu2 %v18305_v21 }
 0x344   : > { %v3107_v5 = vadd.f32 %v3076_v24, %v20866_v41  ;;  %v5370_v41 = vsel %vm1584_vm0, %v5365_v3, %v5369_v19  ;;  %v3556_v36 = vrot.slane %v19229_v33, 1 }
 0x345   : > { %v4807_v31 = vpop.f32.mrf.mxu0 }
 0x346   : > { %v21127_v23 = vadd.f32 %v20690_v42, %v3107_v5  ;;  %v19228_v42 = vld [vmem:[#allocation4 + $0x40] sm:$0xff] }
 0x347   : > { %3702 = vmatmul.bf16.gmra.mxu2 %v3553_v30  ;;  %v5036_v55 = vshll.u32 %v19228_v42, 16  ;;  %v5373_v63 = vrot.slane %v19228_v42, 1 }
 0x348   : > { %5517 = vmatmul.bf16.gmra.mxu0 %v5370_v41 }
 0x349   : > { %v3077_v25 = vpop.f32.mrf.mxu3  ;;  %v5038_v12 = vrot.slane %v5036_v55, 1  ;;  %v5374_v5 = vsel %vm1584_vm0, %v5369_v19, %v5373_v63  ;;  %v18312_v19 = vld [vmem:[%s25545_s3 + $0x440] sm:$0xff] }
 0x34a   : > { %v3041_v20 = vpop.f32.mrf.mxu2  ;;  %v4846_v49 = vpop.f32.mrf.mxu1  ;;  %4498 = vmatpush.bf16.msrb.mxu3 %v18312_v19 }
 0x34b   : > { %v21132_v2 = vadd.f32 %v4846_v49, %v4802_v57  ;;  %v5034_v57 = vor.u32 %v5032_v47, %v5030_v53  ;;  %v18304_v53 = vld [vmem:[%s25545_s3 + $0x400] sm:$0xff] }
 0x34c   : > { %4454 = vmatpush.bf16.msrb.mxu2 %v18304_v53 }
 0x34d   : > { %5556 = vmatmul.bf16.gmra.mxu1 %v5368_v61  ;;  %v4809_v54 = vpop.f32.mrf.mxu0  ;;  %v21144_v22 = vsel %vm1427_vm1, %v5034_v57, %v5038_v12  ;;  %v5040_v61 = vshrl.u32 %v19228_v42, 16 }
 0x34e   : > { %3741 = vmatmul.bf16.gmra.mxu3 %v3551_v50  ;;  %v5371_v18 = vrot.slane %v21144_v22, 1  ;;  %v21163_v50 = vld [vmem:[#allocation4 + $0x48] sm:$0xff] }
 0x34f   : > { %v5044_v59 = vshll.u32 %v21163_v50, 16  ;;  %v5042_v54 = vor.u32 %v5040_v61, %v5038_v12 }
 0x350   : > { %v5372_v49 = vsel %vm1584_vm0, %v5367_v13, %v5371_v18  ;;  %v3560_v13 = vrot.slane %v20616_v17, 1 }
 0x351   : > { %v3080_v3 = vpop.f32.mrf.mxu3 }
 0x352   : > { %v3081_v6 = vadd.f32 %v3080_v3, %v3036_v51  ;;  %v3043_v9 = vpop.f32.mrf.mxu2  ;;  %v4848_v24 = vpop.f32.mrf.mxu1  ;;  %v3557_v51 = vsel %vm1584_vm0, %v3552_v48, %v3556_v36  ;;  %v3561_v33 = vsel %vm1584_vm0, %v3556_v36, %v3560_v13 }
 0x353   : > { %v5046_v9 = vrot.slane %v5044_v59, 1 }
 0x354   : > { %v3109_v28 = vadd.f32 %v3081_v6, %v20893_v37  ;;  %v5377_v6 = vrot.slane %v21163_v50, 1 }
 0x355   : > { %v4812_v30 = vpop.f32.mrf.mxu0  ;;  %v21170_v42 = vsel %vm1427_vm1, %v5042_v54, %v5046_v9 }
 0x356   : > { %v21151_v37 = vadd.f32 %v20724_v8, %v3109_v28  ;;  %v3555_v8 = vsel %vm1584_vm0, %v3550_v43, %v3554_v16  ;;  %v5375_v17 = vrot.slane %v21170_v42, 1  ;;  %v21180_v28 = vld [vmem:[#allocation4 + $0x50] sm:$0xff] }
 0x357   : > { %3707 = vmatmul.bf16.gmra.mxu2 %v3557_v51 }
 0x358   : > { %5522 = vmatmul.bf16.gmra.mxu0 %v5374_v5  ;;  %v5376_v36 = vsel %vm1584_vm0, %v5371_v18, %v5375_v17 }
 0x359   : > { %v3082_v41 = vpop.f32.mrf.mxu3 }
 0x35a   : > { %v3046_v48 = vpop.f32.mrf.mxu2  ;;  %v4851_v26 = vpop.f32.mrf.mxu1  ;;  %v5052_v41 = vshll.u32 %v21180_v28, 16 }
 0x35b   : > { %v21156_v25 = vadd.f32 %v4851_v26, %v4807_v31  ;;  %v18356_v26 = vld [vmem:[%s25545_s3 + $0x538] sm:$0xff] }
 0x35c   : > { %5200 = vmatpush.bf16.msra.mxu2 %v18356_v26 }
 0x35d   : > { %5561 = vmatmul.bf16.gmra.mxu1 %v5372_v49  ;;  %v4814_v43 = vpop.f32.mrf.mxu0 }
 0x35e   : > { %3746 = vmatmul.bf16.gmra.mxu3 %v3555_v8  ;;  %v21196_v8 = vrot.slane %v5052_v41, 1 }
 0x361   : > { %v3085_v55 = vpop.f32.mrf.mxu3 }
 0x362   : > { %v3086_v31 = vadd.f32 %v3085_v55, %v3041_v20  ;;  %v3048_v3 = vpop.f32.mrf.mxu2  ;;  %v4853_v47 = vpop.f32.mrf.mxu1  ;;  %v5378_v20 = vsel %vm1584_vm0, %v5373_v63, %v5377_v6  ;;  %v5048_v63 = vshrl.u32 %v21163_v50, 16  ;;  %v5056_v50 = vshrl.u32 %v21180_v28, 16 }
 0x363   : > { %v25745_v3 = vld [vmem:[#allocation15_spill] sm:$0xff] }
 0x364   : > { %v3111_v24 = vadd.f32 %v3086_v31, %v20937_v38  ;;  %v5050_v49 = vor.u32 %v5048_v63, %v5046_v9 }
 0x365   : > { %v4817_v51 = vpop.f32.mrf.mxu0 }
 0x366   : > { %v21174_v57 = vadd.f32 %v20765_v10, %v3111_v24  ;;  %v25743_v10 = vld [vmem:[#allocation37_spill] sm:$0xff]  ;;  %v21201_v55 = vsel %vm1427_vm1, %v5050_v49, %v21196_v8  ;;  %v18355_v24 = vld [vmem:[%s25545_s3 + $0x530] sm:$0xff] }
 0x367   : > { %3712 = vmatmul.bf16.gmra.mxu2 %v3561_v33  ;;  %v25744_v53 = vrot.slane %v25743_v10, 1  ;;  %v5379_v47 = vrot.slane %v21201_v55, 1  ;;  %v25746_v33 = vld [vmem:[#allocation41_spill] sm:$0xff] }
 0x368   : > { %5527 = vmatmul.bf16.gmra.mxu0 %v5378_v20  ;;  %5201 = vmatpush.bf16.msra.mxu2 %v18355_v24 }
 0x369   : > { %v3087_v12 = vpop.f32.mrf.mxu3  ;;  %v3559_v5 = vsel %vm1584_vm0, %v3554_v16, %v25744_v53 }
 0x36a   : > { %v3051_v38 = vpop.f32.mrf.mxu2  ;;  %v4856_v21 = vpop.f32.mrf.mxu1 }
 0x36b   : > { %v21182_v52 = vadd.f32 %v4856_v21, %v4812_v30  ;;  %v18364_v30 = vld [vmem:[%s25545_s3 + $0x578] sm:$0xff] }
 0x36c   : > { %5244 = vmatpush.bf16.msra.mxu3 %v18364_v30  ;;  %v18354_v30 = vld [vmem:[%s25545_s3 + $0x528] sm:$0xff] }
 0x36d   : > { %5566 = vmatmul.bf16.gmra.mxu1 %v5376_v36  ;;  %v4819_v31 = vpop.f32.mrf.mxu0  ;;  %5202 = vmatpush.bf16.msra.mxu2 %v18354_v30 }
 0x36e   : > { %3751 = vmatmul.bf16.gmra.mxu3 %v3559_v5 }
 0x371   : > { %v3090_v18 = vpop.f32.mrf.mxu3 }
 0x372   : > { %v3091_v16 = vadd.f32 %v3090_v18, %v3046_v48  ;;  %v3053_v19 = vpop.f32.mrf.mxu2  ;;  %v4858_v61 = vpop.f32.mrf.mxu1 }
 0x373   : > { %v18353_v19 = vld [vmem:[%s25545_s3 + $0x520] sm:$0xff] }
 0x374   : > { %v3113_v59 = vadd.f32 %v3091_v16, %v20998_v35  ;;  %v5380_v35 = vsel %vm1584_vm0, %v5375_v17, %v5379_v47  ;;  %v18361_v61 = vld [vmem:[%s25545_s3 + $0x560] sm:$0xff]  ;;  %5203 = vmatpush.bf16.msra.mxu2 %v18353_v19 }
 0x375   : > { %v4822_v20 = vpop.f32.mrf.mxu0 }
 0x376   : > { %v21204_v54 = vadd.f32 %v20784_v34, %v3113_v59  ;;  %v18363_v34 = vld [vmem:[%s25545_s3 + $0x570] sm:$0xff] }
 0x377   : > { %4455 = vmatmul.bf16.vlgmr.msrb.gmra.mxu2 %v25745_v3  ;;  %5245 = vmatpush.bf16.msra.mxu3 %v18363_v34 }
 0x379   : > { %v3092_v13 = vpop.f32.mrf.mxu3 }
 0x37a   : > { %v3056_v43 = vpop.f32.mrf.mxu2  ;;  %v4861_v9 = vpop.f32.mrf.mxu1 }
 0x37b   : > { %v21208_v48 = vadd.f32 %v4861_v9, %v4817_v51  ;;  %v25748_v9 = vld [vmem:[#allocation21_spill] sm:$0xff] }
 0x37d   : > { %5571 = vmatmul.bf16.gmra.mxu1 %v5380_v35  ;;  %v4824_v41 = vpop.f32.mrf.mxu0 }
 0x37e   : > { %3756 = vmatmul.bf16.gmra.mxu3 %v25746_v33 }
 0x381   : > { %v3095_v12 = vpop.f32.mrf.mxu3 }
 0x382   : > { %v3096_v21 = vadd.f32 %v3095_v12, %v3051_v38  ;;  %v3058_v36 = vpop.f32.mrf.mxu2  ;;  %v4863_v51 = vpop.f32.mrf.mxu1  ;;  %v18362_v38 = vld [vmem:[%s25545_s3 + $0x568] sm:$0xff] }
 0x383   : > { %5246 = vmatpush.bf16.msra.mxu3 %v18362_v38 }
 0x384   : > { %v3115_v17 = vadd.f32 %v3096_v21, %v21041_v60  ;;  %v25747_v60 = vld [vmem:[#allocation18_spill] sm:$0xff] }
 0x385   : > { %v4827_v59 = vpop.f32.mrf.mxu0 }
 0x386   : > { %v21222_v10 = vadd.f32 %v20820_v4, %v3115_v17 }
 0x387   : > { %4460 = vmatmul.bf16.gmra.mxu2 %v19938_v62  ;;  %5247 = vmatpush.bf16.msra.mxu3 %v18361_v61  ;;  %v18350_v61 = vld [vmem:[%s25545_s3 + $0x508] sm:$0xff] }
 0x389   : > { %v3097_v53 = vpop.f32.mrf.mxu3 }
 0x38a   : > { %v3683_v5 = vpop.f32.mrf.mxu2  ;;  %v4866_v63 = vpop.f32.mrf.mxu1 }
 0x38b   : > { %v21225_v26 = vadd.f32 %v4866_v63, %v4822_v20 }
 0x38d   : > { %v4829_v35 = vpop.f32.mrf.mxu0 }
 0x38e   : > { %4499 = vmatmul.bf16.vlgmr.msrb.gmra.mxu3 %v25747_v60 }
 0x391   : > { %v3100_v4 = vpop.f32.mrf.mxu3 }
 0x392   : > { %v3101_v62 = vadd.f32 %v3100_v4, %v3056_v43  ;;  %v3685_v18 = vpop.f32.mrf.mxu2  ;;  %v4868_v49 = vpop.f32.mrf.mxu1 }
 0x393   : > { %v25750_v18 = vld [vmem:[#allocation39_spill] sm:$0xff] }
 0x394   : > { %v3117_v16 = vadd.f32 %v3101_v62, %v21076_v14 }
 0x395   : > { %v4832_v36 = vpop.f32.mrf.mxu0 }
 0x396   : > { %v21242_v31 = vadd.f32 %v20846_v15, %v3117_v16  ;;  %v18352_v15 = vld [vmem:[%s25545_s3 + $0x518] sm:$0xff] }
 0x397   : > { %4465 = vmatmul.bf16.gmra.mxu2 %v20073_v46  ;;  %v18360_v46 = vld [vmem:[%s25545_s3 + $0x558] sm:$0xff] }
 0x398   : > { %5204 = vmatpush.bf16.msra.mxu2 %v18352_v15  ;;  %5248 = vmatpush.bf16.msra.mxu3 %v18360_v46  ;;  %v18388_v15 = vld [vmem:[%s25545_s3 + $0x638] sm:$0xff] }
 0x399   : > { %v3102_v3 = vpop.f32.mrf.mxu3  ;;  %v18396_v46 = vld [vmem:[%s25545_s3 + $0x678] sm:$0xff] }
 0x39a   : > { %v3688_v13 = vpop.f32.mrf.mxu2  ;;  %v4871_v43 = vpop.f32.mrf.mxu1 }
 0x39b   : > { %v21245_v14 = vadd.f32 %v4871_v43, %v4827_v59  ;;  %v18357_v43 = vld [vmem:[%s25545_s3 + $0x540] sm:$0xff] }
 0x39e   : > { %4504 = vmatmul.bf16.gmra.mxu3 %v25748_v9 }
 0x3a1   : > { %v3727_v24 = vpop.f32.mrf.mxu3 }
 0x3a2   : > { %v3728_v34 = vadd.f32 %v3727_v24, %v3683_v5  ;;  %v3690_v33 = vpop.f32.mrf.mxu2  ;;  %v4873_v20 = vpop.f32.mrf.mxu1  ;;  %v25749_v5 = vld [vmem:[#allocation28_spill] sm:$0xff] }
 0x3a3   : > { %v25752_v33 = vld [vmem:[#allocation46_spill] sm:$0xff] }
 0x3a4   : > { %v3762_v12 = vadd.f32 %v3728_v34, %v21103_v0 }
 0x3a6   : > { %v21256_v21 = vadd.f32 %v20870_v32, %v3762_v12  ;;  %v18351_v32 = vld [vmem:[%s25545_s3 + $0x510] sm:$0xff] }
 0x3a7   : > { %4470 = vmatmul.bf16.gmra.mxu2 %v25710_v11  ;;  %v18359_v11 = vld [vmem:[%s25545_s3 + $0x550] sm:$0xff] }
 0x3a8   : > { %5205 = vmatpush.bf16.msra.mxu2 %v18351_v32  ;;  %5249 = vmatpush.bf16.msra.mxu3 %v18359_v11  ;;  %v25753_v12 = vld [vmem:[#allocation48_spill] sm:$0xff] }
 0x3a9   : > { %v3729_v51 = vpop.f32.mrf.mxu3 }
 0x3aa   : > { %v3693_v17 = vpop.f32.mrf.mxu2  ;;  %v4876_v53 = vpop.f32.mrf.mxu1 }
 0x3ab   : > { %v21259_v0 = vadd.f32 %v4876_v53, %v4832_v36  ;;  %v25754_v36 = vld [vmem:[#allocation40_spill] sm:$0xff]  ;;  %v4329_v53 = vshrl.u32 %v25752_v33, 16 }
 0x3ac   : > { %5206 = vmatpush.bf16.msra.mxu2 %v18350_v61  ;;  %v4234_v51 = vshrl.u32 %v25754_v36, 16  ;;  %v18337_v61 = vld [vmem:[#allocation4 + $0x28] sm:$0xff] }
 0x3ae   : > { %4509 = vmatmul.bf16.gmra.mxu3 %v25749_v5  ;;  %v4333_v5 = vshll.u32 %v4234_v51, 16  ;;  %v18384_v51 = vld [vmem:[%s25545_s3 + $0x618] sm:$0xff] }
 0x3b0   : > { %v4335_v11 = vrot.slane %v4333_v5, 1 }
 0x3b1   : > { %v3732_v63 = vpop.f32.mrf.mxu3 }
 0x3b2   : > { %v3733_v41 = vadd.f32 %v3732_v63, %v3688_v13  ;;  %v3695_v30 = vpop.f32.mrf.mxu2  ;;  %v25751_v13 = vld [vmem:[#allocation43_spill] sm:$0xff] }
 0x3b4   : > { %v3764_v38 = vadd.f32 %v3733_v41, %v21127_v23  ;;  %v18336_v41 = vld [vmem:[#allocation4 + $0x20] sm:$0xff] }
 0x3b6   : > { %v21270_v60 = vadd.f32 %v20900_v45, %v3764_v38  ;;  %v18358_v45 = vld [vmem:[%s25545_s3 + $0x548] sm:$0xff] }
 0x3b7   : > { %4475 = vmatmul.bf16.gmra.mxu2 %v20353_v29  ;;  %5250 = vmatpush.bf16.msra.mxu3 %v18358_v45  ;;  %v18349_v29 = vld [vmem:[%s25545_s3 + $0x500] sm:$0xff]  ;;  %v25755_v38 = vld [vmem:[#allocation47_spill] sm:$0xff] }
 0x3b8   : > { %5207 = vmatpush.bf16.msra.mxu2 %v18349_v29  ;;  %v4331_v32 = vor.u32 %v4329_v53, %v25755_v38  ;;  %v18391_v38 = vld [vmem:[%s25545_s3 + $0x650] sm:$0xff] }
 0x3b9   : > { %v3734_v4 = vpop.f32.mrf.mxu3 }
 0x3ba   : > { %v3698_v62 = vpop.f32.mrf.mxu2 }
 0x3bb   : > { %5251 = vmatpush.bf16.msra.mxu3 %v18357_v43  ;;  %v25756_v43 = vld [vmem:[#allocation19_spill] sm:$0xff] }
 0x3bc   : > { %5756 = vmatpush.bf16.msrb.mxu2 %v18388_v15 }
 0x3be   : > { %4514 = vmatmul.bf16.gmra.mxu3 %v25750_v18  ;;  %v4336_v18 = vsel %vm1427_vm1, %v4331_v32, %v4335_v11 }
 0x3bf   : > { %5800 = vmatpush.bf16.msrb.mxu3 %v18396_v46 }
 0x3c1   : > { %v3737_v23 = vpop.f32.mrf.mxu3 }
 0x3c2   : > { %v3738_v49 = vadd.f32 %v3737_v23, %v3693_v17  ;;  %v3700_v16 = vpop.f32.mrf.mxu2  ;;  %v18387_v23 = vld [vmem:[%s25545_s3 + $0x630] sm:$0xff] }
 0x3c3   : > { %5757 = vmatpush.bf16.msrb.mxu2 %v18387_v23 }
 0x3c4   : > { %v3766_v19 = vadd.f32 %v3738_v49, %v21151_v37 }
 0x3c6   : > { %v21285_v59 = vadd.f32 %v20945_v39, %v3766_v19 }
 0x3c7   : > { %4480 = vmatmul.bf16.gmra.mxu2 %v25729_v44 }
 0x3c9   : > { %v3739_v37 = vpop.f32.mrf.mxu3 }
 0x3ca   : > { %v3703_v3 = vpop.f32.mrf.mxu2 }
 0x3ce   : > { %4519 = vmatmul.bf16.gmra.mxu3 %v25751_v13  ;;  %v18394_v13 = vld [vmem:[%s25545_s3 + $0x668] sm:$0xff] }
 0x3d1   : > { %v3742_v9 = vpop.f32.mrf.mxu3 }
 0x3d2   : > { %v3743_v35 = vadd.f32 %v3742_v9, %v3698_v62  ;;  %v3705_v24 = vpop.f32.mrf.mxu2 }
 0x3d3   : > { %v18385_v24 = vld [vmem:[%s25545_s3 + $0x620] sm:$0xff] }
 0x3d4   : > { %v3768_v34 = vadd.f32 %v3743_v35, %v21174_v57 }
 0x3d6   : > { %v21294_v39 = vadd.f32 %v21006_v7, %v3768_v34  ;;  %v18393_v34 = vld [vmem:[%s25545_s3 + $0x660] sm:$0xff] }
 0x3d7   : > { %4485 = vmatmul.bf16.gmra.mxu2 %v25752_v33  ;;  %v18338_v33 = vld [vmem:[#allocation4 + $0x30] sm:$0xff] }
 0x3d9   : > { %v3744_v44 = vpop.f32.mrf.mxu3 }
 0x3da   : > { %v3708_v20 = vpop.f32.mrf.mxu2 }
 0x3de   : > { %4524 = vmatmul.bf16.gmra.mxu3 %v25753_v12 }
 0x3e1   : > { %v3747_v7 = vpop.f32.mrf.mxu3 }
 0x3e2   : > { %v3748_v57 = vadd.f32 %v3747_v7, %v3703_v3  ;;  %v3710_v17 = vpop.f32.mrf.mxu2  ;;  %v18386_v3 = vld [vmem:[%s25545_s3 + $0x628] sm:$0xff]  ;;  %v18392_v7 = vld [vmem:[%s25545_s3 + $0x658] sm:$0xff] }
 0x3e3   : > { %5758 = vmatpush.bf16.msrb.mxu2 %v18386_v3 }
 0x3e4   : > { %v3770_v63 = vadd.f32 %v3748_v57, %v21204_v54  ;;  %v18395_v54 = vld [vmem:[%s25545_s3 + $0x670] sm:$0xff] }
 0x3e5   : > { %5801 = vmatpush.bf16.msrb.mxu3 %v18395_v54  ;;  %v18382_v54 = vld [vmem:[%s25545_s3 + $0x608] sm:$0xff] }
 0x3e6   : > { %v21308_v30 = vadd.f32 %v21047_v40, %v3770_v63 }
 0x3e7   : > { %5208 = vmatmul.bf16.vlgmr.msra.gmra.mxu2 %v18336_v41  ;;  %v18383_v41 = vld [vmem:[%s25545_s3 + $0x610] sm:$0xff] }
 0x3e8   : > { %5759 = vmatpush.bf16.msrb.mxu2 %v18385_v24 }
 0x3e9   : > { %v3749_v4 = vpop.f32.mrf.mxu3  ;;  %5802 = vmatpush.bf16.msrb.mxu3 %v18394_v13 }
 0x3ea   : > { %v3713_v62 = vpop.f32.mrf.mxu2 }
 0x3ec   : > { %5760 = vmatpush.bf16.msrb.mxu2 %v18384_v51 }
 0x3ed   : > { %5803 = vmatpush.bf16.msrb.mxu3 %v18393_v34 }
 0x3ee   : > { %4529 = vmatmul.bf16.gmra.mxu3 %v4336_v18  ;;  %v18341_v18 = vld [vmem:[#allocation4 + $0x48] sm:$0xff] }
 0x3f0   : > { %5761 = vmatpush.bf16.msrb.mxu2 %v18383_v41 }
 0x3f1   : > { %v3752_v40 = vpop.f32.mrf.mxu3  ;;  %5804 = vmatpush.bf16.msrb.mxu3 %v18392_v7 }
 0x3f2   : > { %v3753_v49 = vadd.f32 %v3752_v40, %v3708_v20  ;;  %v3715_v16 = vpop.f32.mrf.mxu2  ;;  %v5381_v40 = vrot.slane %v21180_v28, 1 }
 0x3f3   : > { %v18381_v16 = vld [vmem:[%s25545_s3 + $0x600] sm:$0xff] }
 0x3f4   : > { %v3772_v19 = vadd.f32 %v3753_v49, %v21222_v10  ;;  %v21370_v49 = vld [vmem:[#allocation3] sm:$0xff]  ;;  %5762 = vmatpush.bf16.msrb.mxu2 %v18382_v54 }
 0x3f5   : > { %5805 = vmatpush.bf16.msrb.mxu3 %v18391_v38 }
 0x3f6   : > { %v21320_v45 = vadd.f32 %v21082_v1, %v3772_v19 }
 0x3f7   : > { %5213 = vmatmul.bf16.gmra.mxu2 %v18337_v61 }
 0x3f8   : > { %5763 = vmatpush.bf16.msrb.mxu2 %v18381_v16 }
 0x3f9   : > { %v3754_v29 = vpop.f32.mrf.mxu3 }
 0x3fa   : > { %v4456_v37 = vpop.f32.mrf.mxu2 }
 0x3fe   : > { %5252 = vmatmul.bf16.vlgmr.msra.gmra.mxu3 %v25756_v43  ;;  %v18389_v43 = vld [vmem:[%s25545_s3 + $0x640] sm:$0xff] }
 0x401   : > { %v3757_v10 = vpop.f32.mrf.mxu3 }
 0x402   : > { %v3758_v9 = vadd.f32 %v3757_v10, %v3713_v62  ;;  %v4458_v35 = vpop.f32.mrf.mxu2 }
 0x404   : > { %v3774_v1 = vadd.f32 %v3758_v9, %v21242_v31 }
 0x406   : > { %v21337_v44 = vadd.f32 %v21110_v56, %v3774_v1  ;;  %v18339_v56 = vld [vmem:[#allocation4 + $0x38] sm:$0xff]  ;;  %v5058_v1 = vor.u32 %v5056_v50, %v21196_v8 }
 0x407   : > { %5218 = vmatmul.bf16.gmra.mxu2 %v18338_v33  ;;  %v25760_v50 = vld [vmem:[#allocation42_spill] sm:$0xff] }
 0x409   : > { %v3759_v20 = vpop.f32.mrf.mxu3 }
 0x40a   : > { %v4461_v12 = vpop.f32.mrf.mxu2 }
 0x40e   : > { %5257 = vmatmul.bf16.gmra.mxu3 %v21099_v58 }
 0x411   : > { %v4500_v31 = vpop.f32.mrf.mxu3 }
 0x412   : > { %v4501_v15 = vadd.f32 %v4500_v31, %v4456_v37  ;;  %v4463_v46 = vpop.f32.mrf.mxu2 }
 0x414   : > { %v4535_v36 = vadd.f32 %v4501_v15, %v21256_v21 }
 0x416   : > { %v21348_v57 = vadd.f32 %v21132_v2, %v4535_v36  ;;  %v18340_v2 = vld [vmem:[#allocation4 + $0x40] sm:$0xff] }
 0x417   : > { %5223 = vmatmul.bf16.gmra.mxu2 %v18339_v56 }
 0x419   : > { %v4502_v58 = vpop.f32.mrf.mxu3 }
 0x41a   : > { %v4466_v17 = vpop.f32.mrf.mxu2 }
 0x41e   : > { %5262 = vmatmul.bf16.gmra.mxu3 %v21123_v27 }
 0x421   : > { %v4505_v21 = vpop.f32.mrf.mxu3 }
 0x422   : > { %v4506_v53 = vadd.f32 %v4505_v21, %v4461_v12  ;;  %v4468_v5 = vpop.f32.mrf.mxu2 }
 0x424   : > { %v4537_v63 = vadd.f32 %v4506_v53, %v21270_v60 }
 0x426   : > { %v21359_v32 = vadd.f32 %v21156_v25, %v4537_v63  ;;  %v18390_v25 = vld [vmem:[%s25545_s3 + $0x648] sm:$0xff]  ;;  %v25757_v63 = vld [vmem:[#allocation20_spill] sm:$0xff] }
 0x427   : > { %5228 = vmatmul.bf16.gmra.mxu2 %v18340_v2  ;;  %5806 = vmatpush.bf16.msrb.mxu3 %v18390_v25 }
 0x429   : > { %v4507_v27 = vpop.f32.mrf.mxu3 }
 0x42a   : > { %v4471_v11 = vpop.f32.mrf.mxu2 }
 0x42b   : > { %5807 = vmatpush.bf16.msrb.mxu3 %v18389_v43 }
 0x42e   : > { %5267 = vmatmul.bf16.gmra.mxu3 %v21144_v22  ;;  %v1343_v22 = vpack.c.bf16 %v21370_v49, %v21370_v49 }
 0x430   : > { %1366 = vst [vmem:[#allocation4 + $0x58] sm:$0xf] %v1343_v22 }
 0x431   : > { %v4510_v60 = vpop.f32.mrf.mxu3  ;;  %19183 = vst [vmem:[#allocation7 + $0x10] sm:$0xff] %v1343_v22  }
 0x432   : > { %v4511_v4 = vadd.f32 %v4510_v60, %v4466_v17  ;;  %v4473_v62 = vpop.f32.mrf.mxu2 }
 0x434   : > { %v4539_v23 = vadd.f32 %v4511_v4, %v21285_v59  ;;  %v5382_v59 = vsel %vm1584_vm0, %v5377_v6, %v5381_v40 }
 0x435   : > { %5532 = vmatmul.bf16.gmra.mxu0 %v5382_v59  ;;  %v25759_v59 = vld [vmem:[#allocation29_spill] sm:$0xff] }
 0x436   : > { %v21381_v19 = vadd.f32 %v21182_v52, %v4539_v23 }
 0x437   : > { %5233 = vmatmul.bf16.gmra.mxu2 %v18341_v18  ;;  %v5303_v37 = vld [vmem:[#allocation4 + $0x58] sm:$0x3] }
 0x438   : > { %v4923_v3 = vld [vmem:[#allocation4 + $0x58] sm:$0x1]  ;;  %v5308_v6 = vunpack.c.l.b16 %v5303_v37 }
 0x439   : > { %v4512_v61 = vpop.f32.mrf.mxu3  ;;  %v4995_v13 = vunpack.c.l.b16 %v4923_v3 }
 0x43a   : > { %v4476_v29 = vpop.f32.mrf.mxu2  ;;  %v21388_v10 = vpack.c.b16 %v5308_v6, %v5308_v6 }
 0x43b   : > { %v5003_v34 = vpack.c.b16 %v4995_v13, %v4995_v13 }
 0x43c   : > { %v5319_v24 = vshll.u32 %v21388_v10, 16 }
 0x43d   : > { %v5385_v12 = vrot.slane %v5003_v34, 1  ;;  %v5060_v53 = vshll.u32 %v5003_v34, 16 }
 0x43e   : > { %5272 = vmatmul.bf16.gmra.mxu3 %v21170_v42  ;;  %v18342_v42 = vld [vmem:[#allocation4 + $0x50] sm:$0xff]  ;;  %v5321_v20 = vrot.slane %v5319_v24, 1 }
 0x43f   : > { %v5386_v15 = vsel %vm1584_vm0, %v5381_v40, %v5385_v12  ;;  %v5062_v41 = vrot.slane %v5060_v53, 1 }
 0x440   : > { %v5322_v31 = vsel %vm1427_vm1, %v5058_v1, %v5321_v20 }
 0x441   : > { %v4515_v52 = vpop.f32.mrf.mxu3  ;;  %v5383_v46 = vrot.slane %v5322_v31, 1 }
 0x442   : > { %v4516_v9 = vadd.f32 %v4515_v52, %v4471_v11  ;;  %v4478_v35 = vpop.f32.mrf.mxu2 }
 0x443   : > { %v5384_v8 = vsel %vm1584_vm0, %v5379_v47, %v5383_v46 }
 0x444   : > { %v4541_v33 = vadd.f32 %v4516_v9, %v21294_v39  ;;  %5576 = vmatmul.bf16.gmra.mxu1 %v5384_v8  ;;  %v5323_v39 = vshrl.u32 %v21388_v10, 16  ;;  %v25761_v9 = vld [vmem:[#allocation45_spill] sm:$0xff] }
 0x445   : > { %5537 = vmatmul.bf16.gmra.mxu0 %v5386_v15 }
 0x446   : > { %v21396_v36 = vadd.f32 %v21208_v48, %v4541_v33  ;;  %v5325_v56 = vor.u32 %v5323_v39, %v5321_v20  ;;  %v25762_v20 = vld [vmem:[#allocation38_spill] sm:$0xff] }
 0x447   : > { %5238 = vmatmul.bf16.gmra.mxu2 %v18342_v42  ;;  %v25763_v12 = vrot.slane %v25762_v20, 2 }
 0x448   : > { %v5387_v5 = vrot.slane %v5325_v56, 1 }
 0x449   : > { %v4517_v51 = vpop.f32.mrf.mxu3 }
 0x44a   : > { %v4481_v7 = vpop.f32.mrf.mxu2  ;;  %v5388_v38 = vsel %vm1584_vm0, %v5383_v46, %v5387_v5  ;;  %v5651_v46 = vrot.slane %v21388_v10, 2  ;;  %v4834_v5 = vpop.f32.mrf.mxu0 }
 0x44b   : > { %v4878_v10 = vpop.f32.mrf.mxu1 }
 0x44e   : > { %5277 = vmatmul.bf16.gmra.mxu3 %v21201_v55  ;;  %v5063_v55 = vsel %vm1427_vm1, %v5058_v1, %v5062_v41 }
 0x451   : > { %v4520_v58 = vpop.f32.mrf.mxu3 }
 0x452   : > { %v4521_v17 = vadd.f32 %v4520_v58, %v4476_v29  ;;  %v4483_v21 = vpop.f32.mrf.mxu2  ;;  %v5508_v41 = vpop.f32.mrf.mxu0 }
 0x454   : > { %v4543_v48 = vadd.f32 %v4521_v17, %v21308_v30  ;;  %5581 = vmatmul.bf16.gmra.mxu1 %v5388_v38  ;;  %v25758_v30 = vld [vmem:[#allocation22_spill] sm:$0xff]  ;;  %v5552_v38 = vpop.f32.mrf.mxu1 }
 0x456   : > { %v21407_v47 = vadd.f32 %v21225_v26, %v4543_v48 }
 0x457   : > { %5764 = vmatmul.bf16.vlgmr.msrb.gmra.mxu2 %v25757_v63 }
 0x459   : > { %v4522_v2 = vpop.f32.mrf.mxu3 }
 0x45a   : > { %v4486_v27 = vpop.f32.mrf.mxu2 }
 0x45e   : > { %5282 = vmatmul.bf16.gmra.mxu3 %v5063_v55 }
 0x461   : > { %v4525_v11 = vpop.f32.mrf.mxu3 }
 0x462   : > { %v4526_v60 = vadd.f32 %v4525_v11, %v4481_v7  ;;  %v4488_v4 = vpop.f32.mrf.mxu2 }
 0x463   : > { %v5510_v4 = vpop.f32.mrf.mxu0 }
 0x464   : > { %v4545_v62 = vadd.f32 %v4526_v60, %v21320_v45 }
 0x466   : > { %v21413_v18 = vadd.f32 %v21245_v14, %v4545_v62  ;;  %v5554_v62 = vpop.f32.mrf.mxu1 }
 0x467   : > { %5769 = vmatmul.bf16.gmra.mxu2 %v25758_v30  ;;  %v14714_v62 = vld [vmem:[%s25547_s5 + $0xe8] sm:$0xf0] }
 0x469   : > { %v4527_v23 = vpop.f32.mrf.mxu3 }
 0x46a   : > { %v5209_v54 = vpop.f32.mrf.mxu2 }
 0x46e   : > { %5808 = vmatmul.bf16.vlgmr.msrb.gmra.mxu3 %v25757_v63 }
 0x471   : > { %v4530_v26 = vpop.f32.mrf.mxu3 }
 0x472   : > { %v4531_v25 = vadd.f32 %v4530_v26, %v4486_v27  ;;  %v5211_v40 = vpop.f32.mrf.mxu2  ;;  %v5513_v26 = vpop.f32.mrf.mxu0 }
 0x474   : > { %v4547_v22 = vadd.f32 %v4531_v25, %v21337_v44  ;;  %v5557_v25 = vpop.f32.mrf.mxu1 }
 0x476   : > { %v4893_v16 = vadd.f32 %v21259_v0, %v4547_v22 }
 0x477   : > { %5774 = vmatmul.bf16.gmra.mxu2 %v25759_v59 }
 0x479   : > { %v4532_v61 = vpop.f32.mrf.mxu3 }
 0x47a   : > { %v5214_v45 = vpop.f32.mrf.mxu2  ;;  %v5515_v61 = vpop.f32.mrf.mxu0 }
 0x47e   : > { %5813 = vmatmul.bf16.gmra.mxu3 %v25758_v30 }
 0x481   : > { %v5253_v29 = vpop.f32.mrf.mxu3 }
 0x482   : > { %v5254_v14 = vadd.f32 %v5253_v29, %v5209_v54  ;;  %v5216_v37 = vpop.f32.mrf.mxu2 }
 0x483   : > { %v21455_v37 = vld [vmem:[%s25546_s4] ss:$0 sm:$0xff] }
 0x484   : > { %v21421_v3 = vadd.f32 %v5254_v14, %v21348_v57  ;;  %v5649_v57 = vrot.slane %v21180_v28, 2 }
 0x486   : > { %v5650_v31 = vsel %vm2097_vm3, %v25763_v12, %v5649_v57 }
 0x487   : > { %5779 = vmatmul.bf16.gmra.mxu2 %v25760_v50 }
 0x489   : > { %v5255_v6 = vpop.f32.mrf.mxu3 }
 0x48a   : > { %v5219_v13 = vpop.f32.mrf.mxu2 }
 0x48e   : > { %5818 = vmatmul.bf16.gmra.mxu3 %v25759_v59  ;;  %v5553_v59 = vadd.f32 %v5552_v38, %v5508_v41 }
 0x491   : > { %v5258_v44 = vpop.f32.mrf.mxu3 }
 0x492   : > { %v5259_v43 = vadd.f32 %v5258_v44, %v5214_v45  ;;  %v5221_v52 = vpop.f32.mrf.mxu2  ;;  %v5559_v45 = vpop.f32.mrf.mxu1 }
 0x494   : > { %v21426_v0 = vadd.f32 %v5259_v43, %v21359_v32  ;;  %v5518_v43 = vpop.f32.mrf.mxu0 }
 0x497   : > { %5784 = vmatmul.bf16.gmra.mxu2 %v25761_v9 }
 0x499   : > { %v5260_v35 = vpop.f32.mrf.mxu3 }
 0x49a   : > { %v5224_v1 = vpop.f32.mrf.mxu2  ;;  %v5562_v52 = vpop.f32.mrf.mxu1 }
 0x49e   : > { %5823 = vmatmul.bf16.gmra.mxu3 %v25760_v50 }
 0x4a1   : > { %v5263_v24 = vpop.f32.mrf.mxu3 }
 0x4a2   : > { %v5264_v34 = vadd.f32 %v5263_v24, %v5219_v13  ;;  %v5226_v42 = vpop.f32.mrf.mxu2  ;;  %v5520_v24 = vpop.f32.mrf.mxu0 }
 0x4a4   : > { %v21432_v33 = vadd.f32 %v5264_v34, %v21381_v19  ;;  %v5652_v19 = vsel %vm2097_vm3, %v5649_v57, %v5651_v46  ;;  %v5564_v34 = vpop.f32.mrf.mxu1 }
 0x4a7   : > { %5789 = vmatmul.bf16.gmra.mxu2 %v5650_v31 }
 0x4a9   : > { %v5265_v32 = vpop.f32.mrf.mxu3 }
 0x4aa   : > { %v5229_v15 = vpop.f32.mrf.mxu2  ;;  %v14720_v32 = vld [vmem:[%s25547_s5 + $0xf0] sm:$0xf] }
 0x4ae   : > { %5828 = vmatmul.bf16.gmra.mxu3 %v25761_v9  ;;  %v5558_v9 = vadd.f32 %v5557_v25, %v5513_v26 }
 0x4b1   : > { %v5268_v51 = vpop.f32.mrf.mxu3 }
 0x4b2   : > { %v5269_v8 = vadd.f32 %v5268_v51, %v5224_v1  ;;  %v5231_v28 = vpop.f32.mrf.mxu2  ;;  %v14722_v51 = vld [vmem:[%s25547_s5 + $0xf8] sm:$0xf0] }
 0x4b4   : > { %v21440_v7 = vadd.f32 %v5269_v8, %v21396_v36 }
 0x4b7   : > { %5794 = vmatmul.bf16.gmra.mxu2 %v5652_v19 }
 0x4b9   : > { %v5270_v39 = vpop.f32.mrf.mxu3 }
 0x4ba   : > { %v5234_v56 = vpop.f32.mrf.mxu2  ;;  %v5567_v39 = vpop.f32.mrf.mxu1 }
 0x4be   : > { %5833 = vmatmul.bf16.gmra.mxu3 %v5650_v31 }
 0x4c1   : > { %v5273_v58 = vpop.f32.mrf.mxu3 }
 0x4c2   : > { %v5274_v17 = vadd.f32 %v5273_v58, %v5229_v15  ;;  %v5236_v21 = vpop.f32.mrf.mxu2  ;;  %v18428_v15 = vld [vmem:[%s25547_s5 + $0xf4] sm:$0xf0]  ;;  %v5563_v58 = vadd.f32 %v5562_v52, %v5518_v43  ;;  %v5569_v26 = vpop.f32.mrf.mxu1 }
 0x4c3   : > { %v14721_v46 = vor.u32 %v18428_v15, %v14720_v32 }
 0x4c4   : > { %v21444_v53 = vadd.f32 %v5274_v17, %v21407_v47  ;;  %v5591_v5 = vadd.f32 %v5563_v58, %v21432_v33  ;;  %v18425_v33 = vld [vmem:[%s25547_s5 + $0xe4] sm:$0xf] }
 0x4c5   : > { %6195 = vmatpush.bf16.msra.mxu0 %v14721_v46  ;;  %v14696_v46 = vld [vmem:[%s25547_s5 + $0xc0] sm:$0xf] }
 0x4c9   : > { %v5275_v48 = vpop.f32.mrf.mxu3 }
 0x4ca   : > { %v5239_v63 = vpop.f32.mrf.mxu2 }
 0x4ce   : > { %5838 = vmatmul.bf16.gmra.mxu3 %v5652_v19  ;;  %v5523_v19 = vpop.f32.mrf.mxu0 }
 0x4d1   : > { %v5278_v36 = vpop.f32.mrf.mxu3 }
 0x4d2   : > { %v5279_v2 = vadd.f32 %v5278_v36, %v5234_v56  ;;  %v5241_v27 = vpop.f32.mrf.mxu2 }
 0x4d3   : > { %v14712_v27 = vld [vmem:[%s25547_s5 + $0xe0] sm:$0xf] }
 0x4d4   : > { %v21447_v55 = vadd.f32 %v5279_v2, %v21413_v18  ;;  %v5587_v18 = vadd.f32 %v5553_v59, %v21421_v3  ;;  %v5589_v3 = vadd.f32 %v5558_v9, %v21426_v0  ;;  %v18427_v0 = vld [vmem:[%s25547_s5 + $0xf4] sm:$0xf]  ;;  %v14706_v59 = vld [vmem:[%s25547_s5 + $0xd8] sm:$0xf0]  ;;  %v5572_v9 = vpop.f32.mrf.mxu1 }
 0x4d5   : > { %v14725_v28 = vor.u32 %v18427_v0, %v14722_v51 }
 0x4d7   : > { %6213 = vmatpush.bf16.msra.mxu1 %v14725_v28  ;;  %v14698_v28 = vld [vmem:[%s25547_s5 + $0xc8] sm:$0xf0] }
 0x4d9   : > { %v5280_v11 = vpop.f32.mrf.mxu3 }
 0x4da   : > { %v5765_v60 = vpop.f32.mrf.mxu2  ;;  %v18426_v11 = vld [vmem:[%s25547_s5 + $0xe4] sm:$0xf0] }
 0x4db   : > { %v14713_v4 = vor.u32 %v18426_v11, %v14712_v27 }
 0x4dd   : > { %6196 = vmatpush.bf16.msra.mxu0 %v14713_v4 }
 0x4e1   : > { %v5283_v30 = vpop.f32.mrf.mxu3 }
 0x4e2   : > { %v5284_v47 = vadd.f32 %v5283_v30, %v5239_v63  ;;  %v5767_v23 = vpop.f32.mrf.mxu2  ;;  %v14704_v30 = vld [vmem:[%s25547_s5 + $0xd0] sm:$0xf] }
 0x4e3   : > { %v5525_v23 = vpop.f32.mrf.mxu0 }
 0x4e4   : > { %v21449_v54 = vadd.f32 %v5284_v47, %v4893_v16  ;;  %v18424_v47 = vld [vmem:[%s25547_s5 + $0xd4] sm:$0xf0]  ;;  %v14690_v23 = vld [vmem:[%s25547_s5 + $0xb8] sm:$0xf0] }
 0x4e9   : > { %v5285_v40 = vpop.f32.mrf.mxu3 }
 0x4ea   : > { %v5770_v22 = vpop.f32.mrf.mxu2  ;;  %v14717_v40 = vor.u32 %v18425_v33, %v14714_v62  ;;  %v18420_v62 = vld [vmem:[%s25547_s5 + $0xb4] sm:$0xf0] }
 0x4eb   : > { %v5528_v52 = vpop.f32.mrf.mxu0 }
 0x4ec   : > { %6214 = vmatpush.bf16.msra.mxu1 %v14717_v40 }
 0x4f1   : > { %v5809_v29 = vpop.f32.mrf.mxu3 }
 0x4f2   : > { %v5810_v14 = vadd.f32 %v5809_v29, %v5765_v60  ;;  %v5772_v6 = vpop.f32.mrf.mxu2  ;;  %v14705_v29 = vor.u32 %v18424_v47, %v14704_v30 }
 0x4f3   : > { %v5568_v6 = vadd.f32 %v5567_v39, %v5523_v19  ;;  %v5530_v39 = vpop.f32.mrf.mxu0 }
 0x4f4   : > { %v5844_v50 = vadd.f32 %v5810_v14, %v5587_v18  ;;  %6197 = vmatpush.bf16.msra.mxu0 %v14705_v29  ;;  %v15026_v39 = vld [vmem:[%s25547_s5 + $0x278] sm:$0xf0] }
 0x4f6   : > { %v5862_v16 = vadd.f32 %v21455_v37, %v5844_v50 }
 0x4f8   : > { %v5876_v13 = vmax.f32 %v5862_v16, 0.0 }
 0x4f9   : > { %v5811_v44 = vpop.f32.mrf.mxu3 }
 0x4fa   : > { %5890 = vst [vmem:[#allocation5] sm:$0xff] %v5876_v13  ;;  %v5775_v35 = vpop.f32.mrf.mxu2 }
 0x501   : > { %v5814_v1 = vpop.f32.mrf.mxu3  ;;  %v5904_v56 = vld [vmem:[#allocation5] ss:$2 sm:$0x7]  ;;  %v5910_v17 = vld [vmem:[#allocation5 + $0x1] ss:$2 sm:$0x7] }
 0x502   : > { %v5815_v57 = vadd.f32 %v5814_v1, %v5770_v22  ;;  %v5777_v8 = vpop.f32.mrf.mxu2  ;;  %v5915_v48 = vmax.f32 %v5904_v56, %v5910_v17  ;;  %v5919_v41 = vld [vmem:[#allocation5 + $0x2] ss:$2 sm:$0x7]  ;;  %v18423_v22 = vld [vmem:[%s25547_s5 + $0xd4] sm:$0xf]  ;;  %v5593_v1 = vadd.f32 %v5568_v6, %v21440_v7  ;;  %v5574_v56 = vpop.f32.mrf.mxu1  ;;  %v5573_v17 = vadd.f32 %v5572_v9, %v5528_v52 }
 0x503   : > { %v14709_v18 = vor.u32 %v18423_v22, %v14706_v59  ;;  %v18422_v7 = vld [vmem:[%s25547_s5 + $0xc4] sm:$0xf0]  ;;  %v18421_v8 = vld [vmem:[%s25547_s5 + $0xc4] sm:$0xf]  ;;  %v14672_v56 = vld [vmem:[%s25547_s5 + $0x90] sm:$0xf] }
 0x504   : > { %v5846_v42 = vadd.f32 %v5815_v57, %v5589_v3  ;;  %v5924_v60 = vmax.f32 %v5915_v48, %v5919_v41  ;;  %v14697_v51 = vor.u32 %v18422_v7, %v14696_v46  ;;  %v14701_v19 = vor.u32 %v18421_v8, %v14698_v28  ;;  %v14682_v46 = vld [vmem:[%s25547_s5 + $0xa8] sm:$0xf0]  ;;  %v18476_v8 = vld [vmem:[%s25547_s5 + $0x274] sm:$0xf0] }
 0x505   : > { %6215 = vmatpush.bf16.msra.mxu1 %v14709_v18 }
 0x506   : > { %v5864_v20 = vadd.f32 %v21455_v37, %v5846_v42  ;;  %6198 = vmatpush.bf16.msra.mxu0 %v14697_v51  ;;  %v15024_v51 = vld [vmem:[%s25547_s5 + $0x270] sm:$0xf] }
 0x507   : > { %v15025_v28 = vor.u32 %v18476_v8, %v15024_v51  ;;  %v18466_v51 = vld [vmem:[%s25547_s5 + $0x224] sm:$0xf0]  ;;  %v18465_v8 = vld [vmem:[%s25547_s5 + $0x224] sm:$0xf] }
 0x508   : > { %v5878_v12 = vmax.f32 %v5864_v20, 0.0 }
 0x509   : > { %v5816_v31 = vpop.f32.mrf.mxu3  ;;  %6216 = vmatpush.bf16.msra.mxu1 %v14701_v19  ;;  %v18475_v19 = vld [vmem:[%s25547_s5 + $0x274] sm:$0xf]  ;;  %6772 = vmatpush.bf16.msra.mxu2 %v15025_v28  ;;  %v14986_v28 = vld [vmem:[%s25547_s5 + $0x228] sm:$0xf0] }
 0x50a   : > { %5892 = vst [vmem:[#allocation5 + $0x10] sm:$0xff] %v5878_v12  ;;  %v5780_v38 = vpop.f32.mrf.mxu2  ;;  %v5577_v27 = vpop.f32.mrf.mxu1 }
 0x511   : > { %v5819_v21 = vpop.f32.mrf.mxu3  ;;  %v5928_v36 = vld [vmem:[#allocation5 + $0x10] ss:$2 sm:$0x7]  ;;  %v5937_v14 = vld [vmem:[#allocation5 + $0x11] ss:$2 sm:$0x7] }
 0x512   : > { %v5820_v10 = vadd.f32 %v5819_v21, %v5775_v35  ;;  %v5933_v61 = vmax.f32 %v5924_v60, %v5928_v36  ;;  %v5782_v16 = vpop.f32.mrf.mxu2  ;;  %v5946_v13 = vld [vmem:[#allocation5 + $0x12] ss:$2 sm:$0x7] }
 0x514   : > { %v5848_v63 = vadd.f32 %v5820_v10, %v5591_v5  ;;  %v5942_v50 = vmax.f32 %v5933_v61, %v5937_v14  ;;  %v5595_v10 = vadd.f32 %v5573_v17, %v21444_v53  ;;  %v14688_v53 = vld [vmem:[%s25547_s5 + $0xb0] sm:$0xf]  ;;  %v5579_v14 = vpop.f32.mrf.mxu1  ;;  %v18416_v17 = vld [vmem:[%s25547_s5 + $0x94] sm:$0xf0] }
 0x515   : > { %v14689_v47 = vor.u32 %v18420_v62, %v14688_v53  ;;  %v18472_v53 = vld [vmem:[%s25547_s5 + $0x254] sm:$0xf0]  ;;  %v15002_v14 = vld [vmem:[%s25547_s5 + $0x248] sm:$0xf0] }
 0x516   : > { %v5866_v2 = vadd.f32 %v21455_v37, %v5848_v63  ;;  %v5951_v44 = vmax.f32 %v5942_v50, %v5946_v13 }
 0x517   : > { %6199 = vmatpush.bf16.msra.mxu0 %v14689_v47  ;;  %v15010_v47 = vld [vmem:[%s25547_s5 + $0x258] sm:$0xf0] }
 0x518   : > { %v5880_v25 = vmax.f32 %v5866_v2, 0.0  ;;  %v5533_v2 = vpop.f32.mrf.mxu0 }
 0x519   : > { %v5821_v45 = vpop.f32.mrf.mxu3  ;;  %v5578_v29 = vadd.f32 %v5577_v27, %v5533_v2  ;;  %v15016_v2 = vld [vmem:[%s25547_s5 + $0x260] sm:$0xf]  ;;  %v18474_v27 = vld [vmem:[%s25547_s5 + $0x264] sm:$0xf0] }
 0x51a   : > { %5894 = vst [vmem:[#allocation5 + $0x20] sm:$0xff] %v5880_v25  ;;  %v5785_v15 = vpop.f32.mrf.mxu2 }
 0x51b   : > { %v5597_v13 = vadd.f32 %v5578_v29, %v21447_v55  ;;  %v18418_v55 = vld [vmem:[%s25547_s5 + $0xa4] sm:$0xf0] }
 0x520   : > { %v5535_v18 = vpop.f32.mrf.mxu0 }
 0x521   : > { %v5824_v43 = vpop.f32.mrf.mxu3  ;;  %v5955_v35 = vld [vmem:[#allocation5 + $0x20] ss:$2 sm:$0x7]  ;;  %v5964_v24 = vld [vmem:[#allocation5 + $0x21] ss:$2 sm:$0x7] }
 0x522   : > { %v5825_v3 = vadd.f32 %v5824_v43, %v5780_v38  ;;  %v5960_v57 = vmax.f32 %v5951_v44, %v5955_v35  ;;  %v5973_v20 = vld [vmem:[#allocation5 + $0x22] ss:$2 sm:$0x7]  ;;  %v5912_v21 = vld [vmem:[#allocation5 + $0x21] ss:$2 sm:$0x7]  ;;  %v5787_v36 = vpop.f32.mrf.mxu2 }
 0x523   : > { %v5906_v58 = vld [vmem:[#allocation5 + $0x20] ss:$2 sm:$0x7] }
 0x524   : > { %v5850_v34 = vadd.f32 %v5825_v3, %v5593_v1  ;;  %v5969_v42 = vmax.f32 %v5960_v57, %v5964_v24  ;;  %v5916_v41 = vmax.f32 %v5906_v58, %v5912_v21  ;;  %v5921_v11 = vld [vmem:[#allocation5 + $0x22] ss:$2 sm:$0x7]  ;;  %v15029_v58 = vor.u32 %v18475_v19, %v15026_v39  ;;  %v18415_v21 = vld [vmem:[%s25547_s5 + $0x94] sm:$0xf] }
 0x526   : > { %v5868_v12 = vadd.f32 %v21455_v37, %v5850_v34  ;;  %v5978_v31 = vmax.f32 %v5969_v42, %v5973_v20  ;;  %v5925_v30 = vmax.f32 %v5916_v41, %v5921_v11  ;;  %v5582_v20 = vpop.f32.mrf.mxu1  ;;  %v14673_v41 = vor.u32 %v18416_v17, %v14672_v56  ;;  %v18473_v11 = vld [vmem:[%s25547_s5 + $0x264] sm:$0xf]  ;;  %6790 = vmatpush.bf16.msra.mxu3 %v15029_v58  ;;  %v14976_v17 = vld [vmem:[%s25547_s5 + $0x210] sm:$0xf] }
 0x527   : > { %v14989_v58 = vor.u32 %v18465_v8, %v14986_v28 }
 0x528   : > { %v5882_v32 = vmax.f32 %v5868_v12, 0.0  ;;  %5987 = vst [vmem:[#allocation6 + $0x9] sm:$0x7] %v5978_v31  ;;  %v5538_v42 = vpop.f32.mrf.mxu0  ;;  %v14680_v31 = vld [vmem:[%s25547_s5 + $0xa0] sm:$0xf] }
 0x529   : > { %v5826_v0 = vpop.f32.mrf.mxu3 }
 0x52a   : > { %5896 = vst [vmem:[#allocation5 + $0x30] sm:$0xff] %v5882_v32  ;;  %v5790_v59 = vpop.f32.mrf.mxu2  ;;  %v18417_v0 = vld [vmem:[%s25547_s5 + $0xa4] sm:$0xf] }
 0x52b   : > { %v14685_v7 = vor.u32 %v18417_v0, %v14682_v46 }
 0x52f   : > { %v5991_v63 = vld [vmem:[#allocation6 + $0x8] sm:$0xff] }
 0x530   : > { %v21514_v38 = vpack.c.bf16 %v5991_v63, %v21370_v49  ;;  %v18419_v49 = vld [vmem:[%s25547_s5 + $0xb4] sm:$0xf] }
 0x531   : > { %v5829_v5 = vpop.f32.mrf.mxu3  ;;  %v5930_v60 = vld [vmem:[#allocation5 + $0x30] ss:$2 sm:$0x7]  ;;  %v14693_v25 = vor.u32 %v18419_v49, %v14690_v23  ;;  %v5939_v61 = vld [vmem:[#allocation5 + $0x31] ss:$2 sm:$0x7] }
 0x532   : > { %v5830_v48 = vadd.f32 %v5829_v5, %v5785_v15  ;;  %19145 = vst [vmem:[#allocation7] sm:$0xff] %v21514_v38   ;;  %v5934_v40 = vmax.f32 %v5925_v30, %v5930_v60  ;;  %v5948_v50 = vld [vmem:[#allocation5 + $0x32] ss:$2 sm:$0x7]  ;;  %v5792_v3 = vpop.f32.mrf.mxu2  ;;  %v14681_v15 = vor.u32 %v18418_v55, %v14680_v31  ;;  %v14674_v5 = vld [vmem:[%s25547_s5 + $0x98] sm:$0xf0] }
 0x533   : > { %6217 = vmatpush.bf16.msra.mxu1 %v14693_v25  ;;  %v14677_v36 = vor.u32 %v18415_v21, %v14674_v5  ;;  %v15018_v60 = vld [vmem:[%s25547_s5 + $0x268] sm:$0xf0]  ;;  %v18471_v30 = vld [vmem:[%s25547_s5 + $0x254] sm:$0xf]  ;;  %v18464_v21 = vld [vmem:[%s25547_s5 + $0x214] sm:$0xf0] }
 0x534   : > { %v5852_v33 = vadd.f32 %v5830_v48, %v5595_v10  ;;  %v5943_v45 = vmax.f32 %v5934_v40, %v5939_v61  ;;  %6200 = vmatpush.bf16.msra.mxu0 %v14681_v15  ;;  %v5583_v10 = vadd.f32 %v5582_v20, %v5538_v42  ;;  %v15021_v49 = vor.u32 %v18473_v11, %v15018_v60  ;;  %v15000_v40 = vld [vmem:[%s25547_s5 + $0x240] sm:$0xf]  ;;  %v5584_v61 = vpop.f32.mrf.mxu1  ;;  %v18468_v42 = vld [vmem:[%s25547_s5 + $0x234] sm:$0xf0]  ;;  %v18467_v20 = vld [vmem:[%s25547_s5 + $0x234] sm:$0xf] }
 0x535   : > { %v15013_v18 = vor.u32 %v18471_v30, %v15010_v47  ;;  %v18463_v5 = vld [vmem:[%s25547_s5 + $0x214] sm:$0xf] }
 0x536   : > { %v5870_v4 = vadd.f32 %v21455_v37, %v5852_v33  ;;  %v5952_v16 = vmax.f32 %v5943_v45, %v5948_v50  ;;  %v15017_v33 = vor.u32 %v18474_v27, %v15016_v2  ;;  %v5599_v23 = vadd.f32 %v5583_v10, %v21449_v54  ;;  %6791 = vmatpush.bf16.msra.mxu3 %v15021_v49  ;;  %v18469_v54 = vld [vmem:[%s25547_s5 + $0x244] sm:$0xf]  ;;  %v14664_v50 = vld [vmem:[%s25547_s5 + $0x80] sm:$0xf]  ;;  %v14978_v10 = vld [vmem:[%s25547_s5 + $0x218] sm:$0xf0] }
 0x537   : > { %6218 = vmatpush.bf16.msra.mxu1 %v14685_v7  ;;  %v14984_v7 = vld [vmem:[%s25547_s5 + $0x220] sm:$0xf]  ;;  %v14977_v2 = vor.u32 %v18464_v21, %v14976_v17  ;;  %v18461_v27 = vld [vmem:[%s25547_s5 + $0x204] sm:$0xf]  ;;  %v14981_v60 = vor.u32 %v18463_v5, %v14978_v10  ;;  %v18411_v49 = vld [vmem:[%s25547_s5 + $0x74] sm:$0xf] }
 0x538   : > { %v5884_v26 = vmax.f32 %v5870_v4, 0.0  ;;  %v15008_v4 = vld [vmem:[%s25547_s5 + $0x250] sm:$0xf]  ;;  %6201 = vmatpush.bf16.msra.mxu0 %v14673_v41  ;;  %6773 = vmatpush.bf16.msra.mxu2 %v15017_v33  ;;  %v14985_v56 = vor.u32 %v18466_v51, %v14984_v7  ;;  %v18462_v41 = vld [vmem:[%s25547_s5 + $0x204] sm:$0xf0] }
 0x539   : > { %v5831_v22 = vpop.f32.mrf.mxu3  ;;  %v15009_v25 = vor.u32 %v18472_v53, %v15008_v4  ;;  %v14970_v4 = vld [vmem:[%s25547_s5 + $0x208] sm:$0xf0]  ;;  %v14784_v53 = vld [vmem:[%s25547_s5 + $0x70] sm:$0xf]  ;;  %v18507_v61 = vld [vmem:[%s25547_s5 + $0x374] sm:$0xf] }
 0x53a   : > { %5898 = vst [vmem:[#allocation5 + $0x40] sm:$0xff] %v5884_v26  ;;  %v5795_v62 = vpop.f32.mrf.mxu2  ;;  %v18470_v22 = vld [vmem:[%s25547_s5 + $0x244] sm:$0xf0]  ;;  %6792 = vmatpush.bf16.msra.mxu3 %v15013_v18  ;;  %v18405_v7 = vld [vmem:[%s25547_s5 + $0x44] sm:$0xf] }
 0x53b   : > { %6219 = vmatpush.bf16.msra.mxu1 %v14677_v36  ;;  %v14762_v51 = vld [vmem:[%s25547_s5 + $0x48] sm:$0xf0]  ;;  %v18502_v17 = vld [vmem:[%s25547_s5 + $0x344] sm:$0xf0]  ;;  %v18501_v10 = vld [vmem:[%s25547_s5 + $0x344] sm:$0xf] }
 0x53c   : > { %6774 = vmatpush.bf16.msra.mxu2 %v15009_v25  ;;  %v14765_v5 = vor.u32 %v18405_v7, %v14762_v51  ;;  %v6099_v7 = vshrl.u32 %v21514_v38, 16 }
 0x541   : > { %v5834_v6 = vpop.f32.mrf.mxu3  ;;  %v5957_v44 = vld [vmem:[#allocation5 + $0x40] ss:$2 sm:$0x7]  ;;  %v5966_v9 = vld [vmem:[#allocation5 + $0x41] ss:$2 sm:$0x7] }
 0x542   : > { %v5835_v43 = vadd.f32 %v5834_v6, %v5790_v59  ;;  %v5961_v52 = vmax.f32 %v5952_v16, %v5957_v44  ;;  %v5975_v57 = vld [vmem:[#allocation5 + $0x42] ss:$2 sm:$0x7]  ;;  %v5914_v63 = vld [vmem:[#allocation5 + $0x41] ss:$2 sm:$0x7]  ;;  %v5540_v59 = vpop.f32.mrf.mxu0 }
 0x543   : > { %v5908_v48 = vld [vmem:[#allocation5 + $0x40] ss:$2 sm:$0x7]  ;;  %v18508_v59 = vld [vmem:[%s25547_s5 + $0x374] sm:$0xf0] }
 0x544   : > { %v5854_v35 = vadd.f32 %v5835_v43, %v5597_v13  ;;  %v5970_v1 = vmax.f32 %v5961_v52, %v5966_v9  ;;  %v5917_v45 = vmax.f32 %v5908_v48, %v5914_v63  ;;  %v18414_v16 = vld [vmem:[%s25547_s5 + $0x84] sm:$0xf0]  ;;  %v18413_v6 = vld [vmem:[%s25547_s5 + $0x84] sm:$0xf]  ;;  %v14666_v43 = vld [vmem:[%s25547_s5 + $0x88] sm:$0xf0] }
 0x545   : > { %v14665_v44 = vor.u32 %v18414_v16, %v14664_v50  ;;  %v5923_v52 = vld [vmem:[#allocation5 + $0x42] ss:$2 sm:$0x7]  ;;  %v14968_v63 = vld [vmem:[%s25547_s5 + $0x200] sm:$0xf] }
 0x546   : > { %v5872_v24 = vadd.f32 %v21455_v37, %v5854_v35  ;;  %v5979_v34 = vmax.f32 %v5970_v1, %v5975_v57  ;;  %v15001_v35 = vor.u32 %v18470_v22, %v15000_v40  ;;  %v14669_v1 = vor.u32 %v18413_v6, %v14666_v43  ;;  %v15184_v22 = vld [vmem:[%s25547_s5 + $0x370] sm:$0xf]  ;;  %v18410_v50 = vld [vmem:[%s25547_s5 + $0x64] sm:$0xf0]  ;;  %v15176_v43 = vld [vmem:[%s25547_s5 + $0x360] sm:$0xf] }
 0x547   : > { %v5926_v3 = vmax.f32 %v5917_v45, %v5923_v52  ;;  %6202 = vmatpush.bf16.msra.mxu0 %v14665_v44  ;;  %v14969_v25 = vor.u32 %v18462_v41, %v14968_v63  ;;  %v15185_v18 = vor.u32 %v18508_v59, %v15184_v22  ;;  %v14778_v44 = vld [vmem:[%s25547_s5 + $0x68] sm:$0xf0] }
 0x548   : > { %v5886_v12 = vmax.f32 %v5872_v24, 0.0  ;;  %5988 = vst [vmem:[#allocation6 + $0x11] sm:$0x7] %v5979_v34  ;;  %v15005_v24 = vor.u32 %v18469_v54, %v15002_v14  ;;  %v14992_v34 = vld [vmem:[%s25547_s5 + $0x230] sm:$0xf]  ;;  %6220 = vmatpush.bf16.msra.mxu1 %v14669_v1  ;;  %6775 = vmatpush.bf16.msra.mxu2 %v15001_v35 }
 0x549   : > { %v5836_v32 = vpop.f32.mrf.mxu3  ;;  %v14993_v0 = vor.u32 %v18468_v42, %v14992_v34  ;;  %v15186_v54 = vld [vmem:[%s25547_s5 + $0x378] sm:$0xf0]  ;;  %v14776_v14 = vld [vmem:[%s25547_s5 + $0x60] sm:$0xf]  ;;  %v18505_v35 = vld [vmem:[%s25547_s5 + $0x364] sm:$0xf] }
 0x54a   : > { %5900 = vst [vmem:[#allocation5 + $0x50] sm:$0xff] %v5886_v12  ;;  %v5797_v32 = vpop.f32.mrf.mxu2  ;;  %6793 = vmatpush.bf16.msra.mxu3 %v15005_v24  ;;  %v15189_v16 = vor.u32 %v18507_v61, %v15186_v54  ;;  %v14777_v6 = vor.u32 %v18410_v50, %v14776_v14  ;;  %v15178_v1 = vld [vmem:[%s25547_s5 + $0x368] sm:$0xf0]  ;;  %v18407_v34 = vld [vmem:[%s25547_s5 + $0x54] sm:$0xf] }
 0x54b   : > { %v14770_v42 = vld [vmem:[%s25547_s5 + $0x58] sm:$0xf0]  ;;  %v18401_v61 = vld [vmem:[%s25547_s5 + $0x24] sm:$0xf]  ;;  %v18498_v54 = vld [vmem:[%s25547_s5 + $0x324] sm:$0xf0] }
 0x54c   : > { %6776 = vmatpush.bf16.msra.mxu2 %v14993_v0  ;;  %v14773_v32 = vor.u32 %v18407_v34, %v14770_v42  ;;  %v14760_v0 = vld [vmem:[%s25547_s5 + $0x40] sm:$0xf]  ;;  %v18497_v14 = vld [vmem:[%s25547_s5 + $0x324] sm:$0xf]  ;;  %v15146_v50 = vld [vmem:[%s25547_s5 + $0x328] sm:$0xf0] }
 0x54d   : > { %v18399_v34 = vld [vmem:[%s25547_s5 + $0x14] sm:$0xf]  ;;  %v15149_v42 = vor.u32 %v18497_v14, %v15146_v50  ;;  %v18541_v14 = vld [vmem:[%s25547_s5 + $0x474] sm:$0xf0] }
 0x54e   : > { %v18540_v50 = vld [vmem:[%s25547_s5 + $0x474] sm:$0xf] }
 0x54f   : > { %v5992_v8 = vld [vmem:[#allocation6 + $0x10] sm:$0xff] }
 0x550   : > { %6777 = vmatpush.bf16.msra.mxu2 %v14985_v56 }
 0x551   : > { %v5839_v26 = vpop.f32.mrf.mxu3  ;;  %v5932_v9 = vld [vmem:[#allocation5 + $0x50] ss:$2 sm:$0x7]  ;;  %v5941_v55 = vld [vmem:[#allocation5 + $0x51] ss:$2 sm:$0x7] }
 0x552   : > { %v5840_v29 = vadd.f32 %v5839_v26, %v5795_v62  ;;  %v5935_v12 = vmax.f32 %v5926_v3, %v5932_v9  ;;  %v5950_v39 = vld [vmem:[#allocation5 + $0x52] ss:$2 sm:$0x7]  ;;  %v14786_v26 = vld [vmem:[%s25547_s5 + $0x78] sm:$0xf0] }
 0x553   : > { %v18412_v62 = vld [vmem:[%s25547_s5 + $0x74] sm:$0xf0]  ;;  %v14789_v40 = vor.u32 %v18411_v49, %v14786_v26  ;;  %v18506_v9 = vld [vmem:[%s25547_s5 + $0x364] sm:$0xf0]  ;;  %v14768_v3 = vld [vmem:[%s25547_s5 + $0x50] sm:$0xf] }
 0x554   : > { %v5856_v13 = vadd.f32 %v5840_v29, %v5599_v23  ;;  %v5944_v19 = vmax.f32 %v5935_v12, %v5941_v55  ;;  %v14785_v23 = vor.u32 %v18412_v62, %v14784_v53  ;;  %6778 = vmatpush.bf16.msra.mxu2 %v14977_v2  ;;  %v14973_v29 = vor.u32 %v18461_v27, %v14970_v4  ;;  %v15168_v12 = vld [vmem:[%s25547_s5 + $0x350] sm:$0xf]  ;;  %v18503_v55 = vld [vmem:[%s25547_s5 + $0x354] sm:$0xf]  ;;  %v18404_v2 = vld [vmem:[%s25547_s5 + $0x34] sm:$0xf0] }
 0x555   : > { %6332 = vmatpush.bf16.msrb.mxu1 %v14789_v40  ;;  %v15177_v24 = vor.u32 %v18506_v9, %v15176_v43  ;;  %v18403_v27 = vld [vmem:[%s25547_s5 + $0x34] sm:$0xf]  ;;  %v15152_v62 = vld [vmem:[%s25547_s5 + $0x330] sm:$0xf]  ;;  %v18500_v49 = vld [vmem:[%s25547_s5 + $0x334] sm:$0xf0] }
 0x556   : > { %v5874_v57 = vadd.f32 %v21455_v37, %v5856_v13  ;;  %v14994_v37 = vld [vmem:[%s25547_s5 + $0x238] sm:$0xf0]  ;;  %v5953_v48 = vmax.f32 %v5944_v19, %v5950_v39  ;;  %6314 = vmatpush.bf16.msrb.mxu0 %v14785_v23  ;;  %v18409_v13 = vld [vmem:[%s25547_s5 + $0x64] sm:$0xf]  ;;  %v19195_v4 = vld [vmem:[#allocation7 + $0xc] sm:$0x10] }
 0x557   : > { %v14997_v46 = vor.u32 %v18467_v20, %v14994_v37  ;;  %v14781_v52 = vor.u32 %v18409_v13, %v14778_v44  ;;  %v15181_v20 = vor.u32 %v18505_v35, %v15178_v1  ;;  %v15154_v23 = vld [vmem:[%s25547_s5 + $0x338] sm:$0xf0]  ;;  %v14744_v26 = vld [vmem:[%s25547_s5 + $0x20] sm:$0xf]  ;;  %v6814_v40 = vld [vmem:[#allocation7 + $0x4] sm:$0xe] }
 0x558   : > { %v5888_v31 = vmax.f32 %v5874_v57, 0.0  ;;  %6779 = vmatpush.bf16.msra.mxu2 %v14969_v25  ;;  %v18408_v57 = vld [vmem:[%s25547_s5 + $0x54] sm:$0xf0]  ;;  %v18402_v25 = vld [vmem:[%s25547_s5 + $0x24] sm:$0xf0] }
 0x559   : > { %v5841_v15 = vpop.f32.mrf.mxu3  ;;  %6794 = vmatpush.bf16.msra.mxu3 %v14997_v46  ;;  %v14769_v37 = vor.u32 %v18408_v57, %v14768_v3  ;;  %6333 = vmatpush.bf16.msrb.mxu1 %v14781_v52  ;;  %v18406_v46 = vld [vmem:[%s25547_s5 + $0x44] sm:$0xf0]  ;;  %v14745_v59 = vor.u32 %v18402_v25, %v14744_v26  ;;  %v14736_v57 = vld [vmem:[%s25547_s5 + $0x10] sm:$0xf]  ;;  %v18444_v25 = vld [vmem:[%s25547_s5 + $0x174] sm:$0xf0] }
 0x55a   : > { %5902 = vst [vmem:[#allocation5 + $0x60] sm:$0xff] %v5888_v31  ;;  %6315 = vmatpush.bf16.msrb.mxu0 %v14777_v6  ;;  %v18504_v31 = vld [vmem:[%s25547_s5 + $0x354] sm:$0xf0]  ;;  %v15170_v15 = vld [vmem:[%s25547_s5 + $0x358] sm:$0xf0]  ;;  %v14761_v56 = vor.u32 %v18406_v46, %v14760_v0 }
 0x55b   : > { %v15169_v28 = vor.u32 %v18504_v31, %v15168_v12  ;;  %v15173_v39 = vor.u32 %v18503_v55, %v15170_v15  ;;  %v15136_v12 = vld [vmem:[%s25547_s5 + $0x310] sm:$0xf]  ;;  %v18496_v31 = vld [vmem:[%s25547_s5 + $0x314] sm:$0xf0]  ;;  %v6833_v55 = vunpack.c.l.b16 %v6814_v40  ;;  %v18495_v0 = vld [vmem:[%s25547_s5 + $0x314] sm:$0xf] }
 0x55c   : > { %7066 = vmatpush.bf16.msrb.mxu2 %v15185_v18  ;;  %v15138_v46 = vld [vmem:[%s25547_s5 + $0x318] sm:$0xf0]  ;;  %v14864_v26 = vld [vmem:[%s25547_s5 + $0x170] sm:$0xf]  ;;  %v18443_v40 = vld [vmem:[%s25547_s5 + $0x174] sm:$0xf] }
 0x55d   : > { %6795 = vmatpush.bf16.msra.mxu3 %v14989_v58  ;;  %v15160_v58 = vld [vmem:[%s25547_s5 + $0x340] sm:$0xf]  ;;  %6334 = vmatpush.bf16.msrb.mxu1 %v14773_v32 }
 0x55e   : > { %6316 = vmatpush.bf16.msrb.mxu0 %v14769_v37  ;;  %v15161_v63 = vor.u32 %v18502_v17, %v15160_v58  ;;  %v14738_v37 = vld [vmem:[%s25547_s5 + $0x18] sm:$0xf0]  ;;  %v15137_v17 = vor.u32 %v18496_v31, %v15136_v12 }
 0x560   : > { %7067 = vmatpush.bf16.msrb.mxu2 %v15177_v24  ;;  %v18400_v24 = vld [vmem:[%s25547_s5 + $0x14] sm:$0xf0] }
 0x561   : > { %v5959_v36 = vld [vmem:[#allocation5 + $0x60] ss:$2 sm:$0x7]  ;;  %v5968_v33 = vld [vmem:[#allocation5 + $0x61] ss:$2 sm:$0x7]  ;;  %6796 = vmatpush.bf16.msra.mxu3 %v14981_v60  ;;  %6335 = vmatpush.bf16.msrb.mxu1 %v14765_v5 }
 0x562   : > { %v5962_v11 = vmax.f32 %v5953_v48, %v5959_v36  ;;  %v5977_v47 = vld [vmem:[#allocation5 + $0x62] ss:$2 sm:$0x7]  ;;  %v15162_v48 = vld [vmem:[%s25547_s5 + $0x348] sm:$0xf0]  ;;  %6317 = vmatpush.bf16.msrb.mxu0 %v14761_v56 }
 0x563   : > { %v15165_v41 = vor.u32 %v18501_v10, %v15162_v48  ;;  %v14752_v36 = vld [vmem:[%s25547_s5 + $0x30] sm:$0xf]  ;;  %v14754_v60 = vld [vmem:[%s25547_s5 + $0x38] sm:$0xf0]  ;;  %v18397_v5 = vld [vmem:[%s25547_s5 + $0x4] sm:$0xf]  ;;  %v15141_v48 = vor.u32 %v18495_v0, %v15138_v46 }
 0x564   : > { %v5971_v30 = vmax.f32 %v5962_v11, %v5968_v33  ;;  %7068 = vmatpush.bf16.msrb.mxu2 %v15169_v28  ;;  %v6101_v11 = vshll.u32 %v21514_v38, 16  ;;  %v14753_v33 = vor.u32 %v18404_v2, %v14752_v36  ;;  %v14757_v53 = vor.u32 %v18403_v27, %v14754_v60  ;;  %v14728_v28 = vld [vmem:[%s25547_s5] sm:$0xf]  ;;  %v18494_v36 = vld [vmem:[%s25547_s5 + $0x304] sm:$0xf0] }
 0x565   : > { %6797 = vmatpush.bf16.msra.mxu3 %v14973_v29  ;;  %v15144_v29 = vld [vmem:[%s25547_s5 + $0x320] sm:$0xf]  ;;  %v18439_v0 = vld [vmem:[%s25547_s5 + $0x154] sm:$0xf]  ;;  %v14850_v46 = vld [vmem:[%s25547_s5 + $0x158] sm:$0xf0] }
 0x566   : > { %v5980_v45 = vmax.f32 %v5971_v30, %v5977_v47  ;;  %v18499_v30 = vld [vmem:[%s25547_s5 + $0x334] sm:$0xf]  ;;  %v15153_v47 = vor.u32 %v18500_v49, %v15152_v62  ;;  %6318 = vmatpush.bf16.msrb.mxu0 %v14753_v33  ;;  %6336 = vmatpush.bf16.msrb.mxu1 %v14757_v53  ;;  %v6103_v13 = vrot.slane %v6101_v11, 1  ;;  %v15145_v52 = vor.u32 %v18498_v54, %v15144_v29  ;;  %v15130_v53 = vld [vmem:[%s25547_s5 + $0x308] sm:$0xf0] }
 0x567   : > { %v15157_v22 = vor.u32 %v18499_v30, %v15154_v23  ;;  %v15348_v54 = vld [vmem:[%s25547_s5 + $0x470] sm:$0xf] }
 0x568   : > { %5989 = vst [vmem:[#allocation6 + $0x19] sm:$0x7] %v5980_v45  ;;  %7069 = vmatpush.bf16.msrb.mxu2 %v15161_v63  ;;  %v14746_v45 = vld [vmem:[%s25547_s5 + $0x28] sm:$0xf0]  ;;  %v6104_v10 = vor.u32 %v6103_v13, %v6099_v7  ;;  %v14856_v13 = vld [vmem:[%s25547_s5 + $0x160] sm:$0xf] }
 0x569   : > { %7084 = vmatpush.bf16.msrb.mxu3 %v15189_v16  ;;  %v14749_v18 = vor.u32 %v18401_v61, %v14746_v45  ;;  %v14730_v63 = vld [vmem:[%s25547_s5 + $0x8] sm:$0xf0]  ;;  %v14865_v61 = vor.u32 %v18444_v25, %v14864_v26  ;;  %v14866_v45 = vld [vmem:[%s25547_s5 + $0x178] sm:$0xf0]  ;;  %v15332_v7 = vld [vmem:[%s25547_s5 + $0x450] sm:$0xf] }
 0x56a   : > { %6319 = vmatpush.bf16.msrb.mxu0 %v14745_v59  ;;  %v18436_v26 = vld [vmem:[%s25547_s5 + $0x134] sm:$0xf0]  ;;  %v14834_v25 = vld [vmem:[%s25547_s5 + $0x138] sm:$0xf0] }
 0x56b   : > { %6337 = vmatpush.bf16.msrb.mxu1 %v14749_v18  ;;  %v14869_v18 = vor.u32 %v18443_v40, %v14866_v45  ;;  %v15316_v40 = vld [vmem:[%s25547_s5 + $0x430] sm:$0xf]  ;;  %v15318_v45 = vld [vmem:[%s25547_s5 + $0x438] sm:$0xf0] }
 0x56c   : > { %7070 = vmatpush.bf16.msrb.mxu2 %v15153_v47  ;;  %v14733_v47 = vor.u32 %v18397_v5, %v14730_v63  ;;  %v18438_v5 = vld [vmem:[%s25547_s5 + $0x144] sm:$0xf0] }
 0x56d   : > { %7085 = vmatpush.bf16.msrb.mxu3 %v15181_v20  ;;  %v14737_v20 = vor.u32 %v18400_v24, %v14736_v57  ;;  %v14858_v57 = vld [vmem:[%s25547_s5 + $0x168] sm:$0xf0]  ;;  %v15340_v24 = vld [vmem:[%s25547_s5 + $0x460] sm:$0xf] }
 0x56f   : > { %v5993_v19 = vld [vmem:[#allocation6 + $0x18] sm:$0xff]  ;;  %6320 = vmatpush.bf16.msrb.mxu0 %v14737_v20  ;;  %v18538_v20 = vld [vmem:[%s25547_s5 + $0x464] sm:$0xf] }
 0x570   : > { %v21756_v21 = vpack.c.bf16 %v5993_v19, %v5992_v8  ;;  %v14741_v8 = vor.u32 %v18399_v34, %v14738_v37  ;;  %v18398_v19 = vld [vmem:[%s25547_s5 + $0x4] sm:$0xf0]  ;;  %7071 = vmatpush.bf16.msrb.mxu2 %v15145_v52  ;;  %v15342_v37 = vld [vmem:[%s25547_s5 + $0x468] sm:$0xf0] }
 0x571   : > { %7086 = vmatpush.bf16.msrb.mxu3 %v15173_v39  ;;  %v14729_v33 = vor.u32 %v18398_v19, %v14728_v28  ;;  %v15345_v31 = vor.u32 %v18538_v20, %v15342_v37  ;;  %v14853_v28 = vor.u32 %v18439_v0, %v14850_v46  ;;  %v18536_v19 = vld [vmem:[%s25547_s5 + $0x454] sm:$0xf]  ;;  %v14818_v37 = vld [vmem:[%s25547_s5 + $0x118] sm:$0xf0] }
 0x572   : > { %19182 = vst [vmem:[#allocation7 + $0x8] sm:$0xff] %v21756_v21   ;;  %v19162_v43 = vunpack.c.l.b16 %v21756_v21  ;;  %6338 = vmatpush.bf16.msrb.mxu1 %v14741_v8 }
 0x573   : > { %6321 = vmatpush.bf16.msrb.mxu0 %v14729_v33 }
 0x574   : > { %v6834_v39 = vpack.c.b16 %v19162_v43, %v6833_v55  ;;  %7072 = vmatpush.bf16.msrb.mxu2 %v15137_v17  ;;  %v14848_v55 = vld [vmem:[%s25547_s5 + $0x150] sm:$0xf] }
 0x575   : > { %7087 = vmatpush.bf16.msrb.mxu3 %v15165_v41  ;;  %v15128_v41 = vld [vmem:[%s25547_s5 + $0x300] sm:$0xf] }
 0x576   : > { %v6835_v62 = vrot.slane %v6834_v39, 1  ;;  %v15129_v23 = vor.u32 %v18494_v36, %v15128_v41  ;;  %6339 = vmatpush.bf16.msrb.mxu1 %v14733_v47  ;;  %v15334_v39 = vld [vmem:[%s25547_s5 + $0x458] sm:$0xf0]  ;;  %v15324_v41 = vld [vmem:[%s25547_s5 + $0x440] sm:$0xf] }
 0x577   : > { %v15337_v17 = vor.u32 %v18536_v19, %v15334_v39  ;;  %v18535_v36 = vld [vmem:[%s25547_s5 + $0x444] sm:$0xf0] }
 0x578   : > { %7073 = vmatpush.bf16.msrb.mxu2 %v15129_v23  ;;  %v14832_v23 = vld [vmem:[%s25547_s5 + $0x130] sm:$0xf] }
 0x579   : > { %v6053_v16 = vld [vmem:[#allocation7 + $0x4] sm:$0xff]   ;;  %v6070_v6 = vld [vmem:[#allocation7 + $0xc] sm:$0x1]  ;;  %7088 = vmatpush.bf16.msrb.mxu3 %v15157_v22 }
 0x57a   : > { %v19194_v44 = vld [vmem:[#allocation7 + $0xc] sm:$0xf]  ;;  %v21815_v9 = vunpack.c.h.b16 %v6053_v16  ;;  %v6095_v35 = vunpack.c.l.b16 %v6070_v6  ;;  %v6669_v1 = vunpack.c.l.b16 %v6053_v16  ;;  %v15349_v16 = vor.u32 %v18541_v14, %v15348_v54  ;;  %v15350_v6 = vld [vmem:[%s25547_s5 + $0x478] sm:$0xf0]  ;;  %v18434_v54 = vld [vmem:[%s25547_s5 + $0x124] sm:$0xf0] }
 0x57b   : > { %v21817_v3 = vor.u32 %v19195_v4, %v19194_v44  ;;  %v18493_v4 = vld [vmem:[%s25547_s5 + $0x304] sm:$0xf]  ;;  %v18442_v44 = vld [vmem:[%s25547_s5 + $0x164] sm:$0xf0]  ;;  %v15353_v52 = vor.u32 %v18540_v50, %v15350_v6  ;;  %v15308_v6 = vld [vmem:[%s25547_s5 + $0x420] sm:$0xf] }
 0x57c   : > { %v21838_v32 = vpack.c.b16 %v6095_v35, %v21815_v9  ;;  %v6673_v15 = vpack.c.b16 %v19162_v43, %v6669_v1  ;;  %v15133_v59 = vor.u32 %v18493_v4, %v15130_v53  ;;  %v14857_v35 = vor.u32 %v18442_v44, %v14856_v13  ;;  %v18441_v1 = vld [vmem:[%s25547_s5 + $0x164] sm:$0xf] }
 0x57d   : > { %v6683_v51 = vshll.u32 %v21817_v3, 16  ;;  %7089 = vmatpush.bf16.msrb.mxu3 %v15149_v42  ;;  %v21894_v29 = vrot.slane %v21817_v3, 1  ;;  %v14861_v34 = vor.u32 %v18441_v1, %v14858_v57  ;;  %v18539_v42 = vld [vmem:[%s25547_s5 + $0x464] sm:$0xf0]  ;;  %v18433_v50 = vld [vmem:[%s25547_s5 + $0x124] sm:$0xf] }
 0x57e   : > { %v6106_v56 = vshll.u32 %v21838_v32, 16  ;;  %v6678_v58 = vshll.u32 %v6673_v15, 16  ;;  %v6676_v27 = vshrl.u32 %v6673_v15, 16  ;;  %v15341_v12 = vor.u32 %v18539_v42, %v15340_v24  ;;  %v18440_v15 = vld [vmem:[%s25547_s5 + $0x154] sm:$0xf0] }
 0x57f   : > { %v21869_v60 = vrot.slane %v6683_v51, 1  ;;  %v21916_v43 = vsel %vm1584_vm0, %v6835_v62, %v21894_v29  ;;  %v18537_v51 = vld [vmem:[%s25547_s5 + $0x454] sm:$0xf0]  ;;  %v14849_v8 = vor.u32 %v18440_v15, %v14848_v55  ;;  %v6110_v63 = vshrl.u32 %v21838_v32, 16  ;;  %v15310_v1 = vld [vmem:[%s25547_s5 + $0x428] sm:$0xf0] }
 0x580   : > { %v21867_v2 = vrot.slane %v6106_v56, 1  ;;  %v6680_v11 = vrot.slane %v6678_v58, 1  ;;  %v15333_v56 = vor.u32 %v18537_v51, %v15332_v7  ;;  %v14840_v58 = vld [vmem:[%s25547_s5 + $0x140] sm:$0xf]  ;;  %v6687_v62 = vshrl.u32 %v21817_v3, 16 }
 0x581   : > { %7090 = vmatpush.bf16.msrb.mxu3 %v15141_v48  ;;  %v14842_v48 = vld [vmem:[%s25547_s5 + $0x148] sm:$0xf0]  ;;  %v14841_v33 = vor.u32 %v18438_v5, %v14840_v58  ;;  %v14833_v3 = vor.u32 %v18436_v26, %v14832_v23  ;;  %v14816_v57 = vld [vmem:[%s25547_s5 + $0x110] sm:$0xf]  ;;  %v18432_v24 = vld [vmem:[%s25547_s5 + $0x114] sm:$0xf0] }
 0x582   : > { %v6109_v49 = vsel %vm1427_vm1, %v6104_v10, %v21867_v2  ;;  %v6681_v30 = vor.u32 %v6680_v11, %v6676_v27  ;;  %v18437_v10 = vld [vmem:[%s25547_s5 + $0x144] sm:$0xf]  ;;  %v15326_v11 = vld [vmem:[%s25547_s5 + $0x448] sm:$0xf0]  ;;  %v6112_v53 = vor.u32 %v6110_v63, %v21867_v2  ;;  %v6689_v47 = vor.u32 %v6687_v62, %v21869_v60  ;;  %v18435_v2 = vld [vmem:[%s25547_s5 + $0x134] sm:$0xf] }
 0x583   : > { %6203 = vmatmul.bf16.vlgmr.msra.gmra.mxu0 %v6109_v49  ;;  %6221 = vmatmul.bf16.vlgmr.msra.gmra.mxu1 %v6109_v49  ;;  %v18534_v27 = vld [vmem:[%s25547_s5 + $0x444] sm:$0xf]  ;;  %v14845_v4 = vor.u32 %v18437_v10, %v14842_v48  ;;  %v15325_v49 = vor.u32 %v18535_v36, %v15324_v41  ;;  %v18528_v55 = vld [vmem:[%s25547_s5 + $0x414] sm:$0xf]  ;;  %v15302_v15 = vld [vmem:[%s25547_s5 + $0x418] sm:$0xf0]  ;;  %v14817_v0 = vor.u32 %v18432_v24, %v14816_v57 }
 0x584   : > { %v6686_v22 = vsel %vm1427_vm1, %v6681_v30, %v21869_v60  ;;  %6456 = vmatpush.bf16.msra.mxu0 %v14865_v61  ;;  %6474 = vmatpush.bf16.msra.mxu1 %v14869_v18  ;;  %v15329_v30 = vor.u32 %v18534_v27, %v15326_v11  ;;  %v14837_v60 = vor.u32 %v18435_v2, %v14834_v25  ;;  %v14824_v18 = vld [vmem:[%s25547_s5 + $0x120] sm:$0xf]  ;;  %v18430_v51 = vld [vmem:[%s25547_s5 + $0x104] sm:$0xf0]  ;;  %v15294_v5 = vld [vmem:[%s25547_s5 + $0x408] sm:$0xf0] }
 0x585   : > { %6780 = vmatmul.bf16.vlgmr.msra.gmra.mxu2 %v6686_v22  ;;  %6798 = vmatmul.bf16.vlgmr.msra.gmra.mxu3 %v6686_v22  ;;  %v18533_v22 = vld [vmem:[%s25547_s5 + $0x434] sm:$0xf0]  ;;  %v14825_v13 = vor.u32 %v18434_v54, %v14824_v18  ;;  %v14808_v7 = vld [vmem:[%s25547_s5 + $0x100] sm:$0xf]  ;;  %v15305_v39 = vor.u32 %v18528_v55, %v15302_v15  ;;  %v18527_v58 = vld [vmem:[%s25547_s5 + $0x404] sm:$0xf0] }
 0x586   : > { %7091 = vmatpush.bf16.msrb.mxu3 %v15133_v59  ;;  %7384 = vmatpush.bf16.msra.mxu2 %v15349_v16  ;;  %v18532_v59 = vld [vmem:[%s25547_s5 + $0x434] sm:$0xf]  ;;  %v15317_v61 = vor.u32 %v18533_v22, %v15316_v40  ;;  %v14826_v16 = vld [vmem:[%s25547_s5 + $0x128] sm:$0xf0]  ;;  %v14809_v10 = vor.u32 %v18430_v51, %v14808_v7  ;;  %v14944_v36 = vld [vmem:[%s25547_s5 + $0x1f0] sm:$0xf] }
 0x587   : > { %v15321_v14 = vor.u32 %v18532_v59, %v15318_v45  ;;  %v14829_v44 = vor.u32 %v18433_v50, %v14826_v16  ;;  %v18460_v27 = vld [vmem:[%s25547_s5 + $0x1f4] sm:$0xf0]  ;;  %v18459_v11 = vld [vmem:[%s25547_s5 + $0x1f4] sm:$0xf]  ;;  %v18458_v62 = vld [vmem:[%s25547_s5 + $0x1e4] sm:$0xf0]  ;;  %v6231_v50 = vpack.c.b16 %v21815_v9, %v21815_v9 }
 0x588   : > { %6457 = vmatpush.bf16.msra.mxu0 %v14857_v35  ;;  %6475 = vmatpush.bf16.msra.mxu1 %v14861_v34  ;;  %v18530_v35 = vld [vmem:[%s25547_s5 + $0x424] sm:$0xf]  ;;  %v18431_v34 = vld [vmem:[%s25547_s5 + $0x114] sm:$0xf]  ;;  %v14928_v23 = vld [vmem:[%s25547_s5 + $0x1d0] sm:$0xf] }
 0x589   : > { %v15313_v20 = vor.u32 %v18530_v35, %v15310_v1  ;;  %v14821_v46 = vor.u32 %v18431_v34, %v14818_v37  ;;  %v18456_v26 = vld [vmem:[%s25547_s5 + $0x1d4] sm:$0xf0]  ;;  %v18455_v2 = vld [vmem:[%s25547_s5 + $0x1d4] sm:$0xf]  ;;  %v14920_v22 = vld [vmem:[%s25547_s5 + $0x1c0] sm:$0xf] }
 0x58a   : > { %7402 = vmatpush.bf16.msra.mxu3 %v15353_v52  ;;  %7385 = vmatpush.bf16.msra.mxu2 %v15341_v12  ;;  %v18531_v52 = vld [vmem:[%s25547_s5 + $0x424] sm:$0xf0]  ;;  %v15300_v12 = vld [vmem:[%s25547_s5 + $0x410] sm:$0xf]  ;;  %v14929_v25 = vor.u32 %v18456_v26, %v14928_v23  ;;  %v14922_v45 = vld [vmem:[%s25547_s5 + $0x1c8] sm:$0xf0] }
 0x58b   : > { %v15309_v42 = vor.u32 %v18531_v52, %v15308_v6  ;;  %v22124_v40 = vld [vmem:[#allocation7 + $0xc] sm:$0xff]   ;;  %v18454_v59 = vld [vmem:[%s25547_s5 + $0x1c4] sm:$0xf0]  ;;  %v6350_v52 = vld [vmem:[#allocation7] sm:$0xe] }
 0x58c   : > { %6458 = vmatpush.bf16.msra.mxu0 %v14849_v8  ;;  %6476 = vmatpush.bf16.msra.mxu1 %v14853_v28  ;;  %v18429_v8 = vld [vmem:[%s25547_s5 + $0x104] sm:$0xf]  ;;  %v14810_v28 = vld [vmem:[%s25547_s5 + $0x108] sm:$0xf0]  ;;  %v6981_v18 = vunpack.c.h.b16 %v22124_v40  ;;  %v14921_v54 = vor.u32 %v18454_v59, %v14920_v22  ;;  %v14912_v6 = vld [vmem:[%s25547_s5 + $0x1b0] sm:$0xf]  ;;  %v6369_v37 = vunpack.c.l.b16 %v6350_v52 }
 0x58d   : > { %v14813_v48 = vor.u32 %v18429_v8, %v14810_v28  ;;  %v14914_v1 = vld [vmem:[%s25547_s5 + $0x1b8] sm:$0xf0]  ;;  %v14904_v57 = vld [vmem:[%s25547_s5 + $0x1a0] sm:$0xf]  ;;  %v18450_v34 = vld [vmem:[%s25547_s5 + $0x1a4] sm:$0xf0] }
 0x58e   : > { %7403 = vmatpush.bf16.msra.mxu3 %v15345_v31  ;;  %7386 = vmatpush.bf16.msra.mxu2 %v15333_v56  ;;  %v18529_v31 = vld [vmem:[%s25547_s5 + $0x414] sm:$0xf0]  ;;  %v15292_v56 = vld [vmem:[%s25547_s5 + $0x400] sm:$0xf]  ;;  %v6983_v16 = vpack.c.b16 %v6981_v18, %v6981_v18  ;;  %v19187_v15 = vld [vmem:[#allocation7 + $0x8] sm:$0xe] }
 0x58f   : > { %v15301_v19 = vor.u32 %v18529_v31, %v15300_v12  ;;  %v15293_v63 = vor.u32 %v18527_v58, %v15292_v56  ;;  %v19186_v12 = vld [vmem:[#allocation7 + $0x8] sm:$0xf0]  ;;  %v15208_v31 = vld [vmem:[#allocation7 + $0x10] sm:$0xf]  ;;  %v18509_v55 = vld [vmem:[#allocation7 + $0x10] sm:$0x10] }
 0x590   : > { %6459 = vmatpush.bf16.msra.mxu0 %v14841_v33  ;;  %6477 = vmatpush.bf16.msra.mxu1 %v14845_v4  ;;  %v14945_v33 = vor.u32 %v18460_v27, %v14944_v36  ;;  %v14946_v4 = vld [vmem:[%s25547_s5 + $0x1f8] sm:$0xf0]  ;;  %v14896_v7 = vld [vmem:[%s25547_s5 + $0x190] sm:$0xf]  ;;  %v22168_v51 = vld [vmem:[#allocation7] sm:$0xff]  ;;  %v22182_v58 = vor.u32 %v18509_v55, %v15208_v31  ;;  %v6372_v27 = vrot.slane %v21838_v32, 1 }
 0x591   : > { %v19159_v8 = vunpack.c.h.b16 %v22168_v51  ;;  %v18448_v28 = vld [vmem:[%s25547_s5 + $0x194] sm:$0xf0]  ;;  %v14890_v36 = vld [vmem:[%s25547_s5 + $0x188] sm:$0xf0]  ;;  %v15106_v23 = vld [vmem:[%s25547_s5 + $0x2f8] sm:$0xf0] }
 0x592   : > { %7404 = vmatpush.bf16.msra.mxu3 %v15337_v17  ;;  %7387 = vmatpush.bf16.msra.mxu2 %v15325_v49  ;;  %v18526_v17 = vld [vmem:[%s25547_s5 + $0x404] sm:$0xf]  ;;  %v18492_v32 = vld [vmem:[%s25547_s5 + $0x2f4] sm:$0xf0]  ;;  %v15096_v26 = vld [vmem:[%s25547_s5 + $0x2e0] sm:$0xf] }
 0x593   : > { %6208 = vmatmul.bf16.gmra.mxu0 %v6112_v53  ;;  %6226 = vmatmul.bf16.gmra.mxu1 %v6112_v53  ;;  %v15297_v41 = vor.u32 %v18526_v17, %v15294_v5  ;;  %v14936_v53 = vld [vmem:[%s25547_s5 + $0x1e0] sm:$0xf]  ;;  %v18457_v49 = vld [vmem:[%s25547_s5 + $0x1e4] sm:$0xf]  ;;  %v6370_v56 = vpack.c.b16 %v19159_v8, %v6369_v37  ;;  %v19188_v17 = vor.u32 %v19187_v15, %v19186_v12  ;;  %v18487_v18 = vld [vmem:[%s25547_s5 + $0x2d4] sm:$0xf] }
 0x594   : > { %6460 = vmatpush.bf16.msra.mxu0 %v14833_v3  ;;  %6478 = vmatpush.bf16.msra.mxu1 %v14837_v60  ;;  %v14930_v3 = vld [vmem:[%s25547_s5 + $0x1d8] sm:$0xf0]  ;;  %v14897_v5 = vor.u32 %v18448_v28, %v14896_v7  ;;  %v18482_v37 = vld [vmem:[%s25547_s5 + $0x2a4] sm:$0xf0]  ;;  %v18481_v31 = vld [vmem:[%s25547_s5 + $0x2a4] sm:$0xf] }
 0x595   : > { %6785 = vmatmul.bf16.gmra.mxu2 %v6689_v47  ;;  %6803 = vmatmul.bf16.gmra.mxu3 %v6689_v47  ;;  %v14933_v60 = vor.u32 %v18455_v2, %v14930_v3  ;;  %v18490_v2 = vld [vmem:[%s25547_s5 + $0x2e4] sm:$0xf0]  ;;  %v15066_v55 = vld [vmem:[%s25547_s5 + $0x2a8] sm:$0xf0]  ;;  %v18479_v28 = vld [vmem:[%s25547_s5 + $0x294] sm:$0xf] }
 0x596   : > { %7405 = vmatpush.bf16.msra.mxu3 %v15329_v30  ;;  %7388 = vmatpush.bf16.msra.mxu2 %v15317_v61  ;;  %v14938_v30 = vld [vmem:[%s25547_s5 + $0x1e8] sm:$0xf0]  ;;  %v18453_v61 = vld [vmem:[%s25547_s5 + $0x1c4] sm:$0xf]  ;;  %v15097_v22 = vor.u32 %v18490_v2, %v15096_v26  ;;  %v15069_v7 = vor.u32 %v18481_v31, %v15066_v55  ;;  %v15260_v51 = vld [vmem:[%s25547_s5 + $0x3e0] sm:$0xf] }
 0x597   : > { %v14941_v47 = vor.u32 %v18457_v49, %v14938_v30  ;;  %v15104_v49 = vld [vmem:[%s25547_s5 + $0x2f0] sm:$0xf]  ;;  %v18491_v30 = vld [vmem:[%s25547_s5 + $0x2f4] sm:$0xf]  ;;  %v15254_v26 = vld [vmem:[%s25547_s5 + $0x3d8] sm:$0xf0] }
 0x598   : > { %6461 = vmatpush.bf16.msra.mxu0 %v14825_v13  ;;  %6479 = vmatpush.bf16.msra.mxu1 %v14829_v44  ;;  %v18452_v13 = vld [vmem:[%s25547_s5 + $0x1b4] sm:$0xf0]  ;;  %v18451_v44 = vld [vmem:[%s25547_s5 + $0x1b4] sm:$0xf]  ;;  %v15109_v3 = vor.u32 %v18491_v30, %v15106_v23  ;;  %v15252_v30 = vld [vmem:[%s25547_s5 + $0x3d0] sm:$0xf] }
 0x599   : > { %v14913_v35 = vor.u32 %v18452_v13, %v14912_v6  ;;  %v14917_v24 = vor.u32 %v18451_v44, %v14914_v1  ;;  %v18486_v6 = vld [vmem:[%s25547_s5 + $0x2c4] sm:$0xf0]  ;;  %v18485_v13 = vld [vmem:[%s25547_s5 + $0x2c4] sm:$0xf]  ;;  %v15082_v44 = vld [vmem:[%s25547_s5 + $0x2c8] sm:$0xf0] }
 0x59a   : > { %7406 = vmatpush.bf16.msra.mxu3 %v15321_v14  ;;  %7389 = vmatpush.bf16.msra.mxu2 %v15309_v42  ;;  %v14925_v14 = vor.u32 %v18453_v61, %v14922_v45  ;;  %v18449_v42 = vld [vmem:[%s25547_s5 + $0x1a4] sm:$0xf]  ;;  %v15088_v61 = vld [vmem:[%s25547_s5 + $0x2d0] sm:$0xf]  ;;  %v18488_v45 = vld [vmem:[%s25547_s5 + $0x2d4] sm:$0xf0] }
 0x59b   : > { %v15072_v1 = vld [vmem:[%s25547_s5 + $0x2b0] sm:$0xf]  ;;  %v18511_v31 = vld [vmem:[%s25547_s5 + $0x384] sm:$0xf0] }
 0x59c   : > { %6462 = vmatpush.bf16.msra.mxu0 %v14817_v0  ;;  %6480 = vmatpush.bf16.msra.mxu1 %v14821_v46  ;;  %v14905_v0 = vor.u32 %v18450_v34, %v14904_v57  ;;  %v18484_v57 = vld [vmem:[%s25547_s5 + $0x2b4] sm:$0xf0] }
 0x59d   : > { %v15073_v34 = vor.u32 %v18484_v57, %v15072_v1 }
 0x59e   : > { %7407 = vmatpush.bf16.msra.mxu3 %v15313_v20  ;;  %7390 = vmatpush.bf16.msra.mxu2 %v15301_v19  ;;  %v14906_v20 = vld [vmem:[%s25547_s5 + $0x1a8] sm:$0xf0]  ;;  %v18447_v19 = vld [vmem:[%s25547_s5 + $0x194] sm:$0xf] }
 0x59f   : > { %v14909_v46 = vor.u32 %v18449_v42, %v14906_v20  ;;  %v15074_v42 = vld [vmem:[%s25547_s5 + $0x2b8] sm:$0xf0]  ;;  %v15064_v20 = vld [vmem:[%s25547_s5 + $0x2a0] sm:$0xf] }
 0x5a0   : > { %6463 = vmatpush.bf16.msra.mxu0 %v14809_v10  ;;  %6481 = vmatpush.bf16.msra.mxu1 %v14813_v48  ;;  %v14888_v48 = vld [vmem:[%s25547_s5 + $0x180] sm:$0xf]  ;;  %v15065_v15 = vor.u32 %v18482_v37, %v15064_v20  ;;  %v15222_v37 = vld [vmem:[%s25547_s5 + $0x398] sm:$0xf0] }
 0x5a2   : > { %7408 = vmatpush.bf16.msra.mxu3 %v15305_v39  ;;  %7391 = vmatpush.bf16.msra.mxu2 %v15293_v63  ;;  %v14898_v39 = vld [vmem:[%s25547_s5 + $0x198] sm:$0xf0]  ;;  %v18446_v63 = vld [vmem:[%s25547_s5 + $0x184] sm:$0xf0] }
 0x5a3   : > { %6322 = vmatmul.bf16.vlgmr.msrb.gmra.mxu0 %v21514_v38  ;;  %6340 = vmatmul.bf16.vlgmr.msrb.gmra.mxu1 %v21514_v38  ;;  %v14949_v38 = vor.u32 %v18459_v11, %v14946_v4  ;;  %v14901_v10 = vor.u32 %v18447_v19, %v14898_v39  ;;  %v6371_v11 = vrot.slane %v6370_v56, 1  ;;  %v7300_v4 = vrot.slane %v22182_v58, 1  ;;  %v15058_v19 = vld [vmem:[%s25547_s5 + $0x298] sm:$0xf0]  ;;  %v15048_v56 = vld [vmem:[%s25547_s5 + $0x280] sm:$0xf] }
 0x5a4   : > { %6602 = vmatpush.bf16.msrb.mxu0 %v14945_v33  ;;  %v7299_v33 = vrot.slane %v19188_v17, 1  ;;  %v18478_v17 = vld [vmem:[%s25547_s5 + $0x284] sm:$0xf0] }
 0x5a5   : > { %7074 = vmatmul.bf16.vlgmr.msrb.gmra.mxu2 %v21756_v21  ;;  %7092 = vmatmul.bf16.vlgmr.msrb.gmra.mxu3 %v21756_v21  ;;  %v14937_v21 = vor.u32 %v18458_v62, %v14936_v53  ;;  %v6373_v62 = vsel %vm1584_vm0, %v6371_v11, %v6372_v27  ;;  %v18525_v11 = vld [vmem:[%s25547_s5 + $0x3f4] sm:$0xf0] }
 0x5a6   : > { %7409 = vmatpush.bf16.msra.mxu3 %v15297_v41  ;;  %6620 = vmatpush.bf16.msrb.mxu1 %v14949_v38  ;;  %v18445_v41 = vld [vmem:[%s25547_s5 + $0x184] sm:$0xf]  ;;  %v14889_v38 = vor.u32 %v18446_v63, %v14888_v48  ;;  %v15050_v48 = vld [vmem:[%s25547_s5 + $0x288] sm:$0xf0]  ;;  %v15049_v63 = vor.u32 %v18478_v17, %v15048_v56 }
 0x5a7   : > { %v14893_v53 = vor.u32 %v18445_v41, %v14890_v36  ;;  %v6518_v36 = vpack.c.b16 %v21815_v9, %v19159_v8  ;;  %v15270_v9 = vld [vmem:[%s25547_s5 + $0x3f8] sm:$0xf0]  ;;  %v18523_v8 = vld [vmem:[%s25547_s5 + $0x3e4] sm:$0xf0] }
 0x5a8   : > { %6603 = vmatpush.bf16.msrb.mxu0 %v14937_v21  ;;  %v7301_v21 = vsel %vm1584_vm0, %v7299_v33, %v7300_v4  ;;  %v18524_v33 = vld [vmem:[%s25547_s5 + $0x3f4] sm:$0xf] }
 0x5aa   : > { %6621 = vmatpush.bf16.msrb.mxu1 %v14941_v47  ;;  %v15105_v47 = vor.u32 %v18492_v32, %v15104_v49  ;;  %v15261_v49 = vor.u32 %v18523_v8, %v15260_v51  ;;  %v7147_v51 = vshll.u32 %v22182_v58, 16 }
 0x5ac   : > { %6604 = vmatpush.bf16.msrb.mxu0 %v14929_v25  ;;  %v18489_v25 = vld [vmem:[%s25547_s5 + $0x2e4] sm:$0xf] }
 0x5ae   : > { %6622 = vmatpush.bf16.msrb.mxu1 %v14933_v60  ;;  %v15098_v60 = vld [vmem:[%s25547_s5 + $0x2e8] sm:$0xf0] }
 0x5af   : > { %v15101_v59 = vor.u32 %v18489_v25, %v15098_v60  ;;  %v18519_v25 = vld [vmem:[%s25547_s5 + $0x3c4] sm:$0xf0]  ;;  %v6517_v60 = vunpack.c.l.b16 %v22124_v40  ;;  %v15236_v40 = vld [vmem:[%s25547_s5 + $0x3b0] sm:$0xf] }
 0x5b0   : > { %6605 = vmatpush.bf16.msrb.mxu0 %v14921_v54  ;;  %v15090_v54 = vld [vmem:[%s25547_s5 + $0x2d8] sm:$0xf0] }
 0x5b2   : > { %6623 = vmatpush.bf16.msrb.mxu1 %v14925_v14  ;;  %v15089_v14 = vor.u32 %v18488_v45, %v15088_v61 }
 0x5b3   : > { %6327 = vmatmul.bf16.gmra.mxu0 %v6231_v50  ;;  %6345 = vmatmul.bf16.gmra.mxu1 %v6231_v50  ;;  %v15093_v50 = vor.u32 %v18487_v18, %v15090_v54  ;;  %v6519_v18 = vpack.c.b16 %v6517_v60, %v6517_v60  ;;  %v18517_v54 = vld [vmem:[%s25547_s5 + $0x3b4] sm:$0xf0] }
 0x5b4   : > { %6606 = vmatpush.bf16.msrb.mxu0 %v14913_v35  ;;  %v15085_v35 = vor.u32 %v18485_v13, %v15082_v44  ;;  %v18515_v13 = vld [vmem:[%s25547_s5 + $0x3a4] sm:$0xf0] }
 0x5b5   : > { %7079 = vmatmul.bf16.gmra.mxu2 %v6983_v16  ;;  %7097 = vmatmul.bf16.gmra.mxu3 %v6983_v16  ;;  %v15080_v16 = vld [vmem:[%s25547_s5 + $0x2c0] sm:$0xf] }
 0x5b6   : > { %6624 = vmatpush.bf16.msrb.mxu1 %v14917_v24  ;;  %v15081_v52 = vor.u32 %v18486_v6, %v15080_v16  ;;  %v18483_v24 = vld [vmem:[%s25547_s5 + $0x2b4] sm:$0xf]  ;;  %v15238_v16 = vld [vmem:[%s25547_s5 + $0x3b8] sm:$0xf0]  ;;  %v15228_v6 = vld [vmem:[%s25547_s5 + $0x3a0] sm:$0xf] }
 0x5b7   : > { %v15077_v12 = vor.u32 %v18483_v24, %v15074_v42  ;;  %v15229_v1 = vor.u32 %v18515_v13, %v15228_v6  ;;  %v15220_v24 = vld [vmem:[%s25547_s5 + $0x390] sm:$0xf]  ;;  %v18512_v42 = vld [vmem:[%s25547_s5 + $0x394] sm:$0xf] }
 0x5b8   : > { %6607 = vmatpush.bf16.msrb.mxu0 %v14905_v0  ;;  %v15056_v0 = vld [vmem:[%s25547_s5 + $0x290] sm:$0xf]  ;;  %v15225_v55 = vor.u32 %v18512_v42, %v15222_v37 }
 0x5ba   : > { %6625 = vmatpush.bf16.msrb.mxu1 %v14909_v46  ;;  %v18480_v46 = vld [vmem:[%s25547_s5 + $0x294] sm:$0xf0] }
 0x5bb   : > { %v15057_v39 = vor.u32 %v18480_v46, %v15056_v0  ;;  %v15214_v0 = vld [vmem:[%s25547_s5 + $0x388] sm:$0xf0] }
 0x5bc   : > { %6608 = vmatpush.bf16.msrb.mxu0 %v14897_v5  ;;  %v15061_v5 = vor.u32 %v18479_v28, %v15058_v19 }
 0x5be   : > { %6626 = vmatpush.bf16.msrb.mxu1 %v14901_v10  ;;  %v18477_v10 = vld [vmem:[%s25547_s5 + $0x284] sm:$0xf] }
 0x5bf   : > { %v15053_v41 = vor.u32 %v18477_v10, %v15050_v48 }
 0x5c0   : > { %6609 = vmatpush.bf16.msrb.mxu0 %v14889_v38  ;;  %v15273_v38 = vor.u32 %v18524_v33, %v15270_v9 }
 0x5c2   : > { %6627 = vmatpush.bf16.msrb.mxu1 %v14893_v53  ;;  %v18522_v53 = vld [vmem:[%s25547_s5 + $0x3e4] sm:$0xf] }
 0x5c3   : > { %6464 = vmatmul.bf16.vlgmr.msra.gmra.mxu0 %v6373_v62  ;;  %6482 = vmatmul.bf16.vlgmr.msra.gmra.mxu1 %v6373_v62  ;;  %v15262_v62 = vld [vmem:[%s25547_s5 + $0x3e8] sm:$0xf0] }
 0x5c4   : > { %6920 = vmatpush.bf16.msra.mxu0 %v15105_v47  ;;  %v15265_v32 = vor.u32 %v18522_v53, %v15262_v62  ;;  %v18520_v47 = vld [vmem:[%s25547_s5 + $0x3d4] sm:$0xf]  ;;  %v7149_v53 = vrot.slane %v7147_v51, 1 }
 0x5c5   : > { %7392 = vmatmul.bf16.vlgmr.msra.gmra.mxu2 %v7301_v21  ;;  %7410 = vmatmul.bf16.vlgmr.msra.gmra.mxu3 %v7301_v21  ;;  %v18521_v21 = vld [vmem:[%s25547_s5 + $0x3d4] sm:$0xf0]  ;;  %v15257_v2 = vor.u32 %v18520_v47, %v15254_v26 }
 0x5c6   : > { %6938 = vmatpush.bf16.msra.mxu1 %v15109_v3  ;;  %v15253_v23 = vor.u32 %v18521_v21, %v15252_v30  ;;  %v15244_v3 = vld [vmem:[%s25547_s5 + $0x3c0] sm:$0xf] }
 0x5c7   : > { %v15245_v61 = vor.u32 %v18519_v25, %v15244_v3  ;;  %v7151_v25 = vshrl.u32 %v22182_v58, 16 }
 0x5c8   : > { %6921 = vmatpush.bf16.msra.mxu0 %v15097_v22  ;;  %v18518_v22 = vld [vmem:[%s25547_s5 + $0x3c4] sm:$0xf] }
 0x5c9   : > { %v7153_v60 = vor.u32 %v7151_v25, %v7149_v53  ;;  %v6008_v25 = vlaneseq }
 0x5ca   : > { %6939 = vmatpush.bf16.msra.mxu1 %v15101_v59  ;;  %v15246_v59 = vld [vmem:[%s25547_s5 + $0x3c8] sm:$0xf0] }
 0x5cb   : > { %v15249_v45 = vor.u32 %v18518_v22, %v15246_v59 }
 0x5cc   : > { %6922 = vmatpush.bf16.msra.mxu0 %v15089_v14  ;;  %v18516_v14 = vld [vmem:[%s25547_s5 + $0x3b4] sm:$0xf] }
 0x5cd   : > { %v15241_v44 = vor.u32 %v18516_v14, %v15238_v16 }
 0x5ce   : > { %6940 = vmatpush.bf16.msra.mxu1 %v15093_v50  ;;  %v15237_v50 = vor.u32 %v18517_v54, %v15236_v40 }
 0x5d0   : > { %6923 = vmatpush.bf16.msra.mxu0 %v15081_v52  ;;  %v18514_v52 = vld [vmem:[%s25547_s5 + $0x3a4] sm:$0xf] }
 0x5d2   : > { %6941 = vmatpush.bf16.msra.mxu1 %v15085_v35  ;;  %v15230_v35 = vld [vmem:[%s25547_s5 + $0x3a8] sm:$0xf0] }
 0x5d3   : > { %6469 = vmatmul.bf16.gmra.mxu0 %v6372_v27  ;;  %6487 = vmatmul.bf16.gmra.mxu1 %v6372_v27  ;;  %v15268_v27 = vld [vmem:[%s25547_s5 + $0x3f0] sm:$0xf]  ;;  %v15233_v57 = vor.u32 %v18514_v52, %v15230_v35 }
 0x5d4   : > { %6924 = vmatpush.bf16.msra.mxu0 %v15073_v34  ;;  %v18513_v34 = vld [vmem:[%s25547_s5 + $0x394] sm:$0xf0] }
 0x5d5   : > { %7397 = vmatmul.bf16.gmra.mxu2 %v7300_v4  ;;  %7415 = vmatmul.bf16.gmra.mxu3 %v7300_v4  ;;  %v15269_v4 = vor.u32 %v18525_v11, %v15268_v27  ;;  %v15221_v20 = vor.u32 %v18513_v34, %v15220_v24 }
 0x5d6   : > { %6942 = vmatpush.bf16.msra.mxu1 %v15077_v12  ;;  %v15212_v12 = vld [vmem:[%s25547_s5 + $0x380] sm:$0xf] }
 0x5d7   : > { %v15213_v46 = vor.u32 %v18511_v31, %v15212_v12 }
 0x5d8   : > { %6925 = vmatpush.bf16.msra.mxu0 %v15065_v15  ;;  %v18510_v15 = vld [vmem:[%s25547_s5 + $0x384] sm:$0xf] }
 0x5d9   : > { %v15217_v19 = vor.u32 %v18510_v15, %v15214_v0 }
 0x5da   : > { %6943 = vmatpush.bf16.msra.mxu1 %v15069_v7 }
 0x5dc   : > { %6926 = vmatpush.bf16.msra.mxu0 %v15057_v39 }
 0x5de   : > { %6944 = vmatpush.bf16.msra.mxu1 %v15061_v5 }
 0x5e0   : > { %6927 = vmatpush.bf16.msra.mxu0 %v15049_v63 }
 0x5e2   : > { %6945 = vmatpush.bf16.msra.mxu1 %v15053_v41 }
 0x5e3   : > { %6610 = vmatmul.bf16.vlgmr.msrb.gmra.mxu0 %v6518_v36  ;;  %6628 = vmatmul.bf16.vlgmr.msrb.gmra.mxu1 %v6518_v36 }
 0x5e4   : > { %7236 = vmatpush.bf16.msrb.mxu0 %v15269_v4 }
 0x5e6   : > { %7254 = vmatpush.bf16.msrb.mxu1 %v15273_v38 }
 0x5e8   : > { %7237 = vmatpush.bf16.msrb.mxu0 %v15261_v49 }
 0x5ea   : > { %7255 = vmatpush.bf16.msrb.mxu1 %v15265_v32 }
 0x5ec   : > { %7238 = vmatpush.bf16.msrb.mxu0 %v15253_v23 }
 0x5ee   : > { %7256 = vmatpush.bf16.msrb.mxu1 %v15257_v2 }
 0x5f0   : > { %7239 = vmatpush.bf16.msrb.mxu0 %v15245_v61 }
 0x5f2   : > { %7257 = vmatpush.bf16.msrb.mxu1 %v15249_v45 }
 0x5f3   : > { %6615 = vmatmul.bf16.gmra.mxu0 %v6519_v18  ;;  %6633 = vmatmul.bf16.gmra.mxu1 %v6519_v18 }
 0x5f4   : > { %7240 = vmatpush.bf16.msrb.mxu0 %v15237_v50 }
 0x5f6   : > { %7258 = vmatpush.bf16.msrb.mxu1 %v15241_v44 }
 0x5f8   : > { %7241 = vmatpush.bf16.msrb.mxu0 %v15229_v1 }
 0x5fa   : > { %7259 = vmatpush.bf16.msrb.mxu1 %v15233_v57 }
 0x5fc   : > { %7242 = vmatpush.bf16.msrb.mxu0 %v15221_v20 }
 0x5fe   : > { %7260 = vmatpush.bf16.msrb.mxu1 %v15225_v55 }
 0x600   : > { %v6204_v7 = vpop.f32.mrf.mxu0  ;;  %v6222_v28 = vpop.f32.mrf.mxu1  ;;  %7243 = vmatpush.bf16.msrb.mxu0 %v15213_v46 }
 0x602   : > { %7261 = vmatpush.bf16.msrb.mxu1 %v15217_v19 }
 0x603   : > { %6928 = vmatmul.bf16.vlgmr.msra.gmra.mxu0 %v21916_v43  ;;  %6946 = vmatmul.bf16.vlgmr.msra.gmra.mxu1 %v21916_v43  ;;  %v19185_v43 = vld [vmem:[#allocation7 + $0x8] sm:$0xff]  }
 0x604   : > { %v7142_v36 = vshll.u32 %v19185_v43, 16  ;;  %v7140_v8 = vshrl.u32 %v19185_v43, 16 }
 0x606   : > { %v7144_v9 = vrot.slane %v7142_v36, 1 }
 0x608   : > { %v22398_v39 = vpop.f32.mrf.mxu0  ;;  %v22400_v56 = vpop.f32.mrf.mxu1  ;;  %v7145_v38 = vor.u32 %v7144_v9, %v7140_v8 }
 0x609   : > { %v22402_v17 = vpop.f32.mrf.mxu2  ;;  %v22404_v5 = vpop.f32.mrf.mxu3 }
 0x60a   : > { %v7150_v47 = vsel %vm1427_vm1, %v7145_v38, %v7149_v53 }
 0x610   : > { %v6209_v10 = vpop.f32.mrf.mxu0  ;;  %v6227_v48 = vpop.f32.mrf.mxu1 }
 0x611   : > { %v22406_v63 = vpop.f32.mrf.mxu2  ;;  %v22408_v41 = vpop.f32.mrf.mxu3 }
 0x613   : > { %6933 = vmatmul.bf16.gmra.mxu0 %v21894_v29  ;;  %6951 = vmatmul.bf16.gmra.mxu1 %v21894_v29 }
 0x618   : > { %v6211_v27 = vpop.f32.mrf.mxu0  ;;  %v6229_v11 = vpop.f32.mrf.mxu1 }
 0x619   : > { %v22412_v33 = vpop.f32.mrf.mxu2  ;;  %v22414_v4 = vpop.f32.mrf.mxu3 }
 0x620   : > { %v6323_v62 = vpop.f32.mrf.mxu0  ;;  %v6341_v49 = vpop.f32.mrf.mxu1 }
 0x621   : > { %v6324_v32 = vadd.f32 %v6323_v62, %v6204_v7  ;;  %v6342_v30 = vadd.f32 %v6341_v49, %v6222_v28  ;;  %v6788_v21 = vpop.f32.mrf.mxu2  ;;  %v6806_v29 = vpop.f32.mrf.mxu3 }
 0x623   : > { %7244 = vmatmul.bf16.vlgmr.msrb.gmra.mxu0 %v7150_v47  ;;  %7262 = vmatmul.bf16.vlgmr.msrb.gmra.mxu1 %v7150_v47 }
 0x628   : > { %v6325_v23 = vpop.f32.mrf.mxu0  ;;  %v6343_v26 = vpop.f32.mrf.mxu1 }
 0x629   : > { %v22418_v2 = vpop.f32.mrf.mxu2  ;;  %v22420_v3 = vpop.f32.mrf.mxu3  ;;  %v6326_v49 = vadd.f32 %v6325_v23, %v22398_v39  ;;  %v6009_v39 = vshrl.u32 %v6008_v25, 7 }
 0x62b   : > { %v6010_v23 = vadd.s32 8, %v6009_v39 }
 0x630   : > { %v6328_v22 = vpop.f32.mrf.mxu0  ;;  %v6346_v59 = vpop.f32.mrf.mxu1 }
 0x631   : > { %v6329_v61 = vadd.f32 %v6328_v22, %v6209_v10  ;;  %v6347_v45 = vadd.f32 %v6346_v59, %v6227_v48  ;;  %v22423_v18 = vpop.f32.mrf.mxu2  ;;  %v22425_v40 = vpop.f32.mrf.mxu3 }
 0x633   : > { %7249 = vmatmul.bf16.gmra.mxu0 %v7153_v60  ;;  %7267 = vmatmul.bf16.gmra.mxu1 %v7153_v60 }
 0x638   : > { %v6330_v54 = vpop.f32.mrf.mxu0  ;;  %v6348_v14 = vpop.f32.mrf.mxu1 }
 0x639   : > { %v22427_v50 = vpop.f32.mrf.mxu2  ;;  %v22429_v16 = vpop.f32.mrf.mxu3 }
 0x640   : > { %v6465_v6 = vpop.f32.mrf.mxu0  ;;  %v6483_v13 = vpop.f32.mrf.mxu1 }
 0x641   : > { %v6492_v58 = vadd.f32 %v6465_v6, %v6324_v32  ;;  %v6493_v44 = vadd.f32 %v6483_v13, %v6342_v30  ;;  %v7082_v52 = vpop.f32.mrf.mxu2  ;;  %v7100_v35 = vpop.f32.mrf.mxu3  ;;  %v6344_v32 = vadd.f32 %v6343_v26, %v22400_v56  ;;  %v7426_v56 = vld [vmem:[%s25548_s6] sm:$0x3] }
 0x648   : > { %v6467_v1 = vpop.f32.mrf.mxu0  ;;  %v6485_v57 = vpop.f32.mrf.mxu1 }
 0x649   : > { %v7393_v43 = vpop.f32.mrf.mxu2  ;;  %v7411_v36 = vpop.f32.mrf.mxu3  ;;  %v6494_v59 = vadd.f32 %v6467_v1, %v6326_v49  ;;  %v22450_v1 = vperm.slane %v7426_v56, 0 }
 0x650   : > { %v6470_v24 = vpop.f32.mrf.mxu0  ;;  %v6488_v34 = vpop.f32.mrf.mxu1 }
 0x651   : > { %v6496_v42 = vadd.f32 %v6470_v24, %v6329_v61  ;;  %v6497_v20 = vadd.f32 %v6488_v34, %v6347_v45  ;;  %v22431_v8 = vpop.f32.mrf.mxu2  ;;  %v22433_v38 = vpop.f32.mrf.mxu3  ;;  %v6495_v61 = vadd.f32 %v6485_v57, %v6344_v32  ;;  %v22452_v24 = vperm.slane %v7426_v56, 1  ;;  %v15510_v32 = vld [vmem:[%s25549_s7 + $0x1f8] sm:$0xf0]  ;;  %v15438_v56 = vld [vmem:[%s25549_s7 + $0x168] sm:$0xf0] }
 0x658   : > { %v6472_v37 = vpop.f32.mrf.mxu0  ;;  %v6490_v12 = vpop.f32.mrf.mxu1 }
 0x659   : > { %v22439_v60 = vpop.f32.mrf.mxu2  ;;  %v22441_v22 = vpop.f32.mrf.mxu3 }
 0x660   : > { %v6611_v31 = vpop.f32.mrf.mxu0  ;;  %v6629_v55 = vpop.f32.mrf.mxu1 }
 0x661   : > { %v6638_v53 = vadd.f32 %v6611_v31, %v6492_v58  ;;  %v6639_v62 = vadd.f32 %v6629_v55, %v6493_v44  ;;  %v7400_v34 = vpop.f32.mrf.mxu2  ;;  %v7418_v37 = vpop.f32.mrf.mxu3 }
 0x662   : > { %v15500_v34 = vld [vmem:[%s25549_s7 + $0x1e0] sm:$0xf]  ;;  %v18603_v37 = vld [vmem:[%s25549_s7 + $0x1e4] sm:$0xf0] }
 0x663   : > { %v6808_v29 = vadd.f32 %v22402_v17, %v6638_v53  ;;  %v6809_v47 = vadd.f32 %v22404_v5, %v6639_v62  ;;  %v18588_v53 = vld [vmem:[%s25549_s7 + $0x174] sm:$0xf] }
 0x668   : > { %v6613_v15 = vpop.f32.mrf.mxu0  ;;  %v6631_v0 = vpop.f32.mrf.mxu1 }
 0x669   : > { %v6640_v14 = vadd.f32 %v6613_v15, %v6494_v59  ;;  %v6641_v6 = vadd.f32 %v6631_v0, %v6495_v61  ;;  %v6023_v15 = vand.u32 7, %v6010_v23  ;;  %v18589_v59 = vld [vmem:[%s25549_s7 + $0x174] sm:$0xf0]  ;;  %v15508_v61 = vld [vmem:[%s25549_s7 + $0x1f0] sm:$0xf] }
 0x66b   : > { %v6810_v13 = vadd.f32 %v22406_v63, %v6640_v14  ;;  %v6811_v58 = vadd.f32 %v22408_v41, %v6641_v6  ;;  %v22454_v63 = vadd.s32 16, %v6009_v39  ;;  %vm22466_vm6 = vcmp.lt.s32.totalorder %v6023_v15, 3  ;;  %v18605_v6 = vld [vmem:[%s25549_s7 + $0x1f4] sm:$0xf0] }
 0x670   : > { %v6616_v46 = vpop.f32.mrf.mxu0  ;;  %v6634_v7 = vpop.f32.mrf.mxu1 }
 0x671   : > { %v6642_v26 = vadd.f32 %v6616_v46, %v6496_v42  ;;  %v6643_v12 = vadd.f32 %v6634_v7, %v6497_v20 }
 0x673   : > { %v6812_v41 = vadd.f32 %v22412_v33, %v6642_v26  ;;  %v6030_v33 = vand.u32 7, %v22454_v63 }
 0x675   : > { %vm22620_vm8 = vcmp.lt.s32.totalorder %v6030_v33, 3  ;;  %v18596_v33 = vld [vmem:[%s25549_s7 + $0x1b4] sm:$0xf] }
 0x678   : > { %v6618_v28 = vpop.f32.mrf.mxu0  ;;  %v6636_v19 = vpop.f32.mrf.mxu1 }
 0x679   : > { %v6813_v28 = vadd.f32 %v22414_v4, %v6643_v12  ;;  %v18584_v12 = vld [vmem:[%s25549_s7 + $0x154] sm:$0xf] }
 0x680   : > { %v6929_v10 = vpop.f32.mrf.mxu0  ;;  %v6947_v48 = vpop.f32.mrf.mxu1 }
 0x681   : > { %v6956_v45 = vadd.f32 %v6929_v10, %v6808_v29  ;;  %v6957_v54 = vadd.f32 %v6947_v48, %v6809_v47 }
 0x683   : > { %v7102_v17 = vadd.f32 %v22418_v2, %v6956_v45  ;;  %v7103_v5 = vadd.f32 %v22420_v3, %v6957_v54  ;;  %v6016_v3 = vand.u32 7, %v6009_v39  ;;  %v18586_v39 = vld [vmem:[%s25549_s7 + $0x164] sm:$0xf] }
 0x685   : > { %vm22460_vm5 = vcmp.lt.s32.totalorder %v6016_v3, 3  ;;  %v15501_v3 = vor.u32 %v18603_v37, %v15500_v34  ;;  %v18581_v37 = vld [vmem:[%s25549_s7 + $0x134] sm:$0xf0] }
 0x688   : > { %v6931_v27 = vpop.f32.mrf.mxu0  ;;  %v6949_v11 = vpop.f32.mrf.mxu1 }
 0x689   : > { %v6958_v2 = vadd.f32 %v6931_v27, %v6810_v13  ;;  %v6959_v31 = vadd.f32 %v6949_v11, %v6811_v58  ;;  %v15436_v58 = vld [vmem:[%s25549_s7 + $0x160] sm:$0xf] }
 0x68b   : > { %v7104_v20 = vadd.f32 %v22423_v18, %v6958_v2  ;;  %v7105_v7 = vadd.f32 %v22425_v40, %v6959_v31  ;;  %v15446_v18 = vld [vmem:[%s25549_s7 + $0x178] sm:$0xf0]  ;;  %v18604_v40 = vld [vmem:[%s25549_s7 + $0x1f4] sm:$0xf] }
 0x68c   : > { %v15449_v47 = vor.u32 %v18588_v53, %v15446_v18  ;;  %v15513_v25 = vor.u32 %v18604_v40, %v15510_v32 }
 0x68e   : > { %7830 = vmatpush.bf16.msrb.mxu2 %v15449_v47  ;;  %7848 = vmatpush.bf16.msrb.mxu3 %v15513_v25 }
 0x690   : > { %v6934_v9 = vpop.f32.mrf.mxu0  ;;  %v6952_v51 = vpop.f32.mrf.mxu1 }
 0x691   : > { %v6961_v27 = vadd.f32 %v6952_v51, %v6813_v28  ;;  %v15428_v28 = vld [vmem:[%s25549_s7 + $0x150] sm:$0xf] }
 0x698   : > { %v6936_v30 = vpop.f32.mrf.mxu0  ;;  %v6954_v21 = vpop.f32.mrf.mxu1 }
 0x699   : > { %v15444_v30 = vld [vmem:[%s25549_s7 + $0x170] sm:$0xf] }
 0x69a   : > { %v15445_v14 = vor.u32 %v18589_v59, %v15444_v30 }
 0x69c   : > { %7794 = vmatpush.bf16.msra.mxu0 %v15445_v14 }
 0x6a0   : > { %v7245_v44 = vpop.f32.mrf.mxu0  ;;  %v7263_v52 = vpop.f32.mrf.mxu1 }
 0x6a1   : > { %v7272_v35 = vadd.f32 %v7245_v44, %v7102_v17  ;;  %v7273_v57 = vadd.f32 %v7263_v52, %v7103_v5  ;;  %v18602_v17 = vld [vmem:[%s25549_s7 + $0x1e4] sm:$0xf]  ;;  %v15502_v5 = vld [vmem:[%s25549_s7 + $0x1e8] sm:$0xf0]  ;;  %v18587_v44 = vld [vmem:[%s25549_s7 + $0x164] sm:$0xf0] }
 0x6a2   : > { %v15505_v13 = vor.u32 %v18602_v17, %v15502_v5  ;;  %v15414_v5 = vld [vmem:[%s25549_s7 + $0x138] sm:$0xf0] }
 0x6a3   : > { %v7420_v55 = vadd.f32 %v7393_v43, %v7272_v35  ;;  %v7421_v42 = vadd.f32 %v7411_v36, %v7273_v57  ;;  %v6960_v36 = vadd.f32 %v6934_v9, %v6812_v41  ;;  %v7107_v35 = vadd.f32 %v22429_v16, %v6961_v27  ;;  %v18600_v16 = vld [vmem:[%s25549_s7 + $0x1d4] sm:$0xf]  ;;  %v15492_v27 = vld [vmem:[%s25549_s7 + $0x1d0] sm:$0xf]  ;;  %v18887_v43 = vld [vmem:[%s25551_s9 + $0x1b8] sm:$0xff] }
 0x6a4   : > { %v15437_v57 = vor.u32 %v18587_v44, %v15436_v58  ;;  %7849 = vmatpush.bf16.msrb.mxu3 %v15505_v13  ;;  %v15478_v44 = vld [vmem:[%s25549_s7 + $0x1b8] sm:$0xf0] }
 0x6a5   : > { %v7432_v0 = vadd.f32 %v22450_v1, %v7420_v55  ;;  %v7433_v46 = vadd.f32 %v22452_v24, %v7421_v42  ;;  %v7106_v52 = vadd.f32 %v22427_v50, %v6960_v36  ;;  %v15430_v50 = vld [vmem:[%s25549_s7 + $0x158] sm:$0xf0]  ;;  %v19233_v55 = vld [vmem:[#allocation3] sm:$0xff]  ;;  %v15481_v34 = vor.u32 %v18596_v33, %v15478_v44 }
 0x6a6   : > { %v22548_v42 = vpack.c.bf16 %v19233_v55, %v19233_v55  ;;  %7795 = vmatpush.bf16.msra.mxu0 %v15437_v57  ;;  %v18572_v44 = vld [vmem:[%s25549_s7 + $0xf4] sm:$0xf] }
 0x6a7   : > { %v7438_v10 = vmax.f32 %v7432_v0, 0.0  ;;  %v7439_v48 = vmax.f32 %v7433_v46, 0.0  ;;  %v15433_v0 = vor.u32 %v18584_v12, %v15430_v50  ;;  %v15494_v46 = vld [vmem:[%s25549_s7 + $0x1d8] sm:$0xf0]  ;;  %v15476_v12 = vld [vmem:[%s25549_s7 + $0x1b0] sm:$0xf] }
 0x6a8   : > { %v7247_v11 = vpop.f32.mrf.mxu0  ;;  %v7265_v4 = vpop.f32.mrf.mxu1  ;;  %v15497_v18 = vor.u32 %v18600_v16, %v15494_v46  ;;  %7509 = vst [vmem:[#allocation9] sm:$0xff] %v22548_v42  ;;  %v18597_v50 = vld [vmem:[%s25549_s7 + $0x1b4] sm:$0xf0]  ;;  %v18578_v16 = vld [vmem:[%s25549_s7 + $0x124] sm:$0xf] }
 0x6a9   : > { %v22482_v62 = vsel %vm22460_vm5, %v7438_v10, 0.0  ;;  %v22486_v9 = vsel %vm22460_vm5, %v7439_v48, 0.0  ;;  %v7274_v51 = vadd.f32 %v7247_v11, %v7104_v20  ;;  %v7275_v49 = vadd.f32 %v7265_v4, %v7105_v7  ;;  %v18585_v20 = vld [vmem:[%s25549_s7 + $0x154] sm:$0xf0]  ;;  %7513 = vst [vmem:[#allocation9 + $0x20] sm:$0xff] %v22548_v42 }
 0x6aa   : > { %v7469_v21 = vrot.slane %v22482_v62, 7  ;;  %v7470_v29 = vrot.slane %v22486_v9, 7  ;;  %v18601_v11 = vld [vmem:[%s25549_s7 + $0x1d4] sm:$0xf0]  ;;  %v15429_v40 = vor.u32 %v18585_v20, %v15428_v28  ;;  %7850 = vmatpush.bf16.msrb.mxu3 %v15497_v18  ;;  %v15477_v55 = vor.u32 %v18597_v50, %v15476_v12  ;;  %v15398_v18 = vld [vmem:[%s25549_s7 + $0x118] sm:$0xf0] }
 0x6ab   : > { %v7422_v45 = vadd.f32 %v22431_v8, %v7274_v51  ;;  %v7423_v54 = vadd.f32 %v22433_v38, %v7275_v49  ;;  %v15509_v8 = vor.u32 %v18605_v6, %v15508_v61  ;;  %v15441_v38 = vor.u32 %v18586_v39, %v15438_v56  ;;  %v18582_v51 = vld [vmem:[%s25549_s7 + $0x144] sm:$0xf]  ;;  %v15422_v49 = vld [vmem:[%s25549_s7 + $0x148] sm:$0xf0]  ;;  %v15420_v6 = vld [vmem:[%s25549_s7 + $0x140] sm:$0xf] }
 0x6ac   : > { %7485 = vst [vmem:[#allocation8 + $0x58] sm:$0xfe] %v7469_v21  ;;  %v15493_v25 = vor.u32 %v18601_v11, %v15492_v27  ;;  %v15425_v59 = vor.u32 %v18582_v51, %v15422_v49  ;;  %v18598_v61 = vld [vmem:[%s25549_s7 + $0x1c4] sm:$0xf]  ;;  %v18583_v39 = vld [vmem:[%s25549_s7 + $0x144] sm:$0xf0]  ;;  %7796 = vmatpush.bf16.msra.mxu0 %v15429_v40 }
 0x6ad   : > { %7486 = vst [vmem:[#allocation8 + $0x18] sm:$0xfe] %v7470_v29  ;;  %v7434_v23 = vadd.f32 %v22450_v1, %v7422_v45  ;;  %v7435_v26 = vadd.f32 %v22452_v24, %v7423_v54  ;;  %7812 = vmatpush.bf16.msra.mxu1 %v15509_v8  ;;  %7831 = vmatpush.bf16.msrb.mxu2 %v15441_v38  ;;  %v15486_v45 = vld [vmem:[%s25549_s7 + $0x1c8] sm:$0xf0]  ;;  %v18599_v8 = vld [vmem:[%s25549_s7 + $0x1c4] sm:$0xf0] }
 0x6ae   : > { %v15489_v14 = vor.u32 %v18598_v61, %v15486_v45  ;;  %v15421_v17 = vor.u32 %v18583_v39, %v15420_v6  ;;  %v18576_v11 = vld [vmem:[%s25549_s7 + $0x114] sm:$0xf]  ;;  %v15462_v51 = vld [vmem:[%s25549_s7 + $0x198] sm:$0xf0]  ;;  %v15396_v49 = vld [vmem:[%s25549_s7 + $0x110] sm:$0xf] }
 0x6af   : > { %v7440_v2 = vmax.f32 %v7434_v23, 0.0  ;;  %v7441_v31 = vmax.f32 %v7435_v26, 0.0  ;;  %v18592_v40 = vld [vmem:[%s25549_s7 + $0x194] sm:$0xf]  ;;  %v18574_v61 = vld [vmem:[%s25549_s7 + $0x104] sm:$0xf] }
 0x6b0   : > { %v7250_v15 = vpop.f32.mrf.mxu0  ;;  %v7268_v41 = vpop.f32.mrf.mxu1  ;;  %7851 = vmatpush.bf16.msrb.mxu3 %v15489_v14  ;;  %7797 = vmatpush.bf16.msra.mxu0 %v15421_v17  ;;  %v15390_v45 = vld [vmem:[%s25549_s7 + $0x108] sm:$0xf0]  ;;  %v15388_v6 = vld [vmem:[%s25549_s7 + $0x100] sm:$0xf]  ;;  %v18575_v39 = vld [vmem:[%s25549_s7 + $0x104] sm:$0xf0] }
 0x6b1   : > { %v22561_v7 = vsel %vm22466_vm6, %v7440_v2, 0.0  ;;  %v22565_v10 = vsel %vm22466_vm6, %v7441_v31, 0.0  ;;  %v7276_v48 = vadd.f32 %v7250_v15, %v7106_v52  ;;  %v7277_v36 = vadd.f32 %v7268_v41, %v7107_v35  ;;  %7813 = vmatpush.bf16.msra.mxu1 %v15501_v3  ;;  %7832 = vmatpush.bf16.msrb.mxu2 %v15433_v0  ;;  %v15412_v52 = vld [vmem:[%s25549_s7 + $0x130] sm:$0xf]  ;;  %v15406_v15 = vld [vmem:[%s25549_s7 + $0x128] sm:$0xf0] }
 0x6b2   : > { %v7471_v4 = vrot.slane %v22561_v7, 7  ;;  %v7473_v53 = vrot.slane %v22565_v10, 7  ;;  %v15413_v3 = vor.u32 %v18581_v37, %v15412_v52  ;;  %v18594_v41 = vld [vmem:[%s25549_s7 + $0x1a4] sm:$0xf]  ;;  %v15470_v0 = vld [vmem:[%s25549_s7 + $0x1a8] sm:$0xf0]  ;;  %v15409_v20 = vor.u32 %v18578_v16, %v15406_v15 }
 0x6b3   : > { %v7493_v32 = vld [vmem:[#allocation8 + $0x58] sm:$0xff]  ;;  %v7424_v30 = vadd.f32 %v22439_v60, %v7276_v48  ;;  %v7425_v47 = vadd.f32 %v22441_v22, %v7277_v36  ;;  %v15404_v48 = vld [vmem:[%s25549_s7 + $0x120] sm:$0xf]  ;;  %v18579_v36 = vld [vmem:[%s25549_s7 + $0x124] sm:$0xf0]  ;;  %v15473_v27 = vor.u32 %v18594_v41, %v15470_v0  ;;  %v15389_v33 = vor.u32 %v18575_v39, %v15388_v6  ;;  %7514 = vst [vmem:[#allocation9 + $0x28] sm:$0xff] %v22548_v42 }
 0x6b4   : > { %v7494_v54 = vld [vmem:[#allocation8 + $0x18] sm:$0xff]  ;;  %v7472_v60 = vsel %vm7468_vm7, %v7469_v21, %v7471_v4  ;;  %v7474_v22 = vsel %vm7468_vm7, %v7470_v29, %v7473_v53  ;;  %v15484_v29 = vld [vmem:[%s25549_s7 + $0x1c0] sm:$0xf]  ;;  %7852 = vmatpush.bf16.msrb.mxu3 %v15481_v34  ;;  %v18595_v10 = vld [vmem:[%s25549_s7 + $0x1a4] sm:$0xf0]  ;;  %7798 = vmatpush.bf16.msra.mxu0 %v15413_v3  ;;  %10263 = vst [vmem:[#allocation11] sm:$0xff] %v22548_v42 }
 0x6b5   : > { %v22606_v62 = vpack.c.bf16 %v7494_v54, %v7493_v32  ;;  %v22608_v21 = vpack.c.bf16 %v7474_v22, %v7472_v60  ;;  %v7436_v56 = vadd.f32 %v22450_v1, %v7424_v30  ;;  %v7437_v9 = vadd.f32 %v22452_v24, %v7425_v47  ;;  %7814 = vmatpush.bf16.msra.mxu1 %v15493_v25  ;;  %v18580_v24 = vld [vmem:[%s25549_s7 + $0x134] sm:$0xf]  ;;  %v15468_v7 = vld [vmem:[%s25549_s7 + $0x1a0] sm:$0xf]  ;;  %v18577_v32 = vld [vmem:[%s25549_s7 + $0x114] sm:$0xf0] }
 0x6b6   : > { %v15485_v1 = vor.u32 %v18599_v8, %v15484_v29  ;;  %7833 = vmatpush.bf16.msrb.mxu2 %v15425_v59  ;;  %v15417_v58 = vor.u32 %v18580_v24, %v15414_v5  ;;  %v15401_v30 = vor.u32 %v18576_v11, %v15398_v18  ;;  %v15465_v47 = vor.u32 %v18592_v40, %v15462_v51  ;;  %v15460_v25 = vld [vmem:[%s25549_s7 + $0x190] sm:$0xf]  ;;  %v18593_v59 = vld [vmem:[%s25549_s7 + $0x194] sm:$0xf0]  ;;  %v18590_v54 = vld [vmem:[%s25549_s7 + $0x184] sm:$0xf] }
 0x6b7   : > { %7510 = vst [vmem:[#allocation9 + $0x8] sm:$0xff] %v22606_v62  ;;  %v7442_v23 = vmax.f32 %v7436_v56, 0.0  ;;  %v7443_v63 = vmax.f32 %v7437_v9, 0.0  ;;  %v15454_v60 = vld [vmem:[%s25549_s7 + $0x188] sm:$0xf0]  ;;  %v15397_v22 = vor.u32 %v18577_v32, %v15396_v49  ;;  %v15461_v14 = vor.u32 %v18593_v59, %v15460_v25  ;;  %v18850_v38 = vld [vmem:[%s25551_s9 + $0x90] sm:$0xff] }
 0x6b8   : > { %7511 = vst [vmem:[#allocation9 + $0x10] sm:$0xff] %v22608_v21  ;;  %v7252_v26 = vpop.f32.mrf.mxu0  ;;  %v7270_v13 = vpop.f32.mrf.mxu1  ;;  %7853 = vmatpush.bf16.msrb.mxu3 %v15473_v27  ;;  %v15452_v56 = vld [vmem:[%s25549_s7 + $0x180] sm:$0xf]  ;;  %v18591_v9 = vld [vmem:[%s25549_s7 + $0x184] sm:$0xf0]  ;;  %v15393_v8 = vor.u32 %v18574_v61, %v15390_v45  ;;  %v15457_v17 = vor.u32 %v18590_v54, %v15454_v60  ;;  %v22734_v24 = vunpack.c.l.b16 %v22606_v62 }
 0x6b9   : > { %v7460_v35 = vsel %vm22620_vm8, %v7442_v23, 0.0  ;;  %v7461_v57 = vsel %vm22620_vm8, %v7443_v63, 0.0  ;;  %7815 = vmatpush.bf16.msra.mxu1 %v15485_v1  ;;  %v7588_v1 = vunpack.c.l.b16 %v22548_v42  ;;  %v18556_v5 = vld [vmem:[%s25549_s7 + $0x74] sm:$0xf]  ;;  %v15574_v23 = vld [vmem:[%s25549_s7 + $0x78] sm:$0xf0]  ;;  %v7589_v26 = vunpack.c.h.b16 %v22548_v42 }
 0x6ba   : > { %v7475_v2 = vrot.slane %v7460_v35, 7  ;;  %v7477_v31 = vrot.slane %v7461_v57, 7  ;;  %7834 = vmatpush.bf16.msrb.mxu2 %v15417_v58  ;;  %v22744_v13 = vunpack.c.h.b16 %v22606_v62  ;;  %v15577_v58 = vor.u32 %v18556_v5, %v15574_v23  ;;  %v15638_v52 = vld [vmem:[%s25549_s7 + $0xf8] sm:$0xf0]  ;;  %v15572_v37 = vld [vmem:[%s25549_s7 + $0x70] sm:$0xf] }
 0x6bb   : > { %v15453_v57 = vor.u32 %v18591_v9, %v15452_v56  ;;  %v15641_v34 = vor.u32 %v18572_v44, %v15638_v52  ;;  %v18557_v62 = vld [vmem:[%s25549_s7 + $0x74] sm:$0xf0]  ;;  %v18554_v3 = vld [vmem:[%s25549_s7 + $0x64] sm:$0xf]  ;;  %v15566_v16 = vld [vmem:[%s25549_s7 + $0x68] sm:$0xf0]  ;;  %v22774_v15 = vpack.c.b16 %v22734_v24, %v7588_v1  ;;  %v22836_v56 = vunpack.c.l.b16 %v22608_v21 }
 0x6bc   : > { %v7476_v46 = vsel %vm7468_vm7, %v7471_v4, %v7475_v2  ;;  %v7478_v28 = vsel %vm7468_vm7, %v7473_v53, %v7477_v31  ;;  %v15405_v4 = vor.u32 %v18579_v36, %v15404_v48  ;;  %v15469_v53 = vor.u32 %v18595_v10, %v15468_v7  ;;  %7854 = vmatpush.bf16.msrb.mxu3 %v15465_v47  ;;  %v15636_v2 = vld [vmem:[%s25549_s7 + $0xf0] sm:$0xf]  ;;  %v18573_v31 = vld [vmem:[%s25549_s7 + $0xf4] sm:$0xf0]  ;;  %v15628_v36 = vld [vmem:[%s25549_s7 + $0xe0] sm:$0xf] }
 0x6bd   : > { %7489 = vst [vmem:[#allocation8 + $0x8] sm:$0xf] %v7476_v46  ;;  %7816 = vmatpush.bf16.msra.mxu1 %v15477_v55  ;;  %v15573_v12 = vor.u32 %v18557_v62, %v15572_v37  ;;  %v15637_v50 = vor.u32 %v18573_v31, %v15636_v2  ;;  %v18570_v55 = vld [vmem:[%s25549_s7 + $0xe4] sm:$0xf]  ;;  %v22777_v41 = vpack.c.b16 %v22744_v13, %v7589_v26  ;;  %v15630_v46 = vld [vmem:[%s25549_s7 + $0xe8] sm:$0xf0] }
 0x6be   : > { %7490 = vst [vmem:[#allocation8 + $0x38] sm:$0xf] %v7478_v28  ;;  %7835 = vmatpush.bf16.msrb.mxu2 %v15409_v20  ;;  %7799 = vmatpush.bf16.msra.mxu0 %v15405_v4  ;;  %v15569_v0 = vor.u32 %v18554_v3, %v15566_v16  ;;  %v15564_v28 = vld [vmem:[%s25549_s7 + $0x60] sm:$0xf]  ;;  %v18555_v20 = vld [vmem:[%s25549_s7 + $0x64] sm:$0xf0]  ;;  %v15633_v48 = vor.u32 %v18570_v55, %v15630_v46 }
 0x6bf   : > { %v18571_v7 = vld [vmem:[%s25549_s7 + $0xe4] sm:$0xf0]  ;;  %v18552_v27 = vld [vmem:[%s25549_s7 + $0x54] sm:$0xf]  ;;  %v15565_v10 = vor.u32 %v18555_v20, %v15564_v28  ;;  %v15558_v4 = vld [vmem:[%s25549_s7 + $0x58] sm:$0xf0]  ;;  %v22886_v46 = vpack.c.b16 %v22836_v56, %v22734_v24 }
 0x6c0   : > { %7855 = vmatpush.bf16.msrb.mxu3 %v15457_v17  ;;  %v15629_v11 = vor.u32 %v18571_v7, %v15628_v36  ;;  %v15622_v18 = vld [vmem:[%s25549_s7 + $0xd8] sm:$0xf0]  ;;  %v15556_v40 = vld [vmem:[%s25549_s7 + $0x50] sm:$0xf]  ;;  %v18553_v51 = vld [vmem:[%s25549_s7 + $0x54] sm:$0xf0]  ;;  %v15561_v47 = vor.u32 %v18552_v27, %v15558_v4 }
 0x6c1   : > { %7817 = vmatpush.bf16.msra.mxu1 %v15469_v53  ;;  %v18568_v53 = vld [vmem:[%s25549_s7 + $0xd4] sm:$0xf]  ;;  %v15620_v49 = vld [vmem:[%s25549_s7 + $0xd0] sm:$0xf]  ;;  %v7603_v32 = vshll.u32 %v22774_v15, 16  ;;  %v7601_v23 = vshrl.u32 %v22774_v15, 16 }
 0x6c2   : > { %7836 = vmatpush.bf16.msrb.mxu2 %v15401_v30  ;;  %7800 = vmatpush.bf16.msra.mxu0 %v15397_v22  ;;  %v7615_v30 = vshll.u32 %v22777_v41, 16  ;;  %v15625_v25 = vor.u32 %v18568_v53, %v15622_v18  ;;  %v18569_v59 = vld [vmem:[%s25549_s7 + $0xd4] sm:$0xf0]  ;;  %v18550_v61 = vld [vmem:[%s25549_s7 + $0x44] sm:$0xf]  ;;  %v7613_v44 = vshrl.u32 %v22777_v41, 16 }
 0x6c3   : > { %v15550_v45 = vld [vmem:[%s25549_s7 + $0x48] sm:$0xf0]  ;;  %v18566_v54 = vld [vmem:[%s25549_s7 + $0xc4] sm:$0xf]  ;;  %v15621_v6 = vor.u32 %v18569_v59, %v15620_v49  ;;  %v15548_v39 = vld [vmem:[%s25549_s7 + $0x40] sm:$0xf] }
 0x6c4   : > { %v7497_v29 = vld [vmem:[#allocation8 + $0x8] sm:$0xff]  ;;  %8086 = vmatpush.bf16.msra.mxu3 %v15641_v34  ;;  %v15614_v60 = vld [vmem:[%s25549_s7 + $0xc8] sm:$0xf0]  ;;  %v15612_v1 = vld [vmem:[%s25549_s7 + $0xc0] sm:$0xf]  ;;  %v7617_v52 = vrot.slane %v7615_v30, 1 }
 0x6c5   : > { %v7498_v63 = vld [vmem:[#allocation8 + $0x38] sm:$0xff]  ;;  %7818 = vmatpush.bf16.msra.mxu1 %v15461_v14  ;;  %v15557_v14 = vor.u32 %v18553_v51, %v15556_v40  ;;  %v18551_v17 = vld [vmem:[%s25549_s7 + $0x44] sm:$0xf0]  ;;  %v15542_v37 = vld [vmem:[%s25549_s7 + $0x38] sm:$0xf0] }
 0x6c6   : > { %v7506_v35 = vpack.c.bf16 %v7498_v63, %v7497_v29  ;;  %7837 = vmatpush.bf16.msrb.mxu2 %v15393_v8  ;;  %7801 = vmatpush.bf16.msra.mxu0 %v15389_v33  ;;  %v22839_v29 = vunpack.c.h.b16 %v22608_v21  ;;  %v18567_v5 = vld [vmem:[%s25549_s7 + $0xc4] sm:$0xf0]  ;;  %v7605_v63 = vrot.slane %v7603_v32, 1  ;;  %v15553_v21 = vor.u32 %v18550_v61, %v15550_v45  ;;  %v18548_v34 = vld [vmem:[%s25549_s7 + $0x34] sm:$0xf] }
 0x6c7   : > { %v15617_v33 = vor.u32 %v18566_v54, %v15614_v60  ;;  %v18564_v62 = vld [vmem:[%s25549_s7 + $0xb4] sm:$0xf]  ;;  %v15606_v31 = vld [vmem:[%s25549_s7 + $0xb8] sm:$0xf0]  ;;  %v15540_v3 = vld [vmem:[%s25549_s7 + $0x30] sm:$0xf]  ;;  %v7618_v20 = vor.u32 %v7617_v52, %v7613_v44  ;;  %v15545_v7 = vor.u32 %v18548_v34, %v15542_v37 }
 0x6c8   : > { %7512 = vst [vmem:[#allocation9 + $0x18] sm:$0xff] %v7506_v35  ;;  %8087 = vmatpush.bf16.msra.mxu3 %v15633_v48  ;;  %v15549_v35 = vor.u32 %v18551_v17, %v15548_v39  ;;  %v18549_v16 = vld [vmem:[%s25549_s7 + $0x34] sm:$0xf0]  ;;  %v15604_v55 = vld [vmem:[%s25549_s7 + $0xb0] sm:$0xf]  ;;  %v22894_v36 = vpack.c.b16 %v22839_v29, %v22744_v13  ;;  %v15609_v27 = vor.u32 %v18564_v62, %v15606_v31 }
 0x6c9   : > { %7819 = vmatpush.bf16.msra.mxu1 %v15453_v57  ;;  %v15613_v57 = vor.u32 %v18567_v5, %v15612_v1  ;;  %v15541_v18 = vor.u32 %v18549_v16, %v15540_v3  ;;  %v18562_v51 = vld [vmem:[%s25549_s7 + $0xa4] sm:$0xf]  ;;  %v15598_v49 = vld [vmem:[%s25549_s7 + $0xa8] sm:$0xf0]  ;;  %v15532_v32 = vld [vmem:[%s25549_s7 + $0x20] sm:$0xf] }
 0x6ca   : > { %8068 = vmatpush.bf16.msra.mxu2 %v15577_v58  ;;  %8032 = vmatpush.bf16.msrb.mxu0 %v15573_v12  ;;  %v18547_v30 = vld [vmem:[%s25549_s7 + $0x24] sm:$0xf0]  ;;  %v15601_v61 = vor.u32 %v18562_v51, %v15598_v49  ;;  %v18544_v45 = vld [vmem:[%s25549_s7 + $0x14] sm:$0xf]  ;;  %v15526_v54 = vld [vmem:[%s25549_s7 + $0x18] sm:$0xf0] }
 0x6cb   : > { %v15533_v60 = vor.u32 %v18547_v30, %v15532_v32  ;;  %v15524_v39 = vld [vmem:[%s25549_s7 + $0x10] sm:$0xf]  ;;  %v18561_v17 = vld [vmem:[%s25549_s7 + $0x94] sm:$0xf0]  ;;  %v15529_v1 = vor.u32 %v18544_v45, %v15526_v54  ;;  %v18558_v44 = vld [vmem:[%s25549_s7 + $0x84] sm:$0xf] }
 0x6cc   : > { %8088 = vmatpush.bf16.msra.mxu3 %v15625_v25  ;;  %v18563_v25 = vld [vmem:[%s25549_s7 + $0xa4] sm:$0xf0]  ;;  %v15582_v52 = vld [vmem:[%s25549_s7 + $0x88] sm:$0xf0]  ;;  %v15580_v34 = vld [vmem:[%s25549_s7 + $0x80] sm:$0xf] }
 0x6cd   : > { %8050 = vmatpush.bf16.msrb.mxu1 %v15637_v50  ;;  %v7606_v50 = vor.u32 %v7605_v63, %v7601_v23  ;;  %v18542_v23 = vld [vmem:[%s25549_s7 + $0x4] sm:$0xf]  ;;  %v15518_v63 = vld [vmem:[%s25549_s7 + $0x8] sm:$0xf0]  ;;  %v18559_v37 = vld [vmem:[%s25549_s7 + $0x84] sm:$0xf0]  ;;  %v15585_v31 = vor.u32 %v18558_v44, %v15582_v52 }
 0x6ce   : > { %8069 = vmatpush.bf16.msra.mxu2 %v15569_v0  ;;  %8033 = vmatpush.bf16.msrb.mxu0 %v15565_v10  ;;  %v18565_v0 = vld [vmem:[%s25549_s7 + $0xb4] sm:$0xf0]  ;;  %v18546_v10 = vld [vmem:[%s25549_s7 + $0x24] sm:$0xf]  ;;  %v18620_v3 = vld [vmem:[%s25549_s7 + $0x274] sm:$0xf] }
 0x6cf   : > { %v7550_v22 = vld [vmem:[#allocation9 + $0x18] sm:$0x11]  ;;  %v15605_v40 = vor.u32 %v18565_v0, %v15604_v55  ;;  %v15581_v55 = vor.u32 %v18559_v37, %v15580_v34  ;;  %v15724_v30 = vld [vmem:[%s25549_s7 + $0x260] sm:$0xf]  ;;  %v18635_v45 = vld [vmem:[%s25549_s7 + $0x2e4] sm:$0xf0] }
 0x6d0   : > { %v7594_v9 = vunpack.c.l.b16 %v7550_v22  ;;  %v7595_v8 = vunpack.c.h.b16 %v7550_v22  ;;  %8089 = vmatpush.bf16.msra.mxu3 %v15617_v33  ;;  %v18636_v0 = vld [vmem:[%s25549_s7 + $0x2f4] sm:$0xf]  ;;  %v8104_v54 = vld [vmem:[#allocation9] sm:$0xee]  ;;  %v18617_v44 = vld [vmem:[%s25549_s7 + $0x254] sm:$0xf0] }
 0x6d1   : > { %8051 = vmatpush.bf16.msrb.mxu1 %v15629_v11  ;;  %v15534_v11 = vld [vmem:[%s25549_s7 + $0x28] sm:$0xf0]  ;;  %v15780_v52 = vld [vmem:[%s25549_s7 + $0x2d0] sm:$0xf] }
 0x6d2   : > { %8070 = vmatpush.bf16.msra.mxu2 %v15561_v47  ;;  %v22852_v26 = vpack.c.b16 %v7594_v9, %v22836_v56  ;;  %v22855_v58 = vpack.c.b16 %v7595_v8, %v22839_v29  ;;  %8034 = vmatpush.bf16.msrb.mxu0 %v15557_v14  ;;  %v15596_v47 = vld [vmem:[%s25549_s7 + $0xa0] sm:$0xf]  ;;  %v15537_v59 = vor.u32 %v18546_v10, %v15534_v11  ;;  %v18560_v14 = vld [vmem:[%s25549_s7 + $0x94] sm:$0xf]  ;;  %v18545_v9 = vld [vmem:[%s25549_s7 + $0x14] sm:$0xf0] }
 0x6d3   : > { %v15597_v22 = vor.u32 %v18563_v25, %v15596_v47  ;;  %v15588_v8 = vld [vmem:[%s25549_s7 + $0x90] sm:$0xf]  ;;  %v18637_v11 = vld [vmem:[%s25549_s7 + $0x2f4] sm:$0xf0] }
 0x6d4   : > { %v7608_v12 = vshll.u32 %v22852_v26, 16  ;;  %v7620_v2 = vshll.u32 %v22855_v58, 16  ;;  %8090 = vmatpush.bf16.msra.mxu3 %v15609_v27  ;;  %v15589_v33 = vor.u32 %v18561_v17, %v15588_v8  ;;  %v7624_v62 = vshrl.u32 %v22852_v26, 16  ;;  %v18621_v27 = vld [vmem:[%s25549_s7 + $0x274] sm:$0xf0] }
 0x6d5   : > { %8052 = vmatpush.bf16.msrb.mxu1 %v15621_v6  ;;  %v15590_v6 = vld [vmem:[%s25549_s7 + $0x98] sm:$0xf0]  ;;  %v15796_v10 = vld [vmem:[%s25549_s7 + $0x2f0] sm:$0xf] }
 0x6d6   : > { %8071 = vmatpush.bf16.msra.mxu2 %v15553_v21  ;;  %v22888_v28 = vrot.slane %v7608_v12, 1  ;;  %v22890_v48 = vrot.slane %v7620_v2, 1  ;;  %8035 = vmatpush.bf16.msrb.mxu0 %v15549_v35  ;;  %v15593_v5 = vor.u32 %v18560_v14, %v15590_v6  ;;  %v15525_v21 = vor.u32 %v18545_v9, %v15524_v39  ;;  %v15516_v35 = vld [vmem:[%s25549_s7] sm:$0xf]  ;;  %v18616_v9 = vld [vmem:[%s25549_s7 + $0x254] sm:$0xf] }
 0x6d7   : > { %v7627_v12 = vshrl.u32 %v22855_v58, 16  ;;  %v15521_v2 = vor.u32 %v18542_v23, %v15518_v63  ;;  %v15797_v25 = vor.u32 %v18637_v11, %v15796_v10  ;;  %v15718_v8 = vld [vmem:[%s25549_s7 + $0x258] sm:$0xf0]  ;;  %v18632_v23 = vld [vmem:[%s25549_s7 + $0x2d4] sm:$0xf] }
 0x6d8   : > { %v7611_v4 = vsel %vm1427_vm1, %v7606_v50, %v22888_v28  ;;  %v7623_v53 = vsel %vm1427_vm1, %v7618_v20, %v22890_v48  ;;  %8091 = vmatpush.bf16.msra.mxu3 %v15601_v61  ;;  %v15734_v50 = vld [vmem:[%s25549_s7 + $0x278] sm:$0xf0]  ;;  %v8675_v61 = vld [vmem:[#allocation9 + $0x10] sm:$0xff]  ;;  %v18631_v10 = vld [vmem:[%s25549_s7 + $0x2c4] sm:$0xf0] }
 0x6d9   : > { %8053 = vmatpush.bf16.msrb.mxu1 %v15613_v57  ;;  %7802 = vmatmul.bf16.vlgmr.msra.gmra.mxu0 %v7611_v4  ;;  %v18543_v57 = vld [vmem:[%s25549_s7 + $0x4] sm:$0xf0]  ;;  %v15798_v20 = vld [vmem:[%s25549_s7 + $0x2f8] sm:$0xf0]  ;;  %v7629_v51 = vor.u32 %v7627_v12, %v22890_v48  ;;  %v15737_v49 = vor.u32 %v18620_v3, %v15734_v50  ;;  %v23037_v17 = vunpack.c.l.b16 %v8675_v61  ;;  %v23039_v42 = vunpack.c.h.b16 %v8675_v61 }
 0x6da   : > { %7820 = vmatmul.bf16.vlgmr.msra.gmra.mxu1 %v7623_v53  ;;  %7838 = vmatmul.bf16.vlgmr.msrb.gmra.mxu2 %v7611_v4  ;;  %v15517_v16 = vor.u32 %v18543_v57, %v15516_v35  ;;  %v7626_v4 = vor.u32 %v7624_v62, %v22888_v28  ;;  %v15801_v32 = vor.u32 %v18636_v0, %v15798_v20  ;;  %v15790_v28 = vld [vmem:[%s25549_s7 + $0x2e8] sm:$0xf0]  ;;  %v18619_v48 = vld [vmem:[%s25549_s7 + $0x264] sm:$0xf0]  ;;  %v15782_v63 = vld [vmem:[%s25549_s7 + $0x2d8] sm:$0xf0]  ;;  %v8140_v57 = vunpack.c.h.b16 %v8104_v54 }
 0x6db   : > { %7856 = vmatmul.bf16.vlgmr.msrb.gmra.mxu3 %v7623_v53  ;;  %8072 = vmatpush.bf16.msra.mxu2 %v15545_v7  ;;  %v15732_v7 = vld [vmem:[%s25549_s7 + $0x270] sm:$0xf]  ;;  %v18618_v53 = vld [vmem:[%s25549_s7 + $0x264] sm:$0xf]  ;;  %v18633_v35 = vld [vmem:[%s25549_s7 + $0x2d4] sm:$0xf0]  ;;  %v15721_v62 = vor.u32 %v18616_v9, %v15718_v8  ;;  %v15785_v12 = vor.u32 %v18632_v23, %v15782_v63 }
 0x6dc   : > { %8036 = vmatpush.bf16.msrb.mxu0 %v15541_v18  ;;  %8092 = vmatpush.bf16.msra.mxu3 %v15593_v5  ;;  %v15726_v18 = vld [vmem:[%s25549_s7 + $0x268] sm:$0xf0]  ;;  %v15733_v47 = vor.u32 %v18621_v27, %v15732_v7  ;;  %v15781_v50 = vor.u32 %v18633_v35, %v15780_v52  ;;  %v15708_v0 = vld [vmem:[%s25549_s7 + $0x240] sm:$0xf]  ;;  %v18615_v7 = vld [vmem:[%s25549_s7 + $0x244] sm:$0xf0]  ;;  %v8142_v11 = vpack.c.b16 %v22744_v13, %v8140_v57 }
 0x6dd   : > { %8054 = vmatpush.bf16.msrb.mxu1 %v15605_v40  ;;  %v18634_v40 = vld [vmem:[%s25549_s7 + $0x2e4] sm:$0xf]  ;;  %v15729_v6 = vor.u32 %v18618_v53, %v15726_v18  ;;  %v15772_v27 = vld [vmem:[%s25549_s7 + $0x2c0] sm:$0xf]  ;;  %v15702_v18 = vld [vmem:[%s25549_s7 + $0x238] sm:$0xf0] }
 0x6de   : > { %v15793_v39 = vor.u32 %v18634_v40, %v15790_v28  ;;  %v18628_v40 = vld [vmem:[%s25549_s7 + $0x2b4] sm:$0xf]  ;;  %v15766_v13 = vld [vmem:[%s25549_s7 + $0x2b8] sm:$0xf0]  ;;  %v18613_v28 = vld [vmem:[%s25549_s7 + $0x234] sm:$0xf0] }
 0x6df   : > { %8073 = vmatpush.bf16.msra.mxu2 %v15537_v59  ;;  %v15788_v59 = vld [vmem:[%s25549_s7 + $0x2e0] sm:$0xf]  ;;  %v23121_v61 = vrot.slane %v22855_v58, 1  ;;  %v18626_v8 = vld [vmem:[%s25549_s7 + $0x2a4] sm:$0xf] }
 0x6e0   : > { %8037 = vmatpush.bf16.msrb.mxu0 %v15533_v60  ;;  %8093 = vmatpush.bf16.msra.mxu3 %v15585_v31  ;;  %v8391_v60 = vld [vmem:[#allocation9 + $0x18] sm:$0xff]  ;;  %v15789_v5 = vor.u32 %v18635_v45, %v15788_v59  ;;  %v15710_v31 = vld [vmem:[%s25549_s7 + $0x248] sm:$0xf0]  ;;  %v8146_v59 = vrot.slane %v8142_v11, 1  ;;  %v18611_v23 = vld [vmem:[%s25549_s7 + $0x224] sm:$0xf0] }
 0x6e1   : > { %8055 = vmatpush.bf16.msrb.mxu1 %v15597_v22  ;;  %v23027_v22 = vunpack.c.l.b16 %v8391_v60  ;;  %v23029_v14 = vunpack.c.h.b16 %v8391_v60  ;;  %v18610_v60 = vld [vmem:[%s25549_s7 + $0x224] sm:$0xf]  ;;  %v15756_v63 = vld [vmem:[%s25549_s7 + $0x2a0] sm:$0xf]  ;;  %v18608_v52 = vld [vmem:[%s25549_s7 + $0x214] sm:$0xf] }
 0x6e2   : > { %v23135_v58 = vsel %vm1584_vm0, %v8146_v59, %v23121_v61  ;;  %v15686_v35 = vld [vmem:[%s25549_s7 + $0x218] sm:$0xf0]  ;;  %v15676_v11 = vld [vmem:[%s25549_s7 + $0x200] sm:$0xf]  ;;  %v15956_v59 = vld [vmem:[%s25549_s7 + $0x3f0] sm:$0xf] }
 0x6e3   : > { %8074 = vmatpush.bf16.msra.mxu2 %v15529_v1  ;;  %v15725_v1 = vor.u32 %v18619_v48, %v15724_v30  ;;  %v23061_v34 = vpack.c.b16 %v23027_v22, %v23037_v17  ;;  %v23065_v37 = vpack.c.b16 %v23029_v14, %v23039_v42  ;;  %v18629_v48 = vld [vmem:[%s25549_s7 + $0x2b4] sm:$0xf0] }
 0x6e4   : > { %8038 = vmatpush.bf16.msrb.mxu0 %v15525_v21  ;;  %8367 = vmatpush.bf16.msrb.mxu3 %v15801_v32  ;;  %v15716_v21 = vld [vmem:[%s25549_s7 + $0x250] sm:$0xf] }
 0x6e5   : > { %8056 = vmatpush.bf16.msrb.mxu1 %v15589_v33  ;;  %v8139_v33 = vunpack.c.l.b16 %v8104_v54  ;;  %v15717_v3 = vor.u32 %v18617_v44, %v15716_v21  ;;  %v15700_v32 = vld [vmem:[%s25549_s7 + $0x230] sm:$0xf]  ;;  %v15769_v54 = vor.u32 %v18628_v40, %v15766_v13  ;;  %v18627_v21 = vld [vmem:[%s25549_s7 + $0x2a4] sm:$0xf0]  ;;  %v18652_v13 = vld [vmem:[%s25549_s7 + $0x374] sm:$0xf] }
 0x6e7   : > { %8075 = vmatpush.bf16.msra.mxu2 %v15521_v2  ;;  %v18614_v2 = vld [vmem:[%s25549_s7 + $0x244] sm:$0xf]  ;;  %v8141_v20 = vpack.c.b16 %v22734_v24, %v8139_v33 }
 0x6e8   : > { %8039 = vmatpush.bf16.msrb.mxu0 %v15517_v16  ;;  %8368 = vmatpush.bf16.msrb.mxu3 %v15793_v39  ;;  %v18630_v16 = vld [vmem:[%s25549_s7 + $0x2c4] sm:$0xf]  ;;  %v15713_v24 = vor.u32 %v18614_v2, %v15710_v31  ;;  %v15701_v39 = vor.u32 %v18613_v28, %v15700_v32  ;;  %v18609_v2 = vld [vmem:[%s25549_s7 + $0x214] sm:$0xf0]  ;;  %v15748_v31 = vld [vmem:[%s25549_s7 + $0x290] sm:$0xf] }
 0x6e9   : > { %8057 = vmatpush.bf16.msrb.mxu1 %v15581_v55  ;;  %7807 = vmatmul.bf16.gmra.mxu0 %v7626_v4  ;;  %v15774_v55 = vld [vmem:[%s25549_s7 + $0x2c8] sm:$0xf0]  ;;  %v8143_v30 = vrot.slane %v8141_v20, 1  ;;  %v18668_v28 = vld [vmem:[%s25549_s7 + $0x3f4] sm:$0xf] }
 0x6ea   : > { %7825 = vmatmul.bf16.gmra.mxu1 %v7629_v51  ;;  %7843 = vmatmul.bf16.gmra.mxu2 %v7626_v4  ;;  %v18612_v4 = vld [vmem:[%s25549_s7 + $0x234] sm:$0xf]  ;;  %v15777_v53 = vor.u32 %v18630_v16, %v15774_v55  ;;  %v18606_v55 = vld [vmem:[%s25549_s7 + $0x204] sm:$0xf] }
 0x6eb   : > { %7861 = vmatmul.bf16.gmra.mxu3 %v7629_v51  ;;  %8349 = vmatpush.bf16.msrb.mxu2 %v15737_v49  ;;  %v15709_v51 = vor.u32 %v18615_v7, %v15708_v0  ;;  %v15773_v49 = vor.u32 %v18631_v10, %v15772_v27  ;;  %v15678_v0 = vld [vmem:[%s25549_s7 + $0x208] sm:$0xf0]  ;;  %v18622_v27 = vld [vmem:[%s25549_s7 + $0x284] sm:$0xf] }
 0x6ec   : > { %8313 = vmatpush.bf16.msra.mxu0 %v15733_v47  ;;  %8369 = vmatpush.bf16.msrb.mxu3 %v15785_v12  ;;  %v23112_v47 = vrot.slane %v22852_v26, 1  ;;  %v15705_v26 = vor.u32 %v18612_v4, %v15702_v18  ;;  %v15684_v12 = vld [vmem:[%s25549_s7 + $0x210] sm:$0xf]  ;;  %v15742_v10 = vld [vmem:[%s25549_s7 + $0x288] sm:$0xf0]  ;;  %v15681_v18 = vor.u32 %v18606_v55, %v15678_v0 }
 0x6ed   : > { %8331 = vmatpush.bf16.msra.mxu1 %v15797_v25  ;;  %v15764_v25 = vld [vmem:[%s25549_s7 + $0x2b0] sm:$0xf]  ;;  %v15685_v20 = vor.u32 %v18609_v2, %v15684_v12  ;;  %v18607_v4 = vld [vmem:[%s25549_s7 + $0x204] sm:$0xf0]  ;;  %v15745_v40 = vor.u32 %v18622_v27, %v15742_v10  ;;  %v15942_v12 = vld [vmem:[%s25549_s7 + $0x3d8] sm:$0xf0] }
 0x6ee   : > { %v23125_v45 = vsel %vm1584_vm0, %v8143_v30, %v23112_v47  ;;  %v15765_v9 = vor.u32 %v18629_v48, %v15764_v25  ;;  %v15958_v30 = vld [vmem:[%s25549_s7 + $0x3f8] sm:$0xf0]  ;;  %v15892_v25 = vld [vmem:[%s25549_s7 + $0x370] sm:$0xf]  ;;  %v18653_v48 = vld [vmem:[%s25549_s7 + $0x374] sm:$0xf0] }
 0x6ef   : > { %8350 = vmatpush.bf16.msrb.mxu2 %v15729_v6  ;;  %v15694_v6 = vld [vmem:[%s25549_s7 + $0x228] sm:$0xf0]  ;;  %v15876_v2 = vld [vmem:[%s25549_s7 + $0x350] sm:$0xf]  ;;  %v18646_v0 = vld [vmem:[%s25549_s7 + $0x344] sm:$0xf] }
 0x6f0   : > { %8314 = vmatpush.bf16.msra.mxu0 %v15725_v1  ;;  %8370 = vmatpush.bf16.msrb.mxu3 %v15777_v53  ;;  %v15758_v1 = vld [vmem:[%s25549_s7 + $0x2a8] sm:$0xf0]  ;;  %v15697_v33 = vor.u32 %v18610_v60, %v15694_v6  ;;  %v18623_v53 = vld [vmem:[%s25549_s7 + $0x284] sm:$0xf0]  ;;  %v7867_v60 = vpack.c.b16 %v22839_v29, %v22839_v29  ;;  %v18662_v10 = vld [vmem:[%s25549_s7 + $0x3c4] sm:$0xf] }
 0x6f1   : > { %8332 = vmatpush.bf16.msra.mxu1 %v15789_v5  ;;  %v15692_v5 = vld [vmem:[%s25549_s7 + $0x220] sm:$0xf]  ;;  %v15761_v44 = vor.u32 %v18626_v8, %v15758_v1  ;;  %v15886_v8 = vld [vmem:[%s25549_s7 + $0x368] sm:$0xf0]  ;;  %v15893_v1 = vor.u32 %v18653_v48, %v15892_v25  ;;  %v15926_v25 = vld [vmem:[%s25549_s7 + $0x3b8] sm:$0xf0] }
 0x6f2   : > { %v15693_v57 = vor.u32 %v18611_v23, %v15692_v5  ;;  %v15950_v29 = vld [vmem:[%s25549_s7 + $0x3e8] sm:$0xf0]  ;;  %v15884_v23 = vld [vmem:[%s25549_s7 + $0x360] sm:$0xf]  ;;  %v15860_v48 = vld [vmem:[%s25549_s7 + $0x330] sm:$0xf] }
 0x6f3   : > { %8351 = vmatpush.bf16.msrb.mxu2 %v15721_v62  ;;  %v15757_v62 = vor.u32 %v18627_v21, %v15756_v63  ;;  %v18651_v63 = vld [vmem:[%s25549_s7 + $0x364] sm:$0xf0]  ;;  %v15948_v21 = vld [vmem:[%s25549_s7 + $0x3e0] sm:$0xf] }
 0x6f4   : > { %8315 = vmatpush.bf16.msra.mxu0 %v15717_v3  ;;  %8371 = vmatpush.bf16.msrb.mxu3 %v15769_v54  ;;  %v18625_v3 = vld [vmem:[%s25549_s7 + $0x294] sm:$0xf0]  ;;  %v7866_v54 = vpack.c.b16 %v22836_v56, %v22836_v56  ;;  %v18666_v56 = vld [vmem:[%s25549_s7 + $0x3e4] sm:$0xf] }
 0x6f5   : > { %8333 = vmatpush.bf16.msra.mxu1 %v15781_v50  ;;  %v15689_v50 = vor.u32 %v18608_v52, %v15686_v35  ;;  %v15749_v7 = vor.u32 %v18625_v3, %v15748_v31  ;;  %v15953_v52 = vor.u32 %v18666_v56, %v15950_v29  ;;  %v18648_v35 = vld [vmem:[%s25549_s7 + $0x354] sm:$0xf]  ;;  %v18649_v31 = vld [vmem:[%s25549_s7 + $0x354] sm:$0xf0]  ;;  %v15940_v3 = vld [vmem:[%s25549_s7 + $0x3d0] sm:$0xf] }
 0x6f6   : > { %v15918_v56 = vld [vmem:[%s25549_s7 + $0x3a8] sm:$0xf0]  ;;  %v15852_v29 = vld [vmem:[%s25549_s7 + $0x320] sm:$0xf] }
 0x6f7   : > { %8352 = vmatpush.bf16.msrb.mxu2 %v15713_v24  ;;  %v15740_v24 = vld [vmem:[%s25549_s7 + $0x280] sm:$0xf] }
 0x6f8   : > { %8316 = vmatpush.bf16.msra.mxu0 %v15709_v51  ;;  %8372 = vmatpush.bf16.msrb.mxu3 %v15761_v44  ;;  %v15894_v51 = vld [vmem:[%s25549_s7 + $0x378] sm:$0xf0]  ;;  %v15741_v32 = vor.u32 %v18623_v53, %v15740_v24  ;;  %v18647_v24 = vld [vmem:[%s25549_s7 + $0x344] sm:$0xf0]  ;;  %v15932_v53 = vld [vmem:[%s25549_s7 + $0x3c0] sm:$0xf] }
 0x6f9   : > { %8334 = vmatpush.bf16.msra.mxu1 %v15773_v49  ;;  %8040 = vmatmul.bf16.vlgmr.msrb.gmra.mxu0 %v22774_v15  ;;  %v15677_v49 = vor.u32 %v18607_v4, %v15676_v11  ;;  %v15897_v6 = vor.u32 %v18652_v13, %v15894_v51  ;;  %v15934_v11 = vld [vmem:[%s25549_s7 + $0x3c8] sm:$0xf0]  ;;  %v15868_v4 = vld [vmem:[%s25549_s7 + $0x340] sm:$0xf]  ;;  %v18644_v51 = vld [vmem:[%s25549_s7 + $0x334] sm:$0xf] }
 0x6fa   : > { %8058 = vmatmul.bf16.vlgmr.msrb.gmra.mxu1 %v22777_v41  ;;  %8076 = vmatmul.bf16.vlgmr.msra.gmra.mxu2 %v22774_v15  ;;  %v18624_v15 = vld [vmem:[%s25549_s7 + $0x294] sm:$0xf]  ;;  %v15937_v13 = vor.u32 %v18662_v10, %v15934_v11  ;;  %v18639_v10 = vld [vmem:[%s25549_s7 + $0x304] sm:$0xf0]  ;;  %v15900_v11 = vld [vmem:[%s25549_s7 + $0x380] sm:$0xf] }
 0x6fb   : > { %8094 = vmatmul.bf16.vlgmr.msra.gmra.mxu3 %v22777_v41  ;;  %8353 = vmatpush.bf16.msrb.mxu2 %v15705_v26  ;;  %v15750_v41 = vld [vmem:[%s25549_s7 + $0x298] sm:$0xf0]  ;;  %v18669_v26 = vld [vmem:[%s25549_s7 + $0x3f4] sm:$0xf0] }
 0x6fc   : > { %8317 = vmatpush.bf16.msra.mxu0 %v15701_v39  ;;  %v15753_v16 = vor.u32 %v18624_v15, %v15750_v41  ;;  %v15961_v39 = vor.u32 %v18668_v28, %v15958_v30  ;;  %v15957_v5 = vor.u32 %v18669_v26, %v15956_v59  ;;  %v18664_v41 = vld [vmem:[%s25549_s7 + $0x3d4] sm:$0xf]  ;;  %v18645_v59 = vld [vmem:[%s25549_s7 + $0x334] sm:$0xf0]  ;;  %v15924_v26 = vld [vmem:[%s25549_s7 + $0x3b0] sm:$0xf] }
 0x6fd   : > { %8335 = vmatpush.bf16.msra.mxu1 %v15765_v9  ;;  %v18650_v9 = vld [vmem:[%s25549_s7 + $0x364] sm:$0xf]  ;;  %v15945_v55 = vor.u32 %v18664_v41, %v15942_v12  ;;  %v18660_v30 = vld [vmem:[%s25549_s7 + $0x3b4] sm:$0xf]  ;;  %v18641_v41 = vld [vmem:[%s25549_s7 + $0x314] sm:$0xf0] }
 0x6fe   : > { %8373 = vmatpush.bf16.msrb.mxu3 %v15753_v16  ;;  %v15889_v44 = vor.u32 %v18650_v9, %v15886_v8  ;;  %v15854_v9 = vld [vmem:[%s25549_s7 + $0x328] sm:$0xf0]  ;;  %v15861_v8 = vor.u32 %v18645_v59, %v15860_v48  ;;  %v15908_v12 = vld [vmem:[%s25549_s7 + $0x390] sm:$0xf]  ;;  %v18701_v48 = vld [vmem:[%s25549_s7 + $0x4f4] sm:$0xf0] }
 0x6ff   : > { %8354 = vmatpush.bf16.msrb.mxu2 %v15697_v33  ;;  %v18667_v33 = vld [vmem:[%s25549_s7 + $0x3e4] sm:$0xf0] }
 0x700   : > { %8318 = vmatpush.bf16.msra.mxu0 %v15693_v57  ;;  %v15878_v57 = vld [vmem:[%s25549_s7 + $0x358] sm:$0xf0]  ;;  %v15949_v15 = vor.u32 %v18667_v33, %v15948_v21  ;;  %v18659_v21 = vld [vmem:[%s25549_s7 + $0x3a4] sm:$0xf0] }
 0x701   : > { %8336 = vmatpush.bf16.msra.mxu1 %v15757_v62  ;;  %v15885_v62 = vor.u32 %v18651_v63, %v15884_v23  ;;  %v15881_v16 = vor.u32 %v18648_v35, %v15878_v57  ;;  %v18643_v23 = vld [vmem:[%s25549_s7 + $0x324] sm:$0xf0]  ;;  %v15916_v63 = vld [vmem:[%s25549_s7 + $0x3a0] sm:$0xf]  ;;  %v15846_v35 = vld [vmem:[%s25549_s7 + $0x318] sm:$0xf0] }
 0x702   : > { %8374 = vmatpush.bf16.msrb.mxu3 %v15745_v40  ;;  %v15853_v57 = vor.u32 %v18643_v23, %v15852_v29  ;;  %v18699_v29 = vld [vmem:[%s25549_s7 + $0x4e4] sm:$0xf0] }
 0x703   : > { %8355 = vmatpush.bf16.msrb.mxu2 %v15689_v50  ;;  %v18665_v50 = vld [vmem:[%s25549_s7 + $0x3d4] sm:$0xf0] }
 0x704   : > { %8319 = vmatpush.bf16.msra.mxu0 %v15685_v20  ;;  %v15870_v20 = vld [vmem:[%s25549_s7 + $0x348] sm:$0xf0]  ;;  %v15941_v27 = vor.u32 %v18665_v50, %v15940_v3  ;;  %v18638_v50 = vld [vmem:[%s25549_s7 + $0x304] sm:$0xf] }
 0x705   : > { %8337 = vmatpush.bf16.msra.mxu1 %v15749_v7  ;;  %v15877_v7 = vor.u32 %v18649_v31, %v15876_v2  ;;  %v15873_v40 = vor.u32 %v18646_v0, %v15870_v20  ;;  %v18657_v2 = vld [vmem:[%s25549_s7 + $0x394] sm:$0xf0]  ;;  %v18654_v20 = vld [vmem:[%s25549_s7 + $0x384] sm:$0xf] }
 0x706   : > { %8650 = vmatpush.bf16.msra.mxu3 %v15961_v39  ;;  %v18642_v39 = vld [vmem:[%s25549_s7 + $0x324] sm:$0xf]  ;;  %v15909_v0 = vor.u32 %v18657_v2, %v15908_v12  ;;  %v16030_v12 = vld [vmem:[%s25549_s7 + $0x448] sm:$0xf0] }
 0x707   : > { %8356 = vmatpush.bf16.msrb.mxu2 %v15681_v18  ;;  %v18663_v18 = vld [vmem:[%s25549_s7 + $0x3c4] sm:$0xf0]  ;;  %v15857_v33 = vor.u32 %v18642_v39, %v15854_v9  ;;  %v18698_v9 = vld [vmem:[%s25549_s7 + $0x4e4] sm:$0xf] }
 0x708   : > { %8320 = vmatpush.bf16.msra.mxu0 %v15677_v49  ;;  %v15862_v49 = vld [vmem:[%s25549_s7 + $0x338] sm:$0xf0]  ;;  %v15933_v28 = vor.u32 %v18663_v18, %v15932_v53  ;;  %v18684_v18 = vld [vmem:[%s25549_s7 + $0x474] sm:$0xf] }
 0x709   : > { %8338 = vmatpush.bf16.msra.mxu1 %v15741_v32  ;;  %8045 = vmatmul.bf16.gmra.mxu0 %v7866_v54  ;;  %v15869_v32 = vor.u32 %v18647_v24, %v15868_v4  ;;  %v18655_v4 = vld [vmem:[%s25549_s7 + $0x384] sm:$0xf0] }
 0x70a   : > { %8063 = vmatmul.bf16.gmra.mxu1 %v7867_v60  ;;  %8081 = vmatmul.bf16.gmra.mxu2 %v7866_v54  ;;  %v18661_v54 = vld [vmem:[%s25549_s7 + $0x3b4] sm:$0xf0] }
 0x70b   : > { %8099 = vmatmul.bf16.gmra.mxu3 %v7867_v60  ;;  %8632 = vmatpush.bf16.msra.mxu2 %v15897_v6  ;;  %v15865_v60 = vor.u32 %v18644_v51, %v15862_v49  ;;  %v15929_v6 = vor.u32 %v18660_v30, %v15926_v25  ;;  %v15901_v51 = vor.u32 %v18655_v4, %v15900_v11  ;;  %v18700_v49 = vld [vmem:[%s25549_s7 + $0x4f4] sm:$0xf]  ;;  %v18685_v30 = vld [vmem:[%s25549_s7 + $0x474] sm:$0xf0]  ;;  %v16116_v25 = vld [vmem:[%s25549_s7 + $0x4f0] sm:$0xf] }
 0x70c   : > { %8596 = vmatpush.bf16.msrb.mxu0 %v15893_v1  ;;  %8651 = vmatpush.bf16.msra.mxu3 %v15953_v52  ;;  %v15925_v1 = vor.u32 %v18661_v54, %v15924_v26  ;;  %v18640_v52 = vld [vmem:[%s25549_s7 + $0x314] sm:$0xf]  ;;  %v18682_v54 = vld [vmem:[%s25549_s7 + $0x464] sm:$0xf]  ;;  %v16117_v39 = vor.u32 %v18701_v48, %v16116_v25  ;;  %v16022_v11 = vld [vmem:[%s25549_s7 + $0x438] sm:$0xf0] }
 0x70d   : > { %8614 = vmatpush.bf16.msrb.mxu1 %v15957_v5  ;;  %v18658_v5 = vld [vmem:[%s25549_s7 + $0x3a4] sm:$0xf]  ;;  %v15849_v31 = vor.u32 %v18640_v52, %v15846_v35  ;;  %v16036_v35 = vld [vmem:[%s25549_s7 + $0x450] sm:$0xf]  ;;  %v16014_v25 = vld [vmem:[%s25549_s7 + $0x428] sm:$0xf0] }
 0x70f   : > { %8633 = vmatpush.bf16.msra.mxu2 %v15889_v44  ;;  %v15921_v44 = vor.u32 %v18658_v5, %v15918_v56  ;;  %v18683_v5 = vld [vmem:[%s25549_s7 + $0x464] sm:$0xf0]  ;;  %v16108_v56 = vld [vmem:[%s25549_s7 + $0x4e0] sm:$0xf] }
 0x710   : > { %8597 = vmatpush.bf16.msrb.mxu0 %v15885_v62  ;;  %8652 = vmatpush.bf16.msra.mxu3 %v15945_v55  ;;  %v15917_v62 = vor.u32 %v18659_v21, %v15916_v63  ;;  %v18680_v21 = vld [vmem:[%s25549_s7 + $0x454] sm:$0xf]  ;;  %v16109_v52 = vor.u32 %v18699_v29, %v16108_v56  ;;  %v16006_v56 = vld [vmem:[%s25549_s7 + $0x418] sm:$0xf0] }
 0x711   : > { %8615 = vmatpush.bf16.msrb.mxu1 %v15949_v15  ;;  %v15844_v15 = vld [vmem:[%s25549_s7 + $0x310] sm:$0xf] }
 0x712   : > { %v15845_v55 = vor.u32 %v18641_v41, %v15844_v15  ;;  %v18678_v41 = vld [vmem:[%s25549_s7 + $0x444] sm:$0xf] }
 0x713   : > { %8634 = vmatpush.bf16.msra.mxu2 %v15881_v16  ;;  %v15838_v16 = vld [vmem:[%s25549_s7 + $0x308] sm:$0xf0] }
 0x714   : > { %8598 = vmatpush.bf16.msrb.mxu0 %v15877_v7  ;;  %8653 = vmatpush.bf16.msra.mxu3 %v15937_v13  ;;  %v15902_v7 = vld [vmem:[%s25549_s7 + $0x388] sm:$0xf0]  ;;  %v15841_v24 = vor.u32 %v18638_v50, %v15838_v16  ;;  %v16028_v16 = vld [vmem:[%s25549_s7 + $0x440] sm:$0xf] }
 0x715   : > { %8616 = vmatpush.bf16.msrb.mxu1 %v15941_v27  ;;  %v15836_v27 = vld [vmem:[%s25549_s7 + $0x300] sm:$0xf]  ;;  %v15905_v53 = vor.u32 %v18654_v20, %v15902_v7  ;;  %v16094_v50 = vld [vmem:[%s25549_s7 + $0x4c8] sm:$0xf0]  ;;  %v18695_v20 = vld [vmem:[%s25549_s7 + $0x4c4] sm:$0xf0]  ;;  %v16033_v7 = vor.u32 %v18678_v41, %v16030_v12 }
 0x716   : > { %v15837_v13 = vor.u32 %v18639_v10, %v15836_v27  ;;  %v18676_v10 = vld [vmem:[%s25549_s7 + $0x434] sm:$0xf]  ;;  %v15996_v41 = vld [vmem:[%s25549_s7 + $0x400] sm:$0xf]  ;;  %v18671_v12 = vld [vmem:[%s25549_s7 + $0x404] sm:$0xf0] }
 0x717   : > { %8635 = vmatpush.bf16.msra.mxu2 %v15873_v40  ;;  %v16054_v40 = vld [vmem:[%s25549_s7 + $0x478] sm:$0xf0] }
 0x718   : > { %8599 = vmatpush.bf16.msrb.mxu0 %v15869_v32  ;;  %8654 = vmatpush.bf16.msra.mxu3 %v15929_v6  ;;  %v16118_v32 = vld [vmem:[%s25549_s7 + $0x4f8] sm:$0xf0]  ;;  %v16057_v59 = vor.u32 %v18684_v18, %v16054_v40  ;;  %v16020_v40 = vld [vmem:[%s25549_s7 + $0x430] sm:$0xf] }
 0x719   : > { %8617 = vmatpush.bf16.msrb.mxu1 %v15933_v28  ;;  %8321 = vmatmul.bf16.vlgmr.msra.gmra.mxu0 %v23125_v45  ;;  %v16052_v28 = vld [vmem:[%s25549_s7 + $0x470] sm:$0xf]  ;;  %v16121_v26 = vor.u32 %v18700_v49, %v16118_v32  ;;  %v16086_v18 = vld [vmem:[%s25549_s7 + $0x4b8] sm:$0xf0]  ;;  %v18693_v49 = vld [vmem:[%s25549_s7 + $0x4b4] sm:$0xf0]  ;;  %v16025_v32 = vor.u32 %v18676_v10, %v16022_v11 }
 0x71a   : > { %8339 = vmatmul.bf16.vlgmr.msra.gmra.mxu1 %v23135_v58  ;;  %8357 = vmatmul.bf16.vlgmr.msrb.gmra.mxu2 %v23125_v45  ;;  %v18656_v45 = vld [vmem:[%s25549_s7 + $0x394] sm:$0xf]  ;;  %v16053_v6 = vor.u32 %v18685_v30, %v16052_v28  ;;  %v18674_v30 = vld [vmem:[%s25549_s7 + $0x424] sm:$0xf]  ;;  %v16278_v11 = vld [vmem:[%s25549_s7 + $0x5f8] sm:$0xf0] }
 0x71b   : > { %8375 = vmatmul.bf16.vlgmr.msrb.gmra.mxu3 %v23135_v58  ;;  %8636 = vmatpush.bf16.msra.mxu2 %v15865_v60  ;;  %v15910_v58 = vld [vmem:[%s25549_s7 + $0x398] sm:$0xf0]  ;;  %v16046_v60 = vld [vmem:[%s25549_s7 + $0x468] sm:$0xf0]  ;;  %v18732_v10 = vld [vmem:[%s25549_s7 + $0x5f4] sm:$0xf] }
 0x71c   : > { %8600 = vmatpush.bf16.msrb.mxu0 %v15861_v8  ;;  %8655 = vmatpush.bf16.msra.mxu3 %v15921_v44  ;;  %v15913_v3 = vor.u32 %v18656_v45, %v15910_v58  ;;  %v16110_v8 = vld [vmem:[%s25549_s7 + $0x4e8] sm:$0xf0]  ;;  %v16049_v23 = vor.u32 %v18682_v54, %v16046_v60  ;;  %v18697_v45 = vld [vmem:[%s25549_s7 + $0x4d4] sm:$0xf0]  ;;  %v16012_v60 = vld [vmem:[%s25549_s7 + $0x420] sm:$0xf] }
 0x71d   : > { %8618 = vmatpush.bf16.msrb.mxu1 %v15925_v1  ;;  %v16044_v1 = vld [vmem:[%s25549_s7 + $0x460] sm:$0xf]  ;;  %v16113_v63 = vor.u32 %v18698_v9, %v16110_v8  ;;  %v16078_v54 = vld [vmem:[%s25549_s7 + $0x4a8] sm:$0xf0]  ;;  %v18691_v9 = vld [vmem:[%s25549_s7 + $0x4a4] sm:$0xf0]  ;;  %v16017_v8 = vor.u32 %v18674_v30, %v16014_v25  ;;  %v16281_v25 = vor.u32 %v18732_v10, %v16278_v11 }
 0x71e   : > { %v16045_v44 = vor.u32 %v18683_v5, %v16044_v1  ;;  %v18672_v5 = vld [vmem:[%s25549_s7 + $0x414] sm:$0xf] }
 0x71f   : > { %8637 = vmatpush.bf16.msra.mxu2 %v15857_v33  ;;  %v16038_v33 = vld [vmem:[%s25549_s7 + $0x458] sm:$0xf0] }
 0x720   : > { %8601 = vmatpush.bf16.msrb.mxu0 %v15853_v57  ;;  %8656 = vmatpush.bf16.msra.mxu3 %v15913_v3  ;;  %v18681_v57 = vld [vmem:[%s25549_s7 + $0x454] sm:$0xf0]  ;;  %v16041_v58 = vor.u32 %v18680_v21, %v16038_v33  ;;  %v18694_v3 = vld [vmem:[%s25549_s7 + $0x4c4] sm:$0xf]  ;;  %v16068_v33 = vld [vmem:[%s25549_s7 + $0x490] sm:$0xf] }
 0x721   : > { %8619 = vmatpush.bf16.msrb.mxu1 %v15917_v62  ;;  %v16100_v62 = vld [vmem:[%s25549_s7 + $0x4d0] sm:$0xf]  ;;  %v16037_v2 = vor.u32 %v18681_v57, %v16036_v35  ;;  %v16097_v27 = vor.u32 %v18694_v3, %v16094_v50  ;;  %v18673_v21 = vld [vmem:[%s25549_s7 + $0x414] sm:$0xf0]  ;;  %v15998_v35 = vld [vmem:[%s25549_s7 + $0x408] sm:$0xf0] }
 0x722   : > { %v8674_v57 = vld [vmem:[#allocation9 + $0x8] sm:$0xff] }
 0x723   : > { %8638 = vmatpush.bf16.msra.mxu2 %v15849_v31  ;;  %v16101_v31 = vor.u32 %v18697_v45, %v16100_v62  ;;  %v8715_v3 = vunpack.c.l.b16 %v8674_v57 }
 0x724   : > { %8602 = vmatpush.bf16.msrb.mxu0 %v15845_v55  ;;  %8657 = vmatpush.bf16.msra.mxu3 %v15905_v53  ;;  %v18679_v55 = vld [vmem:[%s25549_s7 + $0x444] sm:$0xf0]  ;;  %v18692_v53 = vld [vmem:[%s25549_s7 + $0x4b4] sm:$0xf] }
 0x725   : > { %8620 = vmatpush.bf16.msrb.mxu1 %v15909_v0  ;;  %v16092_v0 = vld [vmem:[%s25549_s7 + $0x4c0] sm:$0xf]  ;;  %v16029_v4 = vor.u32 %v18679_v55, %v16028_v16  ;;  %v16089_v28 = vor.u32 %v18692_v53, %v16086_v18  ;;  %v16276_v53 = vld [vmem:[%s25549_s7 + $0x5f0] sm:$0xf]  ;;  %v18733_v18 = vld [vmem:[%s25549_s7 + $0x5f4] sm:$0xf0] }
 0x726   : > { %v8677_v55 = vld [vmem:[#allocation9 + $0x20] sm:$0x11] }
 0x727   : > { %8639 = vmatpush.bf16.msra.mxu2 %v15841_v24  ;;  %v16093_v24 = vor.u32 %v18695_v20, %v16092_v0  ;;  %v18716_v0 = vld [vmem:[%s25549_s7 + $0x574] sm:$0xf]  ;;  %v16214_v20 = vld [vmem:[%s25549_s7 + $0x578] sm:$0xf0] }
 0x728   : > { %8603 = vmatpush.bf16.msrb.mxu0 %v15837_v13  ;;  %8975 = vmatpush.bf16.msrb.mxu3 %v16121_v26  ;;  %v18677_v13 = vld [vmem:[%s25549_s7 + $0x434] sm:$0xf0]  ;;  %v18690_v26 = vld [vmem:[%s25549_s7 + $0x4a4] sm:$0xf]  ;;  %v16217_v30 = vor.u32 %v18716_v0, %v16214_v20  ;;  %v18711_v0 = vld [vmem:[%s25549_s7 + $0x544] sm:$0xf0] }
 0x729   : > { %8621 = vmatpush.bf16.msrb.mxu1 %v15901_v51  ;;  %8326 = vmatmul.bf16.gmra.mxu0 %v23112_v47  ;;  %v16084_v51 = vld [vmem:[%s25549_s7 + $0x4b0] sm:$0xf]  ;;  %v16021_v48 = vor.u32 %v18677_v13, %v16020_v40  ;;  %v16081_v1 = vor.u32 %v18690_v26, %v16078_v54  ;;  %v8430_v40 = vpack.c.b16 %v23027_v22, %v23027_v22  ;;  %v8721_v13 = vunpack.c.l.b16 %v8677_v55  ;;  %v16252_v20 = vld [vmem:[%s25549_s7 + $0x5c0] sm:$0xf] }
 0x72a   : > { %8344 = vmatmul.bf16.gmra.mxu1 %v23121_v61  ;;  %8362 = vmatmul.bf16.gmra.mxu2 %v23112_v47  ;;  %v18696_v47 = vld [vmem:[%s25549_s7 + $0x4d4] sm:$0xf]  ;;  %v16277_v54 = vor.u32 %v18733_v18, %v16276_v53 }
 0x72b   : > { %8380 = vmatmul.bf16.gmra.mxu3 %v23121_v61  ;;  %8957 = vmatpush.bf16.msrb.mxu2 %v16057_v59  ;;  %v16102_v61 = vld [vmem:[%s25549_s7 + $0x4d8] sm:$0xf0]  ;;  %v16085_v59 = vor.u32 %v18693_v49, %v16084_v51  ;;  %v23634_v51 = vpack.c.b16 %v23037_v17, %v8715_v3  ;;  %v8716_v49 = vunpack.c.h.b16 %v8674_v57 }
 0x72c   : > { %8921 = vmatpush.bf16.msra.mxu0 %v16053_v6  ;;  %8976 = vmatpush.bf16.msrb.mxu3 %v16113_v63  ;;  %v16105_v15 = vor.u32 %v18696_v47, %v16102_v61  ;;  %v18675_v6 = vld [vmem:[%s25549_s7 + $0x424] sm:$0xf0]  ;;  %v16004_v63 = vld [vmem:[%s25549_s7 + $0x410] sm:$0xf]  ;;  %v18670_v61 = vld [vmem:[%s25549_s7 + $0x404] sm:$0xf] }
 0x72d   : > { %8939 = vmatpush.bf16.msra.mxu1 %v16117_v39  ;;  %v16076_v39 = vld [vmem:[%s25549_s7 + $0x4a0] sm:$0xf]  ;;  %v16013_v29 = vor.u32 %v18675_v6, %v16012_v60  ;;  %v16005_v62 = vor.u32 %v18673_v21, %v16004_v63  ;;  %v16001_v50 = vor.u32 %v18670_v61, %v15998_v35  ;;  %v18730_v60 = vld [vmem:[%s25549_s7 + $0x5e4] sm:$0xf]  ;;  %v16270_v6 = vld [vmem:[%s25549_s7 + $0x5e8] sm:$0xf0] }
 0x72e   : > { %v18712_v63 = vld [vmem:[%s25549_s7 + $0x554] sm:$0xf]  ;;  %v16260_v61 = vld [vmem:[%s25549_s7 + $0x5d0] sm:$0xf]  ;;  %v18729_v35 = vld [vmem:[%s25549_s7 + $0x5d4] sm:$0xf0] }
 0x72f   : > { %8958 = vmatpush.bf16.msrb.mxu2 %v16049_v23  ;;  %v16077_v23 = vor.u32 %v18691_v9, %v16076_v39  ;;  %v16204_v39 = vld [vmem:[%s25549_s7 + $0x560] sm:$0xf]  ;;  %v18715_v9 = vld [vmem:[%s25549_s7 + $0x564] sm:$0xf0]  ;;  %v16261_v3 = vor.u32 %v18729_v35, %v16260_v61  ;;  %v18704_v35 = vld [vmem:[%s25549_s7 + $0x514] sm:$0xf] }
 0x730   : > { %8922 = vmatpush.bf16.msra.mxu0 %v16045_v44  ;;  %8977 = vmatpush.bf16.msrb.mxu3 %v16105_v15  ;;  %v18689_v44 = vld [vmem:[%s25549_s7 + $0x494] sm:$0xf0]  ;;  %v16062_v15 = vld [vmem:[%s25549_s7 + $0x488] sm:$0xf0]  ;;  %v16205_v21 = vor.u32 %v18715_v9, %v16204_v39 }
 0x731   : > { %8940 = vmatpush.bf16.msra.mxu1 %v16109_v52  ;;  %v16009_v52 = vor.u32 %v18672_v5, %v16006_v56  ;;  %v16069_v45 = vor.u32 %v18689_v44, %v16068_v33  ;;  %v23663_v5 = vpack.c.b16 %v8721_v13, %v23027_v22  ;;  %v23666_v56 = vpack.c.b16 %v23039_v42, %v8716_v49  ;;  %v16198_v22 = vld [vmem:[%s25549_s7 + $0x558] sm:$0xf0] }
 0x732   : > { %v16262_v44 = vld [vmem:[%s25549_s7 + $0x5d8] sm:$0xf0] }
 0x733   : > { %8959 = vmatpush.bf16.msrb.mxu2 %v16041_v58  ;;  %v18686_v58 = vld [vmem:[%s25549_s7 + $0x484] sm:$0xf]  ;;  %v8735_v57 = vshll.u32 %v23663_v5, 16  ;;  %v16182_v13 = vld [vmem:[%s25549_s7 + $0x538] sm:$0xf0] }
 0x734   : > { %8923 = vmatpush.bf16.msra.mxu0 %v16037_v2  ;;  %8978 = vmatpush.bf16.msrb.mxu3 %v16097_v27  ;;  %v16060_v2 = vld [vmem:[%s25549_s7 + $0x480] sm:$0xf]  ;;  %v16065_v16 = vor.u32 %v18686_v58, %v16062_v15  ;;  %v16201_v15 = vor.u32 %v18712_v63, %v16198_v22  ;;  %v18722_v22 = vld [vmem:[%s25549_s7 + $0x5a4] sm:$0xf] }
 0x735   : > { %8941 = vmatpush.bf16.msra.mxu1 %v16101_v31  ;;  %v18687_v31 = vld [vmem:[%s25549_s7 + $0x484] sm:$0xf0]  ;;  %v23724_v10 = vrot.slane %v8735_v57, 1  ;;  %v16166_v57 = vld [vmem:[%s25549_s7 + $0x518] sm:$0xf0] }
 0x736   : > { %v16061_v27 = vor.u32 %v18687_v31, %v16060_v2  ;;  %v16190_v2 = vld [vmem:[%s25549_s7 + $0x548] sm:$0xf0] }
 0x737   : > { %8960 = vmatpush.bf16.msrb.mxu2 %v16033_v7  ;;  %v15997_v7 = vor.u32 %v18671_v12, %v15996_v41  ;;  %v18710_v12 = vld [vmem:[%s25549_s7 + $0x544] sm:$0xf] }
 0x738   : > { %8924 = vmatpush.bf16.msra.mxu0 %v16029_v4  ;;  %8979 = vmatpush.bf16.msrb.mxu3 %v16089_v28  ;;  %v16212_v4 = vld [vmem:[%s25549_s7 + $0x570] sm:$0xf]  ;;  %v8722_v28 = vunpack.c.h.b16 %v8677_v55  ;;  %v16188_v55 = vld [vmem:[%s25549_s7 + $0x540] sm:$0xf]  ;;  %v16193_v53 = vor.u32 %v18710_v12, %v16190_v2 }
 0x739   : > { %8942 = vmatpush.bf16.msra.mxu1 %v16093_v24  ;;  %8604 = vmatmul.bf16.vlgmr.msrb.gmra.mxu0 %v22886_v46  ;;  %v18717_v24 = vld [vmem:[%s25549_s7 + $0x574] sm:$0xf0]  ;;  %v16189_v49 = vor.u32 %v18711_v0, %v16188_v55 }
 0x73a   : > { %8622 = vmatmul.bf16.vlgmr.msrb.gmra.mxu1 %v22894_v36  ;;  %8640 = vmatmul.bf16.vlgmr.msra.gmra.mxu2 %v22886_v46  ;;  %v18688_v46 = vld [vmem:[%s25549_s7 + $0x494] sm:$0xf]  ;;  %v16213_v26 = vor.u32 %v18717_v24, %v16212_v4  ;;  %v8740_v4 = vshrl.u32 %v23666_v56, 16 }
 0x73b   : > { %8658 = vmatmul.bf16.vlgmr.msra.gmra.mxu3 %v22894_v36  ;;  %8961 = vmatpush.bf16.msrb.mxu2 %v16025_v32  ;;  %v16070_v36 = vld [vmem:[%s25549_s7 + $0x498] sm:$0xf0]  ;;  %v8431_v32 = vpack.c.b16 %v23029_v14, %v23029_v14 }
 0x73c   : > { %8925 = vmatpush.bf16.msra.mxu0 %v16021_v48  ;;  %8980 = vmatpush.bf16.msrb.mxu3 %v16081_v1  ;;  %v16073_v47 = vor.u32 %v18688_v46, %v16070_v36  ;;  %v18714_v48 = vld [vmem:[%s25549_s7 + $0x564] sm:$0xf]  ;;  %v18731_v1 = vld [vmem:[%s25549_s7 + $0x5e4] sm:$0xf0]  ;;  %v16273_v36 = vor.u32 %v18730_v60, %v16270_v6 }
 0x73d   : > { %8943 = vmatpush.bf16.msra.mxu1 %v16085_v59  ;;  %v16206_v59 = vld [vmem:[%s25549_s7 + $0x568] sm:$0xf0] }
 0x73e   : > { %v16209_v46 = vor.u32 %v18714_v48, %v16206_v59  ;;  %v18709_v48 = vld [vmem:[%s25549_s7 + $0x534] sm:$0xf0]  ;;  %v16244_v59 = vld [vmem:[%s25549_s7 + $0x5b0] sm:$0xf] }
 0x73f   : > { %8962 = vmatpush.bf16.msrb.mxu2 %v16017_v8  ;;  %v16268_v8 = vld [vmem:[%s25549_s7 + $0x5e0] sm:$0xf] }
 0x740   : > { %8926 = vmatpush.bf16.msra.mxu0 %v16013_v29  ;;  %8981 = vmatpush.bf16.msrb.mxu3 %v16073_v47  ;;  %v8730_v29 = vshll.u32 %v23634_v51, 16  ;;  %v16269_v33 = vor.u32 %v18731_v1, %v16268_v8  ;;  %v18713_v47 = vld [vmem:[%s25549_s7 + $0x554] sm:$0xf0] }
 0x741   : > { %8944 = vmatpush.bf16.msra.mxu1 %v16077_v23  ;;  %v23670_v23 = vpack.c.b16 %v8722_v28, %v23029_v14  ;;  %v18728_v14 = vld [vmem:[%s25549_s7 + $0x5d4] sm:$0xf] }
 0x742   : > { %v16265_v41 = vor.u32 %v18728_v14, %v16262_v44  ;;  %v18724_v28 = vld [vmem:[%s25549_s7 + $0x5b4] sm:$0xf]  ;;  %v18707_v14 = vld [vmem:[%s25549_s7 + $0x524] sm:$0xf0]  ;;  %v16236_v44 = vld [vmem:[%s25549_s7 + $0x5a0] sm:$0xf] }
 0x743   : > { %8963 = vmatpush.bf16.msrb.mxu2 %v16009_v52  ;;  %v16196_v52 = vld [vmem:[%s25549_s7 + $0x550] sm:$0xf]  ;;  %v8747_v58 = vshll.u32 %v23670_v23, 16 }
 0x744   : > { %8927 = vmatpush.bf16.msra.mxu0 %v16005_v62  ;;  %8982 = vmatpush.bf16.msrb.mxu3 %v16065_v16  ;;  %v8742_v62 = vshll.u32 %v23666_v56, 16  ;;  %v16197_v31 = vor.u32 %v18713_v47, %v16196_v52  ;;  %v16254_v16 = vld [vmem:[%s25549_s7 + $0x5c8] sm:$0xf0]  ;;  %v18706_v56 = vld [vmem:[%s25549_s7 + $0x524] sm:$0xf] }
 0x745   : > { %8945 = vmatpush.bf16.msra.mxu1 %v16069_v45  ;;  %v8732_v45 = vrot.slane %v8730_v29, 1  ;;  %v23727_v24 = vrot.slane %v8747_v58, 1  ;;  %v16174_v29 = vld [vmem:[%s25549_s7 + $0x528] sm:$0xf0]  ;;  %v18723_v52 = vld [vmem:[%s25549_s7 + $0x5a4] sm:$0xf0] }
 0x746   : > { %v8744_v11 = vrot.slane %v8742_v62, 1  ;;  %v16177_v47 = vor.u32 %v18706_v56, %v16174_v29  ;;  %v18720_v58 = vld [vmem:[%s25549_s7 + $0x594] sm:$0xf] }
 0x747   : > { %8964 = vmatpush.bf16.msrb.mxu2 %v16001_v50  ;;  %v18726_v50 = vld [vmem:[%s25549_s7 + $0x5c4] sm:$0xf] }
 0x748   : > { %8928 = vmatpush.bf16.msra.mxu0 %v15997_v7  ;;  %9262 = vmatpush.bf16.msra.mxu3 %v16281_v25  ;;  %v18727_v7 = vld [vmem:[%s25549_s7 + $0x5c4] sm:$0xf0]  ;;  %v16257_v18 = vor.u32 %v18726_v50, %v16254_v16  ;;  %v16180_v25 = vld [vmem:[%s25549_s7 + $0x530] sm:$0xf]  ;;  %v8745_v39 = vor.u32 %v8744_v11, %v8740_v4  ;;  %v18721_v50 = vld [vmem:[%s25549_s7 + $0x594] sm:$0xf0] }
 0x749   : > { %8946 = vmatpush.bf16.msra.mxu1 %v16061_v27  ;;  %8609 = vmatmul.bf16.gmra.mxu0 %v8430_v40  ;;  %v8728_v27 = vshrl.u32 %v23634_v51, 16  ;;  %v18702_v11 = vld [vmem:[%s25549_s7 + $0x504] sm:$0xf]  ;;  %v16158_v4 = vld [vmem:[%s25549_s7 + $0x508] sm:$0xf0] }
 0x74a   : > { %8627 = vmatmul.bf16.gmra.mxu1 %v8431_v32  ;;  %8645 = vmatmul.bf16.gmra.mxu2 %v8430_v40  ;;  %v18708_v40 = vld [vmem:[%s25549_s7 + $0x534] sm:$0xf] }
 0x74b   : > { %8663 = vmatmul.bf16.gmra.mxu3 %v8431_v32  ;;  %9244 = vmatpush.bf16.msra.mxu2 %v16217_v30  ;;  %v8733_v51 = vor.u32 %v8732_v45, %v8728_v27  ;;  %v16253_v32 = vor.u32 %v18727_v7, %v16252_v20  ;;  %v16246_v30 = vld [vmem:[%s25549_s7 + $0x5b8] sm:$0xf0]  ;;  %v16185_v8 = vor.u32 %v18708_v40, %v16182_v13  ;;  %v18718_v40 = vld [vmem:[%s25549_s7 + $0x584] sm:$0xf]  ;;  %v16222_v13 = vld [vmem:[%s25549_s7 + $0x588] sm:$0xf0] }
 0x74c   : > { %9208 = vmatpush.bf16.msrb.mxu0 %v16213_v26  ;;  %9263 = vmatpush.bf16.msra.mxu3 %v16273_v36  ;;  %v18725_v26 = vld [vmem:[%s25549_s7 + $0x5b4] sm:$0xf0]  ;;  %v16249_v1 = vor.u32 %v18724_v28, %v16246_v30  ;;  %v16181_v36 = vor.u32 %v18709_v48, %v16180_v25  ;;  %v16237_v45 = vor.u32 %v18723_v52, %v16236_v44  ;;  %v18719_v28 = vld [vmem:[%s25549_s7 + $0x584] sm:$0xf0]  ;;  %v8751_v30 = vshrl.u32 %v23663_v5, 16 }
 0x74d   : > { %9226 = vmatpush.bf16.msrb.mxu1 %v16277_v54  ;;  %v8738_v6 = vsel %vm1427_vm1, %v8733_v51, %v23724_v10  ;;  %v16245_v63 = vor.u32 %v18725_v26, %v16244_v59  ;;  %v16169_v7 = vor.u32 %v18704_v35, %v16166_v57  ;;  %v16156_v51 = vld [vmem:[%s25549_s7 + $0x500] sm:$0xf]  ;;  %v8754_v25 = vshrl.u32 %v23670_v23, 16  ;;  %v18748_v26 = vld [vmem:[%s25549_s7 + $0x674] sm:$0xf] }
 0x74e   : > { %v16161_v48 = vor.u32 %v18702_v11, %v16158_v4  ;;  %v16225_v59 = vor.u32 %v18718_v40, %v16222_v13  ;;  %v18746_v57 = vld [vmem:[%s25549_s7 + $0x664] sm:$0xf]  ;;  %v18760_v11 = vld [vmem:[%s25549_s7 + $0x6d4] sm:$0xf]  ;;  %v16422_v4 = vld [vmem:[%s25549_s7 + $0x6d8] sm:$0xf0] }
 0x74f   : > { %9245 = vmatpush.bf16.msra.mxu2 %v16209_v46  ;;  %v8750_v46 = vsel %vm1427_vm1, %v8745_v39, %v23727_v24  ;;  %v18764_v39 = vld [vmem:[%s25549_s7 + $0x6f4] sm:$0xf]  ;;  %v8756_v44 = vor.u32 %v8754_v25, %v23727_v24  ;;  %v18762_v24 = vld [vmem:[%s25549_s7 + $0x6e4] sm:$0xf]  ;;  %v18745_v13 = vld [vmem:[%s25549_s7 + $0x654] sm:$0xf0] }
 0x750   : > { %9209 = vmatpush.bf16.msrb.mxu0 %v16205_v21  ;;  %9264 = vmatpush.bf16.msra.mxu3 %v16265_v41  ;;  %v16238_v21 = vld [vmem:[%s25549_s7 + $0x5a8] sm:$0xf0]  ;;  %v16164_v41 = vld [vmem:[%s25549_s7 + $0x510] sm:$0xf] }
 0x751   : > { %9227 = vmatpush.bf16.msrb.mxu1 %v16269_v33  ;;  %v16172_v33 = vld [vmem:[%s25549_s7 + $0x520] sm:$0xf]  ;;  %v16241_v61 = vor.u32 %v18722_v22, %v16238_v21 }
 0x752   : > { %v16173_v62 = vor.u32 %v18707_v14, %v16172_v33  ;;  %v8753_v14 = vor.u32 %v8751_v30, %v23724_v10 }
 0x753   : > { %9246 = vmatpush.bf16.msra.mxu2 %v16201_v15  ;;  %v16230_v15 = vld [vmem:[%s25549_s7 + $0x598] sm:$0xf0] }
 0x754   : > { %9210 = vmatpush.bf16.msrb.mxu0 %v16197_v31  ;;  %9265 = vmatpush.bf16.msra.mxu3 %v16257_v18  ;;  %v18705_v31 = vld [vmem:[%s25549_s7 + $0x514] sm:$0xf0]  ;;  %v16233_v27 = vor.u32 %v18720_v58, %v16230_v15  ;;  %v16430_v58 = vld [vmem:[%s25549_s7 + $0x6e8] sm:$0xf0]  ;;  %v16364_v15 = vld [vmem:[%s25549_s7 + $0x660] sm:$0xf] }
 0x755   : > { %9228 = vmatpush.bf16.msrb.mxu1 %v16261_v3  ;;  %v16228_v3 = vld [vmem:[%s25549_s7 + $0x590] sm:$0xf] }
 0x756   : > { %v7803_v54 = vpop.f32.mrf.mxu0  ;;  %v16229_v18 = vor.u32 %v18721_v50, %v16228_v3  ;;  %v16433_v50 = vor.u32 %v18762_v24, %v16430_v58  ;;  %v16404_v24 = vld [vmem:[%s25549_s7 + $0x6b0] sm:$0xf]  ;;  %v18757_v58 = vld [vmem:[%s25549_s7 + $0x6b4] sm:$0xf0] }
 0x757   : > { %v7821_v60 = vpop.f32.mrf.mxu1  ;;  %9247 = vmatpush.bf16.msra.mxu2 %v16193_v53  ;;  %v16165_v53 = vor.u32 %v18705_v31, %v16164_v41  ;;  %v18747_v41 = vld [vmem:[%s25549_s7 + $0x664] sm:$0xf0] }
 0x758   : > { %v23755_v9 = vadd.f32 %v7821_v60, %v7803_v54  ;;  %9211 = vmatpush.bf16.msrb.mxu0 %v16189_v49  ;;  %9266 = vmatpush.bf16.msra.mxu3 %v16249_v1  ;;  %v18703_v49 = vld [vmem:[%s25549_s7 + $0x504] sm:$0xf0]  ;;  %v16374_v54 = vld [vmem:[%s25549_s7 + $0x678] sm:$0xf0]  ;;  %v16372_v1 = vld [vmem:[%s25549_s7 + $0x670] sm:$0xf] }
 0x759   : > { %9229 = vmatpush.bf16.msrb.mxu1 %v16253_v32  ;;  %8929 = vmatmul.bf16.vlgmr.msra.gmra.mxu0 %v8738_v6  ;;  %v16220_v32 = vld [vmem:[%s25549_s7 + $0x580] sm:$0xf]  ;;  %v16157_v60 = vor.u32 %v18703_v49, %v16156_v51  ;;  %v16420_v51 = vld [vmem:[%s25549_s7 + $0x6d0] sm:$0xf]  ;;  %v18761_v49 = vld [vmem:[%s25549_s7 + $0x6d4] sm:$0xf0] }
 0x75a   : > { %8947 = vmatmul.bf16.vlgmr.msra.gmra.mxu1 %v8750_v46  ;;  %8965 = vmatmul.bf16.vlgmr.msrb.gmra.mxu2 %v8738_v6  ;;  %v16221_v6 = vor.u32 %v18719_v28, %v16220_v32 }
 0x75b   : > { %8983 = vmatmul.bf16.vlgmr.msrb.gmra.mxu3 %v8750_v46  ;;  %9248 = vmatpush.bf16.msra.mxu2 %v16185_v8  ;;  %v16438_v8 = vld [vmem:[%s25549_s7 + $0x6f8] sm:$0xf0]  ;;  %v18749_v46 = vld [vmem:[%s25549_s7 + $0x674] sm:$0xf0] }
 0x75c   : > { %9212 = vmatpush.bf16.msrb.mxu0 %v16181_v36  ;;  %9267 = vmatpush.bf16.msra.mxu3 %v16241_v61  ;;  %v16436_v36 = vld [vmem:[%s25549_s7 + $0x6f0] sm:$0xf]  ;;  %v16377_v61 = vor.u32 %v18748_v26, %v16374_v54  ;;  %v16441_v35 = vor.u32 %v18764_v39, %v16438_v8  ;;  %v16373_v10 = vor.u32 %v18749_v46, %v16372_v1  ;;  %v18742_v54 = vld [vmem:[%s25549_s7 + $0x644] sm:$0xf]  ;;  %v16414_v8 = vld [vmem:[%s25549_s7 + $0x6c8] sm:$0xf0] }
 0x75d   : > { %9230 = vmatpush.bf16.msrb.mxu1 %v16245_v63  ;;  %v7839_v12 = vpop.f32.mrf.mxu2  ;;  %v18765_v63 = vld [vmem:[%s25549_s7 + $0x6f4] sm:$0xf0]  ;;  %v16425_v26 = vor.u32 %v18760_v11, %v16422_v4  ;;  %v16421_v39 = vor.u32 %v18761_v49, %v16420_v51  ;;  %v16348_v1 = vld [vmem:[%s25549_s7 + $0x640] sm:$0xf]  ;;  %v18759_v46 = vld [vmem:[%s25549_s7 + $0x6c4] sm:$0xf0]  ;;  %v16405_v11 = vor.u32 %v18757_v58, %v16404_v24 }
 0x75e   : > { %v7857_v2 = vpop.f32.mrf.mxu3  ;;  %v7805_v55 = vpop.f32.mrf.mxu0  ;;  %v16398_v4 = vld [vmem:[%s25549_s7 + $0x6a8] sm:$0xf0]  ;;  %v18755_v51 = vld [vmem:[%s25549_s7 + $0x6a4] sm:$0xf0]  ;;  %v18782_v58 = vld [vmem:[%s25549_s7 + $0x774] sm:$0xf] }
 0x75f   : > { %v23807_v16 = vadd.f32 %v7857_v2, %v7839_v12  ;;  %v7823_v0 = vpop.f32.mrf.mxu1  ;;  %9249 = vmatpush.bf16.msra.mxu2 %v16177_v47  ;;  %v8999_v47 = vld [vmem:[#allocation9 + $0x8] sm:$0xee]  ;;  %v16428_v12 = vld [vmem:[%s25549_s7 + $0x6e0] sm:$0xf] }
 0x760   : > { %v23809_v20 = vadd.f32 %v7823_v0, %v7805_v55  ;;  %9213 = vmatpush.bf16.msrb.mxu0 %v16173_v62  ;;  %9268 = vmatpush.bf16.msra.mxu3 %v16233_v27  ;;  %v16366_v62 = vld [vmem:[%s25549_s7 + $0x668] sm:$0xf0]  ;;  %v18763_v2 = vld [vmem:[%s25549_s7 + $0x6e4] sm:$0xf0]  ;;  %v9034_v31 = vunpack.c.l.b16 %v8999_v47  ;;  %v18744_v55 = vld [vmem:[%s25549_s7 + $0x654] sm:$0xf]  ;;  %v9035_v25 = vunpack.c.h.b16 %v8999_v47 }
 0x761   : > { %9231 = vmatpush.bf16.msrb.mxu1 %v16237_v45  ;;  %v16437_v45 = vor.u32 %v18765_v63, %v16436_v36  ;;  %v16369_v3 = vor.u32 %v18746_v57, %v16366_v62  ;;  %v16358_v0 = vld [vmem:[%s25549_s7 + $0x658] sm:$0xf0]  ;;  %v16429_v27 = vor.u32 %v18763_v2, %v16428_v12  ;;  %v23943_v36 = vrot.slane %v23663_v5, 1  ;;  %v18740_v47 = vld [vmem:[%s25549_s7 + $0x634] sm:$0xf] }
 0x762   : > { %v9037_v63 = vpack.c.b16 %v23039_v42, %v9035_v25  ;;  %v16340_v57 = vld [vmem:[%s25549_s7 + $0x630] sm:$0xf]  ;;  %v16326_v25 = vld [vmem:[%s25549_s7 + $0x618] sm:$0xf0] }
 0x763   : > { %9250 = vmatpush.bf16.msra.mxu2 %v16169_v7  ;;  %v16365_v7 = vor.u32 %v18747_v41, %v16364_v15 }
 0x764   : > { %9214 = vmatpush.bf16.msrb.mxu0 %v16165_v53  ;;  %9269 = vmatpush.bf16.msra.mxu3 %v16225_v59  ;;  %v16356_v53 = vld [vmem:[%s25549_s7 + $0x650] sm:$0xf]  ;;  %v16361_v59 = vor.u32 %v18744_v55, %v16358_v0  ;;  %v9041_v2 = vrot.slane %v9037_v63, 1  ;;  %v18738_v55 = vld [vmem:[%s25549_s7 + $0x624] sm:$0xf] }
 0x765   : > { %9232 = vmatpush.bf16.msrb.mxu1 %v16229_v18  ;;  %v7841_v56 = vpop.f32.mrf.mxu2  ;;  %v16334_v0 = vld [vmem:[%s25549_s7 + $0x628] sm:$0xf0] }
 0x766   : > { %v7859_v29 = vpop.f32.mrf.mxu3  ;;  %v7808_v21 = vpop.f32.mrf.mxu0  ;;  %v16337_v49 = vor.u32 %v18738_v55, %v16334_v0  ;;  %v18783_v0 = vld [vmem:[%s25549_s7 + $0x774] sm:$0xf0] }
 0x767   : > { %v23861_v22 = vadd.f32 %v7859_v29, %v7841_v56  ;;  %v7826_v33 = vpop.f32.mrf.mxu1  ;;  %9251 = vmatpush.bf16.msra.mxu2 %v16161_v48  ;;  %v9036_v48 = vpack.c.b16 %v23037_v17, %v9034_v31  ;;  %v18758_v17 = vld [vmem:[%s25549_s7 + $0x6c4] sm:$0xf]  ;;  %v18743_v56 = vld [vmem:[%s25549_s7 + $0x644] sm:$0xf0]  ;;  %v16412_v29 = vld [vmem:[%s25549_s7 + $0x6c0] sm:$0xf] }
 0x768   : > { %v23865_v52 = vadd.f32 %v7826_v33, %v7808_v21  ;;  %9215 = vmatpush.bf16.msrb.mxu0 %v16157_v60  ;;  %9545 = vmatpush.bf16.msrb.mxu3 %v16441_v35  ;;  %v16350_v60 = vld [vmem:[%s25549_s7 + $0x648] sm:$0xf0]  ;;  %v23947_v33 = vrot.slane %v23670_v23, 1  ;;  %v16349_v5 = vor.u32 %v18743_v56, %v16348_v1  ;;  %v16413_v42 = vor.u32 %v18759_v46, %v16412_v29  ;;  %v18756_v23 = vld [vmem:[%s25549_s7 + $0x6b4] sm:$0xf] }
 0x769   : > { %9233 = vmatpush.bf16.msrb.mxu1 %v16221_v6  ;;  %8934 = vmatmul.bf16.gmra.mxu0 %v8753_v14  ;;  %v16357_v6 = vor.u32 %v18745_v13, %v16356_v53  ;;  %v9038_v21 = vrot.slane %v9036_v48, 1  ;;  %v16406_v35 = vld [vmem:[%s25549_s7 + $0x6b8] sm:$0xf0]  ;;  %v16332_v53 = vld [vmem:[%s25549_s7 + $0x620] sm:$0xf] }
 0x76a   : > { %8952 = vmatmul.bf16.gmra.mxu1 %v8756_v44  ;;  %8970 = vmatmul.bf16.gmra.mxu2 %v8753_v14  ;;  %v16353_v14 = vor.u32 %v18742_v54, %v16350_v60  ;;  %v16396_v13 = vld [vmem:[%s25549_s7 + $0x6a0] sm:$0xf]  ;;  %v16390_v54 = vld [vmem:[%s25549_s7 + $0x698] sm:$0xf0]  ;;  %v16324_v60 = vld [vmem:[%s25549_s7 + $0x610] sm:$0xf] }
 0x76b   : > { %8988 = vmatmul.bf16.gmra.mxu3 %v8756_v44  ;;  %9527 = vmatpush.bf16.msrb.mxu2 %v16377_v61  ;;  %v16417_v44 = vor.u32 %v18758_v17, %v16414_v8  ;;  %v16342_v61 = vld [vmem:[%s25549_s7 + $0x638] sm:$0xf0]  ;;  %v9040_v12 = vsel %vm1584_vm0, %v9038_v21, %v23943_v36  ;;  %v18737_v17 = vld [vmem:[%s25549_s7 + $0x614] sm:$0xf0]  ;;  %v16388_v8 = vld [vmem:[%s25549_s7 + $0x690] sm:$0xf] }
 0x76c   : > { %9491 = vmatpush.bf16.msra.mxu0 %v16373_v10  ;;  %9546 = vmatpush.bf16.msrb.mxu3 %v16433_v50  ;;  %v16409_v50 = vor.u32 %v18756_v23, %v16406_v35  ;;  %v18753_v1 = vld [vmem:[%s25549_s7 + $0x694] sm:$0xf0]  ;;  %v16316_v23 = vld [vmem:[%s25549_s7 + $0x600] sm:$0xf] }
 0x76d   : > { %9509 = vmatpush.bf16.msra.mxu1 %v16437_v45  ;;  %v7844_v18 = vpop.f32.mrf.mxu2  ;;  %v18741_v45 = vld [vmem:[%s25549_s7 + $0x634] sm:$0xf0] }
 0x76e   : > { %v7862_v40 = vpop.f32.mrf.mxu3  ;;  %v7810_v28 = vpop.f32.mrf.mxu0 }
 0x76f   : > { %v23915_v32 = vadd.f32 %v7862_v40, %v7844_v18  ;;  %v7828_v30 = vpop.f32.mrf.mxu1  ;;  %9528 = vmatpush.bf16.msrb.mxu2 %v16369_v3  ;;  %v16345_v3 = vor.u32 %v18740_v47, %v16342_v61  ;;  %v18739_v40 = vld [vmem:[%s25549_s7 + $0x624] sm:$0xf0]  ;;  %v16318_v47 = vld [vmem:[%s25549_s7 + $0x608] sm:$0xf0] }
 0x770   : > { %9492 = vmatpush.bf16.msra.mxu0 %v16365_v7  ;;  %9547 = vmatpush.bf16.msrb.mxu3 %v16425_v26  ;;  %v9043_v7 = vsel %vm1584_vm0, %v9041_v2, %v23947_v33  ;;  %v18736_v30 = vld [vmem:[%s25549_s7 + $0x614] sm:$0xf]  ;;  %v16333_v48 = vor.u32 %v18739_v40, %v16332_v53 }
 0x771   : > { %9510 = vmatpush.bf16.msra.mxu1 %v16429_v27  ;;  %v16341_v27 = vor.u32 %v18741_v45, %v16340_v57  ;;  %v18752_v26 = vld [vmem:[%s25549_s7 + $0x694] sm:$0xf]  ;;  %v16329_v21 = vor.u32 %v18736_v30, %v16326_v25  ;;  %v18735_v57 = vld [vmem:[%s25549_s7 + $0x604] sm:$0xf0]  ;;  %v16598_v25 = vld [vmem:[%s25549_s7 + $0x7e8] sm:$0xf0] }
 0x772   : > { %v18798_v2 = vld [vmem:[%s25549_s7 + $0x7f4] sm:$0xf] }
 0x773   : > { %9529 = vmatpush.bf16.msrb.mxu2 %v16361_v59  ;;  %v16397_v59 = vor.u32 %v18755_v51, %v16396_v13  ;;  %v18780_v51 = vld [vmem:[%s25549_s7 + $0x764] sm:$0xf] }
 0x774   : > { %9493 = vmatpush.bf16.msra.mxu0 %v16357_v6  ;;  %9548 = vmatpush.bf16.msrb.mxu3 %v16417_v44  ;;  %v18734_v44 = vld [vmem:[%s25549_s7 + $0x604] sm:$0xf] }
 0x775   : > { %9511 = vmatpush.bf16.msra.mxu1 %v16421_v39  ;;  %v7846_v62 = vpop.f32.mrf.mxu2  ;;  %v16321_v45 = vor.u32 %v18734_v44, %v16318_v47  ;;  %v18795_v44 = vld [vmem:[%s25549_s7 + $0x7d4] sm:$0xf0] }
 0x776   : > { %v7864_v10 = vpop.f32.mrf.mxu3  ;;  %v8041_v15 = vpop.f32.mrf.mxu0  ;;  %v16380_v62 = vld [vmem:[%s25549_s7 + $0x680] sm:$0xf] }
 0x777   : > { %v8059_v41 = vpop.f32.mrf.mxu1  ;;  %v8042_v31 = vadd.f32 %v8041_v15, %v23755_v9  ;;  %9530 = vmatpush.bf16.msrb.mxu2 %v16353_v14  ;;  %v18754_v9 = vld [vmem:[%s25549_s7 + $0x6a4] sm:$0xf]  ;;  %v16393_v14 = vor.u32 %v18752_v26, %v16390_v54  ;;  %v18751_v10 = vld [vmem:[%s25549_s7 + $0x684] sm:$0xf0]  ;;  %v16542_v15 = vld [vmem:[%s25549_s7 + $0x778] sm:$0xf0] }
 0x778   : > { %9494 = vmatpush.bf16.msra.mxu0 %v16349_v5  ;;  %9549 = vmatpush.bf16.msrb.mxu3 %v16409_v50  ;;  %v16401_v28 = vor.u32 %v18754_v9, %v16398_v4  ;;  %v16389_v5 = vor.u32 %v18753_v1, %v16388_v8  ;;  %v16545_v40 = vor.u32 %v18782_v58, %v16542_v15  ;;  %v18781_v26 = vld [vmem:[%s25549_s7 + $0x764] sm:$0xf0]  ;;  %v16596_v54 = vld [vmem:[%s25549_s7 + $0x7e0] sm:$0xf]  ;;  %v16526_v8 = vld [vmem:[%s25549_s7 + $0x758] sm:$0xf0] }
 0x779   : > { %9512 = vmatpush.bf16.msra.mxu1 %v16413_v42  ;;  %v23993_v18 = vadd.f32 %v8059_v41, %v8042_v31  ;;  %9216 = vmatmul.bf16.vlgmr.msrb.gmra.mxu0 %v9040_v12  ;;  %v16382_v42 = vld [vmem:[%s25549_s7 + $0x688] sm:$0xf0]  ;;  %v16317_v41 = vor.u32 %v18735_v57, %v16316_v23  ;;  %v16606_v31 = vld [vmem:[%s25549_s7 + $0x7f8] sm:$0xf0]  ;;  %v18776_v23 = vld [vmem:[%s25549_s7 + $0x744] sm:$0xf] }
 0x77a   : > { %9234 = vmatmul.bf16.vlgmr.msrb.gmra.mxu1 %v9043_v7  ;;  %9252 = vmatmul.bf16.vlgmr.msra.gmra.mxu2 %v9040_v12  ;;  %v16381_v12 = vor.u32 %v18751_v10, %v16380_v62  ;;  %v16609_v13 = vor.u32 %v18798_v2, %v16606_v31  ;;  %v16518_v57 = vld [vmem:[%s25549_s7 + $0x748] sm:$0xf0]  ;;  %v16516_v58 = vld [vmem:[%s25549_s7 + $0x740] sm:$0xf]  ;;  %v18777_v15 = vld [vmem:[%s25549_s7 + $0x744] sm:$0xf0] }
 0x77b   : > { %9270 = vmatmul.bf16.vlgmr.msra.gmra.mxu3 %v9043_v7  ;;  %9531 = vmatpush.bf16.msrb.mxu2 %v16345_v3  ;;  %v16540_v3 = vld [vmem:[%s25549_s7 + $0x770] sm:$0xf]  ;;  %v16521_v2 = vor.u32 %v18776_v23, %v16518_v57 }
 0x77c   : > { %9495 = vmatpush.bf16.msra.mxu0 %v16341_v27  ;;  %9550 = vmatpush.bf16.msrb.mxu3 %v16401_v28  ;;  %v16604_v7 = vld [vmem:[%s25549_s7 + $0x7f0] sm:$0xf]  ;;  %v18799_v27 = vld [vmem:[%s25549_s7 + $0x7f4] sm:$0xf0] }
 0x77d   : > { %9513 = vmatpush.bf16.msra.mxu1 %v16405_v11  ;;  %v8077_v6 = vpop.f32.mrf.mxu2  ;;  %v16605_v30 = vor.u32 %v18799_v27, %v16604_v7  ;;  %v18790_v7 = vld [vmem:[%s25549_s7 + $0x7b4] sm:$0xf]  ;;  %v16574_v27 = vld [vmem:[%s25549_s7 + $0x7b8] sm:$0xf0] }
 0x77e   : > { %v8095_v39 = vpop.f32.mrf.mxu3  ;;  %v8078_v56 = vadd.f32 %v8077_v6, %v23807_v16  ;;  %v8043_v29 = vpop.f32.mrf.mxu0  ;;  %v16325_v16 = vor.u32 %v18737_v17, %v16324_v60  ;;  %v18797_v60 = vld [vmem:[%s25549_s7 + $0x7e4] sm:$0xf0]  ;;  %v18778_v17 = vld [vmem:[%s25549_s7 + $0x754] sm:$0xf] }
 0x77f   : > { %v8061_v46 = vpop.f32.mrf.mxu1  ;;  %v8044_v63 = vadd.f32 %v8043_v29, %v23809_v20  ;;  %9532 = vmatpush.bf16.msrb.mxu2 %v16337_v49  ;;  %v18750_v20 = vld [vmem:[%s25549_s7 + $0x684] sm:$0xf]  ;;  %v16534_v49 = vld [vmem:[%s25549_s7 + $0x768] sm:$0xf0]  ;;  %v16524_v29 = vld [vmem:[%s25549_s7 + $0x750] sm:$0xf] }
 0x780   : > { %v24036_v61 = vadd.f32 %v8095_v39, %v8078_v56  ;;  %9496 = vmatpush.bf16.msra.mxu0 %v16333_v48  ;;  %9551 = vmatpush.bf16.msrb.mxu3 %v16393_v14  ;;  %v16385_v24 = vor.u32 %v18750_v20, %v16382_v42  ;;  %v16532_v48 = vld [vmem:[%s25549_s7 + $0x760] sm:$0xf]  ;;  %v16537_v6 = vor.u32 %v18780_v51, %v16534_v49  ;;  %v16588_v14 = vld [vmem:[%s25549_s7 + $0x7d0] sm:$0xf] }
 0x781   : > { %9514 = vmatpush.bf16.msra.mxu1 %v16397_v59  ;;  %v24047_v35 = vadd.f32 %v8061_v46, %v8044_v63  ;;  %v16533_v1 = vor.u32 %v18781_v26, %v16532_v48  ;;  %v16597_v56 = vor.u32 %v18797_v60, %v16596_v54  ;;  %v16529_v20 = vor.u32 %v18778_v17, %v16526_v8  ;;  %v16502_v48 = vld [vmem:[%s25549_s7 + $0x728] sm:$0xf0]  ;;  %v18788_v60 = vld [vmem:[%s25549_s7 + $0x7a4] sm:$0xf]  ;;  %v18773_v8 = vld [vmem:[%s25549_s7 + $0x724] sm:$0xf0] }
 0x783   : > { %9533 = vmatpush.bf16.msrb.mxu2 %v16329_v21  ;;  %v18779_v21 = vld [vmem:[%s25549_s7 + $0x754] sm:$0xf0] }
 0x784   : > { %9497 = vmatpush.bf16.msra.mxu0 %v16325_v16  ;;  %9552 = vmatpush.bf16.msrb.mxu3 %v16385_v24  ;;  %v16525_v10 = vor.u32 %v18779_v21, %v16524_v29  ;;  %v16582_v24 = vld [vmem:[%s25549_s7 + $0x7c8] sm:$0xf0]  ;;  %v16494_v29 = vld [vmem:[%s25549_s7 + $0x718] sm:$0xf0]  ;;  %v16492_v21 = vld [vmem:[%s25549_s7 + $0x710] sm:$0xf] }
 0x785   : > { %9515 = vmatpush.bf16.msra.mxu1 %v16389_v5  ;;  %v8079_v50 = vpop.f32.mrf.mxu2 }
 0x786   : > { %v8097_v55 = vpop.f32.mrf.mxu3  ;;  %v8080_v11 = vadd.f32 %v8079_v50, %v23861_v22  ;;  %v8046_v9 = vpop.f32.mrf.mxu0  ;;  %v16541_v22 = vor.u32 %v18783_v0, %v16540_v3  ;;  %v18774_v3 = vld [vmem:[%s25549_s7 + $0x734] sm:$0xf]  ;;  %v16510_v50 = vld [vmem:[%s25549_s7 + $0x738] sm:$0xf0] }
 0x787   : > { %v8064_v4 = vpop.f32.mrf.mxu1  ;;  %v8047_v53 = vadd.f32 %v8046_v9, %v23865_v52  ;;  %9534 = vmatpush.bf16.msrb.mxu2 %v16321_v45  ;;  %v18796_v52 = vld [vmem:[%s25549_s7 + $0x7e4] sm:$0xf] }
 0x788   : > { %v24090_v28 = vadd.f32 %v8097_v55, %v8080_v11  ;;  %9498 = vmatpush.bf16.msra.mxu0 %v16317_v41  ;;  %9870 = vmatpush.bf16.msra.mxu3 %v16609_v13  ;;  %v16601_v39 = vor.u32 %v18796_v52, %v16598_v25  ;;  %v18792_v45 = vld [vmem:[%s25549_s7 + $0x7c4] sm:$0xf]  ;;  %v16580_v41 = vld [vmem:[%s25549_s7 + $0x7c0] sm:$0xf]  ;;  %v16517_v55 = vor.u32 %v18777_v15, %v16516_v58  ;;  %v16508_v11 = vld [vmem:[%s25549_s7 + $0x730] sm:$0xf] }
 0x789   : > { %9516 = vmatpush.bf16.msra.mxu1 %v16381_v12  ;;  %v24101_v59 = vadd.f32 %v8064_v4, %v8047_v53  ;;  %9221 = vmatmul.bf16.gmra.mxu0 %v23943_v36  ;;  %v18793_v12 = vld [vmem:[%s25549_s7 + $0x7c4] sm:$0xf0]  ;;  %v16585_v31 = vor.u32 %v18792_v45, %v16582_v24  ;;  %v18775_v53 = vld [vmem:[%s25549_s7 + $0x734] sm:$0xf0]  ;;  %v16577_v52 = vor.u32 %v18790_v7, %v16574_v27  ;;  %v18772_v25 = vld [vmem:[%s25549_s7 + $0x724] sm:$0xf] }
 0x78a   : > { %9239 = vmatmul.bf16.gmra.mxu1 %v23947_v33  ;;  %9257 = vmatmul.bf16.gmra.mxu2 %v23943_v36  ;;  %v18794_v36 = vld [vmem:[%s25549_s7 + $0x7d4] sm:$0xf]  ;;  %v16581_v0 = vor.u32 %v18793_v12, %v16580_v41  ;;  %v18791_v13 = vld [vmem:[%s25549_s7 + $0x7b4] sm:$0xf0]  ;;  %v16509_v26 = vor.u32 %v18775_v53, %v16508_v11  ;;  %v18768_v45 = vld [vmem:[%s25549_s7 + $0x704] sm:$0xf] }
 0x78b   : > { %9275 = vmatmul.bf16.gmra.mxu3 %v23947_v33  ;;  %9852 = vmatpush.bf16.msra.mxu2 %v16545_v40  ;;  %v16590_v33 = vld [vmem:[%s25549_s7 + $0x7d8] sm:$0xf0]  ;;  %v16572_v40 = vld [vmem:[%s25549_s7 + $0x7b0] sm:$0xf]  ;;  %v16486_v24 = vld [vmem:[%s25549_s7 + $0x708] sm:$0xf0] }
 0x78c   : > { %9816 = vmatpush.bf16.msrb.mxu0 %v16541_v22  ;;  %9871 = vmatpush.bf16.msra.mxu3 %v16601_v39  ;;  %v16593_v42 = vor.u32 %v18794_v36, %v16590_v33  ;;  %v16573_v54 = vor.u32 %v18791_v13, %v16572_v40  ;;  %v16500_v39 = vld [vmem:[%s25549_s7 + $0x720] sm:$0xf]  ;;  %v18770_v33 = vld [vmem:[%s25549_s7 + $0x714] sm:$0xf]  ;;  %v9569_v58 = vld [vmem:[#allocation9 + $0x10] sm:$0xff]  ;;  %v16489_v53 = vor.u32 %v18768_v45, %v16486_v24 }
 0x78d   : > { %9834 = vmatpush.bf16.msrb.mxu1 %v16605_v30  ;;  %v8082_v46 = vpop.f32.mrf.mxu2  ;;  %v16513_v30 = vor.u32 %v18774_v3, %v16510_v50  ;;  %v24252_v15 = vld [vmem:[#allocation9 + $0x18] sm:$0xff]  ;;  %v16550_v3 = vld [vmem:[%s25549_s7 + $0x788] sm:$0xf0]  ;;  %v16484_v50 = vld [vmem:[%s25549_s7 + $0x700] sm:$0xf] }
 0x78e   : > { %v8100_v63 = vpop.f32.mrf.mxu3  ;;  %v8083_v47 = vadd.f32 %v8082_v46, %v23915_v32  ;;  %v8048_v16 = vpop.f32.mrf.mxu0  ;;  %v16589_v32 = vor.u32 %v18795_v44, %v16588_v14  ;;  %v16501_v46 = vor.u32 %v18773_v8, %v16500_v39  ;;  %v18769_v27 = vld [vmem:[%s25549_s7 + $0x704] sm:$0xf0]  ;;  %v16548_v11 = vld [vmem:[%s25549_s7 + $0x780] sm:$0xf]  ;;  %v18814_v13 = vld [vmem:[%s25549_s7 + $0x874] sm:$0xf] }
 0x78f   : > { %v8066_v5 = vpop.f32.mrf.mxu1  ;;  %9853 = vmatpush.bf16.msra.mxu2 %v16537_v6  ;;  %v16566_v6 = vld [vmem:[%s25549_s7 + $0x7a8] sm:$0xf0]  ;;  %v16556_v16 = vld [vmem:[%s25549_s7 + $0x790] sm:$0xf]  ;;  %v18815_v8 = vld [vmem:[%s25549_s7 + $0x874] sm:$0xf0] }
 0x790   : > { %v24147_v62 = vadd.f32 %v8100_v63, %v8083_v47  ;;  %9817 = vmatpush.bf16.msrb.mxu0 %v16533_v1  ;;  %9872 = vmatpush.bf16.msra.mxu3 %v16593_v42  ;;  %v16564_v1 = vld [vmem:[%s25549_s7 + $0x7a0] sm:$0xf]  ;;  %v16569_v36 = vor.u32 %v18788_v60, %v16566_v6  ;;  %v18771_v47 = vld [vmem:[%s25549_s7 + $0x714] sm:$0xf0]  ;;  %v18829_v45 = vld [vmem:[%s25549_s7 + $0x8e4] sm:$0xf0] }
 0x791   : > { %9835 = vmatpush.bf16.msrb.mxu1 %v16597_v56  ;;  %v18789_v56 = vld [vmem:[%s25549_s7 + $0x7a4] sm:$0xf0]  ;;  %v18787_v5 = vld [vmem:[%s25549_s7 + $0x794] sm:$0xf0]  ;;  %v16493_v12 = vor.u32 %v18771_v47, %v16492_v21  ;;  %v16694_v47 = vld [vmem:[%s25549_s7 + $0x868] sm:$0xf0] }
 0x792   : > { %v16565_v63 = vor.u32 %v18789_v56, %v16564_v1  ;;  %v16764_v1 = vld [vmem:[%s25549_s7 + $0x8f0] sm:$0xf]  ;;  %v18831_v56 = vld [vmem:[%s25549_s7 + $0x8f4] sm:$0xf0] }
 0x793   : > { %9854 = vmatpush.bf16.msra.mxu2 %v16529_v20 }
 0x794   : > { %9818 = vmatpush.bf16.msrb.mxu0 %v16525_v10  ;;  %9873 = vmatpush.bf16.msra.mxu3 %v16585_v31  ;;  %v16497_v10 = vor.u32 %v18770_v33, %v16494_v29  ;;  %v18784_v31 = vld [vmem:[%s25549_s7 + $0x784] sm:$0xf] }
 0x795   : > { %9836 = vmatpush.bf16.msrb.mxu1 %v16589_v32  ;;  %v8084_v9 = vpop.f32.mrf.mxu2  ;;  %v16553_v40 = vor.u32 %v18784_v31, %v16550_v3  ;;  %v18810_v3 = vld [vmem:[%s25549_s7 + $0x854] sm:$0xf] }
 0x796   : > { %v8102_v4 = vpop.f32.mrf.mxu3  ;;  %v8322_v51 = vpop.f32.mrf.mxu0  ;;  %v18785_v9 = vld [vmem:[%s25549_s7 + $0x784] sm:$0xf0] }
 0x797   : > { %v8340_v49 = vpop.f32.mrf.mxu1  ;;  %9855 = vmatpush.bf16.msra.mxu2 %v16521_v2  ;;  %v16557_v2 = vor.u32 %v18787_v5, %v16556_v16  ;;  %v9612_v4 = vunpack.c.l.b16 %v24252_v15 }
 0x798   : > { %v8341_v22 = vadd.f32 %v8340_v49, %v8322_v51  ;;  %9819 = vmatpush.bf16.msrb.mxu0 %v16517_v55  ;;  %9874 = vmatpush.bf16.msra.mxu3 %v16577_v52  ;;  %v16702_v51 = vld [vmem:[%s25549_s7 + $0x878] sm:$0xf0]  ;;  %v16485_v49 = vor.u32 %v18769_v27, %v16484_v50  ;;  %v9611_v52 = vunpack.c.h.b16 %v9569_v58  ;;  %v18826_v27 = vld [vmem:[%s25549_s7 + $0x8d4] sm:$0xf] }
 0x799   : > { %9837 = vmatpush.bf16.msrb.mxu1 %v16581_v0  ;;  %9499 = vmatmul.bf16.vlgmr.msra.gmra.mxu0 %v23061_v34  ;;  %v16705_v21 = vor.u32 %v18814_v13, %v16702_v51  ;;  %v16686_v50 = vld [vmem:[%s25549_s7 + $0x858] sm:$0xf0]  ;;  %v18811_v51 = vld [vmem:[%s25549_s7 + $0x854] sm:$0xf0] }
 0x79a   : > { %v24207_v17 = vadd.f32 %v8341_v22, %v23993_v18  ;;  %9517 = vmatmul.bf16.vlgmr.msra.gmra.mxu1 %v23065_v37  ;;  %9535 = vmatmul.bf16.vlgmr.msrb.gmra.mxu2 %v23061_v34  ;;  %v16505_v18 = vor.u32 %v18772_v25, %v16502_v48  ;;  %v18786_v34 = vld [vmem:[%s25549_s7 + $0x794] sm:$0xf]  ;;  %v16549_v22 = vor.u32 %v18785_v9, %v16548_v11  ;;  %v16766_v48 = vld [vmem:[%s25549_s7 + $0x8f8] sm:$0xf0]  ;;  %v16684_v9 = vld [vmem:[%s25549_s7 + $0x850] sm:$0xf] }
 0x79b   : > { %9553 = vmatmul.bf16.vlgmr.msrb.gmra.mxu3 %v23065_v37  ;;  %9856 = vmatpush.bf16.msra.mxu2 %v16513_v30  ;;  %v16558_v37 = vld [vmem:[%s25549_s7 + $0x798] sm:$0xf0]  ;;  %v9610_v30 = vunpack.c.l.b16 %v9569_v58  ;;  %v18830_v25 = vld [vmem:[%s25549_s7 + $0x8f4] sm:$0xf]  ;;  %v16478_v58 = vld [vmem:[#allocation9 + $0x28] sm:$0x10] }
 0x79c   : > { %9820 = vmatpush.bf16.msrb.mxu0 %v16509_v26  ;;  %9875 = vmatpush.bf16.msra.mxu3 %v16569_v36  ;;  %v16561_v32 = vor.u32 %v18786_v34, %v16558_v37  ;;  %v16700_v26 = vld [vmem:[%s25549_s7 + $0x870] sm:$0xf]  ;;  %v16476_v34 = vld [vmem:[#allocation9 + $0x20] sm:$0xf]  ;;  %v18767_v37 = vld [vmem:[#allocation9 + $0x24] sm:$0x10] }
 0x79d   : > { %9838 = vmatpush.bf16.msrb.mxu1 %v16573_v54  ;;  %v8358_v14 = vpop.f32.mrf.mxu2  ;;  %v24306_v29 = vpack.c.b16 %v9612_v4, %v9610_v30  ;;  %v16701_v5 = vor.u32 %v18815_v8, %v16700_v26  ;;  %v16750_v11 = vld [vmem:[%s25549_s7 + $0x8d8] sm:$0xf0] }
 0x79e   : > { %v8376_v44 = vpop.f32.mrf.mxu3  ;;  %v8324_v42 = vpop.f32.mrf.mxu0  ;;  %v16753_v8 = vor.u32 %v18826_v27, %v16750_v11 }
 0x79f   : > { %v8377_v20 = vadd.f32 %v8376_v44, %v8358_v14  ;;  %v8342_v23 = vpop.f32.mrf.mxu1  ;;  %9857 = vmatpush.bf16.msra.mxu2 %v16505_v18  ;;  %v16769_v14 = vor.u32 %v18830_v25, %v16766_v48  ;;  %v18812_v44 = vld [vmem:[%s25549_s7 + $0x864] sm:$0xf]  ;;  %v9625_v24 = vshll.u32 %v24306_v29, 16  ;;  %v9623_v48 = vshrl.u32 %v24306_v29, 16 }
 0x7a0   : > { %v8343_v57 = vadd.f32 %v8342_v23, %v8324_v42  ;;  %9821 = vmatpush.bf16.msrb.mxu0 %v16501_v46  ;;  %9876 = vmatpush.bf16.msra.mxu3 %v16561_v32  ;;  %v18828_v42 = vld [vmem:[%s25549_s7 + $0x8e4] sm:$0xf]  ;;  %v16758_v23 = vld [vmem:[%s25549_s7 + $0x8e8] sm:$0xf0]  ;;  %v16756_v32 = vld [vmem:[%s25549_s7 + $0x8e0] sm:$0xf] }
 0x7a1   : > { %v24255_v41 = vadd.f32 %v8377_v20, %v24036_v61  ;;  %9839 = vmatpush.bf16.msrb.mxu1 %v16565_v63  ;;  %v19234_v61 = vld [vmem:[#allocation9 + $0x20] sm:$0xff]  ;;  %v16765_v20 = vor.u32 %v18831_v56, %v16764_v1  ;;  %v16761_v31 = vor.u32 %v18828_v42, %v16758_v23  ;;  %v9627_v26 = vrot.slane %v9625_v24, 1  ;;  %v18808_v1 = vld [vmem:[%s25549_s7 + $0x844] sm:$0xf]  ;;  %v16678_v56 = vld [vmem:[%s25549_s7 + $0x848] sm:$0xf0] }
 0x7a2   : > { %v24267_v55 = vadd.f32 %v8343_v57, %v24047_v35  ;;  %v9321_v0 = vunpack.c.l.b16 %v19234_v61  ;;  %v9322_v7 = vunpack.c.h.b16 %v19234_v61  ;;  %v9613_v35 = vunpack.c.h.b16 %v24252_v15  ;;  %v16692_v57 = vld [vmem:[%s25549_s7 + $0x860] sm:$0xf]  ;;  %v18824_v29 = vld [vmem:[%s25549_s7 + $0x8c4] sm:$0xf]  ;;  %v18806_v23 = vld [vmem:[%s25549_s7 + $0x834] sm:$0xf] }
 0x7a3   : > { %9858 = vmatpush.bf16.msra.mxu2 %v16497_v10  ;;  %v24350_v61 = vor.u32 %v18767_v37, %v16476_v34  ;;  %v16676_v34 = vld [vmem:[%s25549_s7 + $0x840] sm:$0xf]  ;;  %v16734_v24 = vld [vmem:[%s25549_s7 + $0x8b8] sm:$0xf0] }
 0x7a4   : > { %9822 = vmatpush.bf16.msrb.mxu0 %v16493_v12  ;;  %v9325_v6 = vpack.c.b16 %v9321_v0, %v9321_v0  ;;  %v9326_v39 = vpack.c.b16 %v9322_v7, %v9322_v7  ;;  %v24310_v46 = vpack.c.b16 %v9613_v35, %v9611_v52  ;;  %9877 = vmatpush.bf16.msra.mxu3 %v16553_v40  ;;  %v16740_v37 = vld [vmem:[%s25549_s7 + $0x8c0] sm:$0xf] }
 0x7a5   : > { %9840 = vmatpush.bf16.msrb.mxu1 %v16557_v2  ;;  %v8360_v54 = vpop.f32.mrf.mxu2  ;;  %v16697_v2 = vor.u32 %v18812_v44, %v16694_v47  ;;  %v16757_v7 = vor.u32 %v18829_v45, %v16756_v32 }
 0x7a6   : > { %v8378_v60 = vpop.f32.mrf.mxu3  ;;  %v8327_v36 = vpop.f32.mrf.mxu0  ;;  %v9637_v12 = vshll.u32 %v24310_v46, 16  ;;  %v9635_v47 = vshrl.u32 %v24310_v46, 16  ;;  %v18822_v46 = vld [vmem:[%s25549_s7 + $0x8b4] sm:$0xf] }
 0x7a7   : > { %v8379_v18 = vadd.f32 %v8378_v60, %v8360_v54  ;;  %v8345_v33 = vpop.f32.mrf.mxu1  ;;  %9859 = vmatpush.bf16.msra.mxu2 %v16489_v53  ;;  %v9630_v54 = vshll.u32 %v24350_v61, 16 }
 0x7a8   : > { %v8346_v63 = vadd.f32 %v8345_v33, %v8327_v36  ;;  %9823 = vmatpush.bf16.msrb.mxu0 %v16485_v49  ;;  %10157 = vmatpush.bf16.msrb.mxu3 %v16769_v14  ;;  %v16748_v49 = vld [vmem:[%s25549_s7 + $0x8d0] sm:$0xf]  ;;  %v9639_v60 = vrot.slane %v9637_v12, 1  ;;  %v16685_v36 = vor.u32 %v18811_v51, %v16684_v9  ;;  %v9628_v14 = vor.u32 %v9627_v26, %v9623_v48  ;;  %v18805_v26 = vld [vmem:[%s25549_s7 + $0x824] sm:$0xf0] }
 0x7a9   : > { %v24319_v16 = vadd.f32 %v8379_v18, %v24090_v28  ;;  %9841 = vmatpush.bf16.msrb.mxu1 %v16549_v22  ;;  %9504 = vmatmul.bf16.gmra.mxu0 %v9325_v6  ;;  %v18813_v28 = vld [vmem:[%s25549_s7 + $0x864] sm:$0xf0]  ;;  %v18827_v22 = vld [vmem:[%s25549_s7 + $0x8d4] sm:$0xf0]  ;;  %v24402_v44 = vrot.slane %v9630_v54, 1  ;;  %v16737_v9 = vor.u32 %v18822_v46, %v16734_v24 }
 0x7aa   : > { %v24331_v10 = vadd.f32 %v8346_v63, %v24101_v59  ;;  %9522 = vmatmul.bf16.gmra.mxu1 %v9326_v39  ;;  %9540 = vmatmul.bf16.gmra.mxu2 %v9325_v6  ;;  %v18766_v59 = vld [vmem:[#allocation9 + $0x24] sm:$0xf]  ;;  %v16693_v0 = vor.u32 %v18813_v28, %v16692_v57  ;;  %v16749_v33 = vor.u32 %v18827_v22, %v16748_v49  ;;  %v16742_v63 = vld [vmem:[%s25549_s7 + $0x8c8] sm:$0xf0]  ;;  %v16670_v57 = vld [vmem:[%s25549_s7 + $0x838] sm:$0xf0] }
 0x7ab   : > { %9558 = vmatmul.bf16.gmra.mxu3 %v9326_v39  ;;  %10139 = vmatpush.bf16.msrb.mxu2 %v16705_v21  ;;  %v24361_v13 = vor.u32 %v18766_v59, %v16478_v58  ;;  %v16689_v39 = vor.u32 %v18810_v3, %v16686_v50  ;;  %v18825_v21 = vld [vmem:[%s25549_s7 + $0x8c4] sm:$0xf0]  ;;  %v16745_v42 = vor.u32 %v18824_v29, %v16742_v63  ;;  %v16668_v59 = vld [vmem:[%s25549_s7 + $0x830] sm:$0xf]  ;;  %v18823_v3 = vld [vmem:[%s25549_s7 + $0x8b4] sm:$0xf0] }
 0x7ac   : > { %10103 = vmatpush.bf16.msra.mxu0 %v16701_v5  ;;  %10158 = vmatpush.bf16.msrb.mxu3 %v16761_v31  ;;  %v9640_v28 = vor.u32 %v9639_v60, %v9635_v47  ;;  %v16741_v45 = vor.u32 %v18825_v21, %v16740_v37  ;;  %v16732_v31 = vld [vmem:[%s25549_s7 + $0x8b0] sm:$0xf]  ;;  %v16673_v11 = vor.u32 %v18806_v23, %v16670_v57  ;;  %v16724_v54 = vld [vmem:[%s25549_s7 + $0x8a0] sm:$0xf]  ;;  %v18821_v60 = vld [vmem:[%s25549_s7 + $0x8a4] sm:$0xf0] }
 0x7ad   : > { %10121 = vmatpush.bf16.msra.mxu1 %v16765_v20  ;;  %v8363_v53 = vpop.f32.mrf.mxu2  ;;  %v9642_v6 = vshll.u32 %v24361_v13, 16  ;;  %v16681_v20 = vor.u32 %v18808_v1, %v16678_v56  ;;  %v16733_v22 = vor.u32 %v18823_v3, %v16732_v31  ;;  %v16725_v56 = vor.u32 %v18821_v60, %v16724_v54  ;;  %v16652_v29 = vld [vmem:[%s25549_s7 + $0x810] sm:$0xf]  ;;  %v18819_v21 = vld [vmem:[%s25549_s7 + $0x894] sm:$0xf0] }
 0x7ae   : > { %v8381_v40 = vpop.f32.mrf.mxu3  ;;  %v8329_v52 = vpop.f32.mrf.mxu0  ;;  %v16716_v37 = vld [vmem:[%s25549_s7 + $0x890] sm:$0xf]  ;;  %v9649_v23 = vshrl.u32 %v24361_v13, 16  ;;  %v16708_v31 = vld [vmem:[%s25549_s7 + $0x880] sm:$0xf] }
 0x7af   : > { %v8382_v30 = vadd.f32 %v8381_v40, %v8363_v53  ;;  %v8347_v25 = vpop.f32.mrf.mxu1  ;;  %10140 = vmatpush.bf16.msrb.mxu2 %v16697_v2  ;;  %v24405_v5 = vrot.slane %v9642_v6, 1  ;;  %v18807_v2 = vld [vmem:[%s25549_s7 + $0x834] sm:$0xf0]  ;;  %v18804_v53 = vld [vmem:[%s25549_s7 + $0x824] sm:$0xf] }
 0x7b0   : > { %10104 = vmatpush.bf16.msra.mxu0 %v16693_v0  ;;  %10159 = vmatpush.bf16.msrb.mxu3 %v16753_v8  ;;  %v16662_v40 = vld [vmem:[%s25549_s7 + $0x828] sm:$0xf0]  ;;  %v16669_v49 = vor.u32 %v18807_v2, %v16668_v59  ;;  %v16660_v25 = vld [vmem:[%s25549_s7 + $0x820] sm:$0xf]  ;;  %v16654_v8 = vld [vmem:[%s25549_s7 + $0x818] sm:$0xf0]  ;;  %v16717_v59 = vor.u32 %v18819_v21, %v16716_v37 }
 0x7b1   : > { %v24382_v18 = vadd.f32 %v8382_v30, %v24147_v62  ;;  %10122 = vmatpush.bf16.msra.mxu1 %v16757_v7  ;;  %v18809_v62 = vld [vmem:[%s25549_s7 + $0x844] sm:$0xf0]  ;;  %v9633_v7 = vsel %vm1427_vm1, %v9628_v14, %v24402_v44  ;;  %v9645_v51 = vsel %vm1427_vm1, %v9640_v28, %v24405_v5  ;;  %v18820_v30 = vld [vmem:[%s25549_s7 + $0x8a4] sm:$0xf]  ;;  %v16726_v52 = vld [vmem:[%s25549_s7 + $0x8a8] sm:$0xf0]  ;;  %v16661_v1 = vor.u32 %v18805_v26, %v16660_v25 }
 0x7b2   : > { %v16677_v32 = vor.u32 %v18809_v62, %v16676_v34  ;;  %v16729_v6 = vor.u32 %v18820_v30, %v16726_v52  ;;  %v18803_v62 = vld [vmem:[%s25549_s7 + $0x814] sm:$0xf0]  ;;  %v16644_v2 = vld [vmem:[%s25549_s7 + $0x800] sm:$0xf]  ;;  %v18817_v3 = vld [vmem:[%s25549_s7 + $0x884] sm:$0xf0] }
 0x7b3   : > { %10141 = vmatpush.bf16.msrb.mxu2 %v16689_v39  ;;  %v18802_v39 = vld [vmem:[%s25549_s7 + $0x814] sm:$0xf]  ;;  %v16653_v24 = vor.u32 %v18803_v62, %v16652_v29  ;;  %v9894_v52 = vld [vmem:[#allocation9 + $0x10] sm:$0xee] }
 0x7b4   : > { %10105 = vmatpush.bf16.msra.mxu0 %v16685_v36  ;;  %10160 = vmatpush.bf16.msrb.mxu3 %v16745_v42  ;;  %v18818_v36 = vld [vmem:[%s25549_s7 + $0x894] sm:$0xf]  ;;  %v9646_v42 = vshrl.u32 %v24350_v61, 16  ;;  %v16657_v57 = vor.u32 %v18802_v39, %v16654_v8 }
 0x7b5   : > { %10123 = vmatpush.bf16.msra.mxu1 %v16749_v33  ;;  %v8365_v58 = vpop.f32.mrf.mxu2  ;;  %v16718_v33 = vld [vmem:[%s25549_s7 + $0x898] sm:$0xf0] }
 0x7b6   : > { %v8383_v12 = vpop.f32.mrf.mxu3  ;;  %v8605_v50 = vpop.f32.mrf.mxu0  ;;  %v16721_v28 = vor.u32 %v18818_v36, %v16718_v33  ;;  %v18816_v58 = vld [vmem:[%s25549_s7 + $0x884] sm:$0xf]  ;;  %v9937_v36 = vrot.slane %v24361_v13, 1 }
 0x7b7   : > { %v8623_v0 = vpop.f32.mrf.mxu1  ;;  %10142 = vmatpush.bf16.msrb.mxu2 %v16681_v20  ;;  %v16710_v12 = vld [vmem:[%s25549_s7 + $0x888] sm:$0xf0] }
 0x7b8   : > { %v8624_v27 = vadd.f32 %v8623_v0, %v8605_v50  ;;  %10106 = vmatpush.bf16.msra.mxu0 %v16677_v32  ;;  %10161 = vmatpush.bf16.msrb.mxu3 %v16737_v9  ;;  %v18800_v32 = vld [vmem:[%s25549_s7 + $0x804] sm:$0xf]  ;;  %v16713_v0 = vor.u32 %v18816_v58, %v16710_v12 }
 0x7b9   : > { %10124 = vmatpush.bf16.msra.mxu1 %v16741_v45  ;;  %9824 = vmatmul.bf16.vlgmr.msrb.gmra.mxu0 %v9633_v7  ;;  %v16646_v45 = vld [vmem:[%s25549_s7 + $0x808] sm:$0xf0] }
 0x7ba   : > { %v24451_v48 = vadd.f32 %v8624_v27, %v24207_v17  ;;  %9842 = vmatmul.bf16.vlgmr.msrb.gmra.mxu1 %v9645_v51  ;;  %9860 = vmatmul.bf16.vlgmr.msra.gmra.mxu2 %v9633_v7  ;;  %v16665_v17 = vor.u32 %v18804_v53, %v16662_v40  ;;  %v16649_v50 = vor.u32 %v18800_v32, %v16646_v45 }
 0x7bb   : > { %9878 = vmatmul.bf16.vlgmr.msra.gmra.mxu3 %v9645_v51  ;;  %10143 = vmatpush.bf16.msrb.mxu2 %v16673_v11  ;;  %v16709_v27 = vor.u32 %v18817_v3, %v16708_v31  ;;  %v9648_v53 = vor.u32 %v9646_v42, %v24402_v44  ;;  %v9651_v40 = vor.u32 %v9649_v23, %v24405_v5  ;;  %v9929_v5 = vunpack.c.l.b16 %v9894_v52 }
 0x7bc   : > { %10107 = vmatpush.bf16.msra.mxu0 %v16669_v49  ;;  %10162 = vmatpush.bf16.msrb.mxu3 %v16729_v6 }
 0x7bd   : > { %10125 = vmatpush.bf16.msra.mxu1 %v16733_v22  ;;  %v8641_v63 = vpop.f32.mrf.mxu2  ;;  %v9931_v39 = vpack.c.b16 %v9612_v4, %v9929_v5 }
 0x7be   : > { %v8659_v34 = vpop.f32.mrf.mxu3  ;;  %v24486_v47 = vpop.f32.mrf.mxu0 }
 0x7bf   : > { %v8660_v14 = vadd.f32 %v8659_v34, %v8641_v63  ;;  %v24488_v20 = vpop.f32.mrf.mxu1  ;;  %10144 = vmatpush.bf16.msrb.mxu2 %v16665_v17  ;;  %v9930_v17 = vunpack.c.h.b16 %v9894_v52  ;;  %v9933_v8 = vrot.slane %v9931_v39, 1 }
 0x7c0   : > { %10108 = vmatpush.bf16.msra.mxu0 %v16661_v1  ;;  %10163 = vmatpush.bf16.msrb.mxu3 %v16721_v28  ;;  %v9934_v1 = vrot.slane %v24350_v61, 1 }
 0x7c1   : > { %v24499_v46 = vadd.f32 %v8660_v14, %v24255_v41  ;;  %10126 = vmatpush.bf16.msra.mxu1 %v16725_v56  ;;  %v18801_v41 = vld [vmem:[%s25549_s7 + $0x804] sm:$0xf0] }
 0x7c2   : > { %v16645_v7 = vor.u32 %v18801_v41, %v16644_v2  ;;  %v9935_v37 = vsel %vm1584_vm0, %v9933_v8, %v9934_v1 }
 0x7c3   : > { %10145 = vmatpush.bf16.msrb.mxu2 %v16657_v57 }
 0x7c4   : > { %10109 = vmatpush.bf16.msra.mxu0 %v16653_v24  ;;  %10164 = vmatpush.bf16.msrb.mxu3 %v16713_v0 }
 0x7c5   : > { %10127 = vmatpush.bf16.msra.mxu1 %v16717_v59  ;;  %v24519_v11 = vpop.f32.mrf.mxu2 }
 0x7c6   : > { %v24521_v9 = vpop.f32.mrf.mxu3  ;;  %v8610_v51 = vpop.f32.mrf.mxu0 }
 0x7c7   : > { %v8628_v49 = vpop.f32.mrf.mxu1  ;;  %10146 = vmatpush.bf16.msrb.mxu2 %v16649_v50 }
 0x7c8   : > { %v8629_v22 = vadd.f32 %v8628_v49, %v8610_v51  ;;  %10110 = vmatpush.bf16.msra.mxu0 %v16645_v7 }
 0x7c9   : > { %10128 = vmatpush.bf16.msra.mxu1 %v16709_v27  ;;  %9829 = vmatmul.bf16.gmra.mxu0 %v9648_v53 }
 0x7ca   : > { %v8672_v30 = vadd.f32 %v8629_v22, %v24331_v10  ;;  %9847 = vmatmul.bf16.gmra.mxu1 %v9651_v40  ;;  %9865 = vmatmul.bf16.gmra.mxu2 %v9648_v53  ;;  %v9932_v10 = vpack.c.b16 %v9613_v35, %v9930_v17 }
 0x7cb   : > { %9883 = vmatmul.bf16.gmra.mxu3 %v9651_v40 }
 0x7cc   : > { %v9936_v56 = vrot.slane %v9932_v10, 1 }
 0x7cd   : > { %v8646_v25 = vpop.f32.mrf.mxu2 }
 0x7ce   : > { %v8664_v26 = vpop.f32.mrf.mxu3  ;;  %v8612_v44 = vpop.f32.mrf.mxu0 }
 0x7cf   : > { %v8665_v54 = vadd.f32 %v8664_v26, %v8646_v25  ;;  %v8630_v60 = vpop.f32.mrf.mxu1 }
 0x7d1   : > { %v8673_v6 = vadd.f32 %v8665_v54, %v24382_v18  ;;  %v9938_v18 = vsel %vm1584_vm0, %v9936_v56, %v9937_v36 }
 0x7d5   : > { %v8648_v33 = vpop.f32.mrf.mxu2 }
 0x7d6   : > { %v8666_v29 = vpop.f32.mrf.mxu3  ;;  %v8930_v63 = vpop.f32.mrf.mxu0 }
 0x7d7   : > { %v8948_v34 = vpop.f32.mrf.mxu1 }
 0x7d8   : > { %v8949_v62 = vadd.f32 %v8948_v34, %v8930_v63 }
 0x7d9   : > { %10111 = vmatmul.bf16.vlgmr.msra.gmra.mxu0 %v9935_v37 }
 0x7da   : > { %v8993_v4 = vadd.f32 %v8949_v62, %v24451_v48  ;;  %10129 = vmatmul.bf16.vlgmr.msra.gmra.mxu1 %v9938_v18  ;;  %10147 = vmatmul.bf16.vlgmr.msrb.gmra.mxu2 %v9935_v37 }
 0x7db   : > { %10165 = vmatmul.bf16.vlgmr.msrb.gmra.mxu3 %v9938_v18 }
 0x7dd   : > { %v8966_v15 = vpop.f32.mrf.mxu2 }
 0x7de   : > { %v8984_v35 = vpop.f32.mrf.mxu3  ;;  %v24536_v21 = vpop.f32.mrf.mxu0 }
 0x7df   : > { %v8985_v61 = vadd.f32 %v8984_v35, %v8966_v15  ;;  %v24538_v13 = vpop.f32.mrf.mxu1 }
 0x7e1   : > { %v8994_v14 = vadd.f32 %v8985_v61, %v24499_v46 }
 0x7e5   : > { %v24541_v42 = vpop.f32.mrf.mxu2 }
 0x7e6   : > { %v24543_v23 = vpop.f32.mrf.mxu3  ;;  %v8935_v57 = vpop.f32.mrf.mxu0 }
 0x7e7   : > { %v8953_v28 = vpop.f32.mrf.mxu1 }
 0x7e8   : > { %v8954_v48 = vadd.f32 %v8953_v28, %v8935_v57 }
 0x7e9   : > { %10116 = vmatmul.bf16.gmra.mxu0 %v9934_v1 }
 0x7ea   : > { %v8997_v32 = vadd.f32 %v8954_v48, %v8672_v30  ;;  %10134 = vmatmul.bf16.gmra.mxu1 %v9937_v36  ;;  %10152 = vmatmul.bf16.gmra.mxu2 %v9934_v1 }
 0x7eb   : > { %10170 = vmatmul.bf16.gmra.mxu3 %v9937_v36 }
 0x7ed   : > { %v8971_v45 = vpop.f32.mrf.mxu2 }
 0x7ee   : > { %v8989_v24 = vpop.f32.mrf.mxu3  ;;  %v8937_v58 = vpop.f32.mrf.mxu0 }
 0x7ef   : > { %v8990_v59 = vadd.f32 %v8989_v24, %v8971_v45  ;;  %v8955_v12 = vpop.f32.mrf.mxu1 }
 0x7f1   : > { %v8998_v2 = vadd.f32 %v8990_v59, %v8673_v6 }
 0x7f5   : > { %v8973_v41 = vpop.f32.mrf.mxu2 }
 0x7f6   : > { %v8991_v46 = vpop.f32.mrf.mxu3  ;;  %v9217_v31 = vpop.f32.mrf.mxu0 }
 0x7f7   : > { %v9235_v3 = vpop.f32.mrf.mxu1 }
 0x7f8   : > { %v9236_v50 = vadd.f32 %v9235_v3, %v9217_v31 }
 0x7fa   : > { %v9280_v0 = vadd.f32 %v9236_v50, %v8993_v4 }
 0x7fd   : > { %v9253_v7 = vpop.f32.mrf.mxu2 }
 0x7fe   : > { %v9271_v27 = vpop.f32.mrf.mxu3  ;;  %v24545_v40 = vpop.f32.mrf.mxu0 }
 0x7ff   : > { %v9272_v53 = vadd.f32 %v9271_v27, %v9253_v7  ;;  %v24547_v51 = vpop.f32.mrf.mxu1  ;;  %v8626_v27 = vadd.f32 %v24488_v20, %v24486_v47  ;;  %v18838_v47 = vld [vmem:[%s25551_s9 + $0x30] sm:$0xff] }
 0x800   : > { %v18846_v20 = vld [vmem:[%s25551_s9 + $0x70] sm:$0xff] }
 0x801   : > { %v24549_v49 = vadd.f32 %v9272_v53, %v8994_v14 }
 0x805   : > { %v24551_v22 = vpop.f32.mrf.mxu2 }
 0x806   : > { %v24553_v30 = vpop.f32.mrf.mxu3  ;;  %v9222_v52 = vpop.f32.mrf.mxu0 }
 0x807   : > { %v9240_v25 = vpop.f32.mrf.mxu1 }
 0x808   : > { %v9241_v26 = vadd.f32 %v9240_v25, %v9222_v52  ;;  %v18839_v52 = vld [vmem:[%s25551_s9 + $0x38] sm:$0xff] }
 0x809   : > { %v18847_v25 = vld [vmem:[%s25551_s9 + $0x78] sm:$0xff]  ;;  %10622 = vmatpush.bf16.msra.mxu2 %v18839_v52 }
 0x80a   : > { %v24555_v54 = vadd.f32 %v9241_v26, %v8997_v32  ;;  %v10181_v26 = vld [vmem:[%s25550_s8] sm:$0x3]  ;;  %10640 = vmatpush.bf16.msra.mxu3 %v18847_v25 }
 0x80d   : > { %v9258_v44 = vpop.f32.mrf.mxu2  ;;  %10623 = vmatpush.bf16.msra.mxu2 %v18838_v47 }
 0x80e   : > { %v9276_v60 = vpop.f32.mrf.mxu3  ;;  %v9224_v17 = vpop.f32.mrf.mxu0  ;;  %10641 = vmatpush.bf16.msra.mxu3 %v18846_v20 }
 0x80f   : > { %v9277_v5 = vadd.f32 %v9276_v60, %v9258_v44  ;;  %v9242_v6 = vpop.f32.mrf.mxu1  ;;  %v8951_v44 = vadd.f32 %v24538_v13, %v24536_v21  ;;  %v9238_v21 = vadd.f32 %v24547_v51, %v24545_v40  ;;  %v18837_v40 = vld [vmem:[%s25551_s9 + $0x28] sm:$0xff] }
 0x810   : > { %v8670_v6 = vadd.f32 %v8626_v27, %v24267_v55  ;;  %v18845_v51 = vld [vmem:[%s25551_s9 + $0x68] sm:$0xff] }
 0x811   : > { %v24557_v39 = vadd.f32 %v9277_v5, %v8998_v2  ;;  %10624 = vmatpush.bf16.msra.mxu2 %v18837_v40 }
 0x812   : > { %10642 = vmatpush.bf16.msra.mxu3 %v18845_v51 }
 0x815   : > { %v9260_v10 = vpop.f32.mrf.mxu2 }
 0x816   : > { %v9278_v8 = vpop.f32.mrf.mxu3  ;;  %v9500_v1 = vpop.f32.mrf.mxu0 }
 0x817   : > { %v9518_v56 = vpop.f32.mrf.mxu1 }
 0x818   : > { %v9519_v7 = vadd.f32 %v9518_v56, %v9500_v1  ;;  %v24605_v1 = vperm.slane %v10181_v26, 0  ;;  %v8662_v56 = vadd.f32 %v24521_v9, %v24519_v11  ;;  %v8987_v11 = vadd.f32 %v24543_v23, %v24541_v42 }
 0x819   : > { %v9274_v42 = vadd.f32 %v24553_v30, %v24551_v22 }
 0x81a   : > { %v9563_v60 = vadd.f32 %v9519_v7, %v9280_v0 }
 0x81d   : > { %v9536_v36 = vpop.f32.mrf.mxu2 }
 0x81e   : > { %v9554_v33 = vpop.f32.mrf.mxu3  ;;  %v9502_v29 = vpop.f32.mrf.mxu0 }
 0x81f   : > { %v9520_v63 = vpop.f32.mrf.mxu1 }
 0x825   : > { %v24559_v34 = vpop.f32.mrf.mxu2 }
 0x826   : > { %v24561_v62 = vpop.f32.mrf.mxu3  ;;  %v24563_v37 = vpop.f32.mrf.mxu0 }
 0x827   : > { %v24565_v18 = vpop.f32.mrf.mxu1  ;;  %v9557_v25 = vadd.f32 %v24561_v62, %v24559_v34 }
 0x828   : > { %v9524_v22 = vadd.f32 %v24565_v18, %v24563_v37  ;;  %v18835_v37 = vld [vmem:[%s25551_s9 + $0x18] sm:$0xff] }
 0x829   : > { %v18843_v18 = vld [vmem:[%s25551_s9 + $0x58] sm:$0xff] }
 0x82d   : > { %v24567_v4 = vpop.f32.mrf.mxu2 }
 0x82e   : > { %v24569_v15 = vpop.f32.mrf.mxu3  ;;  %v9507_v35 = vpop.f32.mrf.mxu0 }
 0x82f   : > { %v9525_v61 = vpop.f32.mrf.mxu1  ;;  %v9555_v35 = vadd.f32 %v9554_v33, %v9536_v36  ;;  %v8671_v36 = vadd.f32 %v8662_v56, %v24319_v16  ;;  %v24628_v16 = vperm.slane %v10181_v26, 1 }
 0x830   : > { %v8995_v61 = vadd.f32 %v8951_v44, %v8670_v6 }
 0x831   : > { %v9564_v9 = vadd.f32 %v9555_v35, %v24549_v49  ;;  %v8996_v52 = vadd.f32 %v8987_v11, %v8671_v36  ;;  %v18842_v35 = vld [vmem:[%s25551_s9 + $0x50] sm:$0xff] }
 0x832   : > { %v9282_v55 = vadd.f32 %v9238_v21, %v8995_v61 }
 0x833   : > { %v9283_v26 = vadd.f32 %v9274_v42, %v8996_v52  ;;  %v18895_v52 = vld [vmem:[%s25551_s9 + $0x1f8] sm:$0xff] }
 0x835   : > { %v9543_v14 = vpop.f32.mrf.mxu2  ;;  %v9566_v62 = vadd.f32 %v9557_v25, %v9283_v26 }
 0x836   : > { %v9561_v57 = vpop.f32.mrf.mxu3  ;;  %v9825_v28 = vpop.f32.mrf.mxu0  ;;  %v9521_v14 = vadd.f32 %v9520_v63, %v9502_v29 }
 0x837   : > { %v9843_v48 = vpop.f32.mrf.mxu1 }
 0x838   : > { %v9844_v53 = vadd.f32 %v9843_v48, %v9825_v28  ;;  %v9565_v33 = vadd.f32 %v9521_v14, %v9282_v55  ;;  %v18862_v55 = vld [vmem:[%s25551_s9 + $0xf0] sm:$0xff] }
 0x83a   : > { %v9888_v13 = vadd.f32 %v9844_v53, %v9563_v60 }
 0x83d   : > { %v9861_v32 = vpop.f32.mrf.mxu2 }
 0x83e   : > { %v9879_v45 = vpop.f32.mrf.mxu3  ;;  %v9827_v24 = vpop.f32.mrf.mxu0 }
 0x83f   : > { %v9845_v59 = vpop.f32.mrf.mxu1  ;;  %v9880_v28 = vadd.f32 %v9879_v45, %v9861_v32  ;;  %v18836_v45 = vld [vmem:[%s25551_s9 + $0x20] sm:$0xff] }
 0x840   : > { %v9846_v48 = vadd.f32 %v9845_v59, %v9827_v24  ;;  %v18844_v24 = vld [vmem:[%s25551_s9 + $0x60] sm:$0xff]  ;;  %10625 = vmatpush.bf16.msra.mxu2 %v18836_v45 }
 0x841   : > { %v9889_v23 = vadd.f32 %v9880_v28, %v9564_v9  ;;  %10643 = vmatpush.bf16.msra.mxu3 %v18844_v24  ;;  %v18854_v28 = vld [vmem:[%s25551_s9 + $0xb0] sm:$0xff] }
 0x842   : > { %v9890_v7 = vadd.f32 %v9846_v48, %v9565_v33  ;;  %v9560_v48 = vadd.f32 %v24569_v15, %v24567_v4  ;;  %v18833_v33 = vld [vmem:[%s25551_s9 + $0x8] sm:$0xff] }
 0x843   : > { %v18841_v4 = vld [vmem:[%s25551_s9 + $0x48] sm:$0xff] }
 0x844   : > { %10626 = vmatpush.bf16.msra.mxu2 %v18835_v37 }
 0x845   : > { %v24571_v58 = vpop.f32.mrf.mxu2  ;;  %10644 = vmatpush.bf16.msra.mxu3 %v18843_v18 }
 0x846   : > { %v24573_v12 = vpop.f32.mrf.mxu3  ;;  %v24575_v2 = vpop.f32.mrf.mxu0 }
 0x847   : > { %v24577_v41 = vpop.f32.mrf.mxu1 }
 0x848   : > { %v9849_v47 = vadd.f32 %v24577_v41, %v24575_v2  ;;  %v18855_v2 = vld [vmem:[%s25551_s9 + $0xb8] sm:$0xff] }
 0x849   : > { %v18863_v41 = vld [vmem:[%s25551_s9 + $0xf8] sm:$0xff]  ;;  %10484 = vmatpush.bf16.msrb.mxu0 %v18855_v2  ;;  %10645 = vmatpush.bf16.msra.mxu3 %v18842_v35  ;;  %v18893_v35 = vld [vmem:[%s25551_s9 + $0x1e8] sm:$0xff] }
 0x84a   : > { %10502 = vmatpush.bf16.msrb.mxu1 %v18863_v41 }
 0x84d   : > { %v24579_v46 = vpop.f32.mrf.mxu2  ;;  %10485 = vmatpush.bf16.msrb.mxu0 %v18854_v28  ;;  %10646 = vmatpush.bf16.msra.mxu3 %v18841_v4  ;;  %v18849_v28 = vld [vmem:[%s25551_s9 + $0x88] sm:$0xff] }
 0x84e   : > { %v24581_v31 = vpop.f32.mrf.mxu3  ;;  %v9832_v3 = vpop.f32.mrf.mxu0  ;;  %10503 = vmatpush.bf16.msrb.mxu1 %v18862_v55  ;;  %v18857_v55 = vld [vmem:[%s25551_s9 + $0xc8] sm:$0xff] }
 0x84f   : > { %v9850_v50 = vpop.f32.mrf.mxu1  ;;  %v9885_v11 = vadd.f32 %v24581_v31, %v24579_v46  ;;  %v18853_v46 = vld [vmem:[%s25551_s9 + $0xa8] sm:$0xff] }
 0x850   : > { %v18861_v31 = vld [vmem:[%s25551_s9 + $0xe8] sm:$0xff] }
 0x851   : > { %10486 = vmatpush.bf16.msrb.mxu0 %v18853_v46  ;;  %v18879_v46 = vld [vmem:[%s25551_s9 + $0x178] sm:$0xff] }
 0x852   : > { %10504 = vmatpush.bf16.msrb.mxu1 %v18861_v31  ;;  %v18882_v31 = vld [vmem:[%s25551_s9 + $0x190] sm:$0xff] }
 0x855   : > { %v9868_v5 = vpop.f32.mrf.mxu2 }
 0x856   : > { %v9886_v17 = vpop.f32.mrf.mxu3  ;;  %v10112_v10 = vpop.f32.mrf.mxu0  ;;  %v9882_v5 = vadd.f32 %v24573_v12, %v24571_v58  ;;  %v9567_v58 = vadd.f32 %v9524_v22, %v24555_v54  ;;  %v18834_v54 = vld [vmem:[%s25551_s9 + $0x10] sm:$0xff]  ;;  %v18852_v22 = vld [vmem:[%s25551_s9 + $0xa0] sm:$0xff] }
 0x857   : > { %v10130_v8 = vpop.f32.mrf.mxu1  ;;  %10627 = vmatpush.bf16.msra.mxu2 %v18834_v54  ;;  %10487 = vmatpush.bf16.msrb.mxu0 %v18852_v22  ;;  %v18885_v54 = vld [vmem:[%s25551_s9 + $0x1a8] sm:$0xff] }
 0x858   : > { %v10131_v0 = vadd.f32 %v10130_v8, %v10112_v10  ;;  %v9891_v8 = vadd.f32 %v9882_v5, %v9566_v62  ;;  %v9892_v61 = vadd.f32 %v9849_v47, %v9567_v58 }
 0x85a   : > { %v10175_v57 = vadd.f32 %v10131_v0, %v9888_v13 }
 0x85b   : > { %10628 = vmatpush.bf16.msra.mxu2 %v18833_v33  ;;  %v18856_v33 = vld [vmem:[%s25551_s9 + $0xc0] sm:$0xff] }
 0x85c   : > { %v10187_v3 = vadd.f32 %v24605_v1, %v10175_v57 }
 0x85d   : > { %v10148_v63 = vpop.f32.mrf.mxu2 }
 0x85e   : > { %v10193_v29 = vmax.f32 %v10187_v3, 0.0  ;;  %v10166_v32 = vpop.f32.mrf.mxu3  ;;  %v10114_v59 = vpop.f32.mrf.mxu0 }
 0x85f   : > { %v10167_v49 = vadd.f32 %v10166_v32, %v10148_v63  ;;  %v10132_v50 = vpop.f32.mrf.mxu1 }
 0x860   : > { %v10211_v27 = vsel %vm22460_vm5, %v10193_v29, 0.0  ;;  %v10133_v53 = vadd.f32 %v10132_v50, %v10114_v59  ;;  %v9568_v29 = vadd.f32 %v9560_v48, %v24557_v39  ;;  %v18832_v50 = vld [vmem:[%s25551_s9] sm:$0xff]  ;;  %v18883_v48 = vld [vmem:[%s25551_s9 + $0x198] sm:$0xff] }
 0x861   : > { %v10223_v44 = vrot.slane %v10211_v27, 7  ;;  %v10176_v60 = vadd.f32 %v10167_v49, %v9889_v23  ;;  %v18840_v39 = vld [vmem:[%s25551_s9 + $0x40] sm:$0xff]  ;;  %10629 = vmatpush.bf16.msra.mxu2 %v18832_v50  ;;  %v18877_v50 = vld [vmem:[%s25551_s9 + $0x168] sm:$0xff] }
 0x862   : > { %v10177_v30 = vadd.f32 %v10133_v53, %v9890_v7  ;;  %v9893_v42 = vadd.f32 %v9885_v11, %v9568_v29  ;;  %10647 = vmatpush.bf16.msra.mxu3 %v18840_v39  ;;  %v18890_v29 = vld [vmem:[%s25551_s9 + $0x1d0] sm:$0xff] }
 0x863   : > { %10239 = vst [vmem:[#allocation10 + $0x50] sm:$0xfe] %v10223_v44  ;;  %v10188_v17 = vadd.f32 %v24628_v16, %v10176_v60 }
 0x864   : > { %v10189_v34 = vadd.f32 %v24605_v1, %v10177_v30  ;;  %v18860_v30 = vld [vmem:[%s25551_s9 + $0xe0] sm:$0xff] }
 0x865   : > { %v10194_v20 = vmax.f32 %v10188_v17, 0.0  ;;  %v10150_v6 = vpop.f32.mrf.mxu2  ;;  %v19235_v17 = vld [vmem:[#allocation9 + $0x28] sm:$0xff]  ;;  %10983 = vmatpush.bf16.msrb.mxu2 %v18887_v43  ;;  %10505 = vmatpush.bf16.msrb.mxu1 %v18860_v30 }
 0x866   : > { %v10195_v12 = vmax.f32 %v10189_v34, 0.0  ;;  %v10168_v10 = vpop.f32.mrf.mxu3  ;;  %v10117_v0 = vpop.f32.mrf.mxu0  ;;  %v10342_v47 = vunpack.c.l.b16 %v19235_v17  ;;  %v10343_v34 = vunpack.c.h.b16 %v19235_v17  ;;  %11001 = vmatpush.bf16.msrb.mxu3 %v18895_v52  ;;  %v18888_v43 = vld [vmem:[%s25551_s9 + $0x1c0] sm:$0xff]  ;;  %v18919_v52 = vld [vmem:[%s25551_s9 + $0x2b8] sm:$0xff] }
 0x867   : > { %v10212_v21 = vsel %vm22460_vm5, %v10194_v20, 0.0  ;;  %v10169_v13 = vadd.f32 %v10168_v10, %v10150_v6  ;;  %v10135_v56 = vpop.f32.mrf.mxu1  ;;  %v18886_v6 = vld [vmem:[%s25551_s9 + $0x1b0] sm:$0xff] }
 0x868   : > { %v10224_v14 = vrot.slane %v10212_v21, 7  ;;  %v10213_v57 = vsel %vm22466_vm6, %v10195_v12, 0.0  ;;  %v10136_v19 = vadd.f32 %v10135_v56, %v10117_v0  ;;  %v18851_v21 = vld [vmem:[%s25551_s9 + $0x98] sm:$0xff] }
 0x869   : > { %v10225_v3 = vrot.slane %v10213_v57, 7  ;;  %v10178_v40 = vadd.f32 %v10169_v13, %v9891_v8  ;;  %v18859_v13 = vld [vmem:[%s25551_s9 + $0xd8] sm:$0xff]  ;;  %10984 = vmatpush.bf16.msrb.mxu2 %v18886_v6  ;;  %10488 = vmatpush.bf16.msrb.mxu0 %v18851_v21  ;;  %v18884_v57 = vld [vmem:[%s25551_s9 + $0x1a0] sm:$0xff] }
 0x86a   : > { %10240 = vst [vmem:[#allocation10 + $0x30] sm:$0xfe] %v10224_v14  ;;  %v10179_v51 = vadd.f32 %v10136_v19, %v9892_v61  ;;  %v10247_v7 = vld [vmem:[#allocation10 + $0x50] sm:$0xff]  ;;  %10506 = vmatpush.bf16.msrb.mxu1 %v18859_v13 }
 0x86b   : > { %v10226_v9 = vsel %vm7468_vm7, %v10223_v44, %v10225_v3  ;;  %v10190_v36 = vadd.f32 %v24628_v16, %v10178_v40  ;;  %v18892_v19 = vld [vmem:[%s25551_s9 + $0x1e0] sm:$0xff]  ;;  %v18875_v21 = vld [vmem:[%s25551_s9 + $0x158] sm:$0xff] }
 0x86c   : > { %v10191_v15 = vadd.f32 %v24605_v1, %v10179_v51  ;;  %v18848_v40 = vld [vmem:[%s25551_s9 + $0x80] sm:$0xff] }
 0x86d   : > { %v10196_v63 = vmax.f32 %v10190_v36, 0.0  ;;  %v10153_v45 = vpop.f32.mrf.mxu2  ;;  %10985 = vmatpush.bf16.msrb.mxu2 %v18885_v54  ;;  %10489 = vmatpush.bf16.msrb.mxu0 %v18850_v38  ;;  %v18866_v38 = vld [vmem:[%s25551_s9 + $0x110] sm:$0xff] }
 0x86e   : > { %v10197_v32 = vmax.f32 %v10191_v15, 0.0  ;;  %v10171_v24 = vpop.f32.mrf.mxu3  ;;  %v10119_v49 = vpop.f32.mrf.mxu0  ;;  %v18871_v15 = vld [vmem:[%s25551_s9 + $0x138] sm:$0xff] }
 0x86f   : > { %v10214_v1 = vsel %vm22466_vm6, %v10196_v63, 0.0  ;;  %v10172_v23 = vadd.f32 %v10171_v24, %v10153_v45  ;;  %v10137_v59 = vpop.f32.mrf.mxu1  ;;  %v18870_v45 = vld [vmem:[%s25551_s9 + $0x130] sm:$0xff] }
 0x870   : > { %v10227_v27 = vrot.slane %v10214_v1, 7  ;;  %v10215_v53 = vsel %vm22620_vm8, %v10197_v32, 0.0  ;;  %v18878_v24 = vld [vmem:[%s25551_s9 + $0x170] sm:$0xff]  ;;  %v18889_v1 = vld [vmem:[%s25551_s9 + $0x1c8] sm:$0xff] }
 0x871   : > { %v10248_v25 = vld [vmem:[#allocation10 + $0x30] sm:$0xff]  ;;  %v10229_v44 = vrot.slane %v10215_v53, 7  ;;  %v10180_v60 = vadd.f32 %v10172_v23, %v9893_v42  ;;  %10986 = vmatpush.bf16.msrb.mxu2 %v18884_v57  ;;  %10490 = vmatpush.bf16.msrb.mxu0 %v18849_v28  ;;  %v18881_v42 = vld [vmem:[%s25551_s9 + $0x188] sm:$0xff] }
 0x872   : > { %v10258_v26 = vpack.c.bf16 %v10248_v25, %v10247_v7  ;;  %v10228_v5 = vsel %vm7468_vm7, %v10224_v14, %v10227_v27  ;;  %v18858_v14 = vld [vmem:[%s25551_s9 + $0xd0] sm:$0xff]  ;;  %v18869_v59 = vld [vmem:[%s25551_s9 + $0x128] sm:$0xff]  ;;  %v18880_v53 = vld [vmem:[%s25551_s9 + $0x180] sm:$0xff] }
 0x873   : > { %v10230_v62 = vsel %vm7468_vm7, %v10225_v3, %v10229_v44  ;;  %v10192_v20 = vadd.f32 %v24628_v16, %v10180_v60  ;;  %v10259_v37 = vpack.c.bf16 %v10228_v5, %v10226_v9  ;;  %v18894_v16 = vld [vmem:[%s25551_s9 + $0x1f0] sm:$0xff]  ;;  %10507 = vmatpush.bf16.msrb.mxu1 %v18858_v14  ;;  %v18891_v3 = vld [vmem:[%s25551_s9 + $0x1d8] sm:$0xff]  ;;  %v18876_v5 = vld [vmem:[%s25551_s9 + $0x160] sm:$0xff] }
 0x874   : > { %10264 = vst [vmem:[#allocation11 + $0x8] sm:$0xff] %v10258_v26  ;;  %v24716_v18 = vunpack.c.l.b16 %v10258_v26  ;;  %v24718_v58 = vunpack.c.h.b16 %v10258_v26  ;;  %11002 = vmatpush.bf16.msrb.mxu3 %v18894_v16  ;;  %v18927_v25 = vld [vmem:[%s25551_s9 + $0x2f8] sm:$0xff]  ;;  %v18868_v26 = vld [vmem:[%s25551_s9 + $0x120] sm:$0xff]  ;;  %v18918_v16 = vld [vmem:[%s25551_s9 + $0x2b0] sm:$0xff] }
 0x875   : > { %10243 = vst [vmem:[#allocation10 + $0x18] sm:$0xf] %v10230_v62  ;;  %v10198_v12 = vmax.f32 %v10192_v20, 0.0  ;;  %v10155_v10 = vpop.f32.mrf.mxu2  ;;  %v24776_v9 = vunpack.c.l.b16 %v10259_v37  ;;  %v24778_v36 = vunpack.c.h.b16 %v10259_v37  ;;  %10987 = vmatpush.bf16.msrb.mxu2 %v18883_v48  ;;  %10491 = vmatpush.bf16.msrb.mxu0 %v18848_v40  ;;  %v18874_v14 = vld [vmem:[%s25551_s9 + $0x150] sm:$0xff]  ;;  %v18916_v57 = vld [vmem:[%s25551_s9 + $0x2a0] sm:$0xff]  ;;  %v18865_v28 = vld [vmem:[%s25551_s9 + $0x108] sm:$0xff] }
 0x876   : > { %v10173_v2 = vpop.f32.mrf.mxu3  ;;  %v24727_v41 = vpack.c.b16 %v24716_v18, %v10342_v47  ;;  %v24730_v8 = vpack.c.b16 %v24718_v58, %v10343_v34  ;;  %10265 = vst [vmem:[#allocation11 + $0x10] sm:$0xff] %v10259_v37  ;;  %v18926_v10 = vld [vmem:[%s25551_s9 + $0x2f0] sm:$0xff]  ;;  %v18915_v48 = vld [vmem:[%s25551_s9 + $0x298] sm:$0xff]  ;;  %v18864_v40 = vld [vmem:[%s25551_s9 + $0x100] sm:$0xff] }
 0x877   : > { %v10216_v0 = vsel %vm22620_vm8, %v10198_v12, 0.0  ;;  %10508 = vmatpush.bf16.msrb.mxu1 %v18857_v55  ;;  %v10520_v63 = vpack.c.b16 %v24776_v9, %v24776_v9  ;;  %v10521_v32 = vpack.c.b16 %v24778_v36, %v24778_v36  ;;  %v10879_v13 = vpack.c.b16 %v24776_v9, %v24716_v18  ;;  %v18873_v55 = vld [vmem:[%s25551_s9 + $0x148] sm:$0xff] }
 0x878   : > { %v10231_v56 = vrot.slane %v10216_v0, 7  ;;  %10630 = vmatmul.bf16.vlgmr.msra.gmra.mxu2 %v24727_v41  ;;  %10648 = vmatmul.bf16.vlgmr.msra.gmra.mxu3 %v24730_v8  ;;  %v10357_v23 = vshll.u32 %v24727_v41, 16  ;;  %v10369_v49 = vshll.u32 %v24730_v8, 16  ;;  %v10355_v17 = vshrl.u32 %v24727_v41, 16 }
 0x879   : > { %11003 = vmatpush.bf16.msrb.mxu3 %v18893_v35  ;;  %10803 = vmatpush.bf16.msra.mxu0 %v18871_v15  ;;  %v10367_v34 = vshrl.u32 %v24730_v8, 16  ;;  %v18867_v8 = vld [vmem:[%s25551_s9 + $0x118] sm:$0xff]  ;;  %v10880_v0 = vpack.c.b16 %v24778_v36, %v24718_v58  ;;  %v18917_v35 = vld [vmem:[%s25551_s9 + $0x2a8] sm:$0xff] }
 0x87a   : > { %v10232_v61 = vsel %vm7468_vm7, %v10227_v27, %v10231_v56  ;;  %10988 = vmatpush.bf16.msrb.mxu2 %v18882_v31  ;;  %v10359_v22 = vrot.slane %v10357_v23, 1  ;;  %v10371_v30 = vrot.slane %v10369_v49, 1  ;;  %v19236_v56 = vld [vmem:[#allocation3] sm:$0xff]  ;;  %v18913_v23 = vld [vmem:[%s25551_s9 + $0x288] sm:$0xff] }
 0x87b   : > { %10244 = vst [vmem:[#allocation10 + $0x40] sm:$0xf] %v10232_v61  ;;  %10509 = vmatpush.bf16.msrb.mxu1 %v18856_v33  ;;  %v24868_v54 = vpack.c.bf16 %v19236_v56, %v19236_v56  ;;  %v18925_v61 = vld [vmem:[%s25551_s9 + $0x2e8] sm:$0xff]  ;;  %v18914_v31 = vld [vmem:[%s25551_s9 + $0x290] sm:$0xff] }
 0x87c   : > { %v10251_v51 = vld [vmem:[#allocation10 + $0x18] sm:$0xff]  ;;  %v10360_v20 = vor.u32 %v10359_v22, %v10355_v17  ;;  %v10372_v12 = vor.u32 %v10371_v30, %v10367_v34  ;;  %v18961_v34 = vld [vmem:[%s25551_s9 + $0x3f8] sm:$0xff] }
 0x87d   : > { %11004 = vmatpush.bf16.msrb.mxu3 %v18892_v19  ;;  %10804 = vmatpush.bf16.msra.mxu0 %v18870_v45  ;;  %10267 = vst [vmem:[#allocation11 + $0x20] sm:$0xff] %v24868_v54  ;;  %v18924_v19 = vld [vmem:[%s25551_s9 + $0x2e0] sm:$0xff]  ;;  %v18903_v45 = vld [vmem:[%s25551_s9 + $0x238] sm:$0xff]  ;;  %v18921_v49 = vld [vmem:[%s25551_s9 + $0x2c8] sm:$0xff] }
 0x87e   : > { %10989 = vmatpush.bf16.msrb.mxu2 %v18881_v42  ;;  %10268 = vst [vmem:[#allocation11 + $0x28] sm:$0xff] %v24868_v54  ;;  %v18912_v30 = vld [vmem:[%s25551_s9 + $0x280] sm:$0xff] }
 0x87f   : > { %10821 = vmatpush.bf16.msra.mxu1 %v18879_v46 }
 0x881   : > { %11005 = vmatpush.bf16.msrb.mxu3 %v18891_v3  ;;  %10805 = vmatpush.bf16.msra.mxu0 %v18869_v59  ;;  %v18923_v3 = vld [vmem:[%s25551_s9 + $0x2d8] sm:$0xff] }
 0x882   : > { %v10252_v11 = vld [vmem:[#allocation10 + $0x40] sm:$0xff]  ;;  %10990 = vmatpush.bf16.msrb.mxu2 %v18880_v53 }
 0x883   : > { %v24783_v4 = vpack.c.bf16 %v10252_v11, %v10251_v51  ;;  %10822 = vmatpush.bf16.msra.mxu1 %v18878_v24  ;;  %v18872_v51 = vld [vmem:[%s25551_s9 + $0x140] sm:$0xff]  ;;  %v18902_v53 = vld [vmem:[%s25551_s9 + $0x230] sm:$0xff] }
 0x884   : > { %v11025_v59 = vld [vmem:[#allocation11 + $0x20] sm:$0x11] }
 0x885   : > { %10266 = vst [vmem:[#allocation11 + $0x18] sm:$0xff] %v24783_v4  ;;  %11006 = vmatpush.bf16.msrb.mxu3 %v18890_v29  ;;  %10806 = vmatpush.bf16.msra.mxu0 %v18868_v26  ;;  %v24911_v15 = vunpack.c.l.b16 %v24783_v4  ;;  %v24914_v46 = vunpack.c.h.b16 %v24783_v4  ;;  %v18922_v29 = vld [vmem:[%s25551_s9 + $0x2d0] sm:$0xff]  ;;  %v18911_v4 = vld [vmem:[%s25551_s9 + $0x278] sm:$0xff]  ;;  %v11070_v22 = vunpack.c.h.b16 %v11025_v59  ;;  %v18920_v26 = vld [vmem:[%s25551_s9 + $0x2c0] sm:$0xff] }
 0x886   : > { %11389 = vmatpush.bf16.msra.mxu2 %v18919_v52  ;;  %v11244_v52 = vld [vmem:[#allocation11 + $0x8] sm:$0xee] }
 0x887   : > { %10823 = vmatpush.bf16.msra.mxu1 %v18877_v50  ;;  %v10881_v24 = vpack.c.b16 %v24911_v15, %v24911_v15  ;;  %v10882_v42 = vpack.c.b16 %v24914_v46, %v24914_v46  ;;  %v11465_v50 = vpack.c.b16 %v24911_v15, %v24776_v9  ;;  %v11280_v17 = vunpack.c.h.b16 %v11244_v52 }
 0x888   : > { %10635 = vmatmul.bf16.gmra.mxu2 %v10520_v63  ;;  %10653 = vmatmul.bf16.gmra.mxu3 %v10521_v32 }
 0x889   : > { %11007 = vmatpush.bf16.msrb.mxu3 %v18889_v1  ;;  %10807 = vmatpush.bf16.msra.mxu0 %v18867_v8  ;;  %v10658_v1 = vld [vmem:[#allocation11] sm:$0xee] }
 0x88a   : > { %11390 = vmatpush.bf16.msra.mxu2 %v18918_v16  ;;  %v18909_v16 = vld [vmem:[%s25551_s9 + $0x268] sm:$0xff] }
 0x88b   : > { %10824 = vmatpush.bf16.msra.mxu1 %v18876_v5  ;;  %v11279_v5 = vunpack.c.l.b16 %v11244_v52  ;;  %v17444_v8 = vld [vmem:[#allocation11 + $0x20] sm:$0xf] }
 0x88c   : > { %v10304_v39 = vld [vmem:[#allocation11 + $0x18] sm:$0x11] }
 0x88d   : > { %v10348_v7 = vunpack.c.l.b16 %v10304_v39  ;;  %v10349_v27 = vunpack.c.h.b16 %v10304_v39  ;;  %11008 = vmatpush.bf16.msrb.mxu3 %v18888_v43  ;;  %10808 = vmatpush.bf16.msra.mxu0 %v18866_v38  ;;  %v11466_v39 = vpack.c.b16 %v24914_v46, %v24778_v36  ;;  %v18910_v43 = vld [vmem:[%s25551_s9 + $0x270] sm:$0xff]  ;;  %v11282_v38 = vpack.c.b16 %v24778_v36, %v11280_v17  ;;  %v18897_v17 = vld [vmem:[%s25551_s9 + $0x208] sm:$0xff] }
 0x88e   : > { %11391 = vmatpush.bf16.msra.mxu2 %v18917_v35 }
 0x88f   : > { %v24835_v44 = vpack.c.b16 %v10348_v7, %v24776_v9  ;;  %v24838_v60 = vpack.c.b16 %v10349_v27, %v24778_v36  ;;  %10825 = vmatpush.bf16.msra.mxu1 %v18875_v21  ;;  %v10693_v7 = vunpack.c.l.b16 %v10658_v1  ;;  %v10694_v27 = vunpack.c.h.b16 %v10658_v1  ;;  %v18945_v21 = vld [vmem:[#allocation11 + $0x24] sm:$0x10] }
 0x891   : > { %v10362_v47 = vshll.u32 %v24835_v44, 16  ;;  %v10374_v62 = vshll.u32 %v24838_v60, 16  ;;  %11407 = vmatpush.bf16.msra.mxu3 %v18927_v25  ;;  %10809 = vmatpush.bf16.msra.mxu0 %v18865_v28  ;;  %v10378_v11 = vshrl.u32 %v24835_v44, 16  ;;  %v10381_v33 = vshrl.u32 %v24838_v60, 16  ;;  %v17446_v28 = vld [vmem:[#allocation11 + $0x28] sm:$0x10] }
 0x892   : > { %11392 = vmatpush.bf16.msra.mxu2 %v18916_v57  ;;  %v11069_v25 = vunpack.c.l.b16 %v11025_v59  ;;  %v10701_v35 = vrot.slane %v24838_v60, 1  ;;  %v18960_v57 = vld [vmem:[%s25551_s9 + $0x3f0] sm:$0xff]  ;;  %v18907_v59 = vld [vmem:[%s25551_s9 + $0x258] sm:$0xff] }
 0x893   : > { %v10364_v37 = vrot.slane %v10362_v47, 1  ;;  %v10376_v6 = vrot.slane %v10374_v62, 1  ;;  %10826 = vmatpush.bf16.msra.mxu1 %v18874_v14  ;;  %v18953_v47 = vld [vmem:[%s25551_s9 + $0x3b8] sm:$0xff]  ;;  %v18952_v14 = vld [vmem:[%s25551_s9 + $0x3b0] sm:$0xff] }
 0x894   : > { %v11830_v62 = vld [vmem:[#allocation11 + $0x10] sm:$0xee] }
 0x895   : > { %v10365_v2 = vsel %vm1427_vm1, %v10360_v20, %v10364_v37  ;;  %v10377_v41 = vsel %vm1427_vm1, %v10372_v12, %v10376_v6  ;;  %11408 = vmatpush.bf16.msra.mxu3 %v18926_v10  ;;  %v10380_v63 = vor.u32 %v10378_v11, %v10364_v37  ;;  %v10383_v32 = vor.u32 %v10381_v33, %v10376_v6  ;;  %v18901_v6 = vld [vmem:[%s25551_s9 + $0x228] sm:$0xff] }
 0x896   : > { %10492 = vmatmul.bf16.vlgmr.msrb.gmra.mxu0 %v10365_v2  ;;  %10510 = vmatmul.bf16.vlgmr.msrb.gmra.mxu1 %v10377_v41  ;;  %v10695_v20 = vpack.c.b16 %v24716_v18, %v10693_v7  ;;  %v10698_v37 = vrot.slane %v24835_v44, 1  ;;  %v10696_v12 = vpack.c.b16 %v24718_v58, %v10694_v27  ;;  %v24969_v10 = vld [vmem:[#allocation11 + $0x18] sm:$0xff]  ;;  %v24972_v2 = vpack.c.b16 %v11069_v25, %v24911_v15 }
 0x897   : > { %10827 = vmatpush.bf16.msra.mxu1 %v18873_v55  ;;  %11393 = vmatpush.bf16.msra.mxu2 %v18915_v48  ;;  %v24975_v18 = vpack.c.b16 %v11070_v22, %v24914_v46  ;;  %v11651_v58 = vunpack.c.l.b16 %v24969_v10  ;;  %v11652_v41 = vunpack.c.h.b16 %v24969_v10  ;;  %v11866_v56 = vunpack.c.h.b16 %v11830_v62  ;;  %v18900_v55 = vld [vmem:[%s25551_s9 + $0x220] sm:$0xff]  ;;  %v18898_v22 = vld [vmem:[%s25551_s9 + $0x210] sm:$0xff] }
 0x898   : > { %10991 = vmatmul.bf16.vlgmr.msrb.gmra.mxu2 %v10879_v13  ;;  %11009 = vmatmul.bf16.vlgmr.msrb.gmra.mxu3 %v10880_v0  ;;  %v18944_v13 = vld [vmem:[#allocation11 + $0x24] sm:$0xf]  ;;  %v11865_v0 = vunpack.c.l.b16 %v11830_v62  ;;  %v18908_v48 = vld [vmem:[%s25551_s9 + $0x260] sm:$0xff]  ;;  %v10697_v11 = vrot.slane %v10695_v20, 1  ;;  %v10700_v33 = vrot.slane %v10696_v12, 1  ;;  %v18957_v62 = vld [vmem:[%s25551_s9 + $0x3d8] sm:$0xff]  ;;  %v11463_v15 = vunpack.c.l.b16 %v24868_v54 }
 0x899   : > { %11409 = vmatpush.bf16.msra.mxu3 %v18925_v61  ;;  %10810 = vmatpush.bf16.msra.mxu0 %v18864_v40  ;;  %v11281_v61 = vpack.c.b16 %v24776_v9, %v11279_v5  ;;  %v18958_v5 = vld [vmem:[%s25551_s9 + $0x3e0] sm:$0xff]  ;;  %v11022_v20 = vld [vmem:[#allocation11 + $0x8] sm:$0xff]  ;;  %v11657_v44 = vpack.c.b16 %v11651_v58, %v24776_v9  ;;  %v11658_v60 = vpack.c.b16 %v11652_v41, %v24778_v36  ;;  %v11464_v46 = vunpack.c.h.b16 %v24868_v54 }
 0x89a   : > { %v11867_v40 = vpack.c.b16 %v11651_v58, %v11865_v0  ;;  %v18896_v12 = vld [vmem:[%s25551_s9 + $0x200] sm:$0xff]  ;;  %v18935_v0 = vld [vmem:[%s25551_s9 + $0x338] sm:$0xff]  ;;  %v18942_v58 = vld [vmem:[%s25551_s9 + $0x370] sm:$0xff] }
 0x89b   : > { %10828 = vmatpush.bf16.msra.mxu1 %v18872_v51  ;;  %11394 = vmatpush.bf16.msra.mxu2 %v18914_v31  ;;  %v11868_v51 = vpack.c.b16 %v11652_v41, %v11866_v56  ;;  %v11284_v31 = vrot.slane %v24972_v2, 1  ;;  %v11283_v1 = vrot.slane %v11281_v61, 1  ;;  %v18943_v56 = vld [vmem:[%s25551_s9 + $0x378] sm:$0xff]  ;;  %v18946_v10 = vld [vmem:[%s25551_s9 + $0x380] sm:$0xff] }
 0x89c   : > { %v18954_v41 = vld [vmem:[%s25551_s9 + $0x3c0] sm:$0xff] }
 0x89d   : > { %11410 = vmatpush.bf16.msra.mxu3 %v18924_v19  ;;  %11205 = vmatpush.bf16.msrb.mxu0 %v18903_v45  ;;  %v24988_v19 = vor.u32 %v18945_v21, %v17444_v8  ;;  %v11872_v45 = vrot.slane %v11868_v51, 1  ;;  %v11285_v52 = vsel %vm1584_vm0, %v11283_v1, %v11284_v31  ;;  %v11064_v8 = vunpack.c.h.b16 %v11022_v20  ;;  %v18948_v21 = vld [vmem:[%s25551_s9 + $0x390] sm:$0xff] }
 0x89e   : > { %v11095_v51 = vshll.u32 %v24975_v18, 16 }
 0x89f   : > { %11223 = vmatpush.bf16.msrb.mxu1 %v18911_v4  ;;  %11395 = vmatpush.bf16.msra.mxu2 %v18913_v23  ;;  %v11286_v23 = vrot.slane %v11282_v38, 1  ;;  %v11072_v38 = vpack.c.b16 %v24778_v36, %v11064_v8  ;;  %v18930_v8 = vld [vmem:[%s25551_s9 + $0x310] sm:$0xff]  ;;  %v18971_v36 = vld [vmem:[%s25551_s9 + $0x448] sm:$0xff] }
 0x8a1   : > { %11411 = vmatpush.bf16.msra.mxu3 %v18923_v3  ;;  %11206 = vmatpush.bf16.msrb.mxu0 %v18902_v53  ;;  %v24996_v3 = vor.u32 %v18944_v13, %v17446_v28  ;;  %v18951_v53 = vld [vmem:[%s25551_s9 + $0x3a8] sm:$0xff]  ;;  %v18956_v13 = vld [vmem:[%s25551_s9 + $0x3d0] sm:$0xff]  ;;  %v11090_v28 = vshll.u32 %v11072_v38, 16 }
 0x8a3   : > { %11224 = vmatpush.bf16.msrb.mxu1 %v18910_v43  ;;  %11396 = vmatpush.bf16.msra.mxu2 %v18912_v30  ;;  %v11873_v4 = vrot.slane %v24996_v3, 1  ;;  %v18959_v43 = vld [vmem:[%s25551_s9 + $0x3e8] sm:$0xff]  ;;  %v18906_v30 = vld [vmem:[%s25551_s9 + $0x250] sm:$0xff] }
 0x8a5   : > { %11412 = vmatpush.bf16.msra.mxu3 %v18922_v29  ;;  %11207 = vmatpush.bf16.msrb.mxu0 %v18901_v6  ;;  %v11287_v29 = vrot.slane %v24975_v18, 1  ;;  %v25026_v27 = vsel %vm1584_vm0, %v11872_v45, %v11873_v4  ;;  %v18904_v6 = vld [vmem:[%s25551_s9 + $0x240] sm:$0xff]  ;;  %v11669_v45 = vshll.u32 %v24988_v19, 16 }
 0x8a6   : > { %10497 = vmatmul.bf16.gmra.mxu0 %v10380_v63  ;;  %10515 = vmatmul.bf16.gmra.mxu1 %v10383_v32  ;;  %v11869_v63 = vrot.slane %v11867_v40, 1  ;;  %v11870_v32 = vrot.slane %v24988_v19, 1  ;;  %v11083_v40 = vshll.u32 %v24972_v2, 16 }
 0x8a7   : > { %11791 = vmatpush.bf16.msrb.mxu2 %v18953_v47  ;;  %11225 = vmatpush.bf16.msrb.mxu1 %v18909_v16  ;;  %v11288_v25 = vsel %vm1584_vm0, %v11286_v23, %v11287_v29  ;;  %v18905_v47 = vld [vmem:[%s25551_s9 + $0x248] sm:$0xff]  ;;  %v11063_v16 = vunpack.c.l.b16 %v11022_v20  ;;  %v11088_v23 = vshrl.u32 %v11072_v38, 16  ;;  %v18931_v20 = vld [vmem:[%s25551_s9 + $0x318] sm:$0xff]  ;;  %v18928_v38 = vld [vmem:[%s25551_s9 + $0x300] sm:$0xff] }
 0x8a8   : > { %10996 = vmatmul.bf16.gmra.mxu2 %v10881_v24  ;;  %11014 = vmatmul.bf16.gmra.mxu3 %v10882_v42  ;;  %v10699_v24 = vsel %vm1584_vm0, %v10697_v11, %v10698_v37  ;;  %v10702_v42 = vsel %vm1584_vm0, %v10700_v33, %v10701_v35  ;;  %v25021_v7 = vsel %vm1584_vm0, %v11869_v63, %v11870_v32  ;;  %v18933_v11 = vld [vmem:[%s25551_s9 + $0x328] sm:$0xff] }
 0x8a9   : > { %11413 = vmatpush.bf16.msra.mxu3 %v18921_v49  ;;  %11208 = vmatpush.bf16.msrb.mxu0 %v18900_v55  ;;  %v18899_v49 = vld [vmem:[%s25551_s9 + $0x218] sm:$0xff]  ;;  %v11071_v61 = vpack.c.b16 %v24776_v9, %v11063_v16  ;;  %v11664_v55 = vshll.u32 %v11657_v44, 16  ;;  %v18941_v33 = vld [vmem:[%s25551_s9 + $0x368] sm:$0xff] }
 0x8aa   : > { %v18963_v9 = vld [vmem:[%s25551_s9 + $0x408] sm:$0xff] }
 0x8ab   : > { %11792 = vmatpush.bf16.msrb.mxu2 %v18952_v14  ;;  %11226 = vmatpush.bf16.msrb.mxu1 %v18908_v48  ;;  %v18947_v14 = vld [vmem:[%s25551_s9 + $0x388] sm:$0xff]  ;;  %v11676_v48 = vshll.u32 %v11658_v60, 16  ;;  %v11666_v63 = vrot.slane %v11664_v55, 1  ;;  %v11076_v1 = vshrl.u32 %v11071_v61, 16 }
 0x8ac   : > { %v18975_v55 = vld [vmem:[%s25551_s9 + $0x468] sm:$0xff] }
 0x8ad   : > { %11414 = vmatpush.bf16.msra.mxu3 %v18920_v26  ;;  %11209 = vmatpush.bf16.msrb.mxu0 %v18899_v49  ;;  %v18950_v26 = vld [vmem:[%s25551_s9 + $0x3a0] sm:$0xff]  ;;  %v11085_v49 = vrot.slane %v11083_v40, 1 }
 0x8ae   : > { %v18974_v40 = vld [vmem:[%s25551_s9 + $0x460] sm:$0xff] }
 0x8af   : > { %11227 = vmatpush.bf16.msrb.mxu1 %v18907_v59  ;;  %11793 = vmatpush.bf16.msrb.mxu2 %v18951_v53  ;;  %v11097_v59 = vrot.slane %v11095_v51, 1  ;;  %v11662_v53 = vshrl.u32 %v11657_v44, 16  ;;  %v11102_v44 = vshrl.u32 %v24975_v18, 16  ;;  %v18976_v18 = vld [vmem:[%s25551_s9 + $0x470] sm:$0xff]  ;;  %v18965_v51 = vld [vmem:[%s25551_s9 + $0x418] sm:$0xff] }
 0x8b1   : > { %11809 = vmatpush.bf16.msrb.mxu3 %v18961_v34  ;;  %11210 = vmatpush.bf16.msrb.mxu0 %v18898_v22  ;;  %v18949_v34 = vld [vmem:[%s25551_s9 + $0x398] sm:$0xff] }
 0x8b3   : > { %11228 = vmatpush.bf16.msrb.mxu1 %v18906_v30  ;;  %11794 = vmatpush.bf16.msrb.mxu2 %v18950_v26  ;;  %v11667_v26 = vor.u32 %v11666_v63, %v11662_v53 }
 0x8b5   : > { %11810 = vmatpush.bf16.msrb.mxu3 %v18960_v57  ;;  %11211 = vmatpush.bf16.msrb.mxu0 %v18897_v17  ;;  %v18955_v57 = vld [vmem:[%s25551_s9 + $0x3c8] sm:$0xff] }
 0x8b6   : > { %10811 = vmatmul.bf16.vlgmr.msra.gmra.mxu0 %v10699_v24  ;;  %10829 = vmatmul.bf16.vlgmr.msra.gmra.mxu1 %v10702_v42  ;;  %v11678_v24 = vrot.slane %v11676_v48, 1  ;;  %v11681_v42 = vshll.u32 %v24996_v3, 16  ;;  %v18966_v48 = vld [vmem:[%s25551_s9 + $0x420] sm:$0xff] }
 0x8b7   : > { %11229 = vmatpush.bf16.msrb.mxu1 %v18905_v47  ;;  %11795 = vmatpush.bf16.msrb.mxu2 %v18949_v34 }
 0x8b8   : > { %11397 = vmatmul.bf16.vlgmr.msra.gmra.mxu2 %v11285_v52  ;;  %11415 = vmatmul.bf16.vlgmr.msra.gmra.mxu3 %v11288_v25  ;;  %v18932_v52 = vld [vmem:[%s25551_s9 + $0x320] sm:$0xff]  ;;  %v11683_v47 = vrot.slane %v11681_v42, 1 }
 0x8b9   : > { %11811 = vmatpush.bf16.msrb.mxu3 %v18959_v43  ;;  %11212 = vmatpush.bf16.msrb.mxu0 %v18896_v12  ;;  %v11674_v43 = vshrl.u32 %v11658_v60, 16  ;;  %v18940_v25 = vld [vmem:[%s25551_s9 + $0x360] sm:$0xff]  ;;  %v18939_v12 = vld [vmem:[%s25551_s9 + $0x358] sm:$0xff] }
 0x8ba   : > { %v18969_v60 = vld [vmem:[%s25551_s9 + $0x438] sm:$0xff] }
 0x8bb   : > { %11230 = vmatpush.bf16.msrb.mxu1 %v18904_v6  ;;  %11796 = vmatpush.bf16.msrb.mxu2 %v18948_v21  ;;  %v11679_v17 = vor.u32 %v11678_v24, %v11674_v43  ;;  %v18938_v21 = vld [vmem:[%s25551_s9 + $0x350] sm:$0xff]  ;;  %v11468_v24 = vpack.c.b16 %v11464_v46, %v11464_v46 }
 0x8bd   : > { %11812 = vmatpush.bf16.msrb.mxu3 %v18958_v5  ;;  %11569 = vmatpush.bf16.msra.mxu0 %v18935_v0  ;;  %v11671_v5 = vrot.slane %v11669_v45, 1  ;;  %v11684_v16 = vsel %vm1427_vm1, %v11679_v17, %v11683_v47  ;;  %v18937_v0 = vld [vmem:[%s25551_s9 + $0x348] sm:$0xff]  ;;  %v11467_v45 = vpack.c.b16 %v11463_v15, %v11463_v15  ;;  %v18985_v15 = vld [vmem:[%s25553_s11 + $0x38] sm:$0xff] }
 0x8bf   : > { %11587 = vmatpush.bf16.msra.mxu1 %v18943_v56  ;;  %11797 = vmatpush.bf16.msrb.mxu2 %v18947_v14  ;;  %v11672_v6 = vsel %vm1427_vm1, %v11667_v26, %v11671_v5  ;;  %v11685_v56 = vshrl.u32 %v24988_v19, 16  ;;  %v18936_v14 = vld [vmem:[%s25551_s9 + $0x340] sm:$0xff] }
 0x8c1   : > { %11813 = vmatpush.bf16.msrb.mxu3 %v18957_v62 }
 0x8c3   : > { %11588 = vmatpush.bf16.msra.mxu1 %v18942_v58  ;;  %11798 = vmatpush.bf16.msrb.mxu2 %v18946_v10 }
 0x8c5   : > { %11814 = vmatpush.bf16.msrb.mxu3 %v18956_v13  ;;  %v18929_v13 = vld [vmem:[%s25551_s9 + $0x308] sm:$0xff] }
 0x8c6   : > { %10816 = vmatmul.bf16.gmra.mxu0 %v10698_v37  ;;  %10834 = vmatmul.bf16.gmra.mxu1 %v10701_v35  ;;  %v18934_v37 = vld [vmem:[%s25551_s9 + $0x330] sm:$0xff]  ;;  %v11078_v35 = vshll.u32 %v11071_v61, 16  ;;  %v11688_v61 = vshrl.u32 %v24996_v3, 16 }
 0x8c7   : > { %11570 = vmatpush.bf16.msra.mxu0 %v18934_v37  ;;  %11589 = vmatpush.bf16.msra.mxu1 %v18941_v33  ;;  %v18977_v37 = vld [vmem:[%s25551_s9 + $0x478] sm:$0xff]  ;;  %v18964_v33 = vld [vmem:[%s25551_s9 + $0x410] sm:$0xff] }
 0x8c8   : > { %11402 = vmatmul.bf16.gmra.mxu2 %v11284_v31  ;;  %11420 = vmatmul.bf16.gmra.mxu3 %v11287_v29  ;;  %v11080_v31 = vrot.slane %v11078_v35, 1  ;;  %v11092_v29 = vrot.slane %v11090_v28, 1  ;;  %v11104_v35 = vor.u32 %v11102_v44, %v11097_v59  ;;  %v11687_v28 = vor.u32 %v11685_v56, %v11671_v5 }
 0x8c9   : > { %11815 = vmatpush.bf16.msrb.mxu3 %v18955_v57  ;;  %v11099_v57 = vshrl.u32 %v24972_v2, 16  ;;  %v11690_v10 = vor.u32 %v11688_v61, %v11683_v47  ;;  %v18968_v2 = vld [vmem:[%s25551_s9 + $0x430] sm:$0xff] }
 0x8ca   : > { %v11081_v22 = vor.u32 %v11080_v31, %v11076_v1  ;;  %v11093_v30 = vor.u32 %v11092_v29, %v11088_v23  ;;  %v18972_v31 = vld [vmem:[%s25551_s9 + $0x450] sm:$0xff] }
 0x8cb   : > { %11571 = vmatpush.bf16.msra.mxu0 %v18933_v11  ;;  %11590 = vmatpush.bf16.msra.mxu1 %v18940_v25  ;;  %v11101_v58 = vor.u32 %v11099_v57, %v11085_v49  ;;  %v18973_v11 = vld [vmem:[%s25551_s9 + $0x458] sm:$0xff] }
 0x8cc   : > { %v11086_v34 = vsel %vm1427_vm1, %v11081_v22, %v11085_v49  ;;  %v11098_v62 = vsel %vm1427_vm1, %v11093_v30, %v11097_v59 }
 0x8cd   : > { %11816 = vmatpush.bf16.msrb.mxu3 %v18954_v41  ;;  %v18967_v41 = vld [vmem:[%s25551_s9 + $0x428] sm:$0xff] }
 0x8cf   : > { %11572 = vmatpush.bf16.msra.mxu0 %v18932_v52  ;;  %11591 = vmatpush.bf16.msra.mxu1 %v18939_v12 }
 0x8d1   : > { %12176 = vmatpush.bf16.msra.mxu3 %v18985_v15 }
 0x8d3   : > { %11573 = vmatpush.bf16.msra.mxu0 %v18931_v20  ;;  %11592 = vmatpush.bf16.msra.mxu1 %v18938_v21 }
 0x8d6   : > { %11213 = vmatmul.bf16.vlgmr.msrb.gmra.mxu0 %v11086_v34  ;;  %11231 = vmatmul.bf16.vlgmr.msrb.gmra.mxu1 %v11098_v62 }
 0x8d7   : > { %11574 = vmatpush.bf16.msra.mxu0 %v18930_v8  ;;  %11593 = vmatpush.bf16.msra.mxu1 %v18937_v0 }
 0x8d8   : > { %11799 = vmatmul.bf16.vlgmr.msrb.gmra.mxu2 %v11672_v6  ;;  %11817 = vmatmul.bf16.vlgmr.msrb.gmra.mxu3 %v11684_v16 }
 0x8db   : > { %11575 = vmatpush.bf16.msra.mxu0 %v18929_v13  ;;  %11594 = vmatpush.bf16.msra.mxu1 %v18936_v14 }
 0x8df   : > { %11576 = vmatpush.bf16.msra.mxu0 %v18928_v38  ;;  %11993 = vmatpush.bf16.msrb.mxu1 %v18977_v37 }
 0x8e3   : > { %11975 = vmatpush.bf16.msrb.mxu0 %v18969_v60  ;;  %11994 = vmatpush.bf16.msrb.mxu1 %v18976_v18 }
 0x8e6   : > { %11218 = vmatmul.bf16.gmra.mxu0 %v11101_v58  ;;  %11236 = vmatmul.bf16.gmra.mxu1 %v11104_v35 }
 0x8e7   : > { %11976 = vmatpush.bf16.msrb.mxu0 %v18968_v2  ;;  %11995 = vmatpush.bf16.msrb.mxu1 %v18975_v55 }
 0x8e8   : > { %11804 = vmatmul.bf16.gmra.mxu2 %v11687_v28  ;;  %11822 = vmatmul.bf16.gmra.mxu3 %v11690_v10 }
 0x8eb   : > { %11977 = vmatpush.bf16.msrb.mxu0 %v18967_v41  ;;  %11996 = vmatpush.bf16.msrb.mxu1 %v18974_v40 }
 0x8ef   : > { %11978 = vmatpush.bf16.msrb.mxu0 %v18966_v48  ;;  %11997 = vmatpush.bf16.msrb.mxu1 %v18973_v11 }
 0x8f3   : > { %11979 = vmatpush.bf16.msrb.mxu0 %v18965_v51  ;;  %11998 = vmatpush.bf16.msrb.mxu1 %v18972_v31 }
 0x8f6   : > { %11577 = vmatmul.bf16.vlgmr.msra.gmra.mxu0 %v11465_v50  ;;  %11595 = vmatmul.bf16.vlgmr.msra.gmra.mxu1 %v11466_v39  ;;  %v18962_v50 = vld [vmem:[%s25551_s9 + $0x400] sm:$0xff] }
 0x8f7   : > { %11980 = vmatpush.bf16.msrb.mxu0 %v18964_v33  ;;  %11999 = vmatpush.bf16.msrb.mxu1 %v18971_v36  ;;  %v18970_v39 = vld [vmem:[%s25551_s9 + $0x440] sm:$0xff]  ;;  %v18993_v36 = vld [vmem:[%s25553_s11 + $0x78] sm:$0xff] }
 0x8f8   : > { %12115 = vmatpush.bf16.msra.mxu2 %v18993_v36 }
 0x8fb   : > { %v10631_v29 = vpop.f32.mrf.mxu2  ;;  %v10649_v63 = vpop.f32.mrf.mxu3  ;;  %11981 = vmatpush.bf16.msrb.mxu0 %v18963_v9  ;;  %12000 = vmatpush.bf16.msrb.mxu1 %v18970_v39 }
 0x8ff   : > { %11982 = vmatpush.bf16.msrb.mxu0 %v18962_v50 }
 0x903   : > { %v10633_v42 = vpop.f32.mrf.mxu2  ;;  %v10651_v1 = vpop.f32.mrf.mxu3 }
 0x906   : > { %11582 = vmatmul.bf16.gmra.mxu0 %v11467_v45  ;;  %11600 = vmatmul.bf16.gmra.mxu1 %v11468_v24  ;;  %v18992_v45 = vld [vmem:[%s25553_s11 + $0x70] sm:$0xff] }
 0x907   : > { %12116 = vmatpush.bf16.msra.mxu2 %v18992_v45  ;;  %v18994_v45 = vld [vmem:[%s25553_s11 + $0x80] sm:$0xff] }
 0x90b   : > { %v10636_v23 = vpop.f32.mrf.mxu2  ;;  %v10654_v54 = vpop.f32.mrf.mxu3 }
 0x913   : > { %v10493_v49 = vpop.f32.mrf.mxu0  ;;  %v10511_v59 = vpop.f32.mrf.mxu1 }
 0x914   : > { %v10512_v53 = vadd.f32 %v10511_v59, %v10493_v49  ;;  %v10638_v43 = vpop.f32.mrf.mxu2  ;;  %v10656_v52 = vpop.f32.mrf.mxu3  ;;  %v18991_v59 = vld [vmem:[%s25553_s11 + $0x68] sm:$0xff] }
 0x915   : > { %v19001_v43 = vld [vmem:[%s25553_s11 + $0xb8] sm:$0xff]  ;;  %12117 = vmatpush.bf16.msra.mxu2 %v18991_v59 }
 0x916   : > { %v10632_v25 = vadd.f32 %v10631_v29, %v10512_v53  ;;  %11983 = vmatmul.bf16.vlgmr.msrb.gmra.mxu0 %v25021_v7  ;;  %12001 = vmatmul.bf16.vlgmr.msrb.gmra.mxu1 %v25026_v27  ;;  %v18984_v53 = vld [vmem:[%s25553_s11 + $0x30] sm:$0xff]  ;;  %v19009_v52 = vld [vmem:[%s25553_s11 + $0xf8] sm:$0xff] }
 0x917   : > { %12177 = vmatpush.bf16.msra.mxu3 %v18984_v53  ;;  %12256 = vmatpush.bf16.msra.mxu0 %v19001_v43  ;;  %v19041_v59 = vld [vmem:[%s25553_s11 + $0x1f8] sm:$0xff]  ;;  %v19032_v43 = vld [vmem:[%s25553_s11 + $0x1b0] sm:$0xff] }
 0x918   : > { %v10650_v22 = vadd.f32 %v10649_v63, %v10632_v25  ;;  %12335 = vmatpush.bf16.msra.mxu1 %v19009_v52  ;;  %v19013_v53 = vld [vmem:[%s25553_s11 + $0x118] sm:$0xff]  ;;  %v19022_v52 = vld [vmem:[%s25553_s11 + $0x160] sm:$0xff] }
 0x91b   : > { %v10495_v30 = vpop.f32.mrf.mxu0  ;;  %v10513_v26 = vpop.f32.mrf.mxu1 }
 0x91c   : > { %v10514_v5 = vadd.f32 %v10513_v26, %v10495_v30  ;;  %v10992_v17 = vpop.f32.mrf.mxu2  ;;  %v11010_v47 = vpop.f32.mrf.mxu3  ;;  %v18983_v30 = vld [vmem:[%s25553_s11 + $0x28] sm:$0xff] }
 0x91d   : > { %v11011_v34 = vadd.f32 %v11010_v47, %v10992_v17  ;;  %12178 = vmatpush.bf16.msra.mxu3 %v18983_v30  ;;  %v19012_v30 = vld [vmem:[%s25553_s11 + $0x110] sm:$0xff] }
 0x91e   : > { %v10634_v62 = vadd.f32 %v10633_v42, %v10514_v5 }
 0x920   : > { %v10652_v20 = vadd.f32 %v10651_v1, %v10634_v62 }
 0x923   : > { %v10498_v12 = vpop.f32.mrf.mxu0  ;;  %v10516_v6 = vpop.f32.mrf.mxu1 }
 0x924   : > { %v10517_v16 = vadd.f32 %v10516_v6, %v10498_v12  ;;  %v10994_v8 = vpop.f32.mrf.mxu2  ;;  %v11012_v21 = vpop.f32.mrf.mxu3  ;;  %v19000_v12 = vld [vmem:[%s25553_s11 + $0xb0] sm:$0xff]  ;;  %v18982_v6 = vld [vmem:[%s25553_s11 + $0x20] sm:$0xff] }
 0x925   : > { %v11013_v13 = vadd.f32 %v11012_v21, %v10994_v8  ;;  %12257 = vmatpush.bf16.msra.mxu0 %v19000_v12  ;;  %v18988_v21 = vld [vmem:[%s25553_s11 + $0x50] sm:$0xff]  ;;  %12179 = vmatpush.bf16.msra.mxu3 %v18982_v6  ;;  %v19039_v12 = vld [vmem:[%s25553_s11 + $0x1e8] sm:$0xff] }
 0x926   : > { %v10637_v0 = vadd.f32 %v10636_v23, %v10517_v16  ;;  %11988 = vmatmul.bf16.gmra.mxu0 %v11870_v32  ;;  %12006 = vmatmul.bf16.gmra.mxu1 %v11873_v4  ;;  %v19008_v16 = vld [vmem:[%s25553_s11 + $0xf0] sm:$0xff]  ;;  %v19011_v6 = vld [vmem:[%s25553_s11 + $0x108] sm:$0xff] }
 0x927   : > { %12336 = vmatpush.bf16.msra.mxu1 %v19008_v16  ;;  %v19030_v16 = vld [vmem:[%s25553_s11 + $0x1a0] sm:$0xff] }
 0x928   : > { %v10655_v7 = vadd.f32 %v10654_v54, %v10637_v0  ;;  %v18981_v0 = vld [vmem:[%s25553_s11 + $0x18] sm:$0xff] }
 0x929   : > { %12180 = vmatpush.bf16.msra.mxu3 %v18981_v0  ;;  %v19020_v0 = vld [vmem:[%s25553_s11 + $0x150] sm:$0xff] }
 0x92b   : > { %v10500_v27 = vpop.f32.mrf.mxu0  ;;  %v10518_v56 = vpop.f32.mrf.mxu1 }
 0x92c   : > { %v10997_v61 = vpop.f32.mrf.mxu2  ;;  %v11015_v38 = vpop.f32.mrf.mxu3 }
 0x92d   : > { %v11016_v14 = vadd.f32 %v11015_v38, %v10997_v61 }
 0x933   : > { %v10812_v57 = vpop.f32.mrf.mxu0  ;;  %v10830_v44 = vpop.f32.mrf.mxu1 }
 0x934   : > { %v10831_v60 = vadd.f32 %v10830_v44, %v10812_v57  ;;  %v10999_v37 = vpop.f32.mrf.mxu2  ;;  %v11017_v58 = vpop.f32.mrf.mxu3  ;;  %v18987_v44 = vld [vmem:[%s25553_s11 + $0x48] sm:$0xff] }
 0x935   : > { %v18980_v58 = vld [vmem:[%s25553_s11 + $0x10] sm:$0xff] }
 0x936   : > { %v10839_v35 = vadd.f32 %v10831_v60, %v10650_v22  ;;  %v18990_v22 = vld [vmem:[%s25553_s11 + $0x60] sm:$0xff]  ;;  %12181 = vmatpush.bf16.msra.mxu3 %v18980_v58  ;;  %v19037_v58 = vld [vmem:[%s25553_s11 + $0x1d8] sm:$0xff] }
 0x937   : > { %12118 = vmatpush.bf16.msra.mxu2 %v18990_v22  ;;  %v18998_v60 = vld [vmem:[%s25553_s11 + $0xa0] sm:$0xff]  ;;  %v19040_v22 = vld [vmem:[%s25553_s11 + $0x1f0] sm:$0xff] }
 0x938   : > { %v11019_v28 = vadd.f32 %v11011_v34, %v10839_v35  ;;  %v19006_v35 = vld [vmem:[%s25553_s11 + $0xe0] sm:$0xff] }
 0x93b   : > { %v10814_v10 = vpop.f32.mrf.mxu0  ;;  %v10832_v2 = vpop.f32.mrf.mxu1 }
 0x93c   : > { %v10833_v19 = vadd.f32 %v10832_v2, %v10814_v10  ;;  %v11398_v32 = vpop.f32.mrf.mxu2  ;;  %v11416_v18 = vpop.f32.mrf.mxu3  ;;  %v18997_v10 = vld [vmem:[%s25553_s11 + $0x98] sm:$0xff] }
 0x93d   : > { %v11417_v3 = vadd.f32 %v11416_v18, %v11398_v32  ;;  %v19017_v2 = vld [vmem:[%s25553_s11 + $0x138] sm:$0xff] }
 0x93e   : > { %v10840_v4 = vadd.f32 %v10833_v19, %v10652_v20  ;;  %v18989_v20 = vld [vmem:[%s25553_s11 + $0x58] sm:$0xff]  ;;  %v18979_v19 = vld [vmem:[%s25553_s11 + $0x8] sm:$0xff] }
 0x93f   : > { %12119 = vmatpush.bf16.msra.mxu2 %v18989_v20  ;;  %v19005_v32 = vld [vmem:[%s25553_s11 + $0xd8] sm:$0xff]  ;;  %12182 = vmatpush.bf16.msra.mxu3 %v18979_v19  ;;  %v19018_v19 = vld [vmem:[%s25553_s11 + $0x140] sm:$0xff] }
 0x940   : > { %v11020_v41 = vadd.f32 %v11013_v13, %v10840_v4  ;;  %v18999_v13 = vld [vmem:[%s25553_s11 + $0xa8] sm:$0xff]  ;;  %v19021_v20 = vld [vmem:[%s25553_s11 + $0x158] sm:$0xff] }
 0x941   : > { %12258 = vmatpush.bf16.msra.mxu0 %v18999_v13 }
 0x943   : > { %v10817_v55 = vpop.f32.mrf.mxu0  ;;  %v10835_v48 = vpop.f32.mrf.mxu1  ;;  %12120 = vmatpush.bf16.msra.mxu2 %v18988_v21 }
 0x944   : > { %v10836_v40 = vadd.f32 %v10835_v48, %v10817_v55  ;;  %v11400_v51 = vpop.f32.mrf.mxu2  ;;  %v11418_v11 = vpop.f32.mrf.mxu3  ;;  %v18996_v55 = vld [vmem:[%s25553_s11 + $0x90] sm:$0xff] }
 0x945   : > { %v11419_v33 = vadd.f32 %v11418_v11, %v11400_v51  ;;  %12259 = vmatpush.bf16.msra.mxu0 %v18998_v60  ;;  %v19016_v48 = vld [vmem:[%s25553_s11 + $0x130] sm:$0xff]  ;;  %v19025_v11 = vld [vmem:[%s25553_s11 + $0x178] sm:$0xff]  ;;  %v19019_v60 = vld [vmem:[%s25553_s11 + $0x148] sm:$0xff] }
 0x946   : > { %v10841_v31 = vadd.f32 %v10836_v40, %v10655_v7  ;;  %v19007_v7 = vld [vmem:[%s25553_s11 + $0xe8] sm:$0xff]  ;;  %v18978_v40 = vld [vmem:[%s25553_s11] sm:$0xff]  ;;  %v19004_v51 = vld [vmem:[%s25553_s11 + $0xd0] sm:$0xff] }
 0x947   : > { %12337 = vmatpush.bf16.msra.mxu1 %v19007_v7  ;;  %12121 = vmatpush.bf16.msra.mxu2 %v18987_v44  ;;  %v19038_v7 = vld [vmem:[%s25553_s11 + $0x1e0] sm:$0xff] }
 0x948   : > { %v11021_v29 = vadd.f32 %v11016_v14, %v10841_v31  ;;  %v19015_v31 = vld [vmem:[%s25553_s11 + $0x128] sm:$0xff]  ;;  %12183 = vmatpush.bf16.msra.mxu3 %v18978_v40  ;;  %v19208_v44 = vld [vmem:[%s25552_s10] ss:$0 sm:$0xff] }
 0x949   : > { %12260 = vmatpush.bf16.msra.mxu0 %v18997_v10 }
 0x94b   : > { %v10819_v63 = vpop.f32.mrf.mxu0  ;;  %v10837_v9 = vpop.f32.mrf.mxu1  ;;  %12338 = vmatpush.bf16.msra.mxu1 %v19006_v35  ;;  %v19028_v35 = vld [vmem:[%s25553_s11 + $0x190] sm:$0xff] }
 0x94c   : > { %v11403_v46 = vpop.f32.mrf.mxu2  ;;  %v11421_v50 = vpop.f32.mrf.mxu3  ;;  %12502 = vmatpush.bf16.msrb.mxu3 %v19025_v11 }
 0x94d   : > { %v11422_v39 = vadd.f32 %v11421_v50, %v11403_v46  ;;  %12261 = vmatpush.bf16.msra.mxu0 %v18996_v55 }
 0x94f   : > { %12339 = vmatpush.bf16.msra.mxu1 %v19005_v32  ;;  %v19036_v32 = vld [vmem:[%s25553_s11 + $0x1d0] sm:$0xff] }
 0x953   : > { %v11214_v24 = vpop.f32.mrf.mxu0  ;;  %v11232_v42 = vpop.f32.mrf.mxu1  ;;  %12340 = vmatpush.bf16.msra.mxu1 %v19004_v51 }
 0x954   : > { %v11233_v1 = vadd.f32 %v11232_v42, %v11214_v24  ;;  %v11405_v23 = vpop.f32.mrf.mxu2  ;;  %v11423_v54 = vpop.f32.mrf.mxu3  ;;  %v19014_v24 = vld [vmem:[%s25553_s11 + $0x120] sm:$0xff] }
 0x955   : > { %v19033_v23 = vld [vmem:[%s25553_s11 + $0x1b8] sm:$0xff]  ;;  %v19002_v54 = vld [vmem:[%s25553_s11 + $0xc0] sm:$0xff] }
 0x956   : > { %v11241_v49 = vadd.f32 %v11233_v1, %v11019_v28  ;;  %v18986_v28 = vld [vmem:[%s25553_s11 + $0x40] sm:$0xff] }
 0x957   : > { %12122 = vmatpush.bf16.msra.mxu2 %v18986_v28 }
 0x958   : > { %v25247_v25 = vadd.f32 %v11417_v3, %v11241_v49  ;;  %v19023_v49 = vld [vmem:[%s25553_s11 + $0x168] sm:$0xff] }
 0x95b   : > { %v11216_v26 = vpop.f32.mrf.mxu0  ;;  %v11234_v5 = vpop.f32.mrf.mxu1  ;;  %12421 = vmatpush.bf16.msrb.mxu2 %v19017_v2 }
 0x95c   : > { %v11235_v17 = vadd.f32 %v11234_v5, %v11216_v26  ;;  %v25255_v47 = vpop.f32.mrf.mxu2  ;;  %v25257_v34 = vpop.f32.mrf.mxu3 }
 0x95d   : > { %v11819_v13 = vadd.f32 %v25257_v34, %v25255_v47 }
 0x95e   : > { %v11242_v62 = vadd.f32 %v11235_v17, %v11020_v41  ;;  %v19031_v17 = vld [vmem:[%s25553_s11 + $0x1a8] sm:$0xff] }
 0x95f   : > { %12422 = vmatpush.bf16.msrb.mxu2 %v19016_v48 }
 0x960   : > { %v25271_v8 = vadd.f32 %v11419_v33, %v11242_v62  ;;  %v18995_v33 = vld [vmem:[%s25553_s11 + $0x88] sm:$0xff] }
 0x961   : > { %12262 = vmatpush.bf16.msra.mxu0 %v18995_v33 }
 0x963   : > { %v11219_v27 = vpop.f32.mrf.mxu0  ;;  %v11237_v56 = vpop.f32.mrf.mxu1  ;;  %12423 = vmatpush.bf16.msrb.mxu2 %v19015_v31 }
 0x964   : > { %v11238_v61 = vadd.f32 %v11237_v56, %v11219_v27  ;;  %v25285_v38 = vpop.f32.mrf.mxu2  ;;  %v25287_v14 = vpop.f32.mrf.mxu3  ;;  %v19010_v27 = vld [vmem:[%s25553_s11 + $0x100] sm:$0xff] }
 0x965   : > { %12263 = vmatpush.bf16.msra.mxu0 %v18994_v45 }
 0x966   : > { %v11243_v57 = vadd.f32 %v11238_v61, %v11021_v29  ;;  %v19003_v29 = vld [vmem:[%s25553_s11 + $0xc8] sm:$0xff] }
 0x967   : > { %12341 = vmatpush.bf16.msra.mxu1 %v19003_v29  ;;  %12424 = vmatpush.bf16.msrb.mxu2 %v19014_v24 }
 0x968   : > { %v25295_v37 = vadd.f32 %v11422_v39, %v11243_v57  ;;  %v19024_v39 = vld [vmem:[%s25553_s11 + $0x170] sm:$0xff]  ;;  %v19029_v57 = vld [vmem:[%s25553_s11 + $0x198] sm:$0xff] }
 0x969   : > { %12503 = vmatpush.bf16.msrb.mxu3 %v19024_v39  ;;  %12581 = vmatpush.bf16.msrb.mxu0 %v19033_v23 }
 0x96b   : > { %v11221_v18 = vpop.f32.mrf.mxu0  ;;  %v11239_v3 = vpop.f32.mrf.mxu1  ;;  %12342 = vmatpush.bf16.msra.mxu1 %v19002_v54  ;;  %12425 = vmatpush.bf16.msrb.mxu2 %v19013_v53 }
 0x96c   : > { %v25318_v4 = vpop.f32.mrf.mxu2  ;;  %v25320_v41 = vpop.f32.mrf.mxu3  ;;  %v11821_v18 = vadd.f32 %v25287_v14, %v25285_v38  ;;  %v19027_v3 = vld [vmem:[%s25553_s11 + $0x188] sm:$0xff]  ;;  %v19026_v14 = vld [vmem:[%s25553_s11 + $0x180] sm:$0xff] }
 0x96d   : > { %12504 = vmatpush.bf16.msrb.mxu3 %v19023_v49  ;;  %12582 = vmatpush.bf16.msrb.mxu0 %v19032_v43  ;;  %v19035_v38 = vld [vmem:[%s25553_s11 + $0x1c8] sm:$0xff] }
 0x96e   : > { %v19047_v43 = vld [vmem:[%s25553_s11 + $0x228] sm:$0xff] }
 0x96f   : > { %12667 = vmatpush.bf16.msrb.mxu1 %v19041_v59  ;;  %12426 = vmatpush.bf16.msrb.mxu2 %v19012_v30 }
 0x971   : > { %12505 = vmatpush.bf16.msrb.mxu3 %v19022_v52  ;;  %12583 = vmatpush.bf16.msrb.mxu0 %v19031_v17  ;;  %v19046_v17 = vld [vmem:[%s25553_s11 + $0x220] sm:$0xff] }
 0x973   : > { %v11578_v63 = vpop.f32.mrf.mxu0  ;;  %v11596_v9 = vpop.f32.mrf.mxu1  ;;  %12668 = vmatpush.bf16.msrb.mxu1 %v19040_v22  ;;  %12427 = vmatpush.bf16.msrb.mxu2 %v19011_v6 }
 0x974   : > { %v11807_v36 = vpop.f32.mrf.mxu2  ;;  %v11825_v15 = vpop.f32.mrf.mxu3  ;;  %v11597_v62 = vadd.f32 %v11596_v9, %v11578_v63  ;;  %v11824_v9 = vadd.f32 %v25320_v41, %v25318_v4  ;;  %v19048_v41 = vld [vmem:[%s25553_s11 + $0x230] sm:$0xff] }
 0x975   : > { %12506 = vmatpush.bf16.msrb.mxu3 %v19021_v20  ;;  %12584 = vmatpush.bf16.msrb.mxu0 %v19030_v16 }
 0x976   : > { %v11605_v21 = vadd.f32 %v11597_v62, %v25247_v25 }
 0x977   : > { %12669 = vmatpush.bf16.msrb.mxu1 %v19039_v12  ;;  %12428 = vmatpush.bf16.msrb.mxu2 %v19010_v27  ;;  %v19045_v12 = vld [vmem:[%s25553_s11 + $0x218] sm:$0xff] }
 0x978   : > { %v11827_v47 = vadd.f32 %v11819_v13, %v11605_v21  ;;  %v19044_v21 = vld [vmem:[%s25553_s11 + $0x210] sm:$0xff]  ;;  %v19043_v13 = vld [vmem:[%s25553_s11 + $0x208] sm:$0xff]  ;;  %v19057_v27 = vld [vmem:[%s25555_s13 + $0x38] sm:$0xff] }
 0x979   : > { %12507 = vmatpush.bf16.msrb.mxu3 %v19020_v0  ;;  %12585 = vmatpush.bf16.msrb.mxu0 %v19029_v57  ;;  %v19042_v0 = vld [vmem:[%s25553_s11 + $0x200] sm:$0xff]  ;;  %v19053_v57 = vld [vmem:[%s25555_s13 + $0x18] sm:$0xff] }
 0x97b   : > { %v11580_v46 = vpop.f32.mrf.mxu0  ;;  %v11598_v50 = vpop.f32.mrf.mxu1  ;;  %12670 = vmatpush.bf16.msrb.mxu1 %v19038_v7 }
 0x97c   : > { %v11599_v25 = vadd.f32 %v11598_v50, %v11580_v46  ;;  %v19049_v46 = vld [vmem:[%s25553_s11 + $0x238] sm:$0xff]  ;;  %v19034_v50 = vld [vmem:[%s25553_s11 + $0x1c0] sm:$0xff] }
 0x97d   : > { %12508 = vmatpush.bf16.msrb.mxu3 %v19019_v60  ;;  %12586 = vmatpush.bf16.msrb.mxu0 %v19028_v35  ;;  %v19052_v60 = vld [vmem:[%s25555_s13 + $0x10] sm:$0xff] }
 0x97e   : > { %v11606_v10 = vadd.f32 %v11599_v25, %v25271_v8  ;;  %v19056_v25 = vld [vmem:[%s25555_s13 + $0x30] sm:$0xff] }
 0x97f   : > { %12671 = vmatpush.bf16.msrb.mxu1 %v19037_v58 }
 0x980   : > { %v11828_v48 = vadd.f32 %v11821_v18, %v11606_v10  ;;  %v19050_v18 = vld [vmem:[%s25555_s13] sm:$0xff] }
 0x981   : > { %12509 = vmatpush.bf16.msrb.mxu3 %v19018_v19  ;;  %12587 = vmatpush.bf16.msrb.mxu0 %v19027_v3  ;;  %v19065_v3 = vld [vmem:[%s25557_s15 + $0x38] sm:$0xff] }
 0x983   : > { %v25355_v42 = vpop.f32.mrf.mxu0  ;;  %v25357_v1 = vpop.f32.mrf.mxu1  ;;  %12672 = vmatpush.bf16.msrb.mxu1 %v19036_v32 }
 0x984   : > { %v11602_v51 = vadd.f32 %v25357_v1, %v25355_v42 }
 0x985   : > { %12588 = vmatpush.bf16.msrb.mxu0 %v19026_v14 }
 0x986   : > { %v11607_v63 = vadd.f32 %v11602_v51, %v25295_v37 }
 0x987   : > { %12673 = vmatpush.bf16.msrb.mxu1 %v19035_v38 }
 0x988   : > { %v11829_v1 = vadd.f32 %v11824_v9, %v11607_v63  ;;  %v19062_v63 = vld [vmem:[%s25557_s15 + $0x20] sm:$0xff] }
 0x98b   : > { %v11585_v26 = vpop.f32.mrf.mxu0  ;;  %v11603_v5 = vpop.f32.mrf.mxu1  ;;  %12674 = vmatpush.bf16.msrb.mxu1 %v19034_v50 }
 0x993   : > { %v11984_v56 = vpop.f32.mrf.mxu0  ;;  %v12002_v61 = vpop.f32.mrf.mxu1 }
 0x994   : > { %v12003_v34 = vadd.f32 %v12002_v61, %v11984_v56  ;;  %v19055_v56 = vld [vmem:[%s25555_s13 + $0x28] sm:$0xff]  ;;  %v19054_v61 = vld [vmem:[%s25555_s13 + $0x20] sm:$0xff] }
 0x996   : > { %v12011_v28 = vadd.f32 %v12003_v34, %v11827_v47 }
 0x998   : > { %v12018_v2 = vadd.f32 %v19208_v44, %v12011_v28 }
 0x99a   : > { %v12021_v8 = vmax.f32 %v12018_v2, 0.0  ;;  %v19051_v2 = vld [vmem:[%s25555_s13 + $0x8] sm:$0xff] }
 0x99b   : > { %v11986_v55 = vpop.f32.mrf.mxu0  ;;  %v12004_v40 = vpop.f32.mrf.mxu1 }
 0x99c   : > { %v12024_v11 = vpack.c.bf16 %v12021_v8, %v12021_v8  ;;  %v12005_v33 = vadd.f32 %v12004_v40, %v11986_v55 }
 0x99e   : > { %v12061_v31 = vunpack.c.l.b16 %v12024_v11  ;;  %v12012_v29 = vadd.f32 %v12005_v33, %v11828_v48  ;;  %12184 = vmatmul.bf16.vlgmr.msra.gmra.mxu3 %v12024_v11  ;;  %v19064_v48 = vld [vmem:[%s25557_s15 + $0x30] sm:$0xff]  ;;  %v19063_v11 = vld [vmem:[%s25557_s15 + $0x28] sm:$0xff] }
 0x99f   : > { %12831 = vmatpush.bf16.msra.mxu3 %v19057_v27 }
 0x9a0   : > { %v12062_v36 = vpack.c.b16 %v12061_v31, %v12061_v31  ;;  %v12019_v15 = vadd.f32 %v19208_v44, %v12012_v29 }
 0x9a2   : > { %v12064_v39 = vshrl.u32 %v12062_v36, 16  ;;  %v12206_v45 = vrot.slane %v12062_v36, 1  ;;  %v12022_v24 = vmax.f32 %v12019_v15, 0.0  ;;  %v19061_v15 = vld [vmem:[%s25557_s15 + $0x18] sm:$0xff] }
 0x9a3   : > { %v11989_v42 = vpop.f32.mrf.mxu0  ;;  %v12007_v37 = vpop.f32.mrf.mxu1  ;;  %12832 = vmatpush.bf16.msra.mxu3 %v19056_v25 }
 0x9a4   : > { %v12025_v23 = vpack.c.bf16 %v12022_v24, %v12022_v24  ;;  %v12008_v4 = vadd.f32 %v12007_v37, %v11989_v42  ;;  %12123 = vmatmul.bf16.vlgmr.msra.gmra.mxu2 %v12064_v39  ;;  %12264 = vmatmul.bf16.vlgmr.msra.gmra.mxu0 %v12206_v45  ;;  %v19060_v39 = vld [vmem:[%s25557_s15 + $0x10] sm:$0xff]  ;;  %v12762_v42 = vld [vmem:[%s25554_s12] sm:$0x1] }
 0x9a5   : > { %12748 = vmatpush.bf16.msra.mxu2 %v19049_v46  ;;  %12911 = vmatpush.bf16.msra.mxu0 %v19065_v3 }
 0x9a6   : > { %v12367_v54 = vunpack.c.l.b16 %v12025_v23  ;;  %v12013_v49 = vadd.f32 %v12008_v4, %v11829_v1  ;;  %12343 = vmatmul.bf16.vlgmr.msra.gmra.mxu1 %v12025_v23 }
 0x9a7   : > { %12833 = vmatpush.bf16.msra.mxu3 %v19055_v56 }
 0x9a8   : > { %v12368_v59 = vpack.c.b16 %v12367_v54, %v12367_v54  ;;  %v12020_v53 = vadd.f32 %v19208_v44, %v12013_v49  ;;  %v19059_v54 = vld [vmem:[%s25557_s15 + $0x8] sm:$0xff]  ;;  %v19058_v49 = vld [vmem:[%s25557_s15] sm:$0xff] }
 0x9a9   : > { %12749 = vmatpush.bf16.msra.mxu2 %v19048_v41  ;;  %12912 = vmatpush.bf16.msra.mxu0 %v19064_v48 }
 0x9aa   : > { %v12023_v52 = vmax.f32 %v12020_v53, 0.0  ;;  %v12452_v26 = vrot.slane %v12368_v59, 1  ;;  %v12370_v6 = vshrl.u32 %v12368_v59, 16  ;;  %v12782_v59 = vld [vmem:[%s25556_s14] sm:$0x1] }
 0x9ab   : > { %v11991_v22 = vpop.f32.mrf.mxu0  ;;  %v12009_v30 = vpop.f32.mrf.mxu1  ;;  %12834 = vmatpush.bf16.msra.mxu3 %v19054_v61 }
 0x9ac   : > { %v12026_v5 = vpack.c.bf16 %v12023_v52, %v12023_v52 }
 0x9ad   : > { %12750 = vmatpush.bf16.msra.mxu2 %v19047_v43  ;;  %12913 = vmatpush.bf16.msra.mxu0 %v19063_v11 }
 0x9ae   : > { %v12613_v62 = vunpack.c.l.b16 %v12026_v5  ;;  %12510 = vmatmul.bf16.vlgmr.msrb.gmra.mxu3 %v12452_v26  ;;  %v12862_v26 = vld [vmem:[%s25558_s16] sm:$0x1] }
 0x9af   : > { %12835 = vmatpush.bf16.msra.mxu3 %v19053_v57 }
 0x9b0   : > { %v12614_v20 = vpack.c.b16 %v12613_v62, %v12613_v62 }
 0x9b1   : > { %12751 = vmatpush.bf16.msra.mxu2 %v19046_v17  ;;  %12914 = vmatpush.bf16.msra.mxu0 %v19062_v63 }
 0x9b2   : > { %v12616_v16 = vshrl.u32 %v12614_v20, 16  ;;  %v12698_v7 = vrot.slane %v12614_v20, 1 }
 0x9b3   : > { %12836 = vmatpush.bf16.msra.mxu3 %v19052_v60 }
 0x9b4   : > { %12429 = vmatmul.bf16.vlgmr.msrb.gmra.mxu2 %v12370_v6  ;;  %12589 = vmatmul.bf16.vlgmr.msrb.gmra.mxu0 %v12026_v5 }
 0x9b5   : > { %12752 = vmatpush.bf16.msra.mxu2 %v19045_v12  ;;  %12915 = vmatpush.bf16.msra.mxu0 %v19061_v15 }
 0x9b6   : > { %12675 = vmatmul.bf16.vlgmr.msrb.gmra.mxu1 %v12616_v16 }
 0x9b7   : > { %12837 = vmatpush.bf16.msra.mxu3 %v19051_v2 }
 0x9b9   : > { %12753 = vmatpush.bf16.msra.mxu2 %v19044_v21  ;;  %12916 = vmatpush.bf16.msra.mxu0 %v19060_v39 }
 0x9bb   : > { %12838 = vmatpush.bf16.msra.mxu3 %v19050_v18 }
 0x9bd   : > { %12754 = vmatpush.bf16.msra.mxu2 %v19043_v13  ;;  %12917 = vmatpush.bf16.msra.mxu0 %v19059_v54 }
 0x9c1   : > { %12755 = vmatpush.bf16.msra.mxu2 %v19042_v0  ;;  %12918 = vmatpush.bf16.msra.mxu0 %v19058_v49 }
 0x9c4   : > { %12756 = vmatmul.bf16.vlgmr.msra.gmra.mxu2 %v12698_v7 }
 0xa21   : > { %v12185_v47 = vpop.f32.mrf.mxu3  ;;  %v12265_v34 = vpop.f32.mrf.mxu0 }
 0xa23   : > { %v12344_v44 = vpop.f32.mrf.mxu1 }
 0xa27   : > { %v12124_v58 = vpop.f32.mrf.mxu2 }
 0xa28   : > { %v12186_v32 = vadd.f32 %v12185_v47, %v12124_v58 }
 0xa29   : > { %v12187_v35 = vpop.f32.mrf.mxu3  ;;  %v12267_v28 = vpop.f32.mrf.mxu0 }
 0xa2a   : > { %v12269_v51 = vadd.f32 %v12265_v34, %v12186_v32 }
 0xa2b   : > { %v12346_v10 = vpop.f32.mrf.mxu1 }
 0xa2c   : > { %v12348_v38 = vadd.f32 %v12344_v44, %v12269_v51 }
 0xa2f   : > { %v12126_v19 = vpop.f32.mrf.mxu2 }
 0xa31   : > { %v12511_v8 = vpop.f32.mrf.mxu3  ;;  %v12590_v55 = vpop.f32.mrf.mxu0 }
 0xa33   : > { %v12676_v40 = vpop.f32.mrf.mxu1 }
 0xa37   : > { %v12430_v33 = vpop.f32.mrf.mxu2 }
 0xa38   : > { %v12434_v29 = vadd.f32 %v12430_v33, %v12348_v38 }
 0xa39   : > { %v12513_v14 = vpop.f32.mrf.mxu3  ;;  %v12592_v31 = vpop.f32.mrf.mxu0 }
 0xa3a   : > { %v12515_v36 = vadd.f32 %v12511_v8, %v12434_v29 }
 0xa3b   : > { %v12678_v9 = vpop.f32.mrf.mxu1 }
 0xa3c   : > { %v12594_v50 = vadd.f32 %v12590_v55, %v12515_v36 }
 0xa3e   : > { %v12680_v45 = vadd.f32 %v12676_v40, %v12594_v50 }
 0xa3f   : > { %v12432_v46 = vpop.f32.mrf.mxu2 }
 0xa47   : > { %v12757_v24 = vpop.f32.mrf.mxu2 }
 0xa48   : > { %v12761_v37 = vadd.f32 %v12757_v24, %v12680_v45 }
 0xa4a   : > { %v12763_v1 = vadd.f32 %v12762_v42, %v12761_v37 }
 0xa4c   : > { %v12764_v23 = vmax.f32 %v12763_v1, 0.0 }
 0xa4e   : > { %v12765_v4 = vpack.c.bf16 %v12764_v23, %v12764_v23 }
 0xa4f   : > { %v12759_v41 = vpop.f32.mrf.mxu2 }
 0xa50   : > { %12839 = vmatmul.bf16.vlgmr.msra.gmra.mxu3 %v12765_v4 }
 0xad3   : > { %v12840_v53 = vpop.f32.mrf.mxu3 }
 0xad4   : > { %v12841_v43 = vadd.f32 %v12840_v53, %v12782_v59 }
 0xad6   : > { %v12844_v52 = vmax.f32 %v12841_v43, 0.0 }
 0xad8   : > { %v12845_v22 = vpack.c.bf16 %v12844_v52, %v12844_v52 }
 0xada   : > { %12919 = vmatmul.bf16.vlgmr.msra.gmra.mxu0 %v12845_v22 }
 0xadb   : > { %v12842_v30 = vpop.f32.mrf.mxu3 }
 0xb57   : > { %v12920_v5 = vpop.f32.mrf.mxu0 }
 0xb58   : > { %v12921_v17 = vadd.f32 %v12920_v5, %v12862_v26 }
 0xb5a   : > { %v12924_v62 = vperm.slane %v12921_v17, 0 }
 0xb5c   : > { %12925 = vst [vmem:[%s546_s18] sm:$0xff] %v12924_v62 }
 0xb5f   : > { %v12922_v20 = vpop.f32.mrf.mxu0 }
 0xb60 PF: > { %s25770_s19 = sld [smem:[#allocation12_spill]] }
 0xb66   : > { %s27_s24 = sadd.s32 1, %s25770_s19  }
 0xb67   : > { %p24_p4 = scmp.ge.s32.totalorder %s27_s24, 4  }
 0xb69   :  { %26 = sbr.rel (!%p24_p4) target bundleno = 3 (0x3), region = 250 }

</bundles_post_ra>
